<compile_context>
chip_gen: v7x
topology: tpu7x:2x2x1
jax: 0.10.0
libtpu: 0.0.40
codegen_flags: <defaults>
</compile_context>

<pallas_src>
import functools

import numpy as np
import jax
import jax.numpy as jnp
from jax.experimental import pallas as pl
from jax.experimental.pallas import tpu as pltpu

_LANE = 128


def _round_up(n, m):
    return -(-n // m) * m


def _gelu_tanh(x):
    c = 0.7978845608028654  # sqrt(2/pi)
    return 0.5 * x * (1.0 + jnp.tanh(c * (x + 0.044715 * x * x * x)))


# ----------------------------------------------------------------------------
# fused per-batch block kernel
# ----------------------------------------------------------------------------
def _caterpillar_block_kernel(x_ref, mcat_ref, khw_ref, f2_ref, gbc_ref, vec_ref,
                              w1_ref, b1_ref, w2_ref, o_ref, *,
                              c_real, c_pad, height, width):
    f32 = jnp.float32
    hw = height * width
    x = x_ref[0]                     # (HW, Cp) f32, padded channels are exactly 0
    vecs = vec_ref[...]              # (10, Cp) f32 packed per-channel vectors

    # ---- reflect-shift boundary masks (step == 1), flattened index i = h*W + w ----
    row = jax.lax.broadcasted_iota(jnp.int32, (hw, 1), 0)
    wcol = row % width
    m_last_h = row >= (height - 1) * width
    m_first_h = row < width
    m_w0 = wcol == 0
    m_wlast = wcol == width - 1

    def reflect_shift(blk, s_main, s_fix, fix_mask):
        # circular roll along the flattened-spatial (sublane) axis + reflect boundary fix-up
        main = pltpu.roll(blk, s_main % hw, 0)
        fix = pltpu.roll(blk, s_fix % hw, 0)
        return jnp.where(fix_mask, fix, main)

    # ---------------- localMix: BN -> GELU -> proj@fuse (one dot) -> shifted sum --------
    z = _gelu_tanh(x * vecs[0:1] + vecs[1:2])            # folded BN1 + GELU
    zb = z.astype(jnp.bfloat16)
    t = jnp.dot(zb, mcat_ref[...], preferred_element_type=f32)     # (HW, 4*Cp), N=512
    loc = (reflect_shift(t[:, 0 * c_pad:1 * c_pad], -width, width, m_last_h)    # top
           + reflect_shift(t[:, 1 * c_pad:2 * c_pad], width, -width, m_first_h)  # bottom
           + reflect_shift(t[:, 2 * c_pad:3 * c_pad], 1, -1, m_w0)                # right
           + reflect_shift(t[:, 3 * c_pad:4 * c_pad], -1, 1, m_wlast)             # left
           + vecs[2:3])                                   # combined local bias

    # ---------------- globalMix: BN -> GELU -> stacked H/W mix -> single K=3Cp fuse -----
    a = _gelu_tanh(loc * vecs[3:4] + vecs[4:5])           # folded BN2 + GELU
    ab = a.astype(jnp.bfloat16)
    xhw = jnp.dot(khw_ref[...], ab, preferred_element_type=f32)    # (2*HW, Cp), M=512
    cat = jnp.concatenate([ab,
                           xhw[:hw].astype(jnp.bfloat16),
                           xhw[hw:].astype(jnp.bfloat16)], axis=-1)  # (HW, 3*Cp)
    gbc = gbc_ref[...]                                    # (HW, 2) rank-1 spatial bias cols
    glob = (jnp.dot(cat, f2_ref[...], preferred_element_type=f32)
            + gbc[:, 0:1] * vecs[8:9] + gbc[:, 1:2] * vecs[9:10])
    x1 = x + glob                                         # residual 1 (drop_path = identity)

    # ---------------- channelMix: LayerNorm(C) -> fc1 -> GELU -> fc2 --------------------
    inv_c = 1.0 / float(c_real)
    mu = jnp.sum(x1, axis=-1, keepdims=True) * inv_c      # padded channels are exactly 0
    d = x1 - mu
    var = (jnp.sum(d * d, axis=-1, keepdims=True)
           - float(c_pad - c_real) * mu * mu) * inv_c     # remove padded-channel contribution
    xn = d * jax.lax.rsqrt(var + 1e-5)
    xn = xn * vecs[5:6] + vecs[6:7]                       # LN gamma/beta (padded -> 0)
    h = _gelu_tanh(jnp.dot(xn.astype(jnp.bfloat16), w1_ref[...],
                           preferred_element_type=f32) + b1_ref[...])
    y = jnp.dot(h.astype(jnp.bfloat16), w2_ref[...],
                preferred_element_type=f32) + vecs[7:8]
    o_ref[0] = x1 + y                                     # residual 2


# ----------------------------------------------------------------------------
# parameter preparation (done once, outside the kernel)
# ----------------------------------------------------------------------------
def pack_block_params(p, *, C, H, W, step):
    """Fold / pad the raw per-layer parameters into the tensors the fused kernel consumes."""
    assert step == 1, "roll-based reflect shifts currently require step == 1"
    Cp = _round_up(C, _LANE)
    Hp = _round_up(3 * C, _LANE)
    C4 = C // 4

    def fold_bn(bn):
        gamma, beta, mean, var = bn
        scale = gamma / jnp.sqrt(var + 1e-5)
        return scale, beta - mean * scale

    def padc(v, n):
        return jnp.pad(v, (0, n - v.shape[0]))

    def padm(m, r, c):
        return jnp.pad(m, ((0, r - m.shape[0]), (0, c - m.shape[1])))

    # ---- localMix: combine proj_g @ fuse_slice_g into one (Cp, 4Cp) matrix + bias ----
    bn1_s, bn1_b = fold_bn(p["bn1"])
    fuse1_w, fuse1_b = p["fuse1"]                         # (C, C), (C,)
    m_list, b_loc = [], fuse1_b
    for g, name in enumerate(("proj_t", "proj_b", "proj_r", "proj_l")):  # cat order t,b,r,l
        pw, pb = p[name]                                  # (C, C4), (C4,)
        fg = fuse1_w[g * C4:(g + 1) * C4, :]              # (C4, C)
        m_list.append(padm(pw @ fg, Cp, Cp))
        b_loc = b_loc + pb @ fg
    mcat = jnp.concatenate(m_list, axis=1).astype(jnp.bfloat16)   # (Cp, 4*Cp)

    # ---- globalMix: stacked H/W mixers, single fuse matrix, rank-1 spatial bias ----
    bn2_s, bn2_b = fold_bn(p["bn2"])
    wh, bh = p["proj_h"]                                  # mixes along W
    ww, bw = p["proj_w"]                                  # mixes along H
    i_h = np.eye(H, dtype=np.float32)
    i_w = np.eye(W, dtype=np.float32)
    k_h = np.kron(i_h, np.asarray(wh, np.float32))        # (HW, HW)
    k_w = np.kron(np.asarray(ww, np.float32), i_w)        # (HW, HW)
    khw = jnp.asarray(np.concatenate([k_h, k_w], axis=0), jnp.bfloat16)   # (2*HW, HW)

    fuse2_w = p["fuse2"]                                  # (3C, C), no bias
    f2_blocks = [padm(fuse2_w[i * C:(i + 1) * C, :], Cp, Cp) for i in range(3)]
    f2s = jnp.concatenate(f2_blocks, axis=0).astype(jnp.bfloat16)          # (3*Cp, Cp)
    s_h = jnp.sum(f2_blocks[1], axis=0)                   # (Cp,)  column sums (padded -> 0)
    s_w = jnp.sum(f2_blocks[2], axis=0)                   # (Cp,)
    bh_flat = jnp.tile(jnp.asarray(bh, jnp.float32), (H,))        # bh_flat[h*W + v] = bh[v]
    bw_flat = jnp.repeat(jnp.asarray(bw, jnp.float32), W)         # bw_flat[u*W + w] = bw[u]
    gbc = jnp.stack([bh_flat, bw_flat], axis=1).astype(jnp.float32)        # (HW, 2)

    # ---- channelMix ----
    ln_g, ln_b = p["ln"]
    w1, b1 = p["fc1"]                                     # (C, 3C), (3C,)
    w2, b2 = p["fc2"]                                     # (3C, C), (C,)

    vecs = jnp.stack([padc(bn1_s, Cp), padc(bn1_b, Cp), padc(b_loc, Cp),
                      padc(bn2_s, Cp), padc(bn2_b, Cp),
                      padc(ln_g, Cp), padc(ln_b, Cp),
                      padc(b2, Cp), s_h, s_w]).astype(jnp.float32)  # (10, Cp)

    return dict(C=C, Cp=Cp, Hp=Hp, H=H, W=W,
                mcat=mcat, khw=khw, f2=f2s, gbc=gbc, vecs=vecs,
                w1=padm(w1, Cp, Hp).astype(jnp.bfloat16),
                b1=padc(b1, Hp).reshape(1, Hp).astype(jnp.float32),
                w2=padm(w2, Hp, Cp).astype(jnp.bfloat16))


# ----------------------------------------------------------------------------
# forward pass — production entry takes/returns the channels-last padded layout
# ----------------------------------------------------------------------------
def caterpillar_block_apply(x_pad, kp):
    """x_pad: (B, H*W, Cp) f32, channels-last, channel-padded.  Returns the same layout.

    Keeping this layout across consecutive blocks means the NCHW->padded conversion is paid
    once per network instead of once per block (no per-block transpose/pad/slice HBM passes).
    """
    B, HW, Cp = x_pad.shape
    C, H, W, Hp = kp["C"], kp["H"], kp["W"], kp["Hp"]
    assert HW == H * W and Cp == kp["Cp"]

    weights = (kp["mcat"], kp["khw"], kp["f2"], kp["gbc"], kp["vecs"],
               kp["w1"], kp["b1"], kp["w2"])
    weight_bytes = sum(int(a.size) * a.dtype.itemsize for a in weights)
    act_bytes = HW * Cp * 4

    # advisory cost hint so XLA schedules neighbors around this custom call
    flops_b = 2 * HW * (Cp * 4 * Cp + 2 * HW * Cp + 3 * Cp * Cp + Cp * Hp + Hp * Cp)
    transc_b = HW * (2 * Cp + Hp + 2)
    cost = pl.CostEstimate(flops=B * flops_b,
                           transcendentals=B * transc_b,
                           bytes_accessed=2 * B * act_bytes + weight_bytes)

    # explicit VMEM budget: double-buffered weights + in/out blocks + headroom for values
    vmem_limit = int(2 * weight_bytes + 4 * act_bytes + (16 << 20))

    def full(*shape):
        return pl.BlockSpec(shape, lambda b, _s=len(shape): (0,) * _s)

    kernel = functools.partial(_caterpillar_block_kernel,
                               c_real=C, c_pad=Cp, height=H, width=W)
    return pl.pallas_call(
        kernel,
        out_shape=jax.ShapeDtypeStruct((B, HW, Cp), jnp.float32),
        grid=(B,),
        in_specs=[
            pl.BlockSpec((1, HW, Cp), lambda b: (b, 0, 0)),   # activations
            full(Cp, 4 * Cp),                                 # combined local proj@fuse (bf16)
            full(2 * HW, HW),                                 # stacked H/W mixers (bf16)
            full(3 * Cp, Cp),                                 # global fuse (bf16)
            full(HW, 2),                                      # rank-1 global bias columns
            full(10, Cp),                                     # packed per-channel vectors
            full(Cp, Hp),                                     # fc1 weight (bf16)
            full(1, Hp),                                      # fc1 bias
            full(Hp, Cp),                                     # fc2 weight (bf16)
        ],
        out_specs=pl.BlockSpec((1, HW, Cp), lambda b: (b, 0, 0)),
        compiler_params=pltpu.CompilerParams(
            dimension_semantics=("parallel",),
            vmem_limit_bytes=vmem_limit),
        cost_estimate=cost,
    )(x_pad, *weights)


def nchw_to_padded(x_nchw, Cp):
    B, C, H, W = x_nchw.shape
    x = jnp.transpose(x_nchw, (0, 2, 3, 1)).reshape(B, H * W, C).astype(jnp.float32)
    return jnp.pad(x, ((0, 0), (0, 0), (0, Cp - C)))


def padded_to_nchw(x_pad, C, H, W):
    B = x_pad.shape[0]
    out = x_pad[:, :, :C].reshape(B, H, W, C)
    return jnp.transpose(out, (0, 3, 1, 2))


def caterpillar_block_forward(x_nchw, kp):
    """Convenience NCHW wrapper for an isolated block (conversion paid here, once)."""
    B, C, H, W = x_nchw.shape
    return padded_to_nchw(caterpillar_block_apply(nchw_to_padded(x_nchw, kp["Cp"]), kp),
                          C, H, W)


# ----------------------------------------------------------------------------
# deterministic raw parameters (PyTorch-layout shapes, weights stored (in, out))
# ----------------------------------------------------------------------------
def init_block_params(key, *, C, H, W):
    keys = iter(jax.random.split(key, 32))

    def nrm(shape, std=0.02):
        return jax.random.normal(next(keys), shape, jnp.float32) * std

    def bn(c):
        gamma = 1.0 + 0.1 * jax.random.normal(next(keys), (c,), jnp.float32)
        beta = 0.1 * jax.random.normal(next(keys), (c,), jnp.float32)
        mean = 0.1 * jax.random.normal(next(keys), (c,), jnp.float32)
        var = 1.0 + 0.1 * jnp.abs(jax.random.normal(next(keys), (c,), jnp.float32))
        return gamma, beta, mean, var

    C4 = C // 4
    p = {"bn1": bn(C)}
    for name in ("proj_t", "proj_b", "proj_l", "proj_r"):
        p[name] = (nrm((C, C4)), nrm((C4,), 0.01))
    p["fuse1"] = (nrm((C, C)), nrm((C,), 0.01))
    p["bn2"] = bn(C)
    p["proj_h"] = (nrm((W, W)), nrm((W,), 0.01))
    p["proj_w"] = (nrm((H, H)), nrm((H,), 0.01))
    p["fuse2"] = nrm((3 * C, C))
    p["ln"] = (1.0 + 0.1 * jax.random.normal(next(keys), (C,), jnp.float32),
               0.1 * jax.random.normal(next(keys), (C,), jnp.float32))
    p["fc1"] = (nrm((C, 3 * C)), nrm((3 * C,), 0.01))
    p["fc2"] = (nrm((3 * C, C)), nrm((C,), 0.01))
    return p


# ----------------------------------------------------------------------------
# pure-JAX reference of the block (same folded-BN / tanh-GELU semantics), for sanity check
# ----------------------------------------------------------------------------
def reference_block(x_nchw, p, *, step):
    x = jnp.transpose(x_nchw, (0, 2, 3, 1)).astype(jnp.float32)   # (B,H,W,C)
    _, H, W, C = x.shape

    def fold_bn(bn):
        gamma, beta, mean, var = bn
        s = gamma / jnp.sqrt(var + 1e-5)
        return s, beta - mean * s

    def reflect_take(y, shift, axis):
        n = y.shape[axis]
        idx = np.arange(n) + shift
        idx = np.where(idx < 0, -idx, idx)
        idx = np.where(idx > n - 1, 2 * (n - 1) - idx, idx)
        return jnp.take(y, jnp.asarray(idx, np.int32), axis=axis)

    # localMix
    s1, b1 = fold_bn(p["bn1"])
    z = _gelu_tanh(x * s1 + b1)
    proj = lambda name: jnp.einsum("bhwc,cd->bhwd", z, p[name][0]) + p[name][1]
    x_t = reflect_take(proj("proj_t"), +step, 1)
    x_b = reflect_take(proj("proj_b"), -step, 1)
    x_r = reflect_take(proj("proj_r"), -step, 2)
    x_l = reflect_take(proj("proj_l"), +step, 2)
    fw, fb = p["fuse1"]
    loc = jnp.einsum("bhwc,cd->bhwd",
                     jnp.concatenate([x_t, x_b, x_r, x_l], axis=-1), fw) + fb

    # globalMix
    s2, b2 = fold_bn(p["bn2"])
    a = _gelu_tanh(loc * s2 + b2)
    wh, bh = p["proj_h"]
    ww, bw = p["proj_w"]
    xh = jnp.einsum("vw,bhwc->bhvc", wh, a) + bh[None, None, :, None]
    xw = jnp.einsum("uh,bhwc->buwc", ww, a) + bw[None, :, None, None]
    glob = jnp.einsum("bhwc,cd->bhwd",
                      jnp.concatenate([a, xh, xw], axis=-1), p["fuse2"])
    x1 = x + glob

    # channelMix
    g, be = p["ln"]
    mu = jnp.mean(x1, axis=-1, keepdims=True)
    var = jnp.mean((x1 - mu) ** 2, axis=-1, keepdims=True)
    xn = (x1 - mu) * jax.lax.rsqrt(var + 1e-5) * g + be
    w1, bb1 = p["fc1"]
    w2, bb2 = p["fc2"]
    h = _gelu_tanh(jnp.einsum("bhwc,cd->bhwd", xn, w1) + bb1)
    out = x1 + jnp.einsum("bhwc,cd->bhwd", h, w2) + bb2
    return jnp.transpose(out, (0, 3, 1, 2))


# ----------------------------------------------------------------------------
if __name__ == "__main__":
    B, C, H, W, STEP = 2, 64, 16, 16, 1          # small shapes consistent with the module

    root = jax.random.PRNGKey(0)
    pkey, xkey = jax.random.split(root)
    raw = init_block_params(pkey, C=C, H=H, W=W)
    packed = pack_block_params(raw, C=C, H=H, W=W, step=STEP)

    x = jax.random.normal(xkey, (B, C, H, W), jnp.float32)

    # production-style usage: convert to the padded channels-last layout ONCE, run the block
    x_pad = nchw_to_padded(x, packed["Cp"])
    fwd = jax.jit(lambda inp: caterpillar_block_apply(inp, packed))
    out_pad = jax.block_until_ready(fwd(x_pad))
    out = padded_to_nchw(out_pad, C, H, W)

    assert out.shape == (B, C, H, W), out.shape
    assert bool(jnp.all(jnp.isfinite(out)))

    ref = reference_block(x, raw, step=STEP)
    max_err = float(jnp.max(jnp.abs(out - ref)))
    assert max_err < 5e-2, f"max abs diff vs reference too large: {max_err}"

    print("KERNEL_OK")
</pallas_src>

<mosaic_0001>
module attributes {stable_mosaic.version = 11 : i64} {
  func.func @_caterpillar_block_kernel(%arg0: i32, %arg1: memref<1x256x128xf32, #tpu.memory_space<vmem>>, %arg2: memref<128x512xbf16, #tpu.memory_space<vmem>>, %arg3: memref<512x256xbf16, #tpu.memory_space<vmem>>, %arg4: memref<384x128xbf16, #tpu.memory_space<vmem>>, %arg5: memref<256x2xf32, #tpu.memory_space<vmem>>, %arg6: memref<10x128xf32, #tpu.memory_space<vmem>>, %arg7: memref<128x256xbf16, #tpu.memory_space<vmem>>, %arg8: memref<1x256xf32, #tpu.memory_space<vmem>>, %arg9: memref<256x128xbf16, #tpu.memory_space<vmem>>, %arg10: memref<1x256x128xf32, #tpu.memory_space<vmem>>) attributes {dimension_semantics = [#tpu.dimension_semantics<parallel>], iteration_bounds = array<i64: 2>, scalar_prefetch = 0 : i64, scratch_operands = 0 : i64, tpu.core_type = #tpu.core_type<tc>, window_params = [{transform_indices = @transform_0, window_bounds = array<i64: 1, 256, 128>}, {pipeline_mode = #tpu.pipeline_mode<synchronous>, transform_indices = @transform_1, window_bounds = array<i64: 128, 512>}, {pipeline_mode = #tpu.pipeline_mode<synchronous>, transform_indices = @transform_2, window_bounds = array<i64: 512, 256>}, {pipeline_mode = #tpu.pipeline_mode<synchronous>, transform_indices = @transform_3, window_bounds = array<i64: 384, 128>}, {pipeline_mode = #tpu.pipeline_mode<synchronous>, transform_indices = @transform_4, window_bounds = array<i64: 256, 2>}, {pipeline_mode = #tpu.pipeline_mode<synchronous>, transform_indices = @transform_5, window_bounds = array<i64: 10, 128>}, {pipeline_mode = #tpu.pipeline_mode<synchronous>, transform_indices = @transform_6, window_bounds = array<i64: 128, 256>}, {pipeline_mode = #tpu.pipeline_mode<synchronous>, transform_indices = @transform_7, window_bounds = array<i64: 1, 256>}, {pipeline_mode = #tpu.pipeline_mode<synchronous>, transform_indices = @transform_8, window_bounds = array<i64: 256, 128>}, {transform_indices = @transform_9, window_bounds = array<i64: 1, 256, 128>}]} {
    %c0 = arith.constant 0 : index
    %c0_0 = arith.constant 0 : index
    %c0_1 = arith.constant 0 : index
    %0 = vector.load %arg1[%c0, %c0_0, %c0_1] : memref<1x256x128xf32, #tpu.memory_space<vmem>>, vector<1x256x128xf32>
    %1 = vector.shape_cast %0 : vector<1x256x128xf32> to vector<256x128xf32>
    %c0_2 = arith.constant 0 : index
    %c0_3 = arith.constant 0 : index
    %2 = vector.load %arg6[%c0_2, %c0_3] : memref<10x128xf32, #tpu.memory_space<vmem>>, vector<10x128xf32>
    %3 = tpu.iota {dimensions = array<i32: 0>} : vector<256x1xi32>
    %c16_i32 = arith.constant 16 : i32
    %c0_i32 = arith.constant 0 : i32
    %4 = arith.cmpi eq, %c16_i32, %c0_i32 : i32
    %c1_i32 = arith.constant 1 : i32
    %5 = arith.select %4, %c1_i32, %c16_i32 : i32
    %6 = vector.broadcast %5 : i32 to vector<256x1xi32>
    %7 = arith.remsi %3, %6 : vector<256x1xi32>
    %c0_i32_4 = arith.constant 0 : i32
    %8 = vector.broadcast %c0_i32_4 : i32 to vector<256x1xi32>
    %9 = arith.cmpi ne, %7, %8 : vector<256x1xi32>
    %c0_i32_5 = arith.constant 0 : i32
    %10 = vector.broadcast %c0_i32_5 : i32 to vector<256x1xi32>
    %11 = arith.cmpi slt, %7, %10 : vector<256x1xi32>
    %c0_i32_6 = arith.constant 0 : i32
    %12 = arith.cmpi slt, %5, %c0_i32_6 : i32
    %13 = vector.broadcast %12 : i1 to vector<256x1xi1>
    %14 = vector.broadcast %13 : vector<256x1xi1> to vector<256x1xi1>
    %15 = arith.xori %11, %14 : vector<256x1xi1>
    %16 = arith.andi %15, %9 : vector<256x1xi1>
    %17 = vector.broadcast %5 : i32 to vector<256x1xi32>
    %18 = arith.addi %7, %17 : vector<256x1xi32>
    %19 = arith.select %16, %18, %7 : vector<256x1xi1>, vector<256x1xi32>
    %c240_i32 = arith.constant 240 : i32
    %20 = vector.broadcast %c240_i32 : i32 to vector<256x1xi32>
    %21 = arith.cmpi sge, %3, %20 : vector<256x1xi32>
    %c16_i32_7 = arith.constant 16 : i32
    %22 = vector.broadcast %c16_i32_7 : i32 to vector<256x1xi32>
    %23 = arith.cmpi slt, %3, %22 : vector<256x1xi32>
    %c0_i32_8 = arith.constant 0 : i32
    %24 = vector.broadcast %c0_i32_8 : i32 to vector<256x1xi32>
    %25 = arith.cmpi eq, %19, %24 : vector<256x1xi32>
    %c15_i32 = arith.constant 15 : i32
    %26 = vector.broadcast %c15_i32 : i32 to vector<256x1xi32>
    %27 = arith.cmpi eq, %19, %26 : vector<256x1xi32>
    %28 = vector.extract_strided_slice %2 {offsets = [0, 0], sizes = [1, 128], strides = [1, 1]} : vector<10x128xf32> to vector<1x128xf32>
    %29 = vector.broadcast %28 : vector<1x128xf32> to vector<256x128xf32>
    %30 = arith.mulf %1, %29 : vector<256x128xf32>
    %31 = vector.extract_strided_slice %2 {offsets = [1, 0], sizes = [1, 128], strides = [1, 1]} : vector<10x128xf32> to vector<1x128xf32>
    %32 = vector.broadcast %31 : vector<1x128xf32> to vector<256x128xf32>
    %33 = arith.addf %30, %32 : vector<256x128xf32>
    %cst = arith.constant 5.000000e-01 : f32
    %34 = vector.broadcast %cst : f32 to vector<256x128xf32>
    %35 = arith.mulf %34, %33 : vector<256x128xf32>
    %cst_9 = arith.constant 4.471500e-02 : f32
    %36 = vector.broadcast %cst_9 : f32 to vector<256x128xf32>
    %37 = arith.mulf %36, %33 : vector<256x128xf32>
    %38 = arith.mulf %37, %33 : vector<256x128xf32>
    %39 = arith.mulf %38, %33 : vector<256x128xf32>
    %40 = arith.addf %33, %39 : vector<256x128xf32>
    %cst_10 = arith.constant 0.797884583 : f32
    %41 = vector.broadcast %cst_10 : f32 to vector<256x128xf32>
    %42 = arith.mulf %41, %40 : vector<256x128xf32>
    %43 = math.tanh %42 : vector<256x128xf32>
    %cst_11 = arith.constant 1.000000e+00 : f32
    %44 = vector.broadcast %cst_11 : f32 to vector<256x128xf32>
    %45 = arith.addf %44, %43 : vector<256x128xf32>
    %46 = arith.mulf %35, %45 : vector<256x128xf32>
    %47 = arith.truncf %46 : vector<256x128xf32> to vector<256x128xbf16>
    %c0_12 = arith.constant 0 : index
    %c0_13 = arith.constant 0 : index
    %48 = vector.load %arg2[%c0_12, %c0_13] : memref<128x512xbf16, #tpu.memory_space<vmem>>, vector<128x512xbf16>
    %cst_14 = arith.constant dense<0.000000e+00> : vector<256x512xf32>
    %49 = tpu.matmul %47, %48, %cst_14 {dimension_numbers = #tpu.dot_dimension_numbers<[1], [0], [0], [1], [0, 0, 1, 1], [], []>} : vector<256x128xbf16>, vector<128x512xbf16>, vector<256x512xf32> -> vector<256x512xf32>
    %50 = vector.extract_strided_slice %49 {offsets = [0, 0], sizes = [256, 128], strides = [1, 1]} : vector<256x512xf32> to vector<256x128xf32>
    %c240_i32_15 = arith.constant 240 : i32
    %51 = tpu.dynamic_rotate %50 by %c240_i32_15 dim 0 : vector<256x128xf32>, i32 -> vector<256x128xf32>
    %c16_i32_16 = arith.constant 16 : i32
    %52 = tpu.dynamic_rotate %50 by %c16_i32_16 dim 0 : vector<256x128xf32>, i32 -> vector<256x128xf32>
    %53 = vector.shape_cast %21 : vector<256x1xi1> to vector<256x1xi1>
    %54 = vector.broadcast %53 : vector<256x1xi1> to vector<256x128xi1>
    %55 = arith.select %54, %52, %51 : vector<256x128xi1>, vector<256x128xf32>
    %56 = vector.extract_strided_slice %49 {offsets = [0, 128], sizes = [256, 128], strides = [1, 1]} : vector<256x512xf32> to vector<256x128xf32>
    %c16_i32_17 = arith.constant 16 : i32
    %57 = tpu.dynamic_rotate %56 by %c16_i32_17 dim 0 : vector<256x128xf32>, i32 -> vector<256x128xf32>
    %c240_i32_18 = arith.constant 240 : i32
    %58 = tpu.dynamic_rotate %56 by %c240_i32_18 dim 0 : vector<256x128xf32>, i32 -> vector<256x128xf32>
    %59 = vector.shape_cast %23 : vector<256x1xi1> to vector<256x1xi1>
    %60 = vector.broadcast %59 : vector<256x1xi1> to vector<256x128xi1>
    %61 = arith.select %60, %58, %57 : vector<256x128xi1>, vector<256x128xf32>
    %62 = arith.addf %55, %61 : vector<256x128xf32>
    %63 = vector.extract_strided_slice %49 {offsets = [0, 256], sizes = [256, 128], strides = [1, 1]} : vector<256x512xf32> to vector<256x128xf32>
    %c1_i32_19 = arith.constant 1 : i32
    %64 = tpu.dynamic_rotate %63 by %c1_i32_19 dim 0 : vector<256x128xf32>, i32 -> vector<256x128xf32>
    %c255_i32 = arith.constant 255 : i32
    %65 = tpu.dynamic_rotate %63 by %c255_i32 dim 0 : vector<256x128xf32>, i32 -> vector<256x128xf32>
    %66 = vector.shape_cast %25 : vector<256x1xi1> to vector<256x1xi1>
    %67 = vector.broadcast %66 : vector<256x1xi1> to vector<256x128xi1>
    %68 = arith.select %67, %65, %64 : vector<256x128xi1>, vector<256x128xf32>
    %69 = arith.addf %62, %68 : vector<256x128xf32>
    %70 = vector.extract_strided_slice %49 {offsets = [0, 384], sizes = [256, 128], strides = [1, 1]} : vector<256x512xf32> to vector<256x128xf32>
    %c255_i32_20 = arith.constant 255 : i32
    %71 = tpu.dynamic_rotate %70 by %c255_i32_20 dim 0 : vector<256x128xf32>, i32 -> vector<256x128xf32>
    %c1_i32_21 = arith.constant 1 : i32
    %72 = tpu.dynamic_rotate %70 by %c1_i32_21 dim 0 : vector<256x128xf32>, i32 -> vector<256x128xf32>
    %73 = vector.shape_cast %27 : vector<256x1xi1> to vector<256x1xi1>
    %74 = vector.broadcast %73 : vector<256x1xi1> to vector<256x128xi1>
    %75 = arith.select %74, %72, %71 : vector<256x128xi1>, vector<256x128xf32>
    %76 = arith.addf %69, %75 : vector<256x128xf32>
    %77 = vector.extract_strided_slice %2 {offsets = [2, 0], sizes = [1, 128], strides = [1, 1]} : vector<10x128xf32> to vector<1x128xf32>
    %78 = vector.broadcast %77 : vector<1x128xf32> to vector<256x128xf32>
    %79 = arith.addf %76, %78 : vector<256x128xf32>
    %80 = vector.extract_strided_slice %2 {offsets = [3, 0], sizes = [1, 128], strides = [1, 1]} : vector<10x128xf32> to vector<1x128xf32>
    %81 = vector.broadcast %80 : vector<1x128xf32> to vector<256x128xf32>
    %82 = arith.mulf %79, %81 : vector<256x128xf32>
    %83 = vector.extract_strided_slice %2 {offsets = [4, 0], sizes = [1, 128], strides = [1, 1]} : vector<10x128xf32> to vector<1x128xf32>
    %84 = vector.broadcast %83 : vector<1x128xf32> to vector<256x128xf32>
    %85 = arith.addf %82, %84 : vector<256x128xf32>
    %cst_22 = arith.constant 5.000000e-01 : f32
    %86 = vector.broadcast %cst_22 : f32 to vector<256x128xf32>
    %87 = arith.mulf %86, %85 : vector<256x128xf32>
    %cst_23 = arith.constant 4.471500e-02 : f32
    %88 = vector.broadcast %cst_23 : f32 to vector<256x128xf32>
    %89 = arith.mulf %88, %85 : vector<256x128xf32>
    %90 = arith.mulf %89, %85 : vector<256x128xf32>
    %91 = arith.mulf %90, %85 : vector<256x128xf32>
    %92 = arith.addf %85, %91 : vector<256x128xf32>
    %cst_24 = arith.constant 0.797884583 : f32
    %93 = vector.broadcast %cst_24 : f32 to vector<256x128xf32>
    %94 = arith.mulf %93, %92 : vector<256x128xf32>
    %95 = math.tanh %94 : vector<256x128xf32>
    %cst_25 = arith.constant 1.000000e+00 : f32
    %96 = vector.broadcast %cst_25 : f32 to vector<256x128xf32>
    %97 = arith.addf %96, %95 : vector<256x128xf32>
    %98 = arith.mulf %87, %97 : vector<256x128xf32>
    %99 = arith.truncf %98 : vector<256x128xf32> to vector<256x128xbf16>
    %c0_26 = arith.constant 0 : index
    %c0_27 = arith.constant 0 : index
    %100 = vector.load %arg3[%c0_26, %c0_27] : memref<512x256xbf16, #tpu.memory_space<vmem>>, vector<512x256xbf16>
    %cst_28 = arith.constant dense<0.000000e+00> : vector<512x128xf32>
    %101 = tpu.matmul %100, %99, %cst_28 {dimension_numbers = #tpu.dot_dimension_numbers<[1], [0], [0], [1], [0, 0, 1, 1], [], []>} : vector<512x256xbf16>, vector<256x128xbf16>, vector<512x128xf32> -> vector<512x128xf32>
    %102 = vector.extract_strided_slice %101 {offsets = [0, 0], sizes = [256, 128], strides = [1, 1]} : vector<512x128xf32> to vector<256x128xf32>
    %103 = arith.truncf %102 : vector<256x128xf32> to vector<256x128xbf16>
    %104 = vector.extract_strided_slice %101 {offsets = [256, 0], sizes = [256, 128], strides = [1, 1]} : vector<512x128xf32> to vector<256x128xf32>
    %105 = arith.truncf %104 : vector<256x128xf32> to vector<256x128xbf16>
    %106 = tpu.concatenate %99, %103, %105 in 1 : vector<256x128xbf16>, vector<256x128xbf16>, vector<256x128xbf16> -> vector<256x384xbf16>
    %c0_29 = arith.constant 0 : index
    %c0_30 = arith.constant 0 : index
    %107 = vector.load %arg5[%c0_29, %c0_30] : memref<256x2xf32, #tpu.memory_space<vmem>>, vector<256x2xf32>
    %c0_31 = arith.constant 0 : index
    %c0_32 = arith.constant 0 : index
    %108 = vector.load %arg4[%c0_31, %c0_32] : memref<384x128xbf16, #tpu.memory_space<vmem>>, vector<384x128xbf16>
    %cst_33 = arith.constant dense<0.000000e+00> : vector<256x128xf32>
    %109 = tpu.matmul %106, %108, %cst_33 {dimension_numbers = #tpu.dot_dimension_numbers<[1], [0], [0], [1], [0, 0, 1, 1], [], []>} : vector<256x384xbf16>, vector<384x128xbf16>, vector<256x128xf32> -> vector<256x128xf32>
    %110 = vector.extract_strided_slice %107 {offsets = [0, 0], sizes = [256, 1], strides = [1, 1]} : vector<256x2xf32> to vector<256x1xf32>
    %111 = vector.extract_strided_slice %2 {offsets = [8, 0], sizes = [1, 128], strides = [1, 1]} : vector<10x128xf32> to vector<1x128xf32>
    %112 = vector.broadcast %110 : vector<256x1xf32> to vector<256x128xf32>
    %113 = vector.broadcast %111 : vector<1x128xf32> to vector<256x128xf32>
    %114 = arith.mulf %112, %113 : vector<256x128xf32>
    %115 = arith.addf %109, %114 : vector<256x128xf32>
    %116 = vector.extract_strided_slice %107 {offsets = [0, 1], sizes = [256, 1], strides = [1, 1]} : vector<256x2xf32> to vector<256x1xf32>
    %117 = vector.extract_strided_slice %2 {offsets = [9, 0], sizes = [1, 128], strides = [1, 1]} : vector<10x128xf32> to vector<1x128xf32>
    %118 = vector.broadcast %116 : vector<256x1xf32> to vector<256x128xf32>
    %119 = vector.broadcast %117 : vector<1x128xf32> to vector<256x128xf32>
    %120 = arith.mulf %118, %119 : vector<256x128xf32>
    %121 = arith.addf %115, %120 : vector<256x128xf32>
    %122 = arith.addf %1, %121 : vector<256x128xf32>
    %cst_34 = arith.constant dense<0.000000e+00> : vector<256xf32>
    %123 = vector.multi_reduction <add>, %122, %cst_34 [1] : vector<256x128xf32> to vector<256xf32>
    %124 = vector.shape_cast %123 : vector<256xf32> to vector<256x1xf32>
    %cst_35 = arith.constant 1.562500e-02 : f32
    %125 = vector.broadcast %cst_35 : f32 to vector<256x1xf32>
    %126 = arith.mulf %124, %125 : vector<256x1xf32>
    %127 = vector.broadcast %126 : vector<256x1xf32> to vector<256x128xf32>
    %128 = arith.subf %122, %127 : vector<256x128xf32>
    %129 = arith.mulf %128, %128 : vector<256x128xf32>
    %cst_36 = arith.constant dense<0.000000e+00> : vector<256xf32>
    %130 = vector.multi_reduction <add>, %129, %cst_36 [1] : vector<256x128xf32> to vector<256xf32>
    %131 = vector.shape_cast %130 : vector<256xf32> to vector<256x1xf32>
    %cst_37 = arith.constant 6.400000e+01 : f32
    %132 = vector.broadcast %cst_37 : f32 to vector<256x1xf32>
    %133 = arith.mulf %132, %126 : vector<256x1xf32>
    %134 = arith.mulf %133, %126 : vector<256x1xf32>
    %135 = arith.subf %131, %134 : vector<256x1xf32>
    %cst_38 = arith.constant 1.562500e-02 : f32
    %136 = vector.broadcast %cst_38 : f32 to vector<256x1xf32>
    %137 = arith.mulf %135, %136 : vector<256x1xf32>
    %cst_39 = arith.constant 9.99999974E-6 : f32
    %138 = vector.broadcast %cst_39 : f32 to vector<256x1xf32>
    %139 = arith.addf %137, %138 : vector<256x1xf32>
    %140 = math.rsqrt %139 : vector<256x1xf32>
    %141 = vector.broadcast %140 : vector<256x1xf32> to vector<256x128xf32>
    %142 = arith.mulf %128, %141 : vector<256x128xf32>
    %143 = vector.extract_strided_slice %2 {offsets = [5, 0], sizes = [1, 128], strides = [1, 1]} : vector<10x128xf32> to vector<1x128xf32>
    %144 = vector.broadcast %143 : vector<1x128xf32> to vector<256x128xf32>
    %145 = arith.mulf %142, %144 : vector<256x128xf32>
    %146 = vector.extract_strided_slice %2 {offsets = [6, 0], sizes = [1, 128], strides = [1, 1]} : vector<10x128xf32> to vector<1x128xf32>
    %147 = vector.broadcast %146 : vector<1x128xf32> to vector<256x128xf32>
    %148 = arith.addf %145, %147 : vector<256x128xf32>
    %149 = arith.truncf %148 : vector<256x128xf32> to vector<256x128xbf16>
    %c0_40 = arith.constant 0 : index
    %c0_41 = arith.constant 0 : index
    %150 = vector.load %arg7[%c0_40, %c0_41] : memref<128x256xbf16, #tpu.memory_space<vmem>>, vector<128x256xbf16>
    %cst_42 = arith.constant dense<0.000000e+00> : vector<256x256xf32>
    %151 = tpu.matmul %149, %150, %cst_42 {dimension_numbers = #tpu.dot_dimension_numbers<[1], [0], [0], [1], [0, 0, 1, 1], [], []>} : vector<256x128xbf16>, vector<128x256xbf16>, vector<256x256xf32> -> vector<256x256xf32>
    %c0_43 = arith.constant 0 : index
    %c0_44 = arith.constant 0 : index
    %152 = vector.load %arg8[%c0_43, %c0_44] : memref<1x256xf32, #tpu.memory_space<vmem>>, vector<1x256xf32>
    %153 = vector.broadcast %152 : vector<1x256xf32> to vector<256x256xf32>
    %154 = arith.addf %151, %153 : vector<256x256xf32>
    %cst_45 = arith.constant 5.000000e-01 : f32
    %155 = vector.broadcast %cst_45 : f32 to vector<256x256xf32>
    %156 = arith.mulf %155, %154 : vector<256x256xf32>
    %cst_46 = arith.constant 4.471500e-02 : f32
    %157 = vector.broadcast %cst_46 : f32 to vector<256x256xf32>
    %158 = arith.mulf %157, %154 : vector<256x256xf32>
    %159 = arith.mulf %158, %154 : vector<256x256xf32>
    %160 = arith.mulf %159, %154 : vector<256x256xf32>
    %161 = arith.addf %154, %160 : vector<256x256xf32>
    %cst_47 = arith.constant 0.797884583 : f32
    %162 = vector.broadcast %cst_47 : f32 to vector<256x256xf32>
    %163 = arith.mulf %162, %161 : vector<256x256xf32>
    %164 = math.tanh %163 : vector<256x256xf32>
    %cst_48 = arith.constant 1.000000e+00 : f32
    %165 = vector.broadcast %cst_48 : f32 to vector<256x256xf32>
    %166 = arith.addf %165, %164 : vector<256x256xf32>
    %167 = arith.mulf %156, %166 : vector<256x256xf32>
    %168 = arith.truncf %167 : vector<256x256xf32> to vector<256x256xbf16>
    %c0_49 = arith.constant 0 : index
    %c0_50 = arith.constant 0 : index
    %169 = vector.load %arg9[%c0_49, %c0_50] : memref<256x128xbf16, #tpu.memory_space<vmem>>, vector<256x128xbf16>
    %cst_51 = arith.constant dense<0.000000e+00> : vector<256x128xf32>
    %170 = tpu.matmul %168, %169, %cst_51 {dimension_numbers = #tpu.dot_dimension_numbers<[1], [0], [0], [1], [0, 0, 1, 1], [], []>} : vector<256x256xbf16>, vector<256x128xbf16>, vector<256x128xf32> -> vector<256x128xf32>
    %171 = vector.extract_strided_slice %2 {offsets = [7, 0], sizes = [1, 128], strides = [1, 1]} : vector<10x128xf32> to vector<1x128xf32>
    %172 = vector.broadcast %171 : vector<1x128xf32> to vector<256x128xf32>
    %173 = arith.addf %170, %172 : vector<256x128xf32>
    %174 = arith.addf %122, %173 : vector<256x128xf32>
    %c0_52 = arith.constant 0 : index
    %c0_53 = arith.constant 0 : index
    %c0_54 = arith.constant 0 : index
    %175 = vector.load %arg10[%c0_52, %c0_53, %c0_54] : memref<1x256x128xf32, #tpu.memory_space<vmem>>, vector<1x256x128xf32>
    %176 = vector.shape_cast %175 : vector<1x256x128xf32> to vector<256x128xf32>
    %177 = vector.shape_cast %174 : vector<256x128xf32> to vector<1x256x128xf32>
    tpu.vector_store %arg10[%c0_52, %c0_53, %c0_54], %177 {strides = array<i32>} : memref<1x256x128xf32, #tpu.memory_space<vmem>>, vector<1x256x128xf32>,
    return
  }
  func.func @transform_0(%arg0: i32) -> (i32, i32, i32) {
    %c0_i32 = arith.constant 0 : i32
    %c0_i32_0 = arith.constant 0 : i32
    %c0_i32_1 = arith.constant 0 : i32
    return %arg0, %c0_i32, %c0_i32_0 : i32, i32, i32
  }
  func.func @transform_1(%arg0: i32) -> (i32, i32) {
    %c0_i32 = arith.constant 0 : i32
    %c0_i32_0 = arith.constant 0 : i32
    %c0_i32_1 = arith.constant 0 : i32
    return %c0_i32, %c0_i32_0 : i32, i32
  }
  func.func @transform_2(%arg0: i32) -> (i32, i32) {
    %c0_i32 = arith.constant 0 : i32
    %c0_i32_0 = arith.constant 0 : i32
    %c0_i32_1 = arith.constant 0 : i32
    return %c0_i32, %c0_i32_0 : i32, i32
  }
  func.func @transform_3(%arg0: i32) -> (i32, i32) {
    %c0_i32 = arith.constant 0 : i32
    %c0_i32_0 = arith.constant 0 : i32
    %c0_i32_1 = arith.constant 0 : i32
    return %c0_i32, %c0_i32_0 : i32, i32
  }
  func.func @transform_4(%arg0: i32) -> (i32, i32) {
    %c0_i32 = arith.constant 0 : i32
    %c0_i32_0 = arith.constant 0 : i32
    %c0_i32_1 = arith.constant 0 : i32
    return %c0_i32, %c0_i32_0 : i32, i32
  }
  func.func @transform_5(%arg0: i32) -> (i32, i32) {
    %c0_i32 = arith.constant 0 : i32
    %c0_i32_0 = arith.constant 0 : i32
    %c0_i32_1 = arith.constant 0 : i32
    return %c0_i32, %c0_i32_0 : i32, i32
  }
  func.func @transform_6(%arg0: i32) -> (i32, i32) {
    %c0_i32 = arith.constant 0 : i32
    %c0_i32_0 = arith.constant 0 : i32
    %c0_i32_1 = arith.constant 0 : i32
    return %c0_i32, %c0_i32_0 : i32, i32
  }
  func.func @transform_7(%arg0: i32) -> (i32, i32) {
    %c0_i32 = arith.constant 0 : i32
    %c0_i32_0 = arith.constant 0 : i32
    %c0_i32_1 = arith.constant 0 : i32
    return %c0_i32, %c0_i32_0 : i32, i32
  }
  func.func @transform_8(%arg0: i32) -> (i32, i32) {
    %c0_i32 = arith.constant 0 : i32
    %c0_i32_0 = arith.constant 0 : i32
    %c0_i32_1 = arith.constant 0 : i32
    return %c0_i32, %c0_i32_0 : i32, i32
  }
  func.func @transform_9(%arg0: i32) -> (i32, i32, i32) {
    %c0_i32 = arith.constant 0 : i32
    %c0_i32_0 = arith.constant 0 : i32
    %c0_i32_1 = arith.constant 0 : i32
    return %arg0, %c0_i32, %c0_i32_0 : i32, i32, i32
  }
}

</mosaic_0001>

<bundles_post_ra>
// kernel: _lambda_.1
= control target key start
LH: loop header
LB: loop body
LE: loop exit
PB: predicated region body
PF: predicated region fallthrough
CT: control target
= control target key end

     0   :  { %14 = vsyncpa [#allocation3], 0  ;;  %s11666_s0 = inlined_call_operand.vmem [shape: f32[2,256,128], index: 0, kind: input, shape index: {}]   ;;  %s11667_s1 = inlined_call_operand.vmem [shape: bf16[128,512], index: 1, kind: input, shape index: {}]   ;;  %s11668_s2 = inlined_call_operand.vmem [shape: bf16[512,256], index: 2, kind: input, shape index: {}]   ;;  %s11669_s3 = inlined_call_operand.vmem [shape: bf16[384,128], index: 3, kind: input, shape index: {}]   ;;  %s11670_s4 = inlined_call_operand.vmem [shape: f32[256,2], index: 4, kind: input, shape index: {}]   ;;  %s11671_s5 = inlined_call_operand.vmem [shape: f32[10,128], index: 5, kind: input, shape index: {}]   ;;  %s11672_s6 = inlined_call_operand.vmem [shape: bf16[128,256], index: 6, kind: input, shape index: {}]   ;;  %s11673_s7 = inlined_call_operand.vmem [shape: f32[1,256], index: 7, kind: input, shape index: {}]   ;;  %s11674_s8 = inlined_call_operand.hbm [shape: bf16[256,128], index: 8, kind: input, shape index: {}]   ;;  %s11675_s9 = inlined_call_operand.hbm [shape: f32[2,256,128], index: 9, kind: output, shape index: {}]  }
   0x1   :  { %15 = vsyncpa [#allocation4], 0 }
   0x2   :  { %17 = vsyncpa [#allocation4 + $0x1], 0  ;;  %s7881_s30 = smov 0   ;;  %s7883_s10 = smov 0  }
   0x3   :  { %s7885_s11 = smov 0   ;;  %s7887_s12 = smov 0  }
   0x4 LB: > { %s7902_s13 = sadd.s32 4294967295, %s7821_s12   ;;  %s6595_s14 = sadd.s32 4294967294, %s7821_s12   ;;  %s7821_s12 = sphi %s7887_s12, %s12003_s12   ;;  %s7817_s11 = sphi %s7885_s11, %s12002_s11   ;;  %s7813_s10 = sphi %s7883_s10, %s12001_s10   ;;  %s7809_s30 = sphi %s7881_s30, %s12000_s30  }
   0x5   : > { %s7906_s15 = sadd.s32 1, %s7821_s12   ;;  %s224_s16 = sadd.s32 1, %s7817_s11 }
   0x6   : > { %s221_s17 = ssub.s32 %s7821_s12, %s7906_s15  ;;  %p234_p0 = scmp.ne.s32.totalorder %s7817_s11, %s7813_s10 }
   0x7   : > { %p222_p1 = scmp.eq.s32.totalorder %s221_s17, 0  ;;  %p235_p2 = scmp.eq.s32.totalorder %s7902_s13, 1 }
   0x8   : > { %p240_p3 = scmp.ne.s32.totalorder %s7813_s10, %s7809_s30  ;;  %p241_p4 = scmp.eq.s32.totalorder %s6595_s14, 1 }
   0x9   : > { %s7917_s18 = scalar_select %p222_p1, %s7817_s11, %s224_s16  }
   0xa   : > { %p7919_p5 = por %p235_p2, %p234_p0  ;;  %p7923_p6 = por %p241_p4, %p240_p3 }
   0xb   : > { %p6596_p7 = scmp.ge.s32.totalorder %s7821_s12, 1  ;;  %p248_p8 = scmp.lt.s32.totalorder %s7821_s12, 3 }
   0xc   : > { %s11738_s19 = scalar_select %p7919_p5, 1, 0 }
   0xd   : > { %s11739_s20 = scalar_select %p7923_p6, 1, 0 }
   0xe   : > { %p11676_p9 = scmp.eq.s32.totalorder %s7902_s13, 0  ;;  %p7930_p10 = pnand %p6596_p7, %p248_p8 }
   0xf   : > { %s7823_s22 = smov [#allocation2]   ;;  %s7727_s27 = scalar_lea.hbm %s11674_s8, 2048 }
  0x10   : > { %s11740_s21 = scalar_select %p7930_p10, 1, 0 }
  0x11   : > { %s281_s23 = sshll.u32 %s7823_s22, 4  ;;  %p7081_p11 = pneg %p7930_p10  ;;  %s282_s23 = int_to_ptr.vmem [resolvable:$true] %s281_s23 }
  0x12   : > { %p7728_p13 = scmp.ne.s32.totalorder %s11674_s8, %s7727_s27  ;;  %p7734_p3 = scmp.lt.u32.totalorder %s7727_s27, %s11674_s8 }
  0x13   : > { %p7938_p12 = pnand %p11676_p9, %p7081_p11 }
  0x15   : > { %p7729_p0 = pneg %p7938_p12 }
  0x17   : > { %p7730_p1 = pnand %p7729_p0, %p7728_p13 }
  0x19   : > { %p7731_p2 = pneg %p7730_p1 }
  0x1b   : > { %p7736_p4 = pnand %p7734_p3, %p7731_p2 }
  0x1d   : > { %7739 = shalt.err (!%p7736_p4)
}
  0x1e   : > { %s7740_s17 = scalar_lea.vmem %s282_s23, 2048  ;;  %p7748_p9 = scmp.lt.s32.totalorder %s282_s23, %s282_s23 }
  0x1f   : > { %p7741_p7 = scmp.ne.s32.totalorder %s282_s23, %s7740_s17  ;;  %p7749_p6 = scmp.lt.s32.totalorder %s7740_s17, %s7740_s17 }
  0x21   : > { %p7743_p8 = pnand %p7741_p7, %p7729_p0  ;;  %p7750_p5 = por %p7749_p6, %p7748_p9 }
  0x23   : > { %p7744_p11 = pneg %p7743_p8 }
  0x25   : > { %p7751_p10 = pnand %p7750_p5, %p7744_p11 }
  0x27   : > { %7754 = shalt.err (!%p7751_p10)
}
  0x28   : > { %s7824_s22 = smov 64   ;;  %s7825_s25 = smov 4  }
  0x29   : > { %7084 = dma.hbm_to_vmem [thread:$0]  (!%p7938_p12), %s11674_s8, 2048, %s282_s23, [#allocation3], %s7824_s22, %s7824_s22, %s7825_s25  }
  0x2a   : > { %p11742_p13 = scmp.ne.s32.totalorder %s11740_s21, 0 }
  0x2c   : > { %305 = sbr.rel (%p11742_p13) target bundleno = 2159 (0x86f), region = 56 }
  0x33   : > { %p11743_p1 = scmp.eq.s32.totalorder %s7902_s13, 0 }
  0x35   : > { %7800 = dma.done.wait (%p11743_p1), [#allocation3], 2048   ;;  %p11744_p0 = pmov %p11743_p1 }
  0x36   : > { %v11679_v0 = vmov 0   ;;  %p341_p5 = scmp.lt.s32.totalorder %s7902_s13, 1  ;;  %v7164_v1 = vld [vmem:[%s11667_s1 + $0x4] ss:$16 sps:$4 sm:$0xff]   ;;  %v381_v2 = vlaneseq  ;;  %v7166_v3 = vld [vmem:[%s11667_s1] ss:$16 sps:$4 sm:$0xff]  }
  0x37   : > { %7802 = vsyncadd (%p11744_p0), [#allocation3], 4294965248  ;;  %1526 = vmatprep.mubr.bf16.mxu0 %v11679_v0  ;;  %1646 = vmatprep.mubr.bf16.mxu1 %v11679_v0  ;;  %v7167_v4 = vld [vmem:[%s11667_s1 + $0x24] ss:$16 sps:$4 sm:$0xff]   ;;  %v7169_v5 = vld [vmem:[%s11667_s1 + $0x20] ss:$16 sps:$4 sm:$0xff]  }
  0x38   : > { %7131 = vset.pattern.permute.xlu0 %v11679_v0  ;;  %s342_s21 = scalar_select %p341_p5, %s7902_s13, 1  ;;  %1494 = vmatprep.subr.bf16.mxu0 %v7164_v1  ;;  %v7170_v6 = vld [vmem:[%s11667_s1 + $0x44] ss:$16 sps:$4 sm:$0xff]   ;;  %v7984_v7 = vshrl.u32 %v381_v2, 7  ;;  %v7172_v8 = vld [vmem:[%s11667_s1 + $0x40] ss:$16 sps:$4 sm:$0xff]  }
  0x39   : > { %7059 = vmatprep.subr.bf16.mxu1 %v7164_v1  ;;  %1495 = vmatpush1.bf16.msra.mxu0 %v7166_v3  ;;  %v7173_v9 = vld [vmem:[%s11667_s1 + $0x64] ss:$16 sps:$4 sm:$0xff]   ;;  %v7175_v12 = vld [vmem:[%s11667_s1 + $0x60] ss:$16 sps:$4 sm:$0xff]   ;;  %s338_s22 = sand.u32 1, %s7813_s10   ;;  %s6762_s24 = sshll.u32 %s7902_s13, 12 }
  0x3a   : > { %7067 = vmatpush1.bf16.msra.mxu1 %v7166_v3  ;;  %1496 = vmatprep.subr.bf16.mxu0 %v7167_v4  ;;  %s6761_s28 = sshll.u32 %s342_s21, 8  ;;  %11745 = vst [vmem:[#allocation8_spill] sm:$0xff] %v7984_v7  ;;  %v7998_v10 = vsub.s32 0, %v7984_v7  ;;  %v8001_v11 = vsub.s32 1, %v7984_v7  ;;  %v7176_v13 = vld [vmem:[%s11667_s1 + $0x84] ss:$16 sps:$4 sm:$0xff]   ;;  %s11616_s16 = scalar_lea.hbm %s11675_s9, %s6762_s24 }
  0x3b   : > { %7060 = vmatprep.subr.bf16.mxu1 %v7167_v4  ;;  %s7992_s14 = scalar_lea.vmem %s11666_s0, %s6761_s28  ;;  %v379_v16 = vld [vmem:[%s11671_s5] sm:$0xff]  ;;  %vm2201_vm0 = vcmp.lt.s32.totalorder %v7984_v7, 7  ;;  %vm2136_vm1 = vcmp.lt.s32.totalorder %v7984_v7, 1  ;;  %s6601_s28 = sshll.u32 %s338_s22, 8 }
  0x3c   : > { %11746 = vst [vmem:[#allocation9_spill] sm:$0xff] %v7998_v10  ;;  %11747 = vst [vmem:[#allocation10_spill] sm:$0xff] %v8001_v11  ;;  %v347_v14 = vld [vmem:[%s7992_s14] sm:$0xff]  ;;  %v348_v15 = vld [vmem:[%s7992_s14 + $0x8] sm:$0xff]  ;;  %v8016_v18 = vrot.slane %v379_v16, %v7998_v10  ;;  %v8019_v19 = vrot.slane %v379_v16, %v8001_v11  ;;  %s11519_s23 = scalar_lea.vmem [#allocation5], %s6601_s28  ;;  %s11625_s13 = scalar_lea.sflag [#allocation4], %s338_s22 }
  0x3d   : > { %1497 = vmatpush1.bf16.msra.mxu0 %v7169_v5  ;;  %v371_v17 = vld [vmem:[%s7992_s14 + $0xc0] sm:$0xff]  ;;  %v372_v20 = vld [vmem:[%s7992_s14 + $0xc8] sm:$0xff]  ;;  %v349_v26 = vld [vmem:[%s7992_s14 + $0x10] sm:$0xff]  ;;  %s6521_s27 = sshll.u32 %s11519_s23, 4  ;;  %p11998_p9 = scmp.ne.s32.totalorder %s11738_s19, 0  ;;  %s11618_s27 = int_to_ptr.vmem [resolvable:$true] %s6521_s27 }
  0x3e   : > { %7068 = vmatpush1.bf16.msra.mxu1 %v7169_v5  ;;  %1498 = vmatprep.subr.bf16.mxu0 %v7170_v6  ;;  %v930_v21 = vmul.f32 %v8016_v18, %v347_v14  ;;  %v931_v22 = vmul.f32 %v8016_v18, %v348_v15  ;;  %v954_v23 = vmul.f32 %v8016_v18, %v371_v17  ;;  %v7178_v25 = vld [vmem:[%s11667_s1 + $0x80] ss:$16 sps:$4 sm:$0xff]   ;;  %v350_v27 = vld [vmem:[%s7992_s14 + $0x18] sm:$0xff]  ;;  %v7179_v28 = vld [vmem:[%s11667_s1 + $0xa4] ss:$16 sps:$4 sm:$0xff]   ;;  %s7755_s21 = scalar_lea.vmem %s11618_s27, 4096 }
  0x3f   : > { %7061 = vmatprep.subr.bf16.mxu1 %v7170_v6  ;;  %v955_v24 = vmul.f32 %v8016_v18, %v372_v20  ;;  %v7181_v32 = vld [vmem:[%s11667_s1 + $0xa0] ss:$16 sps:$4 sm:$0xff]   ;;  %v932_v34 = vmul.f32 %v8016_v18, %v349_v26  ;;  %v933_v35 = vmul.f32 %v8016_v18, %v350_v27  ;;  %v374_v41 = vld [vmem:[%s7992_s14 + $0xd8] sm:$0xff]  ;;  %v7182_v42 = vld [vmem:[%s11667_s1 + $0xc4] ss:$16 sps:$4 sm:$0xff]   ;;  %p7756_p6 = scmp.ne.s32.totalorder %s11618_s27, %s7755_s21  ;;  %s7828_s17 = smov [#allocation5]  }
  0x40   : > { %v966_v29 = vadd.f32 %v8019_v19, %v930_v21  ;;  %v967_v30 = vadd.f32 %v8019_v19, %v931_v22  ;;  %v990_v31 = vadd.f32 %v8019_v19, %v954_v23  ;;  %v373_v38 = vld [vmem:[%s7992_s14 + $0xd0] sm:$0xff]  ;;  %v957_v53 = vmul.f32 %v8016_v18, %v374_v41  ;;  %v352_v17 = vld [vmem:[%s7992_s14 + $0x28] sm:$0xff]  ;;  %v375_v27 = vld [vmem:[%s7992_s14 + $0xe0] sm:$0xff]  ;;  %s7759_s25 = sshll.u32 %s7828_s17, 4  ;;  %s7760_s25 = int_to_ptr.vmem [resolvable:$false] %s7759_s25 }
  0x41   : > { %1499 = vmatpush1.bf16.msra.mxu0 %v7172_v8  ;;  %v8041_v33 = vadd.f32 %v8019_v19, %v955_v24  ;;  %v8052_v45 = vadd.f32 %v8019_v19, %v932_v34  ;;  %v8056_v48 = vadd.f32 %v8019_v19, %v933_v35  ;;  %v956_v49 = vmul.f32 %v8016_v18, %v373_v38  ;;  %v7184_v54 = vld [vmem:[%s11667_s1 + $0xc0] ss:$16 sps:$4 sm:$0xff]   ;;  %v7185_v59 = vld [vmem:[%s11667_s1 + $0xe4] ss:$16 sps:$4 sm:$0xff]   ;;  %v7190_v21 = vld [vmem:[%s11667_s1 + $0xc] ss:$16 sps:$4 sm:$0xff]   ;;  %p7757_p10 = pnand %p7756_p6, %p11998_p9  ;;  %p7762_p2 = scmp.lt.s32.totalorder %s11618_s27, %s7760_s25 }
  0x42   : > { %7069 = vmatpush1.bf16.msra.mxu1 %v7172_v8  ;;  %1500 = vmatprep.subr.bf16.mxu0 %v7173_v9  ;;  %v1030_v36 = vmul.f32 0.044715, %v966_v29  ;;  %v1031_v37 = vmul.f32 0.044715, %v967_v30  ;;  %v1054_v39 = vmul.f32 0.044715, %v990_v31  ;;  %v958_v38 = vmul.f32 %v8016_v18, %v375_v27 }
  0x43   : > { %7062 = vmatprep.subr.bf16.mxu1 %v7173_v9  ;;  %v1055_v40 = vmul.f32 0.044715, %v8041_v33  ;;  %v1032_v52 = vmul.f32 0.044715, %v8052_v45  ;;  %v8064_v55 = vmul.f32 0.5, %v966_v29  ;;  %v8071_v60 = vmul.f32 0.5, %v967_v30  ;;  %p7758_p12 = pneg %p7757_p10 }
  0x44   : > { %v1062_v43 = vmul.f32 %v1030_v36, %v966_v29  ;;  %v1063_v44 = vmul.f32 %v1031_v37, %v967_v30  ;;  %v1086_v46 = vmul.f32 %v1054_v39, %v990_v31  ;;  %v1033_v58 = vmul.f32 0.044715, %v8056_v48  ;;  %v7187_v1 = vld [vmem:[%s11667_s1 + $0xe0] ss:$16 sps:$4 sm:$0xff]   ;;  %v376_v35 = vld [vmem:[%s7992_s14 + $0xe8] sm:$0xff]  ;;  %s7761_s26 = scalar_lea.vmem %s7760_s25, 8192 }
  0x45   : > { %1501 = vmatpush1.bf16.msra.mxu0 %v7175_v12  ;;  %v1087_v47 = vmul.f32 %v1055_v40, %v8041_v33  ;;  %v1064_v63 = vmul.f32 %v1032_v52, %v8052_v45  ;;  %v992_v5 = vadd.f32 %v8019_v19, %v956_v49  ;;  %v8087_v20 = vmul.f32 0.5, %v990_v31  ;;  %v354_v52 = vld [vmem:[%s7992_s14 + $0x38] sm:$0xff]  ;;  %p7763_p3 = scmp.lt.s32.totalorder %s7761_s26, %s7755_s21 }
  0x46   : > { %7070 = vmatpush1.bf16.msra.mxu1 %v7175_v12  ;;  %1502 = vmatprep.subr.bf16.mxu0 %v7176_v13  ;;  %v1094_v50 = vmul.f32 %v1062_v43, %v966_v29  ;;  %v1095_v51 = vmul.f32 %v1063_v44, %v967_v30  ;;  %v1118_v56 = vmul.f32 %v1086_v46, %v990_v31  ;;  %v1023_v39 = vmul.f32 0.5, %v8041_v33 }
  0x47   : > { %7063 = vmatprep.subr.bf16.mxu1 %v7176_v13  ;;  %v1119_v57 = vmul.f32 %v1087_v47, %v8041_v33  ;;  %v1065_v4 = vmul.f32 %v1033_v58, %v8056_v48  ;;  %v1096_v9 = vmul.f32 %v1064_v63, %v8052_v45  ;;  %v8082_v12 = vadd.f32 %v8019_v19, %v957_v53  ;;  %v351_v13 = vld [vmem:[%s7992_s14 + $0x20] sm:$0xff]  ;;  %p7764_p4 = por %p7763_p3, %p7762_p2 }
  0x48   : > { %v1126_v61 = vadd.f32 %v1094_v50, %v966_v29  ;;  %v1127_v62 = vadd.f32 %v1095_v51, %v967_v30  ;;  %v1150_v2 = vadd.f32 %v1118_v56, %v990_v31  ;;  %v1056_v23 = vmul.f32 0.044715, %v992_v5 }
  0x49   : > { %1503 = vmatpush1.bf16.msra.mxu0 %v7178_v25  ;;  %v1151_v3 = vadd.f32 %v1119_v57, %v8041_v33  ;;  %v1097_v16 = vmul.f32 %v1065_v4, %v8056_v48  ;;  %v1128_v22 = vadd.f32 %v1096_v9, %v8052_v45  ;;  %v934_v26 = vmul.f32 %v8016_v18, %v351_v13  ;;  %p7765_p7 = pnand %p7764_p4, %p7758_p12 }
  0x4a   : > { %7071 = vmatpush1.bf16.msra.mxu1 %v7178_v25  ;;  %1504 = vmatprep.subr.bf16.mxu0 %v7179_v28  ;;  %v1158_v6 = vmul.f32 0.7978846, %v1126_v61  ;;  %v1159_v8 = vmul.f32 0.7978846, %v1127_v62  ;;  %v1182_v14 = vmul.f32 0.7978846, %v1150_v2  ;;  %v1088_v29 = vmul.f32 %v1056_v23, %v992_v5 }
  0x4b   : > { %7064 = vmatprep.subr.bf16.mxu1 %v7179_v28  ;;  %v1183_v15 = vmul.f32 0.7978846, %v1151_v3  ;;  %v1129_v24 = vadd.f32 %v1097_v16, %v8056_v48  ;;  %v1057_v25 = vmul.f32 0.044715, %v8082_v12  ;;  %v1160_v28 = vmul.f32 0.7978846, %v1128_v22 }
  0x4c   : > { %7372 = vtanh.f32 %v1158_v6  ;;  %v935_v30 = vmul.f32 %v8016_v18, %v352_v17  ;;  %v8100_v34 = vadd.f32 %v8019_v19, %v934_v26  ;;  %v1120_v36 = vmul.f32 %v1088_v29, %v992_v5 }
  0x4d   : > { %1505 = vmatpush1.bf16.msra.mxu0 %v7181_v32  ;;  %7374 = vtanh.f32 %v1159_v8  ;;  %v1161_v31 = vmul.f32 0.7978846, %v1129_v24  ;;  %v1000_v43 = vmul.f32 0.5, %v8052_v45  ;;  %v959_v47 = vmul.f32 %v8016_v18, %v376_v35  ;;  %v378_v35 = vld [vmem:[%s7992_s14 + $0xf8] sm:$0xff] }
  0x4e   : > { %7072 = vmatpush1.bf16.msra.mxu1 %v7181_v32  ;;  %1506 = vmatprep.subr.bf16.mxu0 %v7182_v42  ;;  %7376 = vtanh.f32 %v1182_v14  ;;  %v1089_v32 = vmul.f32 %v1057_v25, %v8082_v12  ;;  %v8104_v37 = vadd.f32 %v8019_v19, %v935_v30  ;;  %v1034_v41 = vmul.f32 0.044715, %v8100_v34 }
  0x4f   : > { %7065 = vmatprep.subr.bf16.mxu1 %v7182_v42  ;;  %7378 = vtanh.f32 %v1183_v15  ;;  %v353_v42 = vld [vmem:[%s7992_s14 + $0x30] sm:$0xff]  ;;  %v1152_v44 = vadd.f32 %v1120_v36, %v992_v5  ;;  %v1001_v49 = vmul.f32 0.5, %v8056_v48  ;;  %v8119_v33 = vadd.f32 %v8019_v19, %v958_v38  ;;  %v7193_v38 = vld [vmem:[%s11667_s1 + $0x2c] ss:$16 sps:$4 sm:$0xff]  }
  0x50   : > { %7380 = vtanh.f32 %v1160_v28  ;;  %v1121_v40 = vmul.f32 %v1089_v32, %v8082_v12  ;;  %v1035_v46 = vmul.f32 0.044715, %v8104_v37  ;;  %v1066_v51 = vmul.f32 %v1034_v41, %v8100_v34  ;;  %v377_v32 = vld [vmem:[%s7992_s14 + $0xf0] sm:$0xff] }
  0x51   : > { %1507 = vmatpush1.bf16.msra.mxu0 %v7184_v54  ;;  %7382 = vtanh.f32 %v1161_v31  ;;  %v1184_v53 = vmul.f32 0.7978846, %v1152_v44  ;;  %v8124_v45 = vadd.f32 %v8019_v19, %v959_v47  ;;  %v936_v56 = vmul.f32 %v8016_v18, %v353_v42 }
  0x52   : > { %7073 = vmatpush1.bf16.msra.mxu1 %v7184_v54  ;;  %1508 = vmatprep.subr.bf16.mxu0 %v7185_v59  ;;  %v1153_v50 = vadd.f32 %v1121_v40, %v8082_v12  ;;  %v1067_v54 = vmul.f32 %v1035_v46, %v8104_v37  ;;  %v8127_v57 = vmul.f32 0.5, %v992_v5  ;;  %v1098_v48 = vmul.f32 %v1066_v51, %v8100_v34 }
  0x53   : > { %7066 = vmatprep.subr.bf16.mxu1 %v7185_v59  ;;  %v1058_v59 = vmul.f32 0.044715, %v8119_v33  ;;  %7384 = vtanh.f32 %v1184_v53  ;;  %v1059_v63 = vmul.f32 0.044715, %v8124_v45  ;;  %v8139_v14 = vadd.f32 %v8019_v19, %v936_v56 }
  0x54   : > { %v1185_v58 = vmul.f32 0.7978846, %v1153_v50  ;;  %v1099_v62 = vmul.f32 %v1067_v54, %v8104_v37  ;;  %v1130_v4 = vadd.f32 %v1098_v48, %v8100_v34  ;;  %v1002_v53 = vmul.f32 0.5, %v8100_v34 }
  0x55   : > { %1509 = vmatpush1.bf16.msra.mxu0 %v7187_v1  ;;  %v1090_v5 = vmul.f32 %v1058_v59, %v8119_v33  ;;  %v1091_v13 = vmul.f32 %v1059_v63, %v8124_v45  ;;  %v1036_v51 = vmul.f32 0.044715, %v8139_v14  ;;  %v960_v59 = vmul.f32 %v8016_v18, %v377_v32 }
  0x56   : > { %7074 = vmatpush1.bf16.msra.mxu1 %v7187_v1  ;;  %3414 = vmatprep.subr.bf16.mxu0 %v11679_v0  ;;  %v7373_v61 = vpop.eup %7372  ;;  %v937_v1 = vmul.f32 %v8016_v18, %v354_v52  ;;  %7386 = vtanh.f32 %v1185_v58  ;;  %v1131_v9 = vadd.f32 %v1099_v62, %v8104_v37  ;;  %v356_v52 = vld [vmem:[%s7992_s14 + $0x48] sm:$0xff] }
  0x57   : > { %1687 = vmatprep.subr.bf16.mxu1 %v7190_v21  ;;  %v7375_v2 = vpop.eup %7374  ;;  %v1222_v3 = vadd.f32 1.0, %v7373_v61  ;;  %v1162_v21 = vmul.f32 0.7978846, %v1130_v4  ;;  %v1122_v22 = vmul.f32 %v1090_v5, %v8119_v33  ;;  %v1123_v27 = vmul.f32 %v1091_v13, %v8124_v45 }
  0x58   : > { %v7377_v6 = vpop.eup %7376  ;;  %v1223_v8 = vadd.f32 1.0, %v7375_v2  ;;  %v1163_v26 = vmul.f32 0.7978846, %v1131_v9  ;;  %v8160_v46 = vadd.f32 %v8019_v19, %v937_v1  ;;  %v1068_v48 = vmul.f32 %v1036_v51, %v8139_v14 }
  0x59   : > { %v7379_v15 = vpop.eup %7378  ;;  %v1254_v16 = vmul.f32 %v1222_v3, %v8064_v55  ;;  %v1246_v17 = vadd.f32 1.0, %v7377_v6  ;;  %v7188_v55 = vld [vmem:[%s11667_s1 + $0x8] ss:$16 sps:$4 sm:$0xff]   ;;  %7388 = vtanh.f32 %v1162_v21  ;;  %v1154_v31 = vadd.f32 %v1122_v22, %v8119_v33 }
  0x5a   : > { %v7381_v23 = vpop.eup %7380  ;;  %v1255_v24 = vmul.f32 %v1223_v8, %v8071_v60  ;;  %v1247_v25 = vadd.f32 1.0, %v7379_v15  ;;  %7390 = vtanh.f32 %v1163_v26  ;;  %v1155_v42 = vadd.f32 %v1123_v27, %v8124_v45  ;;  %v7194_v8 = vld [vmem:[%s11667_s1 + $0x48] ss:$16 sps:$4 sm:$0xff]   ;;  %v357_v26 = vld [vmem:[%s7992_s14 + $0x50] sm:$0xff] }
  0x5b   : > { %v7383_v28 = vpop.eup %7382  ;;  %v1278_v29 = vmul.f32 %v1246_v17, %v8087_v20  ;;  %v1224_v30 = vadd.f32 1.0, %v7381_v23  ;;  %v355_v20 = vld [vmem:[%s7992_s14 + $0x40] sm:$0xff]  ;;  %v1186_v44 = vmul.f32 0.7978846, %v1154_v31  ;;  %v1037_v56 = vmul.f32 0.044715, %v8160_v46 }
  0x5c   : > { %v8152_v60 = vpack.c.bf16 %v1255_v24, %v1254_v16  ;;  %v1279_v36 = vmul.f32 %v1247_v25, %v1023_v39  ;;  %v1225_v40 = vadd.f32 1.0, %v7383_v28  ;;  %v1025_v39 = vmul.f32 0.5, %v8082_v12  ;;  %v7196_v12 = vld [vmem:[%s11667_s1 + $0x4c] ss:$16 sps:$4 sm:$0xff]   ;;  %v7197_v31 = vld [vmem:[%s11667_s1 + $0x68] ss:$16 sps:$4 sm:$0xff]  }
  0x5d   : > { %v1256_v41 = vmul.f32 %v1224_v30, %v1000_v43  ;;  %v7191_v43 = vld [vmem:[%s11667_s1 + $0x28] ss:$16 sps:$4 sm:$0xff]   ;;  %v1187_v54 = vmul.f32 0.7978846, %v1155_v42  ;;  %7392 = vtanh.f32 %v1186_v44  ;;  %v7385_v58 = vpop.eup %7384  ;;  %v961_v61 = vmul.f32 %v8016_v18, %v378_v35  ;;  %v7199_v17 = vld [vmem:[%s11667_s1 + $0x6c] ss:$16 sps:$4 sm:$0xff]  }
  0x5e   : > { %1527 = vmatmul.mubr.bf16.vlgmr.msra.gmra.mrb[0].mxu0 %v8152_v60  ;;  %v8163_v47 = vpack.c.bf16 %v1279_v36, %v1278_v29  ;;  %v1257_v50 = vmul.f32 %v1225_v40, %v1001_v49  ;;  %v1248_v62 = vadd.f32 1.0, %v7385_v58  ;;  %v1069_v63 = vmul.f32 %v1037_v56, %v8160_v46  ;;  %v358_v30 = vld [vmem:[%s7992_s14 + $0x58] sm:$0xff] }
  0x5f   : > { %1536 = vmatprep.mubr.bf16.mxu0 %v11679_v0  ;;  %7394 = vtanh.f32 %v1187_v54  ;;  %v938_v1 = vmul.f32 %v8016_v18, %v355_v20  ;;  %v1100_v3 = vmul.f32 %v1068_v48, %v8139_v14  ;;  %v8188_v4 = vadd.f32 %v8019_v19, %v960_v59  ;;  %v7200_v58 = vld [vmem:[%s11667_s1 + $0x88] ss:$16 sps:$4 sm:$0xff]  }
  0x60   : > { %1647 = vmatmul.mubr.bf16.vlgmr.msra.gmra.mrb[0].mxu1 %v8163_v47  ;;  %v8175_v49 = vpack.c.bf16 %v1257_v50, %v1256_v41  ;;  %v7387_v34 = vpop.eup %7386  ;;  %v8191_v5 = vadd.f32 %v8019_v19, %v961_v61  ;;  %v1280_v6 = vmul.f32 %v1248_v62, %v8127_v57  ;;  %v1003_v9 = vmul.f32 0.5, %v8104_v37  ;;  %v7202_v41 = vld [vmem:[%s11667_s1 + $0x8c] ss:$16 sps:$4 sm:$0xff]  }
  0x61   : > { %1688 = vmatpush1.bf16.msra.mxu1 %v7188_v55  ;;  %1656 = vmatprep.mubr.bf16.mxu1 %v11679_v0  ;;  %v1249_v2 = vadd.f32 1.0, %v7387_v34  ;;  %v1101_v13 = vmul.f32 %v1069_v63, %v8160_v46  ;;  %v939_v15 = vmul.f32 %v8016_v18, %v356_v52  ;;  %v1026_v21 = vmul.f32 0.5, %v8119_v33  ;;  %v7205_v62 = vld [vmem:[%s11667_s1 + $0xac] ss:$16 sps:$4 sm:$0xff]  }
  0x62   : > { %1689 = vmatprep.subr.bf16.mxu1 %v7193_v38  ;;  %v1132_v57 = vadd.f32 %v1100_v3, %v8139_v14  ;;  %v8206_v22 = vadd.f32 %v8019_v19, %v938_v1  ;;  %v1060_v24 = vmul.f32 0.044715, %v8188_v4  ;;  %v1061_v25 = vmul.f32 0.044715, %v8191_v5  ;;  %v360_v3 = vld [vmem:[%s7992_s14 + $0x68] sm:$0xff] }
  0x63   : > { %v1281_v16 = vmul.f32 %v1249_v2, %v1025_v39  ;;  %v7389_v23 = vpop.eup %7388  ;;  %v1133_v37 = vadd.f32 %v1101_v13, %v8160_v46  ;;  %v8216_v55 = vadd.f32 %v8019_v19, %v939_v15  ;;  %v1027_v20 = vmul.f32 0.5, %v8124_v45  ;;  %v359_v2 = vld [vmem:[%s7992_s14 + $0x60] sm:$0xff]  ;;  %v361_v15 = vld [vmem:[%s7992_s14 + $0x70] sm:$0xff] }
  0x64   : > { %v7391_v27 = vpop.eup %7390  ;;  %v1226_v33 = vadd.f32 1.0, %v7389_v23  ;;  %v1164_v29 = vmul.f32 0.7978846, %v1132_v57  ;;  %v1092_v36 = vmul.f32 %v1060_v24, %v8188_v4  ;;  %v1093_v38 = vmul.f32 %v1061_v25, %v8191_v5  ;;  %v7203_v23 = vld [vmem:[%s11667_s1 + $0xa8] ss:$16 sps:$4 sm:$0xff]  }
  0x65   : > { %1690 = vmatpush1.bf16.msra.mxu1 %v7191_v43  ;;  %v8213_v28 = vpack.c.bf16 %v1281_v16, %v1280_v6  ;;  %v1227_v32 = vadd.f32 1.0, %v7391_v27  ;;  %v1165_v35 = vmul.f32 0.7978846, %v1133_v37  ;;  %v1038_v42 = vmul.f32 0.044715, %v8206_v22  ;;  %v362_v16 = vld [vmem:[%s7992_s14 + $0x78] sm:$0xff] }
  0x66   : > { %1537 = vmatmul.mubr.bf16.gmra.mrb[4].mxu0 %v8175_v49  ;;  %1691 = vmatprep.subr.bf16.mxu1 %v7196_v12  ;;  %v1258_v40 = vmul.f32 %v1226_v33, %v1002_v53  ;;  %7396 = vtanh.f32 %v1164_v29  ;;  %v1124_v39 = vmul.f32 %v1092_v36, %v8188_v4  ;;  %v1125_v51 = vmul.f32 %v1093_v38, %v8191_v5  ;;  %v7208_v27 = vld [vmem:[%s11667_s1 + $0xcc] ss:$16 sps:$4 sm:$0xff]  }
  0x67   : > { %1546 = vmatprep.mubr.bf16.mxu0 %v11679_v0  ;;  %v7393_v44 = vpop.eup %7392  ;;  %v1259_v50 = vmul.f32 %v1227_v32, %v1003_v9  ;;  %7398 = vtanh.f32 %v1165_v35  ;;  %v1039_v52 = vmul.f32 0.044715, %v8216_v55  ;;  %v1070_v43 = vmul.f32 %v1038_v42, %v8206_v22 }
  0x68   : > { %1657 = vmatmul.mubr.bf16.gmra.mrb[4].mxu1 %v8213_v28  ;;  %v1250_v45 = vadd.f32 1.0, %v7393_v44  ;;  %v940_v53 = vmul.f32 %v8016_v18, %v357_v26  ;;  %v1156_v12 = vadd.f32 %v1124_v39, %v8188_v4  ;;  %v1157_v48 = vadd.f32 %v1125_v51, %v8191_v5  ;;  %v7211_v51 = vld [vmem:[%s11667_s1 + $0xec] ss:$16 sps:$4 sm:$0xff]  }
  0x69   : > { %1692 = vmatpush1.bf16.msra.mxu1 %v7194_v8  ;;  %1666 = vmatprep.mubr.bf16.mxu1 %v11679_v0  ;;  %v7395_v54 = vpop.eup %7394  ;;  %v8237_v56 = vpack.c.bf16 %v1259_v50, %v1258_v40  ;;  %v941_v59 = vmul.f32 %v8016_v18, %v358_v30  ;;  %v1071_v63 = vmul.f32 %v1039_v52, %v8216_v55  ;;  %v1004_v37 = vmul.f32 0.5, %v8139_v14 }
  0x6a   : > { %1693 = vmatprep.subr.bf16.mxu1 %v7199_v17  ;;  %v1251_v61 = vadd.f32 1.0, %v7395_v54  ;;  %v1282_v34 = vmul.f32 %v1250_v45, %v1026_v21  ;;  %v1102_v1 = vmul.f32 %v1070_v43, %v8206_v22  ;;  %v1188_v6 = vmul.f32 0.7978846, %v1156_v12 }
  0x6b   : > { %v1189_v8 = vmul.f32 0.7978846, %v1157_v48  ;;  %v8253_v9 = vadd.f32 %v8019_v19, %v940_v53  ;;  %v8256_v13 = vadd.f32 %v8019_v19, %v941_v59  ;;  %v1103_v21 = vmul.f32 %v1071_v63, %v8216_v55 }
  0x6c   : > { %v1283_v17 = vmul.f32 %v1251_v61, %v1027_v20  ;;  %v1134_v57 = vadd.f32 %v1102_v1, %v8206_v22  ;;  %v1005_v24 = vmul.f32 0.5, %v8160_v46  ;;  %7400 = vtanh.f32 %v1188_v6 }
  0x6d   : > { %1694 = vmatpush1.bf16.msra.mxu1 %v7197_v31  ;;  %v1040_v25 = vmul.f32 0.044715, %v8253_v9  ;;  %7402 = vtanh.f32 %v1189_v8  ;;  %v1135_v33 = vadd.f32 %v1103_v21, %v8216_v55  ;;  %v1041_v30 = vmul.f32 0.044715, %v8256_v13 }
  0x6e   : > { %1547 = vmatmul.mubr.bf16.gmra.mrb[8].mxu0 %v8237_v56  ;;  %1695 = vmatprep.subr.bf16.mxu1 %v7202_v41  ;;  %v8270_v26 = vpack.c.bf16 %v1283_v17, %v1282_v34  ;;  %v1166_v29 = vmul.f32 0.7978846, %v1134_v57  ;;  %v942_v46 = vmul.f32 %v8016_v18, %v359_v2  ;;  %v943_v31 = vmul.f32 %v8016_v18, %v360_v3  ;;  %v7206_v41 = vld [vmem:[%s11667_s1 + $0xc8] ss:$16 sps:$4 sm:$0xff]   ;;  %v363_v34 = vld [vmem:[%s7992_s14 + $0x80] sm:$0xff] }
  0x6f   : > { %1556 = vmatprep.mubr.bf16.mxu0 %v11679_v0  ;;  %v1072_v14 = vmul.f32 %v1040_v25, %v8253_v9  ;;  %v1167_v35 = vmul.f32 0.7978846, %v1135_v33  ;;  %v944_v36 = vmul.f32 %v8016_v18, %v361_v15  ;;  %v945_v38 = vmul.f32 %v8016_v18, %v362_v16  ;;  %v364_v15 = vld [vmem:[%s7992_s14 + $0x88] sm:$0xff] }
  0x70   : > { %v7397_v32 = vpop.eup %7396  ;;  %1667 = vmatmul.mubr.bf16.gmra.mrb[8].mxu1 %v8270_v26  ;;  %7404 = vtanh.f32 %v1166_v29  ;;  %v1073_v42 = vmul.f32 %v1041_v30, %v8256_v13  ;;  %v8290_v50 = vadd.f32 %v8019_v19, %v942_v46  ;;  %v8296_v45 = vadd.f32 %v8019_v19, %v943_v31 }
  0x71   : > { %1696 = vmatpush1.bf16.msra.mxu1 %v7200_v58  ;;  %v7399_v40 = vpop.eup %7398  ;;  %1676 = vmatprep.mubr.bf16.mxu1 %v11679_v0  ;;  %v1228_v20 = vadd.f32 1.0, %v7397_v32  ;;  %v1104_v44 = vmul.f32 %v1072_v14, %v8253_v9  ;;  %7406 = vtanh.f32 %v1167_v35  ;;  %v8299_v52 = vadd.f32 %v8019_v19, %v944_v36 }
  0x72   : > { %1697 = vmatprep.subr.bf16.mxu1 %v7205_v62  ;;  %v1229_v39 = vadd.f32 1.0, %v7399_v40  ;;  %v1028_v53 = vmul.f32 0.5, %v8188_v4  ;;  %v1105_v54 = vmul.f32 %v1073_v42, %v8256_v13  ;;  %v1029_v48 = vmul.f32 0.5, %v8191_v5  ;;  %v7209_v62 = vld [vmem:[%s11667_s1 + $0xe8] ss:$16 sps:$4 sm:$0xff]   ;;  %v365_v40 = vld [vmem:[%s7992_s14 + $0x90] sm:$0xff] }
  0x73   : > { %v1260_v43 = vmul.f32 %v1228_v20, %v1004_v37  ;;  %v1136_v58 = vadd.f32 %v1104_v44, %v8253_v9  ;;  %v1042_v59 = vmul.f32 0.044715, %v8290_v50  ;;  %v1043_v61 = vmul.f32 0.044715, %v8296_v45 }
  0x74   : > { %v1261_v12 = vmul.f32 %v1229_v39, %v1005_v24  ;;  %v1006_v4 = vmul.f32 0.5, %v8206_v22  ;;  %v1137_v63 = vadd.f32 %v1105_v54, %v8256_v13  ;;  %v8314_v2 = vadd.f32 %v8019_v19, %v945_v38 }
  0x75   : > { %1698 = vmatpush1.bf16.msra.mxu1 %v7203_v23  ;;  %v1168_v1 = vmul.f32 0.7978846, %v1136_v58  ;;  %v1074_v5 = vmul.f32 %v1042_v59, %v8290_v50  ;;  %v1075_v6 = vmul.f32 %v1043_v61, %v8296_v45  ;;  %v1044_v8 = vmul.f32 0.044715, %v8299_v52 }
  0x76   : > { %1699 = vmatprep.subr.bf16.mxu1 %v7208_v27  ;;  %v8316_v3 = vpack.c.bf16 %v1261_v12, %v1260_v43  ;;  %v7401_v16 = vpop.eup %7400  ;;  %v1007_v17 = vmul.f32 0.5, %v8216_v55  ;;  %v1169_v22 = vmul.f32 0.7978846, %v1137_v63  ;;  %v1045_v21 = vmul.f32 0.044715, %v8314_v2  ;;  %v367_v12 = vld [vmem:[%s7992_s14 + $0xa0] sm:$0xff] }
  0x77   : > { %7408 = vtanh.f32 %v1168_v1  ;;  %v7403_v57 = vpop.eup %7402  ;;  %v1252_v23 = vadd.f32 1.0, %v7401_v16  ;;  %v1106_v37 = vmul.f32 %v1074_v5, %v8290_v50  ;;  %v1107_v24 = vmul.f32 %v1075_v6, %v8296_v45 }
  0x78   : > { %1557 = vmatmul.mubr.bf16.gmra.mrb[12].mxu0 %v8316_v3  ;;  %v1076_v25 = vmul.f32 %v1044_v8, %v8299_v52  ;;  %v1253_v27 = vadd.f32 1.0, %v7403_v57  ;;  %7410 = vtanh.f32 %v1169_v22  ;;  %v1077_v55 = vmul.f32 %v1045_v21, %v8314_v2 }
  0x79   : > { %1700 = vmatpush1.bf16.msra.mxu1 %v7206_v41  ;;  %1566 = vmatprep.mubr.bf16.mxu0 %v11679_v0  ;;  %v946_v33 = vmul.f32 %v8016_v18, %v363_v34  ;;  %v1284_v30 = vmul.f32 %v1252_v23, %v1028_v53  ;;  %v1138_v14 = vadd.f32 %v1106_v37, %v8290_v50  ;;  %v368_v34 = vld [vmem:[%s7992_s14 + $0xa8] sm:$0xff] }
  0x7a   : > { %1701 = vmatprep.subr.bf16.mxu1 %v7211_v51  ;;  %v7405_v29 = vpop.eup %7404  ;;  %v1139_v46 = vadd.f32 %v1107_v24, %v8296_v45  ;;  %v1108_v31 = vmul.f32 %v1076_v25, %v8299_v52  ;;  %v1285_v32 = vmul.f32 %v1253_v27, %v1029_v48  ;;  %v1109_v36 = vmul.f32 %v1077_v55, %v8314_v2  ;;  %v366_v51 = vld [vmem:[%s7992_s14 + $0x98] sm:$0xff]  ;;  %v369_v25 = vld [vmem:[%s7992_s14 + $0xb0] sm:$0xff] }
  0x7b   : > { %v1230_v35 = vadd.f32 1.0, %v7405_v29  ;;  %v947_v38 = vmul.f32 %v8016_v18, %v364_v15  ;;  %v7407_v20 = vpop.eup %7406  ;;  %v1170_v41 = vmul.f32 0.7978846, %v1138_v14  ;;  %v8339_v39 = vadd.f32 %v8019_v19, %v946_v33 }
  0x7c   : > { %v1171_v42 = vmul.f32 0.7978846, %v1139_v46  ;;  %v1140_v44 = vadd.f32 %v1108_v31, %v8299_v52  ;;  %v8342_v43 = vpack.c.bf16 %v1285_v32, %v1284_v30  ;;  %v1231_v53 = vadd.f32 1.0, %v7407_v20 }
  0x7d   : > { %1702 = vmatpush1.bf16.msra.mxu1 %v7209_v62  ;;  %v1262_v54 = vmul.f32 %v1230_v35, %v1006_v4  ;;  %v1141_v58 = vadd.f32 %v1109_v36, %v8314_v2  ;;  %v1008_v48 = vmul.f32 0.5, %v8253_v9  ;;  %7412 = vtanh.f32 %v1170_v41 }
  0x7e   : > { %v1172_v59 = vmul.f32 0.7978846, %v1140_v44  ;;  %v8348_v61 = vadd.f32 %v8019_v19, %v947_v38  ;;  %1677 = vmatmul.mubr.bf16.gmra.mrb[12].mxu1 %v8342_v43  ;;  %v1263_v62 = vmul.f32 %v1231_v53, %v1007_v17  ;;  %7414 = vtanh.f32 %v1171_v42  ;;  %v370_v53 = vld [vmem:[%s7992_s14 + $0xb8] sm:$0xff] }
  0x7f   : > { %v1173_v63 = vmul.f32 0.7978846, %v1141_v58  ;;  %v1046_v1 = vmul.f32 0.044715, %v8339_v39  ;;  %1719 = vmatprep.mubr.bf16.mxu1 %v11679_v0  ;;  %v1009_v4 = vmul.f32 0.5, %v8256_v13  ;;  %v948_v5 = vmul.f32 %v8016_v18, %v365_v40 }
  0x80   : > { %7416 = vtanh.f32 %v1172_v59  ;;  %v1047_v9 = vmul.f32 0.044715, %v8348_v61  ;;  %v8357_v8 = vpack.c.bf16 %v1263_v62, %v1262_v54  ;;  %v949_v16 = vmul.f32 %v8016_v18, %v366_v51 }
  0x81   : > { %v7409_v6 = vpop.eup %7408  ;;  %7418 = vtanh.f32 %v1173_v63  ;;  %v1078_v15 = vmul.f32 %v1046_v1, %v8339_v39  ;;  %v8363_v21 = vadd.f32 %v8019_v19, %v948_v5  ;;  %v950_v13 = vmul.f32 %v8016_v18, %v367_v12 }
  0x82   : > { %v1232_v17 = vadd.f32 1.0, %v7409_v6  ;;  %v1079_v22 = vmul.f32 %v1047_v9, %v8348_v61  ;;  %v7411_v57 = vpop.eup %7410  ;;  %1567 = vmatmul.mubr.bf16.gmra.mrb[16].mxu0 %v8357_v8  ;;  %v8369_v37 = vadd.f32 %v8019_v19, %v949_v16  ;;  %v951_v24 = vmul.f32 %v8016_v18, %v368_v34 }
  0x83   : > { %v1110_v23 = vmul.f32 %v1078_v15, %v8339_v39  ;;  %1576 = vmatprep.mubr.bf16.mxu0 %v11679_v0  ;;  %v1233_v27 = vadd.f32 1.0, %v7411_v57  ;;  %v1010_v33 = vmul.f32 0.5, %v8290_v50  ;;  %v1011_v30 = vmul.f32 0.5, %v8296_v45 }
  0x84   : > { %v1264_v55 = vmul.f32 %v1232_v17, %v1008_v48  ;;  %v1111_v29 = vmul.f32 %v1079_v22, %v8348_v61  ;;  %v1048_v46 = vmul.f32 0.044715, %v8363_v21  ;;  %v1049_v31 = vmul.f32 0.044715, %v8369_v37 }
  0x85   : > { %v1142_v14 = vadd.f32 %v1110_v23, %v8339_v39  ;;  %v1265_v32 = vmul.f32 %v1233_v27, %v1009_v4  ;;  %v8382_v36 = vadd.f32 %v8019_v19, %v950_v13  ;;  %v8385_v38 = vadd.f32 %v8019_v19, %v951_v24 }
  0x86   : > { %v1143_v35 = vadd.f32 %v1111_v29, %v8348_v61  ;;  %1720 = vmatmul.mubr.bf16.vlgmr.msra.gmra.mrb[16].mxu1 %v8152_v60  ;;  %v1012_v50 = vmul.f32 0.5, %v8299_v52  ;;  %v1080_v40 = vmul.f32 %v1048_v46, %v8363_v21  ;;  %v1081_v20 = vmul.f32 %v1049_v31, %v8369_v37 }
  0x87   : > { %v1174_v45 = vmul.f32 0.7978846, %v1142_v14  ;;  %v7413_v41 = vpop.eup %7412  ;;  %1729 = vmatprep.mubr.bf16.mxu1 %v11679_v0  ;;  %v8392_v42 = vpack.c.bf16 %v1265_v32, %v1264_v55  ;;  %v1013_v44 = vmul.f32 0.5, %v8314_v2  ;;  %v952_v54 = vmul.f32 %v8016_v18, %v369_v25 }
  0x88   : > { %v1175_v51 = vmul.f32 0.7978846, %v1143_v35  ;;  %v7415_v58 = vpop.eup %7414  ;;  %v1234_v60 = vadd.f32 1.0, %v7413_v41  ;;  %v1112_v52 = vmul.f32 %v1080_v40, %v8363_v21  ;;  %v1113_v12 = vmul.f32 %v1081_v20, %v8369_v37 }
  0x89   : > { %7420 = vtanh.f32 %v1174_v45  ;;  %v1235_v59 = vadd.f32 1.0, %v7415_v58  ;;  %v1050_v34 = vmul.f32 0.044715, %v8382_v36  ;;  %v1051_v62 = vmul.f32 0.044715, %v8385_v38 }
  0x8a   : > { %v7417_v48 = vpop.eup %7416  ;;  %7422 = vtanh.f32 %v1175_v51  ;;  %1577 = vmatmul.mubr.bf16.gmra.mrb[20].mxu0 %v8392_v42  ;;  %v1266_v2 = vmul.f32 %v1234_v60, %v1010_v33  ;;  %v1144_v1 = vadd.f32 %v1112_v52, %v8363_v21  ;;  %v1145_v4 = vadd.f32 %v1113_v12, %v8369_v37 }
  0x8b   : > { %v7419_v63 = vpop.eup %7418  ;;  %v953_v9 = vmul.f32 %v8016_v18, %v370_v53  ;;  %1586 = vmatprep.mubr.bf16.mxu0 %v11679_v0  ;;  %v1267_v5 = vmul.f32 %v1235_v59, %v1011_v30  ;;  %v1236_v6 = vadd.f32 1.0, %v7417_v48  ;;  %v1082_v15 = vmul.f32 %v1050_v34, %v8382_v36 }
  0x8c   : > { %v1083_v16 = vmul.f32 %v1051_v62, %v8385_v38  ;;  %v1176_v17 = vmul.f32 0.7978846, %v1144_v1  ;;  %v1177_v22 = vmul.f32 0.7978846, %v1145_v4  ;;  %v8409_v13 = vadd.f32 %v8019_v19, %v952_v54 }
  0x8d   : > { %v1114_v57 = vmul.f32 %v1082_v15, %v8382_v36  ;;  %v8414_v18 = vpack.c.bf16 %v1267_v5, %v1266_v2  ;;  %v1237_v24 = vadd.f32 1.0, %v7419_v63  ;;  %v8417_v25 = vadd.f32 %v8019_v19, %v953_v9 }
  0x8e   : > { %v1115_v23 = vmul.f32 %v1083_v16, %v8385_v38  ;;  %1730 = vmatmul.mubr.bf16.gmra.mrb[20].mxu1 %v8175_v49  ;;  %v1052_v27 = vmul.f32 0.044715, %v8409_v13  ;;  %7424 = vtanh.f32 %v1176_v17  ;;  %v1014_v49 = vmul.f32 0.5, %v8339_v39 }
  0x8f   : > { %1739 = vmatprep.mubr.bf16.mxu1 %v11679_v0  ;;  %v1146_v55 = vadd.f32 %v1114_v57, %v8382_v36  ;;  %v1053_v29 = vmul.f32 0.044715, %v8417_v25  ;;  %v1015_v14 = vmul.f32 0.5, %v8348_v61  ;;  %7426 = vtanh.f32 %v1177_v22 }
  0x90   : > { %v1147_v33 = vadd.f32 %v1115_v23, %v8385_v38  ;;  %v1084_v30 = vmul.f32 %v1052_v27, %v8409_v13  ;;  %v1268_v46 = vmul.f32 %v1236_v6, %v1012_v50  ;;  %v1269_v31 = vmul.f32 %v1237_v24, %v1013_v44 }
  0x91   : > { %v1085_v32 = vmul.f32 %v1053_v29, %v8417_v25  ;;  %v1178_v45 = vmul.f32 0.7978846, %v1146_v55  ;;  %v1017_v59 = vmul.f32 0.5, %v8369_v37  ;;  %v1019_v37 = vmul.f32 0.5, %v8385_v38 }
  0x92   : > { %1587 = vmatmul.mubr.bf16.gmra.mrb[24].mxu0 %v8414_v18  ;;  %v1179_v40 = vmul.f32 0.7978846, %v1147_v33  ;;  %v1116_v20 = vmul.f32 %v1084_v30, %v8409_v13  ;;  %v1293_v39 = vpack.c.bf16 %v1269_v31, %v1268_v46  ;;  %v1020_v22 = vmul.f32 0.5, %v8409_v13 }
  0x93   : > { %v7421_v19 = vpop.eup %7420  ;;  %1596 = vmatprep.mubr.bf16.mxu0 %v11679_v0  ;;  %v1117_v41 = vmul.f32 %v1085_v32, %v8417_v25  ;;  %7428 = vtanh.f32 %v1178_v45 }
  0x94   : > { %v7423_v35 = vpop.eup %7422  ;;  %v1238_v61 = vadd.f32 1.0, %v7421_v19  ;;  %v1148_v50 = vadd.f32 %v1116_v20, %v8409_v13  ;;  %7430 = vtanh.f32 %v1179_v40 }
  0x95   : > { %v1239_v51 = vadd.f32 1.0, %v7423_v35  ;;  %v1149_v44 = vadd.f32 %v1117_v41, %v8417_v25 }
  0x96   : > { %1740 = vmatmul.mubr.bf16.gmra.mrb[24].mxu1 %v8237_v56  ;;  %v1270_v54 = vmul.f32 %v1238_v61, %v1014_v49  ;;  %v1180_v52 = vmul.f32 0.7978846, %v1148_v50  ;;  %v1016_v56 = vmul.f32 0.5, %v8363_v21  ;;  %v1018_v21 = vmul.f32 0.5, %v8382_v36 }
  0x97   : > { %1749 = vmatprep.mubr.bf16.mxu1 %v11679_v0  ;;  %v1271_v58 = vmul.f32 %v1239_v51, %v1015_v14  ;;  %v1181_v12 = vmul.f32 0.7978846, %v1149_v44 }
  0x98   : > { %v7425_v53 = vpop.eup %7424  ;;  %7432 = vtanh.f32 %v1180_v52 }
  0x99   : > { %v7427_v60 = vpop.eup %7426  ;;  %v1294_v48 = vpack.c.bf16 %v1271_v58, %v1270_v54  ;;  %v1240_v34 = vadd.f32 1.0, %v7425_v53  ;;  %7434 = vtanh.f32 %v1181_v12 }
  0x9a   : > { %1597 = vmatmul.mubr.bf16.gmra.mrb[28].mxu0 %v1293_v39  ;;  %v1241_v62 = vadd.f32 1.0, %v7427_v60 }
  0x9b   : > { %1606 = vmatprep.mubr.bf16.mxu0 %v11679_v0  ;;  %v1272_v2 = vmul.f32 %v1240_v34, %v1016_v56 }
  0x9c   : > { %v1273_v1 = vmul.f32 %v1241_v62, %v1017_v59  ;;  %v383_v62 = vadd.s32 8, %v7984_v7 }
  0x9d   : > { %v7429_v63 = vpop.eup %7428 }
  0x9e   : > { %1750 = vmatmul.mubr.bf16.gmra.mrb[28].mxu1 %v8316_v3  ;;  %v7431_v4 = vpop.eup %7430  ;;  %v1295_v3 = vpack.c.bf16 %v1273_v1, %v1272_v2  ;;  %v1242_v9 = vadd.f32 1.0, %v7429_v63  ;;  %v384_v2 = vadd.s32 16, %v7984_v7 }
  0x9f   : > { %1759 = vmatprep.mubr.bf16.mxu1 %v11679_v0  ;;  %v1243_v5 = vadd.f32 1.0, %v7431_v4 }
  0xa0   : > { %v1274_v15 = vmul.f32 %v1242_v9, %v1018_v21  ;;  %v425_v21 = vand.u32 15, %v383_v62 }
  0xa1   : > { %v1275_v16 = vmul.f32 %v1243_v5, %v1019_v37  ;;  %v2656_v37 = vsub.s32 3, %v7984_v7  ;;  %v2692_v5 = vsub.s32 4, %v7984_v7 }
  0xa2   : > { %1607 = vmatmul.mubr.bf16.gmra.mrb[32].mxu0 %v1294_v48  ;;  %v7433_v6 = vpop.eup %7432  ;;  %vm8582_vm2 = vcmp.eq.s32.totalorder %v425_v21, 15 }
  0xa3   : > { %1616 = vmatprep.mubr.bf16.mxu0 %v11679_v0  ;;  %v7435_v17 = vpop.eup %7434  ;;  %v1296_v36 = vpack.c.bf16 %v1275_v16, %v1274_v15  ;;  %v1244_v57 = vadd.f32 1.0, %v7433_v6  ;;  %v8508_v6 = vadd.s32 24, %v7984_v7  ;;  %v8511_v15 = vadd.s32 32, %v7984_v7 }
  0xa4   : > { %v1245_v38 = vadd.f32 1.0, %v7435_v17  ;;  %v8514_v16 = vadd.s32 40, %v7984_v7 }
  0xa5   : > { %v1276_v23 = vmul.f32 %v1244_v57, %v1020_v22  ;;  %v8525_v57 = vadd.s32 64, %v7984_v7 }
  0xa6   : > { %1760 = vmatmul.mubr.bf16.gmra.mrb[32].mxu1 %v8357_v8  ;;  %v1021_v8 = vmul.f32 0.5, %v8417_v25 }
  0xa7   : > { %1769 = vmatprep.mubr.bf16.mxu1 %v11679_v0 }
  0xa8   : > { %v1277_v24 = vmul.f32 %v1245_v38, %v1021_v8  ;;  %v8522_v8 = vadd.s32 56, %v7984_v7 }
  0xaa   : > { %1617 = vmatmul.mubr.bf16.gmra.mrb[36].mxu0 %v1295_v3  ;;  %v1297_v27 = vpack.c.bf16 %v1277_v24, %v1276_v23  ;;  %v8528_v23 = vadd.s32 72, %v7984_v7  ;;  %v8531_v24 = vadd.s32 80, %v7984_v7 }
  0xab   : > { %1626 = vmatprep.mubr.bf16.mxu0 %v11679_v0 }
  0xae   : > { %1770 = vmatmul.mubr.bf16.gmra.mrb[36].mxu1 %v8392_v42 }
  0xaf   : > { %1779 = vmatprep.mubr.bf16.mxu1 %v11679_v0 }
  0xb2   : > { %1627 = vmatmul.mubr.bf16.gmra.mrb[40].mxu0 %v1296_v36 }
  0xb3   : > { %1636 = vmatprep.mubr.bf16.mxu0 %v11679_v0 }
  0xb6   : > { %1780 = vmatmul.mubr.bf16.gmra.mrb[40].mxu1 %v8414_v18 }
  0xb7   : > { %1789 = vmatprep.mubr.bf16.mxu1 %v11679_v0 }
  0xba   : > { %1637 = vmatmul.mubr.bf16.gmra.mrb[44].mxu0 %v1297_v27 }
  0xbe   : > { %1790 = vmatmul.mubr.bf16.gmra.mrb[44].mxu1 %v1293_v39 }
  0xbf   : > { %1799 = vmatprep.mubr.bf16.mxu1 %v11679_v0 }
  0xc6   : > { %1800 = vmatmul.mubr.bf16.gmra.mrb[48].mxu1 %v1294_v48 }
  0xc7   : > { %1809 = vmatprep.mubr.bf16.mxu1 %v11679_v0 }
  0xce   : > { %1810 = vmatmul.mubr.bf16.gmra.mrb[52].mxu1 %v1295_v3  ;;  %v2620_v3 = vsub.s32 2, %v7984_v7 }
  0xcf   : > { %1819 = vmatprep.mubr.bf16.mxu1 %v11679_v0 }
  0xd6   : > { %1820 = vmatmul.mubr.bf16.gmra.mrb[56].mxu1 %v1296_v36  ;;  %v8519_v36 = vadd.s32 48, %v7984_v7 }
  0xd7   : > { %1829 = vmatprep.mubr.bf16.mxu1 %v11679_v0 }
  0xde   : > { %1830 = vmatmul.mubr.bf16.gmra.mrb[60].mxu1 %v1297_v27  ;;  %v8534_v27 = vadd.s32 88, %v7984_v7 }
  0xdf   : > { %1839 = vmatprep.mubr.bf16.mxu1 %v11679_v0 }
  0xe6   : > { %1840 = vmatmul.mubr.bf16.gmra.mrb[64].mxu1 %v8163_v47 }
  0xe7   : > { %1849 = vmatprep.mubr.bf16.mxu1 %v11679_v0 }
  0xee   : > { %1850 = vmatmul.mubr.bf16.gmra.mrb[68].mxu1 %v8213_v28 }
  0xef   : > { %1859 = vmatprep.mubr.bf16.mxu1 %v11679_v0 }
  0xf6   : > { %1860 = vmatmul.mubr.bf16.gmra.mrb[72].mxu1 %v8270_v26 }
  0xf7   : > { %1869 = vmatprep.mubr.bf16.mxu1 %v11679_v0 }
  0xfe   : > { %1870 = vmatmul.mubr.bf16.gmra.mrb[76].mxu1 %v8342_v43 }
 0x131   : > { %v1528_v42 = vpop.f32.mrb[0].mxu0 }
 0x132   : > { %v1530_v13 = vpop.f32.mrb[1].mxu0  ;;  %v8537_v42 = vadd.s32 96, %v7984_v7 }
 0x133   : > { %v8466_v18 = vpop.f32.mrb[0].mxu1  ;;  %v1532_v25 = vpop.f32.mrb[2].mxu0 }
 0x134   : > { %v1650_v55 = vpop.f32.mrb[1].mxu1  ;;  %v1534_v33 = vpop.f32.mrb[3].mxu0 }
 0x135   : > { %v8468_v47 = vpop.f32.mrb[2].mxu1 }
 0x136   : > { %v1654_v29 = vpop.f32.mrb[3].mxu1 }
 0x139   : > { %v1538_v30 = vpop.f32.mrb[4].mxu0 }
 0x13a   : > { %v1540_v28 = vpop.f32.mrb[5].mxu0 }
 0x13b   : > { %v8470_v49 = vpop.f32.mrb[4].mxu1  ;;  %v8472_v14 = vadd.f32 %v1540_v28, %v1538_v30  ;;  %v1542_v26 = vpop.f32.mrb[6].mxu0 }
 0x13c   : > { %v1660_v19 = vpop.f32.mrb[5].mxu1  ;;  %v1544_v46 = vpop.f32.mrb[7].mxu0 }
 0x13d   : > { %11748 = vst [vmem:[#allocation11_spill] sm:$0xff] %v8472_v14  ;;  %v8474_v43 = vpop.f32.mrb[6].mxu1  ;;  %v8476_v31 = vadd.f32 %v1544_v46, %v1542_v26  ;;  %v439_v26 = vand.u32 15, %v8508_v6  ;;  %v8590_v6 = vadd.s32 144, %v7984_v7  ;;  %v8646_v14 = vadd.s32 176, %v7984_v7 }
 0x13e   : > { %v1664_v32 = vpop.f32.mrb[7].mxu1 }
 0x13f   : > { %11759 = vst [vmem:[#allocation20_spill] sm:$0xff] %v8590_v6  ;;  %vm8651_vm4 = vcmp.eq.s32.totalorder %v439_v26, 15  ;;  %v11773_v26 = vand.u32 15, %v8511_v15 }
 0x141   : > { %v1548_v35 = vpop.f32.mrb[8].mxu0  ;;  %vm8668_vm5 = vcmp.eq.s32.totalorder %v11773_v26, 0 }
 0x142   : > { %v8478_v45 = vadd.f32 %v1548_v35, %v1530_v13  ;;  %v1550_v40 = vpop.f32.mrb[9].mxu0  ;;  %v7692_v13 = vld [vmem:[%s11671_s5] sm:$0xff] }
 0x143   : > { %v1552_v20 = vpop.f32.mrb[10].mxu0  ;;  %v1668_v61 = vpop.f32.mrb[8].mxu1  ;;  %v8542_v25 = vrot.slane %v7692_v13, %v2620_v3  ;;  %v8580_v3 = vadd.s32 128, %v7984_v7 }
 0x144   : > { %v8480_v41 = vadd.f32 %v1552_v20, %v1534_v33  ;;  %v1554_v39 = vpop.f32.mrb[11].mxu0  ;;  %v8482_v51 = vadd.f32 %v1668_v61, %v1650_v55  ;;  %v1670_v50 = vpop.f32.mrb[9].mxu1  ;;  %v8544_v55 = vrot.slane %v7692_v13, %v2656_v37  ;;  %v432_v33 = vand.u32 15, %v384_v2 }
 0x145   : > { %v8484_v44 = vadd.f32 %v1670_v50, %v1668_v61  ;;  %v1672_v53 = vpop.f32.mrb[10].mxu1  ;;  %v8574_v2 = vadd.s32 112, %v7984_v7 }
 0x146   : > { %11749 = vst [vmem:[#allocation12_spill] sm:$0xff] %v8482_v51  ;;  %v8486_v54 = vadd.f32 %v1672_v53, %v1654_v29  ;;  %v1674_v58 = vpop.f32.mrb[11].mxu1  ;;  %vm8600_vm3 = vcmp.eq.s32.totalorder %v432_v33, 0 }
 0x147   : > { %11750 = vst [vmem:[#allocation13_spill] sm:$0xff] %v8484_v44  ;;  %v8488_v60 = vadd.f32 %v1674_v58, %v1672_v53 }
 0x148   : > { %11751 = vst [vmem:[#allocation14_spill] sm:$0xff] %v8486_v54 }
 0x149   : > { %11752 = vst [vmem:[#allocation15_spill] sm:$0xff] %v8488_v60 }
 0x14b   : > { %v1558_v52 = vpop.f32.mrb[12].mxu0 }
 0x14c   : > { %v8490_v56 = vadd.f32 %v1558_v52, %v1540_v28  ;;  %v8492_v12 = vpop.f32.mrb[13].mxu0  ;;  %v8550_v28 = vrot.slane %v7692_v13, %v2692_v5  ;;  %v8587_v5 = vadd.s32 136, %v7984_v7  ;;  %v8620_v52 = vadd.s32 168, %v7984_v7 }
 0x14d   : > { %v1562_v48 = vpop.f32.mrb[14].mxu0 }
 0x14e   : > { %v8494_v59 = vadd.f32 %v1562_v48, %v1544_v46  ;;  %v8496_v34 = vpop.f32.mrb[15].mxu0  ;;  %11765 = vst [vmem:[#allocation24_spill] sm:$0xff] %v8620_v52 }
 0x151   : > { %v1678_v63 = vpop.f32.mrb[12].mxu1 }
 0x152   : > { %v8500_v1 = vadd.f32 %v1678_v63, %v1660_v19  ;;  %v1680_v4 = vpop.f32.mrb[13].mxu1  ;;  %v8571_v63 = vadd.s32 104, %v7984_v7 }
 0x153   : > { %v1682_v9 = vpop.f32.mrb[14].mxu1  ;;  %v8577_v4 = vadd.s32 120, %v7984_v7 }
 0x154   : > { %11753 = vst [vmem:[#allocation16_spill] sm:$0xff] %v8500_v1  ;;  %v8516_v17 = vadd.f32 %v1682_v9, %v1664_v32  ;;  %v1684_v22 = vpop.f32.mrb[15].mxu1 }
 0x155   : > { %v1568_v38 = vpop.f32.mrb[16].mxu0  ;;  %v8593_v22 = vadd.s32 152, %v7984_v7 }
 0x156   : > { %11754 = vst [vmem:[#allocation17_spill] sm:$0xff] %v8516_v17  ;;  %v8546_v29 = vadd.f32 %v1568_v38, %v1550_v40  ;;  %v8548_v30 = vpop.f32.mrb[17].mxu0  ;;  %v8596_v38 = vadd.s32 160, %v7984_v7 }
 0x157   : > { %v1572_v32 = vpop.f32.mrb[18].mxu0  ;;  %11760 = vst [vmem:[#allocation21_spill] sm:$0xff] %v8593_v22 }
 0x158   : > { %v8555_v35 = vadd.f32 %v1572_v32, %v1554_v39  ;;  %v8558_v61 = vpop.f32.mrb[19].mxu0  ;;  %11761 = vst [vmem:[#allocation22_spill] sm:$0xff] %v8596_v38 }
 0x159   : > { %v8562_v53 = vpop.f32.mrb[16].mxu1 }
 0x15a   : > { %11755 = vst [vmem:[#allocation18_spill] sm:$0xff] %v8562_v53  ;;  %v8568_v39 = vpop.f32.mrb[17].mxu1  ;;  %v11683_v13 = vrot.slane %v8562_v53, 7  ;;  %v2169_v32 = vrot.slane %v8562_v53, 1 }
 0x15b   : > { %11756 = vst [vmem:[#allocation19_spill] sm:$0xff] %v8568_v39  ;;  %v1725_v37 = vpop.f32.mrb[18].mxu1  ;;  %v2426_v58 = vrot.slane %v8568_v39, 7  ;;  %v11766_v11 = vrot.slane %v8568_v39, 1 }
 0x15c   : > { %v2105_v21 = vrot.slane %v1725_v37, 7  ;;  %v2170_v0 = vrot.slane %v1725_v37, 1  ;;  %v1727_v62 = vpop.f32.mrb[19].mxu1 }
 0x15d   : > { %v2363_v50 = vrot.slane %v1727_v62, 1  ;;  %v2427_v40 = vrot.slane %v1727_v62, 7  ;;  %v1578_v20 = vpop.f32.mrb[20].mxu0 }
 0x15e   : > { %v8608_v46 = vsel %vm2201_vm0, %v2169_v32, %v2170_v0  ;;  %v2167_v37 = vsel %vm2136_vm1, %v11683_v13, %v2105_v21  ;;  %v8615_v33 = vadd.f32 %v1578_v20, %v8492_v12  ;;  %v8617_v19 = vpop.f32.mrb[21].mxu0 }
 0x15f   : > { %11764 = vst [vmem:[#allocation23_spill] sm:$0xff] %v8608_v46  ;;  %v2331_v62 = vadd.f32 %v2167_v37, %v8476_v31  ;;  %v8627_v0 = vsel %vm2201_vm0, %v11766_v11, %v2363_v50  ;;  %v2488_v32 = vsel %vm2136_vm1, %v2426_v58, %v2427_v40  ;;  %v1582_v13 = vpop.f32.mrb[22].mxu0  ;;  %v8649_v31 = vadd.s32 184, %v7984_v7 }
 0x160   : > { %11767 = vst [vmem:[#allocation25_spill] sm:$0xff] %v8627_v0  ;;  %v8633_v20 = vadd.f32 %v1582_v13, %v8496_v34  ;;  %v8635_v10 = vpop.f32.mrb[23].mxu0  ;;  %v8656_v40 = vadd.s32 192, %v7984_v7  ;;  %v8659_v58 = vadd.s32 200, %v7984_v7  ;;  %v8662_v13 = vadd.s32 208, %v7984_v7 }
 0x161   : > { %v1731_v39 = vpop.f32.mrb[20].mxu1 }
 0x162   : > { %v2106_v12 = vrot.slane %v1731_v39, 7  ;;  %v1733_v34 = vpop.f32.mrb[21].mxu1  ;;  %11770 = vst [vmem:[#allocation26_spill] sm:$0xff] %v8656_v40  ;;  %11771 = vst [vmem:[#allocation27_spill] sm:$0xff] %v8659_v58  ;;  %v2171_v60 = vrot.slane %v1731_v39, 1 }
 0x163   : > { %v2364_v37 = vrot.slane %v1733_v34, 1  ;;  %v1735_v44 = vpop.f32.mrb[22].mxu1  ;;  %11772 = vst [vmem:[#allocation28_spill] sm:$0xff] %v8662_v13  ;;  %v2428_v54 = vrot.slane %v1733_v34, 7 }
 0x164   : > { %v2166_v0 = vsel %vm2136_vm1, %v2105_v21, %v2106_v12  ;;  %v2107_v46 = vrot.slane %v1735_v44, 7  ;;  %v2172_v53 = vrot.slane %v1735_v44, 1  ;;  %v1737_v1 = vpop.f32.mrb[23].mxu1 }
 0x165   : > { %v2423_v51 = vsel %vm2201_vm0, %v2363_v50, %v2364_v37  ;;  %v2365_v52 = vrot.slane %v1737_v1, 1  ;;  %v2429_v38 = vrot.slane %v1737_v1, 7  ;;  %v1588_v22 = vpop.f32.mrb[24].mxu0 }
 0x166   : > { %v2555_v21 = vsel %vm8582_vm2, %v2488_v32, %v2423_v51  ;;  %v2230_v44 = vsel %vm2201_vm0, %v2171_v60, %v2172_v53  ;;  %v2165_v15 = vsel %vm2136_vm1, %v2106_v12, %v2107_v46  ;;  %v8681_v39 = vadd.f32 %v1588_v22, %v8548_v30  ;;  %v8683_v26 = vpop.f32.mrb[25].mxu0 }
 0x167   : > { %v2587_v6 = vadd.f32 %v2555_v21, %v2331_v62  ;;  %v2300_v50 = vsel %vm8600_vm3, %v2230_v44, %v2166_v0  ;;  %v2333_v1 = vadd.f32 %v2165_v15, %v8480_v41  ;;  %v2422_v51 = vsel %vm2201_vm0, %v2364_v37, %v2365_v52  ;;  %v1592_v9 = vpop.f32.mrb[26].mxu0 }
 0x168   : > { %v2332_v60 = vadd.f32 %v2300_v50, %v8478_v45  ;;  %v2486_v53 = vsel %vm2136_vm1, %v2428_v54, %v2429_v38  ;;  %v8694_v30 = vadd.f32 %v1592_v9, %v8558_v61  ;;  %v8696_v22 = vpop.f32.mrb[27].mxu0  ;;  %v8705_v61 = vadd.s32 216, %v7984_v7 }
 0x169   : > { %v2623_v48 = vadd.f32 %v8542_v25, %v2587_v6  ;;  %v1741_v0 = vpop.f32.mrb[24].mxu1  ;;  %v11777_v15 = vand.u32 15, %v8514_v16 }
 0x16a   : > { %v2588_v45 = vadd.f32 %v2422_v51, %v2332_v60  ;;  %v2108_v37 = vrot.slane %v1741_v0, 7  ;;  %v1743_v34 = vpop.f32.mrb[25].mxu1  ;;  %11776 = vst [vmem:[#allocation29_spill] sm:$0xff] %v8705_v61  ;;  %v2173_v21 = vrot.slane %v1741_v0, 1  ;;  %v8715_v51 = vadd.s32 224, %v7984_v7 }
 0x16b   : > { %v2659_v38 = vmul.f32 %v8544_v55, %v2623_v48  ;;  %v2366_v44 = vrot.slane %v1743_v34, 1  ;;  %v1745_v6 = vpop.f32.mrb[26].mxu1  ;;  %vm8710_vm6 = vcmp.eq.s32.totalorder %v11777_v15, 15  ;;  %v2430_v60 = vrot.slane %v1743_v34, 7 }
 0x16c   : > { %11780 = vst [vmem:[#allocation30_spill] sm:$0xff] %v8715_v51  ;;  %v2164_v9 = vsel %vm2136_vm1, %v2107_v46, %v2108_v37  ;;  %v2109_v54 = vrot.slane %v1745_v6, 7  ;;  %v2174_v12 = vrot.slane %v1745_v6, 1  ;;  %v1747_v32 = vpop.f32.mrb[27].mxu1  ;;  %v11781_v48 = vand.u32 15, %v8519_v36 }
 0x16d   : > { %v8726_v16 = vadd.f32 %v8550_v28, %v2659_v38  ;;  %v2421_v15 = vsel %vm2201_vm0, %v2365_v52, %v2366_v44  ;;  %v2367_v41 = vrot.slane %v1747_v32, 1  ;;  %v2431_v62 = vrot.slane %v1747_v32, 7  ;;  %v1598_v13 = vpop.f32.mrb[28].mxu0 }
 0x16e   : > { %vm8721_vm7 = vcmp.eq.s32.totalorder %v11781_v48, 0  ;;  %v2624_v46 = vadd.f32 %v8542_v25, %v2588_v45  ;;  %v2557_v34 = vsel %vm8651_vm4, %v2486_v53, %v2421_v15  ;;  %v2228_v36 = vsel %vm2201_vm0, %v2173_v21, %v2174_v12  ;;  %v8737_v48 = vpop.f32.mrb[29].mxu0 }
 0x16f   : > { %v2163_v6 = vsel %vm2136_vm1, %v2108_v37, %v2109_v54  ;;  %v2589_v38 = vadd.f32 %v2557_v34, %v2333_v1  ;;  %v2302_v52 = vsel %vm8668_vm5, %v2228_v36, %v2164_v9  ;;  %v2420_v45 = vsel %vm2201_vm0, %v2366_v44, %v2367_v41  ;;  %v1602_v58 = vpop.f32.mrb[30].mxu0 }
 0x170   : > { %v2335_v32 = vadd.f32 %v2163_v6, %v8494_v59  ;;  %v2334_v11 = vadd.f32 %v2302_v52, %v8490_v56  ;;  %v2484_v53 = vsel %vm2136_vm1, %v2430_v60, %v2431_v62  ;;  %v8748_v12 = vadd.f32 %v1598_v13, %v8617_v19  ;;  %v8750_v37 = vpop.f32.mrb[31].mxu0 }
 0x171   : > { %v2625_v17 = vadd.f32 %v8542_v25, %v2589_v38  ;;  %v1751_v21 = vpop.f32.mrb[28].mxu1  ;;  %v8755_v59 = vadd.f32 %v1602_v58, %v8635_v10  ;;  %v2759_v56 = vmul.f32 0.044715, %v8726_v16  ;;  %v8760_v19 = vadd.s32 232, %v7984_v7 }
 0x172   : > { %v2590_v9 = vadd.f32 %v2420_v45, %v2334_v11  ;;  %v2110_v15 = vrot.slane %v1751_v21, 7  ;;  %v1753_v62 = vpop.f32.mrb[29].mxu1  ;;  %v8763_v13 = vadd.s32 240, %v7984_v7  ;;  %v2660_v60 = vmul.f32 %v8544_v55, %v2624_v46 }
 0x173   : > { %11784 = vst [vmem:[#allocation31_spill] sm:$0xff] %v8760_v19  ;;  %v2661_v34 = vmul.f32 %v8544_v55, %v2625_v17  ;;  %v2175_v36 = vrot.slane %v1751_v21, 1  ;;  %v2368_v10 = vrot.slane %v1753_v62, 1  ;;  %v1755_v58 = vpop.f32.mrb[30].mxu1  ;;  %v11786_v6 = vand.u32 15, %v8522_v8 }
 0x174   : > { %11785 = vst [vmem:[#allocation32_spill] sm:$0xff] %v8763_v13  ;;  %v2162_v52 = vsel %vm2136_vm1, %v2109_v54, %v2110_v15  ;;  %v2432_v45 = vrot.slane %v1753_v62, 7  ;;  %v2111_v11 = vrot.slane %v1755_v58, 7  ;;  %v2176_v44 = vrot.slane %v1755_v58, 1  ;;  %v1757_v1 = vpop.f32.mrb[31].mxu1 }
 0x175   : > { %vm8769_vm8 = vcmp.eq.s32.totalorder %v11786_v6, 15  ;;  %v11789_v46 = vand.u32 15, %v8525_v57  ;;  %v2419_v8 = vsel %vm2201_vm0, %v2367_v41, %v2368_v10  ;;  %v2369_v21 = vrot.slane %v1757_v1, 1  ;;  %v1608_v51 = vpop.f32.mrb[32].mxu0 }
 0x176   : > { %v2433_v6 = vrot.slane %v1757_v1, 7  ;;  %v2791_v61 = vmul.f32 %v2759_v56, %v8726_v16  ;;  %v2626_v54 = vadd.f32 %v8542_v25, %v2590_v9  ;;  %v2559_v62 = vsel %vm8710_vm6, %v2484_v53, %v2419_v8 }
 0x177   : > { %vm8777_vm9 = vcmp.eq.s32.totalorder %v11789_v46, 0  ;;  %v2161_v57 = vsel %vm2136_vm1, %v2110_v15, %v2111_v11  ;;  %v2226_v58 = vsel %vm2201_vm0, %v2175_v36, %v2176_v44  ;;  %v8791_v46 = vpop.f32.mrb[33].mxu0  ;;  %v2591_v40 = vadd.f32 %v2559_v62, %v2335_v32 }
 0x178   : > { %v2304_v41 = vsel %vm8721_vm7, %v2226_v58, %v2162_v52  ;;  %v2337_v1 = vadd.f32 %v2161_v57, %v8555_v35  ;;  %v2418_v56 = vsel %vm2201_vm0, %v2368_v10, %v2369_v21  ;;  %v1612_v9 = vpop.f32.mrb[34].mxu0  ;;  %v2482_v53 = vsel %vm2136_vm1, %v2432_v45, %v2433_v6 }
 0x179   : > { %v2336_v50 = vadd.f32 %v2304_v41, %v8546_v29  ;;  %v8802_v15 = vadd.f32 %v1608_v51, %v8683_v26  ;;  %v8804_v44 = vpop.f32.mrb[35].mxu0  ;;  %v2627_v0 = vadd.f32 %v8542_v25, %v2591_v40  ;;  %v1761_v36 = vpop.f32.mrb[32].mxu1  ;;  %v8809_v35 = vadd.f32 %v1612_v9, %v8696_v22 }
 0x17a   : > { %v8813_v29 = vadd.s32 248, %v7984_v7  ;;  %v8816_v52 = vadd.f32 %v8550_v28, %v2660_v60  ;;  %v2112_v51 = vrot.slane %v1761_v36, 7  ;;  %v1763_v45 = vpop.f32.mrb[33].mxu1  ;;  %v8820_v6 = vadd.f32 %v8550_v28, %v2661_v34 }
 0x17b   : > { %v2592_v26 = vadd.f32 %v2418_v56, %v2336_v50  ;;  %v2662_v40 = vmul.f32 %v8544_v55, %v2626_v54  ;;  %v2370_v22 = vrot.slane %v1763_v45, 1  ;;  %v1765_v62 = vpop.f32.mrb[34].mxu1  ;;  %v11793_v57 = vand.u32 15, %v8528_v23 }
 0x17c   : > { %11792 = vst [vmem:[#allocation33_spill] sm:$0xff] %v8813_v29  ;;  %v2823_v60 = vmul.f32 %v2791_v61, %v8726_v16  ;;  %v2160_v41 = vsel %vm2136_vm1, %v2111_v11, %v2112_v51  ;;  %v2177_v56 = vrot.slane %v1761_v36, 1  ;;  %v2113_v9 = vrot.slane %v1765_v62, 7  ;;  %v1767_v34 = vpop.f32.mrb[35].mxu1 }
 0x17d   : > { %vm8825_vm10 = vcmp.eq.s32.totalorder %v11793_v57, 15  ;;  %v2178_v50 = vrot.slane %v1765_v62, 1  ;;  %v11796_v8 = vand.u32 15, %v8531_v24  ;;  %v2663_v23 = vmul.f32 %v8544_v55, %v2627_v0  ;;  %v1618_v32 = vpop.f32.mrb[36].mxu0 }
 0x17e   : > { %v2417_v57 = vsel %vm2201_vm0, %v2369_v21, %v2370_v22  ;;  %v2371_v10 = vrot.slane %v1767_v34, 1  ;;  %v2435_v61 = vrot.slane %v1767_v34, 7  ;;  %v2434_v13 = vrot.slane %v1763_v45, 7 }
 0x17f   : > { %vm8834_vm11 = vcmp.eq.s32.totalorder %v11796_v8, 0  ;;  %v2561_v11 = vsel %vm8769_vm8, %v2482_v53, %v2417_v57  ;;  %v2159_v36 = vsel %vm2136_vm1, %v2112_v51, %v2113_v9  ;;  %v2224_v24 = vsel %vm2201_vm0, %v2177_v56, %v2178_v50  ;;  %v8847_v8 = vpop.f32.mrb[37].mxu0 }
 0x180   : > { %v2593_v62 = vadd.f32 %v2561_v11, %v2337_v1  ;;  %v2306_v0 = vsel %vm8777_vm9, %v2224_v24, %v2160_v41  ;;  %v2339_v21 = vadd.f32 %v2159_v36, %v8633_v20  ;;  %v2416_v45 = vsel %vm2201_vm0, %v2370_v22, %v2371_v10  ;;  %v1622_v34 = vpop.f32.mrb[38].mxu0 }
 0x181   : > { %v2338_v38 = vadd.f32 %v2306_v0, %v8615_v33  ;;  %v2480_v53 = vsel %vm2136_vm1, %v2434_v13, %v2435_v61  ;;  %v8858_v51 = vadd.f32 %v1618_v32, %v8737_v48  ;;  %v8860_v56 = vpop.f32.mrb[39].mxu0  ;;  %v1771_v17 = vpop.f32.mrb[36].mxu1  ;;  %v8864_v41 = vadd.f32 %v1622_v34, %v8750_v37 }
 0x182   : > { %v8867_v20 = vmul.f32 0.5, %v8726_v16  ;;  %v2855_v22 = vadd.f32 %v2823_v60, %v8726_v16  ;;  %v8871_v33 = vmul.f32 0.5, %v8816_v52  ;;  %v8874_v13 = vadd.f32 %v8550_v28, %v2662_v40  ;;  %v1773_v50 = vpop.f32.mrb[37].mxu1 }
 0x183   : > { %v2594_v48 = vadd.f32 %v2416_v45, %v2338_v38  ;;  %v2114_v32 = vrot.slane %v1771_v17, 7  ;;  %v8877_v57 = vmul.f32 0.5, %v8820_v6  ;;  %v8880_v37 = vadd.f32 %v8550_v28, %v2663_v23  ;;  %v1775_v36 = vpop.f32.mrb[38].mxu1 }
 0x184   : > { %11799 = vst [vmem:[#allocation34_spill] sm:$0xff] %v8871_v33  ;;  %v2628_v61 = vadd.f32 %v8542_v25, %v2592_v26  ;;  %v2372_v11 = vrot.slane %v1773_v50, 1  ;;  %v11801_v16 = vand.u32 15, %v8534_v27  ;;  %v2760_v40 = vmul.f32 0.044715, %v8816_v52  ;;  %v1777_v23 = vpop.f32.mrb[39].mxu1 }
 0x185   : > { %11800 = vst [vmem:[#allocation35_spill] sm:$0xff] %v8877_v57  ;;  %v2158_v24 = vsel %vm2136_vm1, %v2113_v9, %v2114_v32  ;;  %v2179_v0 = vrot.slane %v1771_v17, 1  ;;  %v2115_v45 = vrot.slane %v1775_v36, 7  ;;  %v2180_v34 = vrot.slane %v1775_v36, 1  ;;  %v1628_v29 = vpop.f32.mrb[40].mxu0 }
 0x186   : > { %vm8885_vm12 = vcmp.eq.s32.totalorder %v11801_v16, 15  ;;  %v11804_v38 = vand.u32 15, %v8537_v42  ;;  %v2415_v27 = vsel %vm2201_vm0, %v2371_v10, %v2372_v11  ;;  %v2373_v16 = vrot.slane %v1777_v23, 1  ;;  %v1630_v36 = vpop.f32.mrb[41].mxu0 }
 0x187   : > { %v2437_v1 = vrot.slane %v1777_v23, 7  ;;  %v2887_v19 = vmul.f32 0.7978846, %v2855_v22  ;;  %v2436_v33 = vrot.slane %v1773_v50, 7  ;;  %v2563_v9 = vsel %vm8825_vm10, %v2480_v53, %v2415_v27  ;;  %v1632_v50 = vpop.f32.mrb[42].mxu0 }
 0x188   : > { %vm8894_vm13 = vcmp.eq.s32.totalorder %v11804_v38, 0  ;;  %v2157_v17 = vsel %vm2136_vm1, %v2114_v32, %v2115_v45  ;;  %v2222_v42 = vsel %vm2201_vm0, %v2179_v0, %v2180_v34  ;;  %v2595_v38 = vadd.f32 %v2563_v9, %v2339_v21  ;;  %v1634_v21 = vpop.f32.mrb[43].mxu0 }
 0x189   : > { %v2308_v57 = vsel %vm8834_vm11, %v2222_v42, %v2158_v24  ;;  %v2341_v10 = vadd.f32 %v2157_v17, %v8694_v30  ;;  %v2414_v22 = vsel %vm2201_vm0, %v2372_v11, %v2373_v16  ;;  %v8912_v58 = vmul.f32 %v8544_v55, %v2628_v61  ;;  %v1781_v24 = vpop.f32.mrb[40].mxu1 }
 0x18a   : > { %v2340_v53 = vadd.f32 %v2308_v57, %v8681_v39  ;;  %v2478_v32 = vsel %vm2136_vm1, %v2436_v33, %v2437_v1  ;;  %v8918_v0 = vadd.f32 %v1628_v29, %v8791_v46  ;;  %v2629_v54 = vadd.f32 %v8542_v25, %v2593_v62  ;;  %v1783_v34 = vpop.f32.mrb[41].mxu1 }
 0x18b   : > { %v8922_v30 = vadd.f32 %v8466_v18, %v1630_v36  ;;  %v8925_v11 = vadd.f32 %v1632_v50, %v8804_v44  ;;  %v8928_v61 = vadd.f32 %v8468_v47, %v1634_v21  ;;  %v2116_v57 = vrot.slane %v1781_v24, 7  ;;  %v1785_v18 = vpop.f32.mrb[42].mxu1 }
 0x18c   : > { %v2596_v39 = vadd.f32 %v2414_v22, %v2340_v53  ;;  %v2761_v1 = vmul.f32 0.044715, %v8820_v6  ;;  %v2792_v46 = vmul.f32 %v2760_v40, %v8816_v52  ;;  %v2630_v29 = vadd.f32 %v8542_v25, %v2594_v48  ;;  %v1787_v40 = vpop.f32.mrb[43].mxu1 }
 0x18d   : > { %v2631_v62 = vadd.f32 %v8542_v25, %v2595_v38  ;;  %v2374_v33 = vrot.slane %v1783_v34, 1  ;;  %v11807_v23 = vand.u32 15, %v8571_v63  ;;  %7436 = vtanh.f32 %v2887_v19  ;;  %v1638_v19 = vpop.f32.mrb[44].mxu0 }
 0x18e   : > { %v2156_v47 = vsel %vm2136_vm1, %v2115_v45, %v2116_v57  ;;  %v2181_v27 = vrot.slane %v1781_v24, 1  ;;  %v2117_v9 = vrot.slane %v1785_v18, 7  ;;  %v2182_v17 = vrot.slane %v1785_v18, 1  ;;  %v1640_v21 = vpop.f32.mrb[45].mxu0 }
 0x18f   : > { %vm8936_vm14 = vcmp.eq.s32.totalorder %v11807_v23, 15  ;;  %v11810_v48 = vand.u32 15, %v8574_v2  ;;  %v2413_v63 = vsel %vm2201_vm0, %v2373_v16, %v2374_v33  ;;  %v2438_v36 = vrot.slane %v1783_v34, 7 }
 0x190   : > { %v2375_v38 = vrot.slane %v1787_v40, 1  ;;  %v2439_v22 = vrot.slane %v1787_v40, 7  ;;  %v2632_v50 = vadd.f32 %v8542_v25, %v2596_v39  ;;  %v2565_v45 = vsel %vm8885_vm12, %v2478_v32, %v2413_v63  ;;  %v1642_v39 = vpop.f32.mrb[46].mxu0 }
 0x191   : > { %vm8944_vm15 = vcmp.eq.s32.totalorder %v11810_v48, 0  ;;  %v2155_v53 = vsel %vm2136_vm1, %v2116_v57, %v2117_v9  ;;  %v2220_v2 = vsel %vm2201_vm0, %v2181_v27, %v2182_v17  ;;  %v2597_v24 = vadd.f32 %v2565_v45, %v2341_v10  ;;  %v1644_v10 = vpop.f32.mrb[47].mxu0 }
 0x192   : > { %v2310_v16 = vsel %vm8894_vm13, %v2220_v2, %v2156_v47  ;;  %v2343_v34 = vadd.f32 %v2155_v53, %v8755_v59  ;;  %v2412_v18 = vsel %vm2201_vm0, %v2374_v33, %v2375_v38  ;;  %v2665_v60 = vmul.f32 %v8544_v55, %v2629_v54  ;;  %v1791_v47 = vpop.f32.mrb[44].mxu1 }
 0x193   : > { %v2342_v32 = vadd.f32 %v2310_v16, %v8748_v12  ;;  %v2476_v57 = vsel %vm2136_vm1, %v2438_v36, %v2439_v22  ;;  %v8967_v23 = vadd.f32 %v1638_v19, %v8847_v8  ;;  %v2666_v26 = vmul.f32 %v8544_v55, %v2630_v29  ;;  %v1793_v40 = vpop.f32.mrb[45].mxu1 }
 0x194   : > { %v8971_v59 = vadd.f32 %v8470_v49, %v1640_v21  ;;  %v8974_v33 = vadd.f32 %v1642_v39, %v8860_v56  ;;  %v8977_v54 = vadd.f32 %v8474_v43, %v1644_v10  ;;  %v2667_v12 = vmul.f32 %v8544_v55, %v2631_v62  ;;  %v1795_v49 = vpop.f32.mrb[46].mxu1 }
 0x195   : > { %v2598_v27 = vadd.f32 %v2412_v18, %v2342_v32  ;;  %v2118_v17 = vrot.slane %v1791_v47, 7  ;;  %v2793_v8 = vmul.f32 %v2761_v1, %v8820_v6  ;;  %v2668_v48 = vmul.f32 %v8544_v55, %v2632_v50  ;;  %v1797_v45 = vpop.f32.mrb[47].mxu1 }
 0x196   : > { %v2633_v29 = vadd.f32 %v8542_v25, %v2597_v24  ;;  %v2376_v63 = vrot.slane %v1793_v40, 1  ;;  %v11813_v36 = vand.u32 15, %v8577_v4  ;;  %v2824_v43 = vmul.f32 %v2792_v46, %v8816_v52 }
 0x197   : > { %v2154_v62 = vsel %vm2136_vm1, %v2117_v9, %v2118_v17  ;;  %v2183_v22 = vrot.slane %v1791_v47, 1  ;;  %v2119_v19 = vrot.slane %v1795_v49, 7  ;;  %v2184_v1 = vrot.slane %v1795_v49, 1  ;;  %v7437_v4 = vpop.eup %7436 }
 0x198   : > { %vm8985_vm2 = vcmp.eq.s32.totalorder %v11813_v36, 15  ;;  %v11816_v50 = vand.u32 15, %v8580_v3  ;;  %v2411_v2 = vsel %vm2201_vm0, %v2375_v38, %v2376_v63  ;;  %v2440_v21 = vrot.slane %v1793_v40, 7 }
 0x199   : > { %v2377_v24 = vrot.slane %v1797_v45, 1  ;;  %v2441_v46 = vrot.slane %v1797_v45, 7  ;;  %v2567_v9 = vsel %vm8936_vm14, %v2476_v57, %v2411_v2  ;;  %v2153_v16 = vsel %vm2136_vm1, %v2118_v17, %v2119_v19  ;;  %v1801_v40 = vpop.f32.mrb[48].mxu1 }
 0x19a   : > { %vm8994_vm3 = vcmp.eq.s32.totalorder %v11816_v50, 0  ;;  %v2218_v3 = vsel %vm2201_vm0, %v2183_v22, %v2184_v1  ;;  %v2825_v18 = vmul.f32 %v2793_v8, %v8820_v6  ;;  %v2599_v39 = vadd.f32 %v2567_v9, %v2343_v34 }
 0x19b   : > { %v2312_v32 = vsel %vm8944_vm15, %v2218_v3, %v2154_v62  ;;  %v2345_v38 = vadd.f32 %v2153_v16, %v8809_v35  ;;  %v2410_v10 = vsel %vm2201_vm0, %v2376_v63, %v2377_v24  ;;  %v9014_v44 = vadd.f32 %v8550_v28, %v8912_v58 }
 0x19c   : > { %v9017_v57 = vadd.f32 %v8550_v28, %v2665_v60  ;;  %v2344_v47 = vadd.f32 %v2312_v32, %v8802_v15  ;;  %v2474_v34 = vsel %vm2136_vm1, %v2440_v21, %v2441_v46  ;;  %v9023_v42 = vadd.f32 %v8550_v28, %v2666_v26  ;;  %v1803_v15 = vpop.f32.mrb[49].mxu1 }
 0x19d   : > { %v9026_v35 = vadd.f32 %v8550_v28, %v2667_v12  ;;  %v9029_v17 = vadd.f32 %v8550_v28, %v2668_v48  ;;  %v9031_v58 = vadd.f32 1.0, %v7437_v4  ;;  %v2669_v60 = vmul.f32 %v8544_v55, %v2633_v29  ;;  %v1805_v12 = vpop.f32.mrb[50].mxu1 }
 0x19e   : > { %v2600_v8 = vadd.f32 %v2410_v10, %v2344_v47  ;;  %v2120_v63 = vrot.slane %v1801_v40, 7  ;;  %v2856_v49 = vadd.f32 %v2824_v43, %v8816_v52  ;;  %v2634_v36 = vadd.f32 %v8542_v25, %v2598_v27  ;;  %v1807_v43 = vpop.f32.mrb[51].mxu1  ;;  %v11822_v27 = vld [vmem:[#allocation20_spill] sm:$0xff] }
 0x19f   : > { %v2635_v26 = vadd.f32 %v8542_v25, %v2599_v39  ;;  %v2378_v62 = vrot.slane %v1803_v15, 1  ;;  %v11819_v22 = vand.u32 15, %v8587_v5  ;;  %v2857_v1 = vadd.f32 %v2825_v18, %v8820_v6 }
 0x1a0   : > { %v2152_v29 = vsel %vm2136_vm1, %v2119_v19, %v2120_v63  ;;  %v2185_v45 = vrot.slane %v1801_v40, 1  ;;  %v2121_v50 = vrot.slane %v1805_v12, 7  ;;  %v2186_v52 = vrot.slane %v1805_v12, 1 }
 0x1a1   : > { %vm9039_vm4 = vcmp.eq.s32.totalorder %v11819_v22, 15  ;;  %v11823_v4 = vand.u32 15, %v11822_v27  ;;  %v2409_v5 = vsel %vm2201_vm0, %v2377_v24, %v2378_v62  ;;  %v2442_v21 = vrot.slane %v1803_v15, 7 }
 0x1a2   : > { %v2379_v46 = vrot.slane %v1807_v43, 1  ;;  %v2443_v9 = vrot.slane %v1807_v43, 7  ;;  %v2569_v6 = vsel %vm8985_vm2, %v2474_v34, %v2409_v5  ;;  %v2151_v19 = vsel %vm2136_vm1, %v2120_v63, %v2121_v50  ;;  %v1811_v63 = vpop.f32.mrb[52].mxu1 }
 0x1a3   : > { %vm9048_vm5 = vcmp.eq.s32.totalorder %v11823_v4, 0  ;;  %v2216_v16 = vsel %vm2201_vm0, %v2185_v45, %v2186_v52  ;;  %v2888_v3 = vmul.f32 0.7978846, %v2856_v49  ;;  %v2601_v18 = vadd.f32 %v2569_v6, %v2345_v38  ;;  %v11830_v4 = vld [vmem:[#allocation22_spill] sm:$0xff] }
 0x1a4   : > { %v2314_v39 = vsel %vm8994_vm3, %v2216_v16, %v2152_v29  ;;  %v2347_v32 = vadd.f32 %v2151_v19, %v8864_v41  ;;  %v2408_v24 = vsel %vm2201_vm0, %v2378_v62, %v2379_v46  ;;  %v9066_v10 = vadd.f32 %v8550_v28, %v2669_v60  ;;  %v1813_v62 = vpop.f32.mrb[53].mxu1  ;;  %v11826_v29 = vld [vmem:[#allocation21_spill] sm:$0xff] }
 0x1a5   : > { %v2346_v56 = vadd.f32 %v2314_v39, %v8858_v51  ;;  %v2472_v47 = vsel %vm2136_vm1, %v2442_v21, %v2443_v9  ;;  %v2889_v34 = vmul.f32 0.7978846, %v2857_v1  ;;  %v2670_v40 = vmul.f32 %v8544_v55, %v2634_v36  ;;  %v1815_v22 = vpop.f32.mrb[54].mxu1 }
 0x1a6   : > { %v2671_v38 = vmul.f32 %v8544_v55, %v2635_v26  ;;  %v2636_v53 = vadd.f32 %v8542_v25, %v2600_v8  ;;  %v2762_v41 = vmul.f32 0.044715, %v8874_v13  ;;  %v2637_v15 = vadd.f32 %v8542_v25, %v2601_v18  ;;  %v1817_v27 = vpop.f32.mrb[55].mxu1 }
 0x1a7   : > { %v2602_v49 = vadd.f32 %v2408_v24, %v2346_v56  ;;  %v2122_v60 = vrot.slane %v1811_v63, 7  ;;  %7438 = vtanh.f32 %v2888_v3  ;;  %v2187_v51 = vrot.slane %v1811_v63, 1 }
 0x1a8   : > { %v2380_v12 = vrot.slane %v1813_v62, 1  ;;  %v11827_v1 = vand.u32 15, %v11826_v29  ;;  %7440 = vtanh.f32 %v2889_v34  ;;  %v2763_v8 = vmul.f32 0.044715, %v8880_v37 }
 0x1a9   : > { %v2150_v26 = vsel %vm2136_vm1, %v2121_v50, %v2122_v60  ;;  %v2444_v45 = vrot.slane %v1813_v62, 7  ;;  %v2123_v52 = vrot.slane %v1815_v22, 7  ;;  %v2188_v43 = vrot.slane %v1815_v22, 1  ;;  %v1821_v2 = vpop.f32.mrb[56].mxu1 }
 0x1aa   : > { %vm9078_vm6 = vcmp.eq.s32.totalorder %v11827_v1, 15  ;;  %v11831_v5 = vand.u32 15, %v11830_v4  ;;  %v2407_v9 = vsel %vm2201_vm0, %v2379_v46, %v2380_v12  ;;  %v2381_v6 = vrot.slane %v1817_v27, 1  ;;  %v11834_v1 = vld [vmem:[#allocation24_spill] sm:$0xff] }
 0x1ab   : > { %v2445_v19 = vrot.slane %v1817_v27, 7  ;;  %v2794_v16 = vmul.f32 %v2762_v41, %v8874_v13  ;;  %v2638_v3 = vadd.f32 %v8542_v25, %v2602_v49  ;;  %v2571_v50 = vsel %vm9039_vm4, %v2472_v47, %v2407_v9 }
 0x1ac   : > { %vm9087_vm7 = vcmp.eq.s32.totalorder %v11831_v5, 0  ;;  %v2149_v18 = vsel %vm2136_vm1, %v2122_v60, %v2123_v52  ;;  %v2214_v39 = vsel %vm2201_vm0, %v2187_v51, %v2188_v43  ;;  %v2603_v24 = vadd.f32 %v2571_v50, %v2347_v32  ;;  %v1823_v51 = vpop.f32.mrb[57].mxu1 }
 0x1ad   : > { %v2316_v56 = vsel %vm9048_vm5, %v2214_v39, %v2150_v26  ;;  %v2349_v46 = vadd.f32 %v2149_v18, %v8925_v11  ;;  %v2406_v34 = vsel %vm2201_vm0, %v2380_v12, %v2381_v6  ;;  %v9107_v63 = vadd.f32 %v8550_v28, %v2670_v40 }
 0x1ae   : > { %v2348_v48 = vadd.f32 %v2316_v56, %v8918_v0  ;;  %v2470_v47 = vsel %vm2136_vm1, %v2444_v45, %v2445_v19  ;;  %v2795_v41 = vmul.f32 %v2763_v8, %v8880_v37  ;;  %v9114_v32 = vadd.f32 %v8550_v28, %v2671_v38 }
 0x1af   : > { %v9118_v11 = vmul.f32 %v9031_v58, %v8867_v20  ;;  %v9121_v49 = vmul.f32 0.5, %v8874_v13  ;;  %v9124_v40 = vmul.f32 0.5, %v8880_v37  ;;  %v2672_v0 = vmul.f32 %v8544_v55, %v2636_v53  ;;  %v1825_v58 = vpop.f32.mrb[58].mxu1 }
 0x1b0   : > { %v2604_v60 = vadd.f32 %v2406_v34, %v2348_v48  ;;  %v2124_v62 = vrot.slane %v1821_v2, 7  ;;  %v2826_v12 = vmul.f32 %v2794_v16, %v8874_v13  ;;  %v2673_v38 = vmul.f32 %v8544_v55, %v2637_v15  ;;  %v1827_v4 = vpop.f32.mrb[59].mxu1 }
 0x1b1   : > { %v2674_v22 = vmul.f32 %v8544_v55, %v2638_v3  ;;  %v2189_v29 = vrot.slane %v1821_v2, 1  ;;  %v2382_v20 = vrot.slane %v1823_v51, 1  ;;  %v11835_v8 = vand.u32 15, %v11834_v1  ;;  %v7439_v45 = vpop.eup %7438 }
 0x1b2   : > { %v2148_v53 = vsel %vm2136_vm1, %v2123_v52, %v2124_v62  ;;  %v2125_v43 = vrot.slane %v1825_v58, 7  ;;  %v2190_v27 = vrot.slane %v1825_v58, 1  ;;  %v11838_v15 = vand.u32 15, %v8646_v14  ;;  %v7441_v19 = vpop.eup %7440 }
 0x1b3   : > { %vm9132_vm8 = vcmp.eq.s32.totalorder %v11835_v8, 15  ;;  %v2827_v9 = vmul.f32 %v2795_v41, %v8880_v37  ;;  %v2405_v16 = vsel %vm2201_vm0, %v2381_v6, %v2382_v20  ;;  %v2446_v3 = vrot.slane %v1823_v51, 7 }
 0x1b4   : > { %vm9140_vm9 = vcmp.eq.s32.totalorder %v11838_v15, 0  ;;  %v2383_v50 = vrot.slane %v1827_v4, 1  ;;  %v2447_v18 = vrot.slane %v1827_v4, 7  ;;  %v2573_v52 = vsel %vm9078_vm6, %v2470_v47, %v2405_v16  ;;  %v11844_v15 = vld [vmem:[#allocation26_spill] sm:$0xff] }
 0x1b5   : > { %v2147_v39 = vsel %vm2136_vm1, %v2124_v62, %v2125_v43  ;;  %v2212_v14 = vsel %vm2201_vm0, %v2189_v29, %v2190_v27  ;;  %v2858_v56 = vadd.f32 %v2826_v12, %v8874_v13  ;;  %v2605_v34 = vadd.f32 %v2573_v52, %v2349_v46 }
 0x1b6   : > { %v2318_v48 = vsel %vm9087_vm7, %v2212_v14, %v2148_v53  ;;  %v2351_v6 = vadd.f32 %v2147_v39, %v8974_v33  ;;  %v2404_v41 = vsel %vm2201_vm0, %v2382_v20, %v2383_v50  ;;  %v9160_v36 = vadd.f32 %v8550_v28, %v2672_v0  ;;  %v1831_v33 = vpop.f32.mrb[60].mxu1 }
 0x1b7   : > { %v9163_v47 = vadd.f32 %v8550_v28, %v2673_v38  ;;  %v2350_v2 = vadd.f32 %v2318_v48, %v8967_v23  ;;  %v2468_v13 = vsel %vm2136_vm1, %v2446_v3, %v2447_v18  ;;  %v9169_v46 = vadd.f32 %v8550_v28, %v2674_v22  ;;  %v1833_v20 = vpop.f32.mrb[61].mxu1 }
 0x1b8   : > { %v2639_v21 = vadd.f32 %v8542_v25, %v2603_v24  ;;  %v2952_v62 = vadd.f32 1.0, %v7439_v45  ;;  %v2953_v51 = vadd.f32 1.0, %v7441_v19  ;;  %v2640_v12 = vadd.f32 %v8542_v25, %v2604_v60  ;;  %v1835_v1 = vpop.f32.mrb[62].mxu1 }
 0x1b9   : > { %v2641_v0 = vadd.f32 %v8542_v25, %v2605_v34  ;;  %v2606_v29 = vadd.f32 %v2404_v41, %v2350_v2  ;;  %v2126_v38 = vrot.slane %v1831_v33, 7  ;;  %v2191_v58 = vrot.slane %v1831_v33, 1  ;;  %v1837_v4 = vpop.f32.mrb[63].mxu1 }
 0x1ba   : > { %v2384_v23 = vrot.slane %v1833_v20, 1  ;;  %v11841_v8 = vand.u32 15, %v8649_v31  ;;  %v2859_v24 = vadd.f32 %v2827_v9, %v8880_v37  ;;  %v2890_v45 = vmul.f32 0.7978846, %v2858_v56  ;;  %v11848_v31 = vld [vmem:[#allocation35_spill] sm:$0xff]  ;;  %v11849_v9 = vld [vmem:[#allocation34_spill] sm:$0xff] }
 0x1bb   : > { %v2146_v60 = vsel %vm2136_vm1, %v2125_v43, %v2126_v38  ;;  %v2127_v53 = vrot.slane %v1835_v1, 7  ;;  %v2192_v27 = vrot.slane %v1835_v1, 1  ;;  %v11845_v19 = vand.u32 15, %v11844_v15 }
 0x1bc   : > { %vm9176_vm10 = vcmp.eq.s32.totalorder %v11841_v8, 15  ;;  %v2985_v3 = vmul.f32 %v2953_v51, %v11848_v31  ;;  %v2403_v18 = vsel %vm2201_vm0, %v2383_v50, %v2384_v23  ;;  %v2385_v52 = vrot.slane %v1837_v4, 1  ;;  %v11854_v31 = vld [vmem:[#allocation28_spill] sm:$0xff] }
 0x1bd   : > { %vm9185_vm11 = vcmp.eq.s32.totalorder %v11845_v19, 0  ;;  %v2449_v37 = vrot.slane %v1837_v4, 7  ;;  %v2984_v39 = vmul.f32 %v2952_v62, %v11849_v9  ;;  %v2448_v14 = vrot.slane %v1833_v20, 7  ;;  %v11850_v4 = vld [vmem:[#allocation27_spill] sm:$0xff] }
 0x1be   : > { %v2575_v43 = vsel %vm9132_vm8, %v2468_v13, %v2403_v18  ;;  %v2145_v56 = vsel %vm2136_vm1, %v2126_v38, %v2127_v53  ;;  %v2210_v34 = vsel %vm2201_vm0, %v2191_v58, %v2192_v27  ;;  %v2402_v2 = vsel %vm2201_vm0, %v2384_v23, %v2385_v52 }
 0x1bf   : > { %v2607_v48 = vadd.f32 %v2575_v43, %v2351_v6  ;;  %v2320_v41 = vsel %vm9140_vm9, %v2210_v34, %v2146_v60  ;;  %v2353_v50 = vadd.f32 %v2145_v56, %v8928_v61  ;;  %v2466_v26 = vsel %vm2136_vm1, %v2448_v14, %v2449_v37  ;;  %v1841_v61 = vpop.f32.mrb[64].mxu1  ;;  %v7214_v37 = vld [vmem:[%s11668_s2 + $0x4] ss:$8 sps:$4 sm:$0xff]  }
 0x1c0   : > { %v2352_v33 = vadd.f32 %v2320_v41, %v8922_v30  ;;  %v9207_v13 = vpack.c.bf16 %v2985_v3, %v2984_v39  ;;  %v9210_v62 = vmul.f32 0.5, %v9014_v44  ;;  %v2675_v6 = vmul.f32 %v8544_v55, %v2639_v21  ;;  %v1843_v1 = vpop.f32.mrb[65].mxu1  ;;  %3446 = vmatprep.mubr.bf16.mxu0 %v7214_v37 }
 0x1c1   : > { %v2676_v5 = vmul.f32 %v8544_v55, %v2640_v12  ;;  %v2677_v51 = vmul.f32 %v8544_v55, %v2641_v0  ;;  %v2891_v38 = vmul.f32 0.7978846, %v2859_v24  ;;  %v2642_v20 = vadd.f32 %v8542_v25, %v2606_v29  ;;  %v1845_v27 = vpop.f32.mrb[66].mxu1 }
 0x1c2   : > { %v2643_v30 = vadd.f32 %v8542_v25, %v2607_v48  ;;  %v2608_v58 = vadd.f32 %v2402_v2, %v2352_v33  ;;  %v2128_v23 = vrot.slane %v1841_v61, 7  ;;  %v2193_v8 = vrot.slane %v1841_v61, 1  ;;  %v1847_v19 = vpop.f32.mrb[67].mxu1 }
 0x1c3   : > { %v2386_v60 = vrot.slane %v1843_v1, 1  ;;  %v11851_v15 = vand.u32 15, %v11850_v4  ;;  %7442 = vtanh.f32 %v2890_v45  ;;  %v2764_v12 = vmul.f32 0.044715, %v9014_v44 }
 0x1c4   : > { %v2144_v0 = vsel %vm2136_vm1, %v2127_v53, %v2128_v23  ;;  %v2129_v29 = vrot.slane %v1845_v27, 7  ;;  %v2194_v24 = vrot.slane %v1845_v27, 1  ;;  %v11855_v3 = vand.u32 15, %v11854_v31 }
 0x1c5   : > { %vm9219_vm12 = vcmp.eq.s32.totalorder %v11851_v15, 15  ;;  %7444 = vtanh.f32 %v2891_v38  ;;  %v2401_v45 = vsel %vm2201_vm0, %v2385_v52, %v2386_v60  ;;  %v2387_v9 = vrot.slane %v1847_v19, 1 }
 0x1c6   : > { %vm9228_vm13 = vcmp.eq.s32.totalorder %v11855_v3, 0  ;;  %v2451_v39 = vrot.slane %v1847_v19, 7  ;;  %v2765_v53 = vmul.f32 0.044715, %v9017_v57  ;;  %v2450_v14 = vrot.slane %v1843_v1, 7  ;;  %v11862_v3 = vld [vmem:[#allocation30_spill] sm:$0xff] }
 0x1c7   : > { %v2577_v43 = vsel %vm9176_vm10, %v2466_v26, %v2401_v45  ;;  %v2143_v56 = vsel %vm2136_vm1, %v2128_v23, %v2129_v29  ;;  %v2208_v34 = vsel %vm2201_vm0, %v2193_v8, %v2194_v24  ;;  %v2400_v2 = vsel %vm2201_vm0, %v2386_v60, %v2387_v9 }
 0x1c8   : > { %v2609_v48 = vadd.f32 %v2577_v43, %v2353_v50  ;;  %v2322_v41 = vsel %vm9185_vm11, %v2208_v34, %v2144_v0  ;;  %v2355_v52 = vadd.f32 %v2143_v56, %v8977_v54  ;;  %v2464_v22 = vsel %vm2136_vm1, %v2450_v14, %v2451_v39  ;;  %v11858_v0 = vld [vmem:[#allocation29_spill] sm:$0xff] }
 0x1c9   : > { %v2354_v33 = vadd.f32 %v2322_v41, %v8971_v59  ;;  %v9253_v26 = vmul.f32 0.5, %v9017_v57  ;;  %v2796_v61 = vmul.f32 %v2764_v12, %v9014_v44  ;;  %v9257_v50 = vadd.f32 %v8550_v28, %v2675_v6  ;;  %v1851_v59 = vpop.f32.mrb[68].mxu1 }
 0x1ca   : > { %v9260_v16 = vadd.f32 %v8550_v28, %v2676_v5  ;;  %v9263_v54 = vadd.f32 %v8550_v28, %v2677_v51  ;;  %v2678_v38 = vmul.f32 %v8544_v55, %v2642_v20  ;;  %v2679_v23 = vmul.f32 %v8544_v55, %v2643_v30  ;;  %v1853_v60 = vpop.f32.mrb[69].mxu1 }
 0x1cb   : > { %v2610_v1 = vadd.f32 %v2400_v2, %v2354_v33  ;;  %v2130_v8 = vrot.slane %v1851_v59, 7  ;;  %v2797_v27 = vmul.f32 %v2765_v53, %v9017_v57  ;;  %v2644_v4 = vadd.f32 %v8542_v25, %v2608_v58  ;;  %v1855_v12 = vpop.f32.mrb[70].mxu1 }
 0x1cc   : > { %v2645_v6 = vadd.f32 %v8542_v25, %v2609_v48  ;;  %v2195_v15 = vrot.slane %v1851_v59, 1  ;;  %v2388_v5 = vrot.slane %v1853_v60, 1  ;;  %v11859_v51 = vand.u32 15, %v11858_v0  ;;  %v1857_v31 = vpop.f32.mrb[71].mxu1 }
 0x1cd   : > { %v2142_v20 = vsel %vm2136_vm1, %v2129_v29, %v2130_v8  ;;  %v2131_v30 = vrot.slane %v1855_v12, 7  ;;  %v2196_v19 = vrot.slane %v1855_v12, 1  ;;  %v11863_v37 = vand.u32 15, %v11862_v3  ;;  %v7443_v39 = vpop.eup %7442 }
 0x1ce   : > { %vm9272_vm14 = vcmp.eq.s32.totalorder %v11859_v51, 15  ;;  %v2828_v45 = vmul.f32 %v2796_v61, %v9014_v44  ;;  %v2399_v53 = vsel %vm2201_vm0, %v2387_v9, %v2388_v5  ;;  %v2452_v14 = vrot.slane %v1853_v60, 7  ;;  %v11866_v9 = vld [vmem:[#allocation14_spill] sm:$0xff] }
 0x1cf   : > { %vm9280_vm15 = vcmp.eq.s32.totalorder %v11863_v37, 0  ;;  %v2389_v43 = vrot.slane %v1857_v31, 1  ;;  %v2453_v56 = vrot.slane %v1857_v31, 7  ;;  %v7445_v34 = vpop.eup %7444  ;;  %v2579_v29 = vsel %vm9219_vm12, %v2464_v22, %v2399_v53  ;;  %v11868_v53 = vld [vmem:[#allocation31_spill] sm:$0xff] }
 0x1d0   : > { %v2141_v48 = vsel %vm2136_vm1, %v2130_v8, %v2131_v30  ;;  %v2206_v41 = vsel %vm2201_vm0, %v2195_v15, %v2196_v19  ;;  %v2829_v2 = vmul.f32 %v2797_v27, %v9017_v57  ;;  %v2611_v33 = vadd.f32 %v2579_v29, %v2355_v52  ;;  %v11867_v8 = vld [vmem:[#allocation12_spill] sm:$0xff]  ;;  %v1861_v15 = vpop.f32.mrb[72].mxu1 }
 0x1d1   : > { %v2324_v61 = vsel %vm9228_vm13, %v2206_v41, %v2142_v20  ;;  %v2357_v59 = vadd.f32 %v2141_v48, %v11866_v9  ;;  %v2398_v60 = vsel %vm2201_vm0, %v2388_v5, %v2389_v43  ;;  %v9300_v21 = vadd.f32 %v8550_v28, %v2678_v38 }
 0x1d2   : > { %v9303_v22 = vadd.f32 %v8550_v28, %v2679_v23  ;;  %v2356_v12 = vadd.f32 %v2324_v61, %v11867_v8  ;;  %v2462_v27 = vsel %vm2136_vm1, %v2452_v14, %v2453_v56  ;;  %v2680_v52 = vmul.f32 %v8544_v55, %v2644_v4  ;;  %v1863_v23 = vpop.f32.mrb[73].mxu1 }
 0x1d3   : > { %v2681_v18 = vmul.f32 %v8544_v55, %v2645_v6  ;;  %v2954_v0 = vadd.f32 1.0, %v7443_v39  ;;  %v2955_v51 = vadd.f32 1.0, %v7445_v34  ;;  %v2646_v5 = vadd.f32 %v8542_v25, %v2610_v1  ;;  %v1865_v37 = vpop.f32.mrb[74].mxu1 }
 0x1d4   : > { %v2647_v38 = vadd.f32 %v8542_v25, %v2611_v33  ;;  %v2612_v20 = vadd.f32 %v2398_v60, %v2356_v12  ;;  %v2132_v19 = vrot.slane %v1861_v15, 7  ;;  %v2197_v31 = vrot.slane %v1861_v15, 1  ;;  %v1867_v34 = vpop.f32.mrb[75].mxu1 }
 0x1d5   : > { %v2390_v3 = vrot.slane %v1863_v23, 1  ;;  %v11869_v29 = vand.u32 15, %v11868_v53  ;;  %v2860_v4 = vadd.f32 %v2828_v45, %v9014_v44  ;;  %v2861_v6 = vadd.f32 %v2829_v2, %v9017_v57  ;;  %v11875_v57 = vld [vmem:[#allocation32_spill] sm:$0xff] }
 0x1d6   : > { %v2140_v1 = vsel %vm2136_vm1, %v2131_v30, %v2132_v19  ;;  %v2133_v39 = vrot.slane %v1865_v37, 7  ;;  %v2198_v56 = vrot.slane %v1865_v37, 1  ;;  %v11872_v48 = vand.u32 15, %v7984_v7 }
 0x1d7   : > { %vm9314_vm2 = vcmp.eq.s32.totalorder %v11869_v29, 15  ;;  %v2987_v33 = vmul.f32 %v2955_v51, %v9124_v40  ;;  %v2397_v61 = vsel %vm2201_vm0, %v2389_v43, %v2390_v3  ;;  %v2391_v44 = vrot.slane %v1867_v34, 1  ;;  %v11879_v51 = vld [vmem:[#allocation17_spill] sm:$0xff] }
 0x1d8   : > { %vm9324_vm3 = vcmp.eq.s32.totalorder %v11872_v48, 0  ;;  %v2455_v45 = vrot.slane %v1867_v34, 7  ;;  %v11876_v2 = vand.u32 15, %v11875_v57  ;;  %v2986_v9 = vmul.f32 %v2954_v0, %v9121_v49  ;;  %v11880_v49 = vld [vmem:[#allocation33_spill] sm:$0xff] }
 0x1d9   : > { %v2454_v60 = vrot.slane %v1863_v23, 7  ;;  %v2581_v8 = vsel %vm9272_vm14, %v2462_v27, %v2397_v61  ;;  %v2139_v40 = vsel %vm2136_vm1, %v2132_v19, %v2133_v39  ;;  %v2204_v43 = vsel %vm2201_vm0, %v2197_v31, %v2198_v56  ;;  %v11884_v19 = vld [vmem:[#allocation16_spill] sm:$0xff] }
 0x1da   : > { %vm9333_vm4 = vcmp.eq.s32.totalorder %v11876_v2, 0  ;;  %v2613_v12 = vadd.f32 %v2581_v8, %v2357_v59  ;;  %v2326_v15 = vsel %vm9280_vm15, %v2204_v43, %v2140_v1  ;;  %v2359_v37 = vadd.f32 %v2139_v40, %v11879_v51 }
 0x1db   : > { %v2396_v53 = vsel %vm2201_vm0, %v2390_v3, %v2391_v44  ;;  %v11881_v0 = vand.u32 15, %v11880_v49  ;;  %v9356_v27 = vadd.f32 %v8550_v28, %v2680_v52  ;;  %v2358_v23 = vadd.f32 %v2326_v15, %v11884_v19  ;;  %v1871_v3 = vpop.f32.mrb[76].mxu1 }
 0x1dc   : > { %v2460_v58 = vsel %vm2136_vm1, %v2454_v60, %v2455_v45  ;;  %v9361_v59 = vpack.c.bf16 %v2987_v33, %v2986_v9  ;;  %v9364_v31 = vadd.f32 %v8550_v28, %v2681_v18  ;;  %v2892_v29 = vmul.f32 0.7978846, %v2860_v4  ;;  %v1873_v45 = vpop.f32.mrb[77].mxu1 }
 0x1dd   : > { %vm9351_vm5 = vcmp.eq.s32.totalorder %v11881_v0, 15  ;;  %v9367_v1 = vmul.f32 0.5, %v9023_v42  ;;  %v9370_v56 = vmul.f32 0.5, %v9026_v35  ;;  %v2682_v52 = vmul.f32 %v8544_v55, %v2646_v5  ;;  %v1875_v2 = vpop.f32.mrb[78].mxu1 }
 0x1de   : > { %v2683_v34 = vmul.f32 %v8544_v55, %v2647_v38  ;;  %v2614_v48 = vadd.f32 %v2396_v53, %v2358_v23  ;;  %v2134_v61 = vrot.slane %v1871_v3, 7  ;;  %v2648_v33 = vadd.f32 %v8542_v25, %v2612_v20  ;;  %v1877_v40 = vpop.f32.mrb[79].mxu1  ;;  %v11885_v53 = vld [vmem:[#allocation18_spill] sm:$0xff] }
 0x1df   : > { %v2199_v57 = vrot.slane %v1871_v3, 1  ;;  %v2392_v18 = vrot.slane %v1873_v45, 1  ;;  %v2893_v9 = vmul.f32 0.7978846, %v2861_v6  ;;  %v2135_v60 = vrot.slane %v1875_v2, 7  ;;  %v11888_v3 = vld [vmem:[#allocation15_spill] sm:$0xff] }
 0x1e0   : > { %v2138_v4 = vsel %vm2136_vm1, %v2133_v39, %v2134_v61  ;;  %v2200_v8 = vrot.slane %v1875_v2, 1  ;;  %v2766_v43 = vmul.f32 0.044715, %v9023_v42  ;;  %v2393_v38 = vrot.slane %v1877_v40, 1 }
 0x1e1   : > { %v2395_v5 = vsel %vm2201_vm0, %v2391_v44, %v2392_v18  ;;  %v2457_v15 = vrot.slane %v1877_v40, 7  ;;  %7446 = vtanh.f32 %v2892_v29  ;;  %v2456_v51 = vrot.slane %v1873_v45, 7  ;;  %v11887_v44 = vld [vmem:[#allocation23_spill] sm:$0xff] }
 0x1e2   : > { %v2583_v20 = vsel %vm9314_vm2, %v2460_v58, %v2395_v5  ;;  %v2137_v6 = vsel %vm2136_vm1, %v2134_v61, %v2135_v60  ;;  %v11886_v39 = vrot.slane %v11885_v53, 7  ;;  %v2202_v19 = vsel %vm2201_vm0, %v2199_v57, %v2200_v8  ;;  %v11889_v61 = vld [vmem:[#allocation11_spill] sm:$0xff]  ;;  %v11893_v5 = vld [vmem:[#allocation25_spill] sm:$0xff] }
 0x1e3   : > { %v2615_v0 = vadd.f32 %v2583_v20, %v2359_v37  ;;  %v2361_v29 = vadd.f32 %v2137_v6, %v11888_v3  ;;  %v2649_v14 = vadd.f32 %v8542_v25, %v2613_v12  ;;  %v2328_v58 = vsel %vm9333_vm4, %v2202_v19, %v2138_v4  ;;  %v11891_v8 = vld [vmem:[#allocation19_spill] sm:$0xff] }
 0x1e4   : > { %v2168_v49 = vsel %vm2136_vm1, %v2135_v60, %v11886_v39  ;;  %v2394_v2 = vsel %vm2201_vm0, %v2392_v18, %v2393_v38  ;;  %v2650_v37 = vadd.f32 %v8542_v25, %v2614_v48  ;;  %v11890_v60 = vld [vmem:[#allocation13_spill] sm:$0xff]  ;;  %v11892_v40 = vrot.slane %v11891_v8, 1 }
 0x1e5   : > { %v2298_v23 = vsel %vm9324_vm3, %v11887_v44, %v2168_v49  ;;  %v2360_v57 = vadd.f32 %v2328_v58, %v11890_v60  ;;  %v2458_v12 = vsel %vm2136_vm1, %v2456_v51, %v2457_v15  ;;  %7448 = vtanh.f32 %v2893_v9 }
 0x1e6   : > { %v2330_v45 = vadd.f32 %v2298_v23, %v11889_v61  ;;  %v2425_v41 = vsel %vm2201_vm0, %v2393_v38, %v11892_v40  ;;  %v2767_v18 = vmul.f32 0.044715, %v9026_v35  ;;  %v2684_v48 = vmul.f32 %v8544_v55, %v2648_v33 }
 0x1e7   : > { %v2585_v4 = vsel %vm9351_vm5, %v2458_v12, %v2425_v41  ;;  %v2616_v20 = vadd.f32 %v2394_v2, %v2360_v57  ;;  %v2798_v53 = vmul.f32 %v2766_v43, %v9023_v42  ;;  %v2685_v39 = vmul.f32 %v8544_v55, %v2649_v14 }
 0x1e8   : > { %v2586_v30 = vadd.f32 %v11893_v5, %v2330_v45  ;;  %v2617_v6 = vadd.f32 %v2585_v4, %v2361_v29  ;;  %v2799_v15 = vmul.f32 %v2767_v18, %v9026_v35  ;;  %v2768_v51 = vmul.f32 0.044715, %v9029_v17 }
 0x1e9   : > { %v9419_v24 = vadd.f32 %v8550_v28, %v2682_v52  ;;  %v2686_v9 = vmul.f32 %v8544_v55, %v2650_v37  ;;  %v2651_v49 = vadd.f32 %v8542_v25, %v2615_v0  ;;  %v2830_v33 = vmul.f32 %v2798_v53, %v9023_v42 }
 0x1ea   : > { %v2622_v38 = vadd.f32 %v8542_v25, %v2586_v30  ;;  %v9425_v19 = vadd.f32 %v8550_v28, %v2683_v34  ;;  %v2831_v44 = vmul.f32 %v2799_v15, %v9026_v35  ;;  %v2769_v23 = vmul.f32 0.044715, %v9066_v10 }
 0x1eb   : > { %v7447_v3 = vpop.eup %7446  ;;  %v9431_v29 = vadd.f32 %v8550_v28, %v2684_v48  ;;  %v2862_v52 = vadd.f32 %v2830_v33, %v9023_v42  ;;  %v9435_v14 = vmul.f32 0.5, %v9029_v17  ;;  %v2800_v0 = vmul.f32 %v2768_v51, %v9029_v17 }
 0x1ec   : > { %v2658_v43 = vmul.f32 %v8544_v55, %v2622_v38  ;;  %v9439_v34 = vadd.f32 %v8550_v28, %v2685_v39  ;;  %v2863_v61 = vadd.f32 %v2831_v44, %v9026_v35  ;;  %v2801_v45 = vmul.f32 %v2769_v23, %v9066_v10 }
 0x1ed   : > { %v9445_v2 = vadd.f32 %v8550_v28, %v2686_v9  ;;  %v2687_v37 = vmul.f32 %v8544_v55, %v2651_v49  ;;  %v2894_v42 = vmul.f32 0.7978846, %v2862_v52  ;;  %v2832_v60 = vmul.f32 %v2800_v0, %v9029_v17 }
 0x1ee   : > { %v2694_v58 = vadd.f32 %v8550_v28, %v2658_v43  ;;  %v2956_v8 = vadd.f32 1.0, %v7447_v3  ;;  %v2895_v40 = vmul.f32 0.7978846, %v2863_v61  ;;  %v2833_v41 = vmul.f32 %v2801_v45, %v9066_v10 }
 0x1ef   : > { %v2652_v12 = vadd.f32 %v8542_v25, %v2616_v20  ;;  %7450 = vtanh.f32 %v2894_v42  ;;  %v9452_v35 = vmul.f32 0.5, %v9066_v10  ;;  %v2864_v5 = vadd.f32 %v2832_v60, %v9029_v17  ;;  %v7449_v30 = vpop.eup %7448 }
 0x1f0   : > { %v2758_v57 = vmul.f32 0.044715, %v2694_v58  ;;  %7452 = vtanh.f32 %v2895_v40  ;;  %v2865_v18 = vadd.f32 %v2833_v41, %v9066_v10  ;;  %v2770_v48 = vmul.f32 0.044715, %v9107_v63 }
 0x1f1   : > { %v2653_v53 = vadd.f32 %v8542_v25, %v2617_v6  ;;  %v2957_v39 = vadd.f32 1.0, %v7449_v30  ;;  %v2896_v38 = vmul.f32 0.7978846, %v2864_v5  ;;  %v2771_v15 = vmul.f32 0.044715, %v9114_v32 }
 0x1f2   : > { %v2790_v4 = vmul.f32 %v2758_v57, %v2694_v58  ;;  %v2988_v51 = vmul.f32 %v2956_v8, %v9210_v62  ;;  %v2897_v9 = vmul.f32 0.7978846, %v2865_v18  ;;  %v2802_v49 = vmul.f32 %v2770_v48, %v9107_v63 }
 0x1f3   : > { %v2989_v17 = vmul.f32 %v2957_v39, %v9253_v26  ;;  %7454 = vtanh.f32 %v2896_v38  ;;  %v2803_v33 = vmul.f32 %v2771_v15, %v9114_v32  ;;  %v2772_v10 = vmul.f32 0.044715, %v9160_v36 }
 0x1f4   : > { %v2822_v20 = vmul.f32 %v2790_v4, %v2694_v58  ;;  %7456 = vtanh.f32 %v2897_v9  ;;  %v2834_v25 = vmul.f32 %v2802_v49, %v9107_v63  ;;  %v2773_v6 = vmul.f32 0.044715, %v9163_v47 }
 0x1f5   : > { %v9467_v44 = vadd.f32 %v8550_v28, %v2687_v37  ;;  %v9469_v62 = vpack.c.bf16 %v2989_v17, %v2988_v51  ;;  %v2835_v23 = vmul.f32 %v2803_v33, %v9114_v32  ;;  %v2804_v26 = vmul.f32 %v2772_v10, %v9160_v36 }
 0x1f6   : > { %v2854_v43 = vadd.f32 %v2822_v20, %v2694_v58  ;;  %v9474_v3 = vmul.f32 %v8544_v55, %v2652_v12  ;;  %v2866_v0 = vadd.f32 %v2834_v25, %v9107_v63  ;;  %v2805_v61 = vmul.f32 %v2773_v6, %v9163_v47 }
 0x1f7   : > { %v2867_v45 = vadd.f32 %v2835_v23, %v9114_v32  ;;  %v2836_v42 = vmul.f32 %v2804_v26, %v9160_v36  ;;  %v2774_v37 = vmul.f32 0.044715, %v9169_v46  ;;  %v2775_v60 = vmul.f32 0.044715, %v9257_v50 }
 0x1f8   : > { %v2886_v52 = vmul.f32 0.7978846, %v2854_v43  ;;  %v9483_v57 = vmul.f32 %v8544_v55, %v2653_v53  ;;  %v2898_v8 = vmul.f32 0.7978846, %v2866_v0  ;;  %v2837_v40 = vmul.f32 %v2805_v61, %v9163_v47 }
 0x1f9   : > { %v7451_v41 = vpop.eup %7450  ;;  %v2899_v12 = vmul.f32 0.7978846, %v2867_v45  ;;  %v2868_v5 = vadd.f32 %v2836_v42, %v9160_v36  ;;  %v2806_v30 = vmul.f32 %v2774_v37, %v9169_v46  ;;  %v2807_v4 = vmul.f32 %v2775_v60, %v9257_v50 }
 0x1fa   : > { %7458 = vtanh.f32 %v2886_v52  ;;  %v7453_v18 = vpop.eup %7452  ;;  %v2726_v48 = vmul.f32 0.5, %v2694_v58  ;;  %v2958_v39 = vadd.f32 1.0, %v7451_v41  ;;  %v2869_v38 = vadd.f32 %v2837_v40, %v9163_v47 }
 0x1fb   : > { %7460 = vtanh.f32 %v2898_v8  ;;  %v2959_v55 = vadd.f32 1.0, %v7453_v18  ;;  %v2900_v53 = vmul.f32 0.7978846, %v2868_v5  ;;  %v2838_v15 = vmul.f32 %v2806_v30, %v9169_v46 }
 0x1fc   : > { %7462 = vtanh.f32 %v2899_v12  ;;  %v2990_v20 = vmul.f32 %v2958_v39, %v9367_v1  ;;  %v2901_v51 = vmul.f32 0.7978846, %v2869_v38  ;;  %v2839_v9 = vmul.f32 %v2807_v4, %v9257_v50 }
 0x1fd   : > { %v2776_v49 = vmul.f32 0.044715, %v9260_v16  ;;  %v7455_v17 = vpop.eup %7454  ;;  %v2991_v33 = vmul.f32 %v2959_v55, %v9370_v56  ;;  %7464 = vtanh.f32 %v2900_v53  ;;  %v2870_v58 = vadd.f32 %v2838_v15, %v9169_v46 }
 0x1fe   : > { %v2777_v10 = vmul.f32 0.044715, %v9263_v54  ;;  %v7457_v43 = vpop.eup %7456  ;;  %v2960_v25 = vadd.f32 1.0, %v7455_v17  ;;  %7466 = vtanh.f32 %v2901_v51  ;;  %v2871_v6 = vadd.f32 %v2839_v9, %v9257_v50 }
 0x1ff   : > { %v2808_v1 = vmul.f32 %v2776_v49, %v9260_v16  ;;  %v9499_v23 = vpack.c.bf16 %v2991_v33, %v2990_v20  ;;  %v2961_v26 = vadd.f32 1.0, %v7457_v43  ;;  %v2902_v52 = vmul.f32 0.7978846, %v2870_v58 }
 0x200   : > { %v2809_v0 = vmul.f32 %v2777_v10, %v9263_v54  ;;  %v2738_v56 = vmul.f32 0.5, %v9107_v63  ;;  %v2739_v61 = vmul.f32 0.5, %v9114_v32  ;;  %v2903_v45 = vmul.f32 0.7978846, %v2871_v6 }
 0x201   : > { %v2840_v42 = vmul.f32 %v2808_v1, %v9260_v16  ;;  %v2992_v37 = vmul.f32 %v2960_v25, %v9435_v14  ;;  %v2993_v60 = vmul.f32 %v2961_v26, %v9452_v35  ;;  %7468 = vtanh.f32 %v2902_v52 }
 0x202   : > { %v2841_v8 = vmul.f32 %v2809_v0, %v9263_v54  ;;  %7470 = vtanh.f32 %v2903_v45  ;;  %v2778_v12 = vmul.f32 0.044715, %v9300_v21  ;;  %v2779_v63 = vmul.f32 0.044715, %v9303_v22 }
 0x203   : > { %v2872_v41 = vadd.f32 %v2840_v42, %v9260_v16  ;;  %v9511_v32 = vpack.c.bf16 %v2993_v60, %v2992_v37  ;;  %v2740_v30 = vmul.f32 0.5, %v9160_v36  ;;  %v2741_v35 = vmul.f32 0.5, %v9163_v47 }
 0x204   : > { %v7459_v40 = vpop.eup %7458  ;;  %v2873_v14 = vadd.f32 %v2841_v8, %v9263_v54  ;;  %v2810_v39 = vmul.f32 %v2778_v12, %v9300_v21  ;;  %v2811_v38 = vmul.f32 %v2779_v63, %v9303_v22  ;;  %v2780_v51 = vmul.f32 0.044715, %v9356_v27 }
 0x205   : > { %v2950_v5 = vadd.f32 1.0, %v7459_v40  ;;  %v7461_v4 = vpop.eup %7460  ;;  %v2904_v18 = vmul.f32 0.7978846, %v2872_v41  ;;  %v2781_v58 = vmul.f32 0.044715, %v9364_v31  ;;  %v2742_v26 = vmul.f32 0.5, %v9169_v46 }
 0x206   : > { %v7463_v55 = vpop.eup %7462  ;;  %v2962_v15 = vadd.f32 1.0, %v7461_v4  ;;  %v2905_v20 = vmul.f32 0.7978846, %v2873_v14  ;;  %v2842_v36 = vmul.f32 %v2810_v39, %v9300_v21  ;;  %v2843_v49 = vmul.f32 %v2811_v38, %v9303_v22 }
 0x207   : > { %v2982_v53 = vmul.f32 %v2950_v5, %v2726_v48  ;;  %v2963_v9 = vadd.f32 1.0, %v7463_v55  ;;  %7472 = vtanh.f32 %v2904_v18  ;;  %v7465_v17 = vpop.eup %7464  ;;  %v2812_v52 = vmul.f32 %v2780_v51, %v9356_v27 }
 0x208   : > { %v2994_v33 = vmul.f32 %v2962_v15, %v2738_v56  ;;  %7474 = vtanh.f32 %v2905_v20  ;;  %v7467_v10 = vpop.eup %7466  ;;  %v2964_v43 = vadd.f32 1.0, %v7465_v17  ;;  %v2874_v25 = vadd.f32 %v2842_v36, %v9300_v21 }
 0x209   : > { %v9522_v47 = vpack.c.bf16 %v9118_v11, %v2982_v53  ;;  %v2995_v48 = vmul.f32 %v2963_v9, %v2739_v61  ;;  %v2875_v6 = vadd.f32 %v2843_v49, %v9303_v22  ;;  %v2965_v1 = vadd.f32 1.0, %v7467_v10 }
 0x20a   : > { %v2813_v11 = vmul.f32 %v2781_v58, %v9364_v31  ;;  %v11894_v0 = vmov 0   ;;  %v2743_v61 = vmul.f32 0.5, %v9257_v50  ;;  %v2906_v45 = vmul.f32 0.7978846, %v2874_v25 }
 0x20b   : > { %3415 = vmatpush1.bf16.msra.mxu0 %v9522_v47  ;;  %v9532_v56 = vpack.c.bf16 %v2995_v48, %v2994_v33  ;;  %v2907_v42 = vmul.f32 0.7978846, %v2875_v6  ;;  %v7469_v37 = vpop.eup %7468  ;;  %v2996_v60 = vmul.f32 %v2964_v43, %v2740_v30  ;;  %v2997_v8 = vmul.f32 %v2965_v1, %v2741_v35 }
 0x20c   : > { %3416 = vmatprep.subr.bf16.mxu0 %v11894_v0  ;;  %v2844_v40 = vmul.f32 %v2812_v52, %v9356_v27  ;;  %v2845_v41 = vmul.f32 %v2813_v11, %v9364_v31  ;;  %v7471_v46 = vpop.eup %7470  ;;  %v2966_v12 = vadd.f32 1.0, %v7469_v37  ;;  %7476 = vtanh.f32 %v2906_v45 }
 0x20d   : > { %v2782_v63 = vmul.f32 0.044715, %v9419_v24  ;;  %v2783_v5 = vmul.f32 0.044715, %v9425_v19  ;;  %v9540_v14 = vpack.c.bf16 %v2997_v8, %v2996_v60  ;;  %v2967_v50 = vadd.f32 1.0, %v7471_v46 }
 0x20e   : > { %7478 = vtanh.f32 %v2907_v42  ;;  %v2876_v30 = vadd.f32 %v2844_v40, %v9356_v27  ;;  %v2744_v4 = vmul.f32 0.5, %v9260_v16  ;;  %v2877_v35 = vadd.f32 %v2845_v41, %v9364_v31 }
 0x20f   : > { %3417 = vmatpush1.bf16.msra.mxu0 %v9207_v13  ;;  %v2814_v18 = vmul.f32 %v2782_v63, %v9419_v24  ;;  %v2815_v39 = vmul.f32 %v2783_v5, %v9425_v19  ;;  %v2998_v38 = vmul.f32 %v2966_v12, %v2742_v26  ;;  %v2999_v55 = vmul.f32 %v2967_v50, %v2743_v61 }
 0x210   : > { %3418 = vmatprep.subr.bf16.mxu0 %v11894_v0  ;;  %v2745_v53 = vmul.f32 0.5, %v9263_v54  ;;  %v2908_v15 = vmul.f32 0.7978846, %v2876_v30  ;;  %v2909_v51 = vmul.f32 0.7978846, %v2877_v35  ;;  %v9561_v43 = vadd.f32 %v8550_v28, %v9474_v3 }
 0x211   : > { %v7473_v20 = vpop.eup %7472  ;;  %v2846_v9 = vmul.f32 %v2814_v18, %v9419_v24  ;;  %v2847_v36 = vmul.f32 %v2815_v39, %v9425_v19  ;;  %v2784_v49 = vmul.f32 0.044715, %v9431_v29  ;;  %v9553_v17 = vpack.c.bf16 %v2999_v55, %v2998_v38 }
 0x212   : > { %v7475_v16 = vpop.eup %7474  ;;  %v2968_v33 = vadd.f32 1.0, %v7473_v20  ;;  %7480 = vtanh.f32 %v2908_v15  ;;  %v2785_v58 = vmul.f32 0.044715, %v9439_v34  ;;  %v9565_v25 = vadd.f32 %v8550_v28, %v9483_v57 }
 0x213   : > { %3419 = vmatpush1.bf16.msra.mxu0 %v9361_v59  ;;  %v2969_v54 = vadd.f32 1.0, %v7475_v16  ;;  %7482 = vtanh.f32 %v2909_v51  ;;  %v2878_v10 = vadd.f32 %v2846_v9, %v9419_v24  ;;  %v2879_v48 = vadd.f32 %v2847_v36, %v9425_v19 }
 0x214   : > { %3420 = vmatprep.subr.bf16.mxu0 %v11894_v0  ;;  %v2816_v6 = vmul.f32 %v2784_v49, %v9431_v29  ;;  %v2817_v1 = vmul.f32 %v2785_v58, %v9439_v34  ;;  %v3000_v26 = vmul.f32 %v2968_v33, %v2744_v4  ;;  %v2786_v3 = vmul.f32 0.044715, %v9445_v2 }
 0x215   : > { %v3001_v52 = vmul.f32 %v2969_v54, %v2745_v53  ;;  %v2910_v11 = vmul.f32 0.7978846, %v2878_v10  ;;  %v2911_v61 = vmul.f32 0.7978846, %v2879_v48  ;;  %v2787_v37 = vmul.f32 0.044715, %v9467_v44 }
 0x216   : > { %v2848_v45 = vmul.f32 %v2816_v6, %v9431_v29  ;;  %v2849_v42 = vmul.f32 %v2817_v1, %v9439_v34  ;;  %v7477_v28 = vpop.eup %7476  ;;  %v2746_v60 = vmul.f32 0.5, %v9300_v21  ;;  %v2747_v8 = vmul.f32 0.5, %v9303_v22 }
 0x217   : > { %3421 = vmatpush1.bf16.msra.mxu0 %v9469_v62  ;;  %v9575_v57 = vpack.c.bf16 %v3001_v52, %v3000_v26  ;;  %7484 = vtanh.f32 %v2910_v11  ;;  %v2970_v41 = vadd.f32 1.0, %v7477_v28  ;;  %v2818_v5 = vmul.f32 %v2786_v3, %v9445_v2 }
 0x218   : > { %3422 = vmatprep.subr.bf16.mxu0 %v11894_v0  ;;  %v7479_v40 = vpop.eup %7478  ;;  %7486 = vtanh.f32 %v2911_v61  ;;  %v2880_v46 = vadd.f32 %v2848_v45, %v9431_v29  ;;  %v2881_v12 = vadd.f32 %v2849_v42, %v9439_v34  ;;  %v2819_v50 = vmul.f32 %v2787_v37, %v9467_v44 }
 0x219   : > { %v2971_v63 = vadd.f32 1.0, %v7479_v40  ;;  %v2788_v30 = vmul.f32 0.044715, %v9561_v43  ;;  %v3002_v21 = vmul.f32 %v2970_v41, %v2746_v60  ;;  %v2789_v35 = vmul.f32 0.044715, %v9565_v25 }
 0x21a   : > { %v2912_v4 = vmul.f32 0.7978846, %v2880_v46  ;;  %v2913_v22 = vmul.f32 0.7978846, %v2881_v12  ;;  %v2850_v39 = vmul.f32 %v2818_v5, %v9445_v2  ;;  %v2851_v38 = vmul.f32 %v2819_v50, %v9467_v44 }
 0x21b   : > { %3423 = vmatpush1.bf16.msra.mxu0 %v9499_v23  ;;  %v3003_v18 = vmul.f32 %v2971_v63, %v2747_v8  ;;  %v2820_v55 = vmul.f32 %v2788_v30, %v9561_v43  ;;  %v2748_v15 = vmul.f32 0.5, %v9356_v27  ;;  %v2749_v20 = vmul.f32 0.5, %v9364_v31 }
 0x21c   : > { %3424 = vmatprep.subr.bf16.mxu0 %v11894_v0  ;;  %v7481_v53 = vpop.eup %7480  ;;  %7488 = vtanh.f32 %v2912_v4  ;;  %v2821_v51 = vmul.f32 %v2789_v35, %v9565_v25  ;;  %v2882_v16 = vadd.f32 %v2850_v39, %v9445_v2  ;;  %v2883_v58 = vadd.f32 %v2851_v38, %v9467_v44 }
 0x21d   : > { %v7483_v9 = vpop.eup %7482  ;;  %v9593_v36 = vpack.c.bf16 %v3003_v18, %v3002_v21  ;;  %v2972_v49 = vadd.f32 1.0, %v7481_v53  ;;  %7490 = vtanh.f32 %v2913_v22  ;;  %v2852_v54 = vmul.f32 %v2820_v55, %v9561_v43 }
 0x21e   : > { %v2973_v33 = vadd.f32 1.0, %v7483_v9  ;;  %v2853_v27 = vmul.f32 %v2821_v51, %v9565_v25  ;;  %v2914_v10 = vmul.f32 0.7978846, %v2882_v16  ;;  %v2915_v6 = vmul.f32 0.7978846, %v2883_v58 }
 0x21f   : > { %3425 = vmatpush1.bf16.msra.mxu0 %v9511_v32  ;;  %v3004_v31 = vmul.f32 %v2972_v49, %v2748_v15  ;;  %v2884_v1 = vadd.f32 %v2852_v54, %v9561_v43  ;;  %v2750_v3 = vmul.f32 0.5, %v9419_v24  ;;  %v2751_v37 = vmul.f32 0.5, %v9425_v19  ;;  %v7218_v58 = vld [vmem:[%s11668_s2 + $0x24] ss:$8 sps:$4 sm:$0xff]  }
 0x220   : > { %3426 = vmatprep.subr.bf16.mxu0 %v11894_v0  ;;  %v3005_v48 = vmul.f32 %v2973_v33, %v2749_v20  ;;  %v2885_v26 = vadd.f32 %v2853_v27, %v9565_v25  ;;  %7492 = vtanh.f32 %v2914_v10  ;;  %v2752_v5 = vmul.f32 0.5, %v9431_v29  ;;  %v7217_v33 = vld [vmem:[%s11668_s2 + $0x10] ss:$8 sps:$4 sm:$0xff]   ;;  %v7266_v54 = vld [vmem:[%s11669_s3 + $0x40] sm:$0xff]   ;;  %v7221_v10 = vld [vmem:[%s11668_s2 + $0x34] ss:$8 sps:$4 sm:$0xff]  }
 0x221   : > { %v7485_v52 = vpop.eup %7484  ;;  %7494 = vtanh.f32 %v2915_v6  ;;  %v2916_v42 = vmul.f32 0.7978846, %v2884_v1  ;;  %v2753_v24 = vmul.f32 0.5, %v9439_v34  ;;  %v2754_v18 = vmul.f32 0.5, %v9445_v2  ;;  %v7267_v27 = vld [vmem:[%s11669_s3] sm:$0xff]   ;;  %6763 = vmatprep.subr.bf16.mxu1 %v7266_v54  ;;  %v7274_v1 = vld [vmem:[%s11669_s3 + $0x48] sm:$0xff]  }
 0x222   : > { %v7487_v11 = vpop.eup %7486  ;;  %v9604_v61 = vpack.c.bf16 %v3005_v48, %v3004_v31  ;;  %v2974_v45 = vadd.f32 1.0, %v7485_v52  ;;  %v2917_v60 = vmul.f32 0.7978846, %v2885_v26  ;;  %v2755_v39 = vmul.f32 0.5, %v9467_v44  ;;  %6764 = vmatpush3.bf16.msra.mxu1 %v7267_v27  ;;  %v7220_v31 = vld [vmem:[%s11668_s2 + $0x20] ss:$8 sps:$4 sm:$0xff]  }
 0x223   : > { %3427 = vmatpush1.bf16.msra.mxu0 %v9532_v56  ;;  %v2975_v28 = vadd.f32 1.0, %v7487_v11  ;;  %7496 = vtanh.f32 %v2916_v42  ;;  %v2756_v15 = vmul.f32 0.5, %v9561_v43  ;;  %v2757_v51 = vmul.f32 0.5, %v9565_v25  ;;  %v7212_v43 = vld [vmem:[%s11668_s2] ss:$8 sps:$4 sm:$0xff]   ;;  %6765 = vmatprep.subr.bf16.mxu1 %v7274_v1  ;;  %v3738_v27 = vld [vmem:[%s11670_s4 + $0x18] sm:$0xff] }
 0x224   : > { %3428 = vmatprep.subr.bf16.mxu0 %v11894_v0  ;;  %v3006_v8 = vmul.f32 %v2974_v45, %v2750_v3  ;;  %7498 = vtanh.f32 %v2917_v60  ;;  %v7215_v25 = vld [vmem:[%s11668_s2 + $0x14] ss:$8 sps:$4 sm:$0xff]   ;;  %v7223_v48 = vld [vmem:[%s11668_s2 + $0x30] ss:$8 sps:$4 sm:$0xff]   ;;  %v7224_v6 = vld [vmem:[%s11668_s2 + $0x44] ss:$8 sps:$4 sm:$0xff]  }
 0x225   : > { %v3007_v40 = vmul.f32 %v2975_v28, %v2751_v37  ;;  %v7275_v26 = vld [vmem:[%s11669_s3 + $0x8] sm:$0xff]   ;;  %v7227_v11 = vld [vmem:[%s11668_s2 + $0x54] ss:$8 sps:$4 sm:$0xff]   ;;  %v7229_v45 = vld [vmem:[%s11668_s2 + $0x50] ss:$8 sps:$4 sm:$0xff]  }
 0x226   : > { %v7489_v41 = vpop.eup %7488  ;;  %6766 = vmatpush3.bf16.msra.mxu1 %v7275_v26  ;;  %v7226_v52 = vld [vmem:[%s11668_s2 + $0x40] ss:$8 sps:$4 sm:$0xff]   ;;  %v7230_v42 = vld [vmem:[%s11668_s2 + $0x64] ss:$8 sps:$4 sm:$0xff]   ;;  %v7282_v3 = vld [vmem:[%s11669_s3 + $0x50] sm:$0xff]  }
 0x227   : > { %3429 = vmatpush1.bf16.msra.mxu0 %v9540_v14  ;;  %v7491_v46 = vpop.eup %7490  ;;  %v9611_v12 = vpack.c.bf16 %v3007_v40, %v3006_v8  ;;  %v2976_v63 = vadd.f32 1.0, %v7489_v41  ;;  %v7283_v37 = vld [vmem:[%s11669_s3 + $0x10] sm:$0xff]   ;;  %6767 = vmatprep.subr.bf16.mxu1 %v7282_v3  ;;  %v7232_v28 = vld [vmem:[%s11668_s2 + $0x60] ss:$8 sps:$4 sm:$0xff]   ;;  %v7236_v40 = vld [vmem:[%s11668_s2 + $0x84] ss:$8 sps:$4 sm:$0xff]  }
 0x228   : > { %3430 = vmatprep.subr.bf16.mxu0 %v11894_v0  ;;  %v2977_v19 = vadd.f32 1.0, %v7491_v46  ;;  %v7233_v60 = vld [vmem:[%s11668_s2 + $0x74] ss:$8 sps:$4 sm:$0xff]   ;;  %v7235_v8 = vld [vmem:[%s11668_s2 + $0x70] ss:$8 sps:$4 sm:$0xff]   ;;  %v3740_v26 = vld [vmem:[%s11670_s4 + $0x28] sm:$0xff] }
 0x229   : > { %v3008_v50 = vmul.f32 %v2976_v63, %v2752_v5  ;;  %v7290_v41 = vld [vmem:[%s11669_s3 + $0x58] sm:$0xff]   ;;  %v7238_v63 = vld [vmem:[%s11668_s2 + $0x80] ss:$8 sps:$4 sm:$0xff]   ;;  %v7260_v54 = vld [vmem:[%s11668_s2 + $0x104] ss:$8 sps:$4 sm:$0xff]  }
 0x22a   : > { %v3009_v30 = vmul.f32 %v2977_v19, %v2753_v24  ;;  %v7493_v21 = vpop.eup %7492  ;;  %6768 = vmatpush3.bf16.msra.mxu1 %v7283_v37  ;;  %v7291_v46 = vld [vmem:[%s11669_s3 + $0x18] sm:$0xff]   ;;  %v7242_v19 = vld [vmem:[%s11668_s2 + $0xa4] ss:$8 sps:$4 sm:$0xff]  }
 0x22b   : > { %3431 = vmatpush1.bf16.msra.mxu0 %v9553_v17  ;;  %v7495_v4 = vpop.eup %7494  ;;  %v2978_v35 = vadd.f32 1.0, %v7493_v21  ;;  %6769 = vmatprep.subr.bf16.mxu1 %v7290_v41  ;;  %v7239_v5 = vld [vmem:[%s11668_s2 + $0x94] ss:$8 sps:$4 sm:$0xff]   ;;  %v7241_v24 = vld [vmem:[%s11668_s2 + $0x90] ss:$8 sps:$4 sm:$0xff]   ;;  %v7300_v21 = vld [vmem:[%s11669_s3 + $0x68] sm:$0xff]  }
 0x22c   : > { %3432 = vmatprep.subr.bf16.mxu0 %v11894_v0  ;;  %v9617_v22 = vpack.c.bf16 %v3009_v30, %v3008_v50  ;;  %v2979_v38 = vadd.f32 1.0, %v7495_v4  ;;  %v7298_v50 = vld [vmem:[%s11669_s3 + $0x60] sm:$0xff]   ;;  %v7301_v4 = vld [vmem:[%s11669_s3 + $0x28] sm:$0xff]   ;;  %v7273_v3 = vld [vmem:[%s11668_s2 + $0x130] ss:$8 sps:$4 sm:$0xff]  }
 0x22d   : > { %v7497_v29 = vpop.eup %7496  ;;  %v3010_v55 = vmul.f32 %v2978_v35, %v2754_v18  ;;  %v7299_v30 = vld [vmem:[%s11669_s3 + $0x20] sm:$0xff]   ;;  %v7245_v18 = vld [vmem:[%s11668_s2 + $0xb4] ss:$8 sps:$4 sm:$0xff]   ;;  %v7281_v41 = vld [vmem:[%s11668_s2 + $0x150] ss:$8 sps:$4 sm:$0xff]  }
 0x22e   : > { %v7499_v34 = vpop.eup %7498  ;;  %v3011_v53 = vmul.f32 %v2979_v38, %v2755_v39  ;;  %v2980_v20 = vadd.f32 1.0, %v7497_v29  ;;  %6770 = vmatpush3.bf16.msra.mxu1 %v7291_v46  ;;  %v7244_v35 = vld [vmem:[%s11668_s2 + $0xa0] ss:$8 sps:$4 sm:$0xff]   ;;  %v7305_v39 = vld [vmem:[%s11669_s3 + $0x70] sm:$0xff]   ;;  %v7268_v1 = vld [vmem:[%s11668_s2 + $0x124] ss:$8 sps:$4 sm:$0xff]  }
 0x22f   : > { %3433 = vmatpush1.bf16.msra.mxu0 %v9575_v57  ;;  %v2981_v9 = vadd.f32 1.0, %v7499_v34  ;;  %6771 = vmatprep.subr.bf16.mxu1 %v7298_v50  ;;  %v7306_v38 = vld [vmem:[%s11669_s3 + $0x30] sm:$0xff]   ;;  %v7248_v34 = vld [vmem:[%s11668_s2 + $0xc4] ss:$8 sps:$4 sm:$0xff]  }
 0x230   : > { %3434 = vmatprep.subr.bf16.mxu0 %v11894_v0  ;;  %v9625_v49 = vpack.c.bf16 %v3011_v53, %v3010_v55  ;;  %v3012_v2 = vmul.f32 %v2980_v20, %v2756_v15  ;;  %v7247_v29 = vld [vmem:[%s11668_s2 + $0xb0] ss:$8 sps:$4 sm:$0xff]   ;;  %v7250_v15 = vld [vmem:[%s11668_s2 + $0xc0] ss:$8 sps:$4 sm:$0xff]   ;;  %v7251_v20 = vld [vmem:[%s11668_s2 + $0xd4] ss:$8 sps:$4 sm:$0xff]  }
 0x231   : > { %v3013_v44 = vmul.f32 %v2981_v9, %v2757_v51  ;;  %v7307_v55 = vld [vmem:[%s11669_s3 + $0x78] sm:$0xff]   ;;  %v7254_v9 = vld [vmem:[%s11668_s2 + $0xe4] ss:$8 sps:$4 sm:$0xff]  }
 0x232   : > { %6772 = vmatpush3.bf16.msra.mxu1 %v7299_v30  ;;  %v7308_v53 = vld [vmem:[%s11669_s3 + $0x38] sm:$0xff]   ;;  %v7276_v37 = vld [vmem:[%s11668_s2 + $0x144] ss:$8 sps:$4 sm:$0xff]  }
 0x233   : > { %3435 = vmatpush1.bf16.msra.mxu0 %v9593_v36  ;;  %v9629_v16 = vpack.c.bf16 %v3013_v44, %v3012_v2  ;;  %6773 = vmatprep.subr.bf16.mxu1 %v7300_v21  ;;  %v7253_v51 = vld [vmem:[%s11668_s2 + $0xd0] ss:$8 sps:$4 sm:$0xff]   ;;  %v7256_v2 = vld [vmem:[%s11668_s2 + $0xe0] ss:$8 sps:$4 sm:$0xff]   ;;  %v7257_v44 = vld [vmem:[%s11668_s2 + $0xf4] ss:$8 sps:$4 sm:$0xff]  }
 0x234   : > { %3436 = vmatprep.subr.bf16.mxu0 %v11894_v0  ;;  %v7284_v46 = vld [vmem:[%s11668_s2 + $0x164] ss:$8 sps:$4 sm:$0xff]   ;;  %v7289_v50 = vld [vmem:[%s11668_s2 + $0x170] ss:$8 sps:$4 sm:$0xff]  }
 0x235   : > { %v7292_v30 = vld [vmem:[%s11668_s2 + $0x184] ss:$8 sps:$4 sm:$0xff]   ;;  %v9883_v21 = vld [vmem:[%s11670_s4 + $0x10] sm:$0xff] }
 0x236   : > { %6774 = vmatpush3.bf16.msra.mxu1 %v7301_v4  ;;  %v3748_v4 = vld [vmem:[%s11670_s4 + $0x68] sm:$0xff] }
 0x237   : > { %3437 = vmatpush1.bf16.msra.mxu0 %v9604_v61  ;;  %6775 = vmatprep.subr.bf16.mxu1 %v7305_v39  ;;  %v3750_v39 = vld [vmem:[%s11670_s4 + $0x78] sm:$0xff] }
 0x238   : > { %3438 = vmatprep.subr.bf16.mxu0 %v11894_v0 }
 0x23a   : > { %6776 = vmatpush3.bf16.msra.mxu1 %v7306_v38  ;;  %v7297_v38 = vld [vmem:[%s11668_s2 + $0x190] ss:$8 sps:$4 sm:$0xff]  }
 0x23b   : > { %3439 = vmatpush1.bf16.msra.mxu0 %v9611_v12  ;;  %6777 = vmatprep.subr.bf16.mxu1 %v7307_v55  ;;  %v3751_v55 = vld [vmem:[%s11670_s4 + $0x80] sm:$0xff] }
 0x23c   : > { %3440 = vmatprep.subr.bf16.mxu0 %v11894_v0 }
 0x23e   : > { %6778 = vmatpush3.bf16.msra.mxu1 %v7308_v53  ;;  %v7304_v53 = vld [vmem:[%s11668_s2 + $0x1a0] ss:$8 sps:$4 sm:$0xff]  }
 0x23f   : > { %3441 = vmatpush1.bf16.msra.mxu0 %v9617_v22 }
 0x240   : > { %3442 = vmatprep.subr.bf16.mxu0 %v11894_v0 }
 0x243   : > { %3443 = vmatpush1.bf16.msra.mxu0 %v9625_v49 }
 0x244   : > { %3444 = vmatprep.subr.bf16.mxu0 %v11894_v0 }
 0x247   : > { %3445 = vmatpush1.bf16.msra.mxu0 %v9629_v16 }
 0x24a   : > { %3447 = vmatmul.mubr.bf16.vlgmr.msra.gmra.mrb[48].mxu0 %v7212_v43  ;;  %v3735_v43 = vld [vmem:[%s11670_s4] sm:$0xff] }
 0x24b   : > { %3454 = vmatprep.mubr.bf16.mxu0 %v7215_v25  ;;  %v7827_v25 = vmov 1   ;;  %3817 = vperm.xlu0 %7131, %v3735_v43  }
 0x24c   : > { %7132 = vset.pattern.permute.xlu1 %v7827_v25 }
 0x24d   : > { %4478 = vperm.xlu1 %7132, %v3735_v43  }
 0x252   : > { %3455 = vmatmul.mubr.bf16.gmra.mrb[52].mxu0 %v7217_v33  ;;  %v3736_v33 = vld [vmem:[%s11670_s4 + $0x8] sm:$0xff] }
 0x253   : > { %3462 = vmatprep.mubr.bf16.mxu0 %v7218_v58  ;;  %3822 = vperm.xlu0 %7131, %v3736_v33   ;;  %v7259_v58 = vld [vmem:[%s11668_s2 + $0xf0] ss:$8 sps:$4 sm:$0xff]  }
 0x254   : > { %4482 = vperm.xlu1 %7132, %v3736_v33   ;;  %v7312_v33 = vld [vmem:[%s11668_s2 + $0x1c4] ss:$8 sps:$4 sm:$0xff]  }
 0x257   : > { %3827 = vperm.xlu0 %7131, %v9883_v21  }
 0x258   : > { %7133 = vset.pattern.permute.xlu1 %v11894_v0 }
 0x259   : > { %3832 = vperm.xlu1 %7133, %v3738_v27  }
 0x25a   : > { %3463 = vmatmul.mubr.bf16.gmra.mrb[56].mxu0 %v7220_v31  ;;  %v7262_v31 = vld [vmem:[%s11668_s2 + $0x100] ss:$8 sps:$4 sm:$0xff]  }
 0x25b   : > { %3470 = vmatprep.mubr.bf16.mxu0 %v7221_v10  ;;  %v7263_v10 = vld [vmem:[%s11668_s2 + $0x114] ss:$8 sps:$4 sm:$0xff]   ;;  %3842 = vperm.xlu0 %7131, %v3740_v26  }
 0x25d   : > { %7134 = vset.pattern.permute.xlu1 %v7827_v25 }
 0x25e   : > { %4490 = vperm.xlu1 %7134, %v3738_v27   ;;  %v7325_v27 = vld [vmem:[%s11669_s3 + $0x88] sm:$0xff]  }
 0x262   : > { %3471 = vmatmul.mubr.bf16.gmra.mrb[60].mxu0 %v7223_v48  ;;  %v3739_v48 = vld [vmem:[%s11670_s4 + $0x20] sm:$0xff]  ;;  %7135 = vset.pattern.permute.xlu1 %v11894_v0 }
 0x263   : > { %3478 = vmatprep.mubr.bf16.mxu0 %v7224_v6  ;;  %3837 = vperm.xlu1 %7135, %v3739_v48   ;;  %v7265_v6 = vld [vmem:[%s11668_s2 + $0x110] ss:$8 sps:$4 sm:$0xff]  }
 0x267   : > { %7136 = vset.pattern.permute.xlu1 %v7827_v25 }
 0x268   : > { %4494 = vperm.xlu1 %7136, %v3739_v48   ;;  %v7326_v48 = vld [vmem:[%s11669_s3 + $0x90] sm:$0xff]  }
 0x26a   : > { %3479 = vmatmul.mubr.bf16.gmra.mrb[64].mxu0 %v7226_v52  ;;  %v9819_v52 = vld [vmem:[%s11669_s3 + $0x80] sm:$0xff]  }
 0x26b   : > { %3486 = vmatprep.mubr.bf16.mxu0 %v7227_v11  ;;  %v7270_v11 = vld [vmem:[%s11668_s2 + $0x120] ss:$8 sps:$4 sm:$0xff]   ;;  %7011 = vmatprep.subr.bf16.mxu1 %v9819_v52 }
 0x26c   : > { %4498 = vperm.xlu1 %7136, %v3740_v26  }
 0x270   : > { %7137 = vset.pattern.permute.xlu1 %v11894_v0 }
 0x272   : > { %3487 = vmatmul.mubr.bf16.gmra.mrb[68].mxu0 %v7229_v45  ;;  %v7271_v45 = vld [vmem:[%s11668_s2 + $0x134] ss:$8 sps:$4 sm:$0xff]  }
 0x273   : > { %3494 = vmatprep.mubr.bf16.mxu0 %v7230_v42  ;;  %v3742_v42 = vld [vmem:[%s11670_s4 + $0x38] sm:$0xff] }
 0x274   : > { %3852 = vperm.xlu1 %7137, %v3742_v42  }
 0x278   : > { %7138 = vset.pattern.permute.xlu1 %v7827_v25 }
 0x279   : > { %4506 = vperm.xlu1 %7138, %v3742_v42   ;;  %v9964_v42 = vld [vmem:[%s11670_s4 + $0x70] sm:$0xff] }
 0x27a   : > { %3495 = vmatmul.mubr.bf16.gmra.mrb[72].mxu0 %v7232_v28  ;;  %v3743_v28 = vld [vmem:[%s11670_s4 + $0x40] sm:$0xff] }
 0x27b   : > { %3502 = vmatprep.mubr.bf16.mxu0 %v7233_v60  ;;  %v7278_v60 = vld [vmem:[%s11668_s2 + $0x140] ss:$8 sps:$4 sm:$0xff]  }
 0x27d   : > { %7139 = vset.pattern.permute.xlu1 %v11894_v0 }
 0x27e   : > { %3857 = vperm.xlu1 %7139, %v3743_v28  }
 0x282   : > { %3503 = vmatmul.mubr.bf16.gmra.mrb[76].mxu0 %v7235_v8  ;;  %v7279_v8 = vld [vmem:[%s11668_s2 + $0x154] ss:$8 sps:$4 sm:$0xff]   ;;  %7140 = vset.pattern.permute.xlu1 %v7827_v25 }
 0x283   : > { %3510 = vmatprep.mubr.bf16.mxu0 %v7236_v40  ;;  %4510 = vperm.xlu1 %7140, %v3743_v28   ;;  %v3744_v40 = vld [vmem:[%s11670_s4 + $0x48] sm:$0xff] }
 0x287   : > { %4514 = vperm.xlu1 %7140, %v3744_v40  }
 0x28a   : > { %3511 = vmatmul.mubr.bf16.gmra.mrb[80].mxu0 %v7238_v63  ;;  %v3746_v63 = vld [vmem:[%s11670_s4 + $0x58] sm:$0xff] }
 0x28b   : > { %3518 = vmatprep.mubr.bf16.mxu0 %v7239_v5  ;;  %7141 = vset.pattern.permute.xlu1 %v11894_v0  ;;  %v7286_v5 = vld [vmem:[%s11668_s2 + $0x160] ss:$8 sps:$4 sm:$0xff]  }
 0x28c   : > { %3872 = vperm.xlu1 %7141, %v3746_v63  }
 0x290   : > { %7142 = vset.pattern.permute.xlu1 %v7827_v25 }
 0x291   : > { %4522 = vperm.xlu1 %7142, %v3746_v63   ;;  %v7329_v63 = vld [vmem:[%s11669_s3 + $0xa8] sm:$0xff]  }
 0x292   : > { %3519 = vmatmul.mubr.bf16.gmra.mrb[84].mxu0 %v7241_v24  ;;  %v7287_v24 = vld [vmem:[%s11668_s2 + $0x174] ss:$8 sps:$4 sm:$0xff]  }
 0x293   : > { %3526 = vmatprep.mubr.bf16.mxu0 %v7242_v19  ;;  %v3747_v19 = vld [vmem:[%s11670_s4 + $0x60] sm:$0xff] }
 0x295   : > { %7143 = vset.pattern.permute.xlu1 %v11894_v0 }
 0x296   : > { %3877 = vperm.xlu1 %7143, %v3747_v19  }
 0x29a   : > { %3527 = vmatmul.mubr.bf16.gmra.mrb[88].mxu0 %v7244_v35  ;;  %7144 = vset.pattern.permute.xlu1 %v7827_v25  ;;  %v7294_v35 = vld [vmem:[%s11668_s2 + $0x180] ss:$8 sps:$4 sm:$0xff]  }
 0x29b   : > { %3534 = vmatprep.mubr.bf16.mxu0 %v7245_v18  ;;  %4526 = vperm.xlu1 %7144, %v3747_v19   ;;  %v7295_v18 = vld [vmem:[%s11668_s2 + $0x194] ss:$8 sps:$4 sm:$0xff]  }
 0x29c   : > { %v7330_v19 = vld [vmem:[%s11669_s3 + $0xb0] sm:$0xff]  }
 0x29f   : > { %4530 = vperm.xlu1 %7144, %v3748_v4  }
 0x2a2   : > { %3535 = vmatmul.mubr.bf16.gmra.mrb[92].mxu0 %v7247_v29  ;;  %v7302_v29 = vld [vmem:[%s11668_s2 + $0x1a4] ss:$8 sps:$4 sm:$0xff]  }
 0x2a3   : > { %3542 = vmatprep.mubr.bf16.mxu0 %v7248_v34  ;;  %7145 = vset.pattern.permute.xlu1 %v11894_v0  ;;  %v9910_v34 = vld [vmem:[%s11670_s4 + $0x30] sm:$0xff] }
 0x2a4   : > { %3892 = vperm.xlu1 %7145, %v3750_v39   ;;  %3847 = vperm.xlu0 %7131, %v9910_v34  }
 0x2a8   : > { %7146 = vset.pattern.permute.xlu1 %v7827_v25  ;;  %3862 = vperm.xlu0 %7131, %v3744_v40   ;;  %v7318_v40 = vld [vmem:[%s11668_s2 + $0x1e4] ss:$8 sps:$4 sm:$0xff]  }
 0x2a9   : > { %4538 = vperm.xlu1 %7146, %v3750_v39   ;;  %v7331_v39 = vld [vmem:[%s11669_s3 + $0xb8] sm:$0xff]  }
 0x2aa   : > { %3543 = vmatmul.mubr.bf16.gmra.mrb[96].mxu0 %v7250_v15  ;;  %v7309_v15 = vld [vmem:[%s11668_s2 + $0x1b4] ss:$8 sps:$4 sm:$0xff]  }
 0x2ab   : > { %3550 = vmatprep.mubr.bf16.mxu0 %v7251_v20  ;;  %v3752_v20 = vld [vmem:[%s11670_s4 + $0x88] sm:$0xff] }
 0x2ad   : > { %7147 = vset.pattern.permute.xlu1 %v11894_v0 }
 0x2ae   : > { %3897 = vperm.xlu1 %7147, %v3751_v55  }
 0x2b2   : > { %3551 = vmatmul.mubr.bf16.gmra.mrb[100].mxu0 %v7253_v51  ;;  %7148 = vset.pattern.permute.xlu1 %v7827_v25  ;;  %v9930_v51 = vld [vmem:[%s11670_s4 + $0x50] sm:$0xff] }
 0x2b3   : > { %3558 = vmatprep.mubr.bf16.mxu0 %v7254_v9  ;;  %4542 = vperm.xlu1 %7148, %v3751_v55  }
 0x2b4   : > { %3867 = vperm.xlu0 %7131, %v9930_v51  }
 0x2b7   : > { %4546 = vperm.xlu1 %7148, %v3752_v20  }
 0x2b8   : > { %3882 = vperm.xlu0 %7131, %v3748_v4  }
 0x2ba   : > { %3559 = vmatmul.mubr.bf16.gmra.mrb[104].mxu0 %v7256_v2 }
 0x2bb   : > { %3566 = vmatprep.mubr.bf16.mxu0 %v7257_v44  ;;  %v7311_v44 = vld [vmem:[%s11668_s2 + $0x1b0] ss:$8 sps:$4 sm:$0xff]   ;;  %7149 = vset.pattern.permute.xlu1 %v11894_v0 }
 0x2bc   : > { %3887 = vperm.xlu0 %7131, %v9964_v42  }
 0x2c0   : > { %3902 = vperm.xlu0 %7131, %v3752_v20  }
 0x2c2   : > { %3567 = vmatmul.mubr.bf16.gmra.mrb[108].mxu0 %v7259_v58 }
 0x2c3   : > { %3574 = vmatprep.mubr.bf16.mxu0 %v7260_v54 }
 0x2ca   : > { %3575 = vmatmul.mubr.bf16.gmra.mrb[112].mxu0 %v7262_v31  ;;  %v3754_v31 = vld [vmem:[%s11670_s4 + $0x98] sm:$0xff] }
 0x2cb   : > { %3582 = vmatprep.mubr.bf16.mxu0 %v7263_v10  ;;  %3912 = vperm.xlu1 %7149, %v3754_v31  }
 0x2cf   : > { %7150 = vset.pattern.permute.xlu1 %v7827_v25 }
 0x2d0   : > { %4554 = vperm.xlu1 %7150, %v3754_v31  }
 0x2d2   : > { %3583 = vmatmul.mubr.bf16.gmra.mrb[116].mxu0 %v7265_v6 }
 0x2d3   : > { %3590 = vmatprep.mubr.bf16.mxu0 %v7268_v1  ;;  %v7314_v1 = vld [vmem:[%s11668_s2 + $0x1c0] ss:$8 sps:$4 sm:$0xff]  }
 0x2d4   : > { %7151 = vset.pattern.permute.xlu1 %v11894_v0 }
 0x2da   : > { %3591 = vmatmul.mubr.bf16.gmra.mrb[120].mxu0 %v7270_v11 }
 0x2db   : > { %3598 = vmatprep.mubr.bf16.mxu0 %v7271_v45  ;;  %v7327_v45 = vld [vmem:[%s11669_s3 + $0x98] sm:$0xff]  }
 0x2e2   : > { %3599 = vmatmul.mubr.bf16.gmra.mrb[124].mxu0 %v7273_v3 }
 0x2e3   : > { %3606 = vmatprep.mubr.bf16.mxu0 %v7276_v37  ;;  %v7328_v37 = vld [vmem:[%s11669_s3 + $0xa0] sm:$0xff]  }
 0x2ea   : > { %3607 = vmatmul.mubr.bf16.gmra.mrb[128].mxu0 %v7278_v60  ;;  %v7317_v60 = vld [vmem:[%s11668_s2 + $0x1d0] ss:$8 sps:$4 sm:$0xff]  }
 0x2eb   : > { %3614 = vmatprep.mubr.bf16.mxu0 %v7279_v8 }
 0x2f2   : > { %3615 = vmatmul.mubr.bf16.gmra.mrb[132].mxu0 %v7281_v41 }
 0x2f3   : > { %3622 = vmatprep.mubr.bf16.mxu0 %v7284_v46 }
 0x2fa   : > { %3623 = vmatmul.mubr.bf16.gmra.mrb[136].mxu0 %v7286_v5  ;;  %v9987_v5 = vld [vmem:[%s11670_s4 + $0xa8] sm:$0xff] }
 0x2fb   : > { %3630 = vmatprep.mubr.bf16.mxu0 %v7287_v24 }
 0x302   : > { %3631 = vmatmul.mubr.bf16.gmra.mrb[140].mxu0 %v7289_v50 }
 0x303   : > { %3638 = vmatprep.mubr.bf16.mxu0 %v7292_v30  ;;  %v7320_v30 = vld [vmem:[%s11668_s2 + $0x1e0] ss:$8 sps:$4 sm:$0xff]  }
 0x30a   : > { %3639 = vmatmul.mubr.bf16.gmra.mrb[144].mxu0 %v7294_v35 }
 0x30b   : > { %3646 = vmatprep.mubr.bf16.mxu0 %v7295_v18 }
 0x312   : > { %3647 = vmatmul.mubr.bf16.gmra.mrb[148].mxu0 %v7297_v38  ;;  %v10007_v38 = vld [vmem:[%s11670_s4 + $0x90] sm:$0xff] }
 0x313   : > { %3654 = vmatprep.mubr.bf16.mxu0 %v7302_v29  ;;  %3907 = vperm.xlu0 %7131, %v10007_v38  }
 0x31a   : > { %3655 = vmatmul.mubr.bf16.gmra.mrb[152].mxu0 %v7304_v53  ;;  %v7323_v53 = vld [vmem:[%s11668_s2 + $0x1f0] ss:$8 sps:$4 sm:$0xff]  }
 0x31b   : > { %3662 = vmatprep.mubr.bf16.mxu0 %v7309_v15  ;;  %v3757_v15 = vld [vmem:[%s11670_s4 + $0xb0] sm:$0xff] }
 0x31d   : > { %v3448_v9 = vpop.f32.mrb[48].mxu0 }
 0x31e   : > { %v3450_v2 = vpop.f32.mrb[49].mxu0 }
 0x31f   : > { %v3451_v43 = vpop.f32.mrb[50].mxu0 }
 0x320   : > { %v3703_v58 = vpack.c.bf16 %v3451_v43, %v3448_v9  ;;  %v3453_v54 = vpop.f32.mrb[51].mxu0 }
 0x322   : > { %3663 = vmatmul.mubr.bf16.gmra.mrb[156].mxu0 %v7311_v44  ;;  %4187 = vmatprep.mubr.bf16.mxu1 %v3703_v58 }
 0x323   : > { %4188 = vmatmul.mubr.bf16.vlgmr.msra.gmra.mrb[80].mxu1 %v9522_v47  ;;  %3670 = vmatprep.mubr.bf16.mxu0 %v7312_v33  ;;  %v7315_v47 = vld [vmem:[%s11668_s2 + $0x1d4] ss:$8 sps:$4 sm:$0xff]  }
 0x324   : > { %7012 = vmatpush3.bf16.msra.mxu1 %v9819_v52 }
 0x325   : > { %v3456_v10 = vpop.f32.mrb[52].mxu0  ;;  %7013 = vmatprep.subr.bf16.mxu1 %v7325_v27 }
 0x326   : > { %v3458_v6 = vpop.f32.mrb[53].mxu0 }
 0x327   : > { %v3459_v26 = vpop.f32.mrb[54].mxu0 }
 0x328   : > { %v3704_v52 = vpack.c.bf16 %v3459_v26, %v3456_v10  ;;  %v3461_v11 = vpop.f32.mrb[55].mxu0  ;;  %7014 = vmatpush3.bf16.msra.mxu1 %v7325_v27  ;;  %v10030_v27 = vld [vmem:[%s11670_s4 + $0xc0] sm:$0xff] }
 0x329   : > { %7015 = vmatprep.subr.bf16.mxu1 %v7326_v48 }
 0x32a   : > { %3671 = vmatmul.mubr.bf16.gmra.mrb[160].mxu0 %v7314_v1  ;;  %4195 = vmatprep.mubr.bf16.mxu1 %v3704_v52  ;;  %v3760_v1 = vld [vmem:[%s11670_s4 + $0xc8] sm:$0xff] }
 0x32b   : > { %4196 = vmatmul.mubr.bf16.gmra.mrb[84].mxu1 %v9207_v13  ;;  %3678 = vmatprep.mubr.bf16.mxu0 %v7315_v47  ;;  %v3755_v13 = vld [vmem:[%s11670_s4 + $0xa0] sm:$0xff] }
 0x32c   : > { %7016 = vmatpush3.bf16.msra.mxu1 %v7326_v48  ;;  %3917 = vperm.xlu1 %7151, %v3755_v13  }
 0x32d   : > { %v3464_v3 = vpop.f32.mrb[56].mxu0  ;;  %7017 = vmatprep.subr.bf16.mxu1 %v7327_v45 }
 0x32e   : > { %v3466_v28 = vpop.f32.mrb[57].mxu0 }
 0x32f   : > { %v3467_v8 = vpop.f32.mrb[58].mxu0 }
 0x330   : > { %v3705_v41 = vpack.c.bf16 %v3467_v8, %v3464_v3  ;;  %v3469_v46 = vpop.f32.mrb[59].mxu0  ;;  %7018 = vmatpush3.bf16.msra.mxu1 %v7327_v45  ;;  %3922 = vperm.xlu1 %7151, %v9987_v5   ;;  %v3762_v45 = vld [vmem:[%s11670_s4 + $0xd8] sm:$0xff]  ;;  %v3761_v3 = vld [vmem:[%s11670_s4 + $0xd0] sm:$0xff] }
 0x331   : > { %7019 = vmatprep.subr.bf16.mxu1 %v7328_v37  ;;  %3947 = vperm.xlu0 %7131, %v3761_v3  }
 0x332   : > { %3679 = vmatmul.mubr.bf16.gmra.mrb[164].mxu0 %v7317_v60  ;;  %4203 = vmatprep.mubr.bf16.mxu1 %v3705_v41 }
 0x333   : > { %4204 = vmatmul.mubr.bf16.gmra.mrb[88].mxu1 %v9361_v59  ;;  %3686 = vmatprep.mubr.bf16.mxu0 %v7318_v40  ;;  %v7321_v59 = vld [vmem:[%s11668_s2 + $0x1f4] ss:$8 sps:$4 sm:$0xff]  }
 0x334   : > { %7020 = vmatpush3.bf16.msra.mxu1 %v7328_v37  ;;  %7152 = vset.pattern.permute.xlu1 %v7827_v25 }
 0x335   : > { %v3472_v24 = vpop.f32.mrb[60].mxu0  ;;  %7021 = vmatprep.subr.bf16.mxu1 %v7329_v63  ;;  %4558 = vperm.xlu1 %7152, %v3755_v13  }
 0x336   : > { %v3474_v50 = vpop.f32.mrb[61].mxu0  ;;  %7157 = vset.pattern.permute.xlu0 %v7827_v25 }
 0x337   : > { %v3475_v4 = vpop.f32.mrb[62].mxu0  ;;  %4486 = vperm.xlu0 %7157, %v9883_v21  }
 0x338   : > { %v3706_v35 = vpack.c.bf16 %v3475_v4, %v3472_v24  ;;  %v3477_v18 = vpop.f32.mrb[63].mxu0  ;;  %7022 = vmatpush3.bf16.msra.mxu1 %v7329_v63  ;;  %v3764_v63 = vld [vmem:[%s11670_s4 + $0xe8] sm:$0xff] }
 0x339   : > { %7023 = vmatprep.subr.bf16.mxu1 %v7330_v19  ;;  %7153 = vset.pattern.permute.xlu1 %v11894_v0 }
 0x33a   : > { %3687 = vmatmul.mubr.bf16.gmra.mrb[168].mxu0 %v7320_v30  ;;  %4211 = vmatprep.mubr.bf16.mxu1 %v3706_v35  ;;  %v10076_v30 = vld [vmem:[%s11670_s4 + $0xf8] sm:$0xff] }
 0x33b   : > { %4212 = vmatmul.mubr.bf16.gmra.mrb[92].mxu1 %v9469_v62  ;;  %3694 = vmatprep.mubr.bf16.mxu0 %v7321_v59  ;;  %v10021_v62 = vld [vmem:[%s11670_s4 + $0xb8] sm:$0xff]  ;;  %11896 = vst [vmem:[#allocation21_spill] sm:$0xff] %v10076_v30 }
 0x33c   : > { %7024 = vmatpush3.bf16.msra.mxu1 %v7330_v19  ;;  %3927 = vperm.xlu1 %7153, %v3757_v15  }
 0x33d   : > { %v3480_v29 = vpop.f32.mrb[64].mxu0  ;;  %7025 = vmatprep.subr.bf16.mxu1 %v7331_v39  ;;  %4502 = vperm.xlu0 %7157, %v9910_v34  }
 0x33e   : > { %v3482_v55 = vpop.f32.mrb[65].mxu0 }
 0x33f   : > { %v3483_v20 = vpop.f32.mrb[66].mxu0 }
 0x340   : > { %v3707_v9 = vpack.c.bf16 %v3483_v20, %v3480_v29  ;;  %v3485_v2 = vpop.f32.mrb[67].mxu0  ;;  %7026 = vmatpush3.bf16.msra.mxu1 %v7331_v39  ;;  %3932 = vperm.xlu1 %7153, %v10021_v62  }
 0x341   : > { %4518 = vperm.xlu0 %7157, %v9930_v51   ;;  %v10067_v51 = vld [vmem:[%s11670_s4 + $0xf0] sm:$0xff] }
 0x342   : > { %3695 = vmatmul.mubr.bf16.gmra.mrb[172].mxu0 %v7323_v53  ;;  %4219 = vmatprep.mubr.bf16.mxu1 %v3707_v9  ;;  %11895 = vst [vmem:[#allocation20_spill] sm:$0xff] %v10067_v51 }
 0x343   : > { %4220 = vmatmul.mubr.bf16.gmra.mrb[96].mxu1 %v9499_v23 }
 0x344   : > { %7154 = vset.pattern.permute.xlu1 %v7827_v25 }
 0x345   : > { %v3488_v44 = vpop.f32.mrb[68].mxu0  ;;  %4566 = vperm.xlu1 %7154, %v3757_v15   ;;  %4534 = vperm.xlu0 %7157, %v9964_v42  }
 0x346   : > { %v3490_v43 = vpop.f32.mrb[69].mxu0 }
 0x347   : > { %v3491_v33 = vpop.f32.mrb[70].mxu0 }
 0x348   : > { %v3708_v58 = vpack.c.bf16 %v3491_v33, %v3488_v44  ;;  %v3493_v54 = vpop.f32.mrb[71].mxu0 }
 0x349   : > { %7155 = vset.pattern.permute.xlu1 %v11894_v0  ;;  %4550 = vperm.xlu0 %7157, %v10007_v38  }
 0x34a   : > { %4227 = vmatprep.mubr.bf16.mxu1 %v3708_v58  ;;  %3937 = vperm.xlu1 %7155, %v10030_v27  }
 0x34b   : > { %4228 = vmatmul.mubr.bf16.gmra.mrb[100].mxu1 %v9511_v32 }
 0x34d   : > { %v3496_v31 = vpop.f32.mrb[72].mxu0  ;;  %4562 = vperm.xlu0 %7157, %v9987_v5  }
 0x34e   : > { %v3498_v23 = vpop.f32.mrb[73].mxu0  ;;  %3942 = vperm.xlu1 %7155, %v3760_v1  }
 0x34f   : > { %v3499_v10 = vpop.f32.mrb[74].mxu0 }
 0x350   : > { %v3709_v48 = vpack.c.bf16 %v3499_v10, %v3496_v31  ;;  %v3501_v6 = vpop.f32.mrb[75].mxu0 }
 0x351   : > { %4570 = vperm.xlu0 %7157, %v10021_v62  }
 0x352   : > { %4235 = vmatprep.mubr.bf16.mxu1 %v3709_v48  ;;  %7156 = vset.pattern.permute.xlu1 %v7827_v25 }
 0x353   : > { %4236 = vmatmul.mubr.bf16.gmra.mrb[104].mxu1 %v9532_v56  ;;  %4578 = vperm.xlu1 %7156, %v3760_v1   ;;  %v10087_v1 = vpop.permute.xlu1 %4478 }
 0x355   : > { %v3504_v32 = vpop.f32.mrb[76].mxu0  ;;  %4574 = vperm.xlu0 %7157, %v10030_v27  }
 0x356   : > { %v3506_v26 = vpop.f32.mrb[77].mxu0 }
 0x357   : > { %v3507_v47 = vpop.f32.mrb[78].mxu0  ;;  %7158 = vset.pattern.permute.xlu1 %v11894_v0 }
 0x358   : > { %v3710_v52 = vpack.c.bf16 %v3507_v47, %v3504_v32  ;;  %v3509_v11 = vpop.f32.mrb[79].mxu0  ;;  %3952 = vperm.xlu1 %7158, %v3762_v45   ;;  %v10089_v47 = vpop.permute.xlu1 %4482 }
 0x359   : > { %4582 = vperm.xlu0 %7157, %v3761_v3  }
 0x35a   : > { %4243 = vmatprep.mubr.bf16.mxu1 %v3710_v52 }
 0x35b   : > { %4244 = vmatmul.mubr.bf16.gmra.mrb[108].mxu1 %v9540_v14  ;;  %v3763_v14 = vld [vmem:[%s11670_s4 + $0xe0] sm:$0xff] }
 0x35c   : > { %7159 = vset.pattern.permute.xlu1 %v7827_v25  ;;  %v10091_v3 = vpop.permute.xlu1 %3832 }
 0x35d   : > { %v3512_v56 = vpop.f32.mrb[80].mxu0  ;;  %4586 = vperm.xlu1 %7159, %v3762_v45   ;;  %4594 = vperm.xlu0 %7157, %v3764_v63  }
 0x35e   : > { %v3514_v37 = vpop.f32.mrb[81].mxu0 }
 0x35f   : > { %v3515_v28 = vpop.f32.mrb[82].mxu0 }
 0x360   : > { %v3711_v60 = vpack.c.bf16 %v3515_v28, %v3512_v56  ;;  %v3517_v13 = vpop.f32.mrb[83].mxu0 }
 0x361   : > { %7160 = vset.pattern.permute.xlu1 %v11894_v0 }
 0x362   : > { %4251 = vmatprep.mubr.bf16.mxu1 %v3711_v60  ;;  %3957 = vperm.xlu1 %7160, %v3763_v14  }
 0x363   : > { %4252 = vmatmul.mubr.bf16.gmra.mrb[112].mxu1 %v9553_v17 }
 0x365   : > { %v3520_v8 = vpop.f32.mrb[84].mxu0 }
 0x366   : > { %v3522_v40 = vpop.f32.mrb[85].mxu0  ;;  %3962 = vperm.xlu1 %7160, %v3764_v63  }
 0x367   : > { %v3523_v41 = vpop.f32.mrb[86].mxu0 }
 0x368   : > { %v3712_v46 = vpack.c.bf16 %v3523_v41, %v3520_v8  ;;  %v3525_v21 = vpop.f32.mrb[87].mxu0 }
 0x36a   : > { %4259 = vmatprep.mubr.bf16.mxu1 %v3712_v46  ;;  %7161 = vset.pattern.permute.xlu1 %v7827_v25 }
 0x36b   : > { %4260 = vmatmul.mubr.bf16.gmra.mrb[116].mxu1 %v9575_v57  ;;  %4590 = vperm.xlu1 %7161, %v3763_v14   ;;  %v10093_v14 = vpop.permute.xlu1 %4490 }
 0x36d   : > { %v3528_v17 = vpop.f32.mrb[88].mxu0 }
 0x36e   : > { %v3530_v34 = vpop.f32.mrb[89].mxu0 }
 0x36f   : > { %v3531_v24 = vpop.f32.mrb[90].mxu0  ;;  %7162 = vset.pattern.permute.xlu1 %v11894_v0  ;;  %v10095_v46 = vpop.permute.xlu1 %3837 }
 0x370   : > { %v3713_v19 = vpack.c.bf16 %v3531_v24, %v3528_v17  ;;  %v3533_v50 = vpop.f32.mrb[91].mxu0  ;;  %3967 = vperm.xlu1 %7162, %v10067_v51  }
 0x372   : > { %4267 = vmatprep.mubr.bf16.mxu1 %v3713_v19 }
 0x373   : > { %4268 = vmatmul.mubr.bf16.gmra.mrb[120].mxu1 %v9593_v36  ;;  %v10097_v34 = vpop.permute.xlu1 %4494 }
 0x374   : > { %3972 = vperm.xlu1 %7162, %v10076_v30  }
 0x375   : > { %v3536_v57 = vpop.f32.mrb[92].mxu0 }
 0x376   : > { %v3538_v42 = vpop.f32.mrb[93].mxu0 }
 0x377   : > { %v3539_v4 = vpop.f32.mrb[94].mxu0  ;;  %v10099_v42 = vpop.permute.xlu1 %4498 }
 0x378   : > { %v3714_v59 = vpack.c.bf16 %v3539_v4, %v3536_v57  ;;  %v3541_v35 = vpop.f32.mrb[95].mxu0  ;;  %7163 = vset.pattern.permute.xlu1 %v7827_v25 }
 0x37a   : > { %4275 = vmatprep.mubr.bf16.mxu1 %v3714_v59 }
 0x37b   : > { %4276 = vmatmul.mubr.bf16.gmra.mrb[124].mxu1 %v9604_v61 }
 0x37d   : > { %v3544_v36 = vpop.f32.mrb[96].mxu0 }
 0x37e   : > { %v3546_v5 = vpop.f32.mrb[97].mxu0 }
 0x37f   : > { %v3547_v18 = vpop.f32.mrb[98].mxu0 }
 0x380   : > { %v3715_v39 = vpack.c.bf16 %v3547_v18, %v3544_v36  ;;  %v3549_v38 = vpop.f32.mrb[99].mxu0  ;;  %v10101_v18 = vpop.permute.xlu1 %3852 }
 0x382   : > { %4283 = vmatprep.mubr.bf16.mxu1 %v3715_v39 }
 0x383   : > { %4284 = vmatmul.mubr.bf16.gmra.mrb[128].mxu1 %v9611_v12 }
 0x385   : > { %v3552_v29 = vpop.f32.mrb[100].mxu0 }
 0x386   : > { %v3554_v55 = vpop.f32.mrb[101].mxu0 }
 0x387   : > { %v3555_v53 = vpop.f32.mrb[102].mxu0  ;;  %v10103_v55 = vpop.permute.xlu1 %4506 }
 0x388   : > { %v3716_v15 = vpack.c.bf16 %v3555_v53, %v3552_v29  ;;  %v3557_v20 = vpop.f32.mrb[103].mxu0 }
 0x38a   : > { %4291 = vmatprep.mubr.bf16.mxu1 %v3716_v15 }
 0x38b   : > { %4292 = vmatmul.mubr.bf16.gmra.mrb[132].mxu1 %v9617_v22 }
 0x38d   : > { %v3560_v61 = vpop.f32.mrb[104].mxu0 }
 0x38e   : > { %v3562_v9 = vpop.f32.mrb[105].mxu0 }
 0x38f   : > { %v3563_v25 = vpop.f32.mrb[106].mxu0 }
 0x390   : > { %v3717_v2 = vpack.c.bf16 %v3563_v25, %v3560_v61  ;;  %v3565_v62 = vpop.f32.mrb[107].mxu0  ;;  %v10105_v61 = vpop.permute.xlu1 %3857 }
 0x392   : > { %4299 = vmatprep.mubr.bf16.mxu1 %v3717_v2 }
 0x393   : > { %4300 = vmatmul.mubr.bf16.gmra.mrb[136].mxu1 %v9625_v49 }
 0x395   : > { %v3568_v44 = vpop.f32.mrb[108].mxu0 }
 0x396   : > { %v3570_v43 = vpop.f32.mrb[109].mxu0 }
 0x397   : > { %v3571_v12 = vpop.f32.mrb[110].mxu0 }
 0x398   : > { %v3718_v33 = vpack.c.bf16 %v3571_v12, %v3568_v44  ;;  %v3573_v58 = vpop.f32.mrb[111].mxu0  ;;  %v10107_v44 = vpop.permute.xlu1 %4510 }
 0x39a   : > { %4307 = vmatprep.mubr.bf16.mxu1 %v3718_v33 }
 0x39b   : > { %4308 = vmatmul.mubr.bf16.gmra.mrb[140].mxu1 %v9629_v16 }
 0x39d   : > { %v3576_v54 = vpop.f32.mrb[112].mxu0 }
 0x39e   : > { %v3578_v27 = vpop.f32.mrb[113].mxu0 }
 0x39f   : > { %v3579_v31 = vpop.f32.mrb[114].mxu0  ;;  %v10109_v27 = vpop.permute.xlu1 %4514 }
 0x3a0   : > { %v3719_v22 = vpack.c.bf16 %v3579_v31, %v3576_v54  ;;  %v3581_v23 = vpop.f32.mrb[115].mxu0 }
 0x3a2   : > { %7027 = vmatprep.mubr.bf16.mxu1 %v3719_v22 }
 0x3a5   : > { %v3584_v10 = vpop.f32.mrb[116].mxu0 }
 0x3a6   : > { %v3586_v48 = vpop.f32.mrb[117].mxu0 }
 0x3a7   : > { %v3587_v6 = vpop.f32.mrb[118].mxu0 }
 0x3a8   : > { %v3720_v49 = vpack.c.bf16 %v3587_v6, %v3584_v10  ;;  %v3589_v32 = vpop.f32.mrb[119].mxu0  ;;  %v10111_v10 = vpop.permute.xlu1 %3872 }
 0x3aa   : > { %7028 = vmatmul.mubr.bf16.vlgmr.msra.gmra.mrb[144].mxu1 %v3720_v49 }
 0x3ac   : > { %v10113_v32 = vpop.permute.xlu1 %4522 }
 0x3ad   : > { %v3592_v26 = vpop.f32.mrb[120].mxu0 }
 0x3ae   : > { %v3594_v52 = vpop.f32.mrb[121].mxu0 }
 0x3af   : > { %v3595_v11 = vpop.f32.mrb[122].mxu0 }
 0x3b0   : > { %v3721_v16 = vpack.c.bf16 %v3595_v11, %v3592_v26  ;;  %v3597_v45 = vpop.f32.mrb[123].mxu0 }
 0x3b2   : > { %7031 = vmatprep.mubr.bf16.mxu1 %v3721_v16 }
 0x3b5   : > { %v3600_v56 = vpop.f32.mrb[124].mxu0 }
 0x3b6   : > { %v3602_v37 = vpop.f32.mrb[125].mxu0 }
 0x3b7   : > { %v3603_v28 = vpop.f32.mrb[126].mxu0 }
 0x3b8   : > { %v3722_v60 = vpack.c.bf16 %v3603_v28, %v3600_v56  ;;  %v3605_v13 = vpop.f32.mrb[127].mxu0 }
 0x3ba   : > { %7032 = vmatmul.mubr.bf16.gmra.mrb[148].mxu1 %v3722_v60 }
 0x3bd   : > { %v3608_v8 = vpop.f32.mrb[128].mxu0 }
 0x3be   : > { %v3610_v40 = vpop.f32.mrb[129].mxu0 }
 0x3bf   : > { %v3611_v41 = vpop.f32.mrb[130].mxu0 }
 0x3c0   : > { %v3723_v21 = vpack.c.bf16 %v3611_v41, %v3608_v8  ;;  %v3613_v63 = vpop.f32.mrb[131].mxu0  ;;  %v10119_v8 = vpop.permute.xlu0 %3817 }
 0x3c1   : > { %v10121_v41 = vpop.permute.xlu1 %3877 }
 0x3c2   : > { %7035 = vmatprep.mubr.bf16.mxu1 %v3723_v21 }
 0x3c5   : > { %v3616_v17 = vpop.f32.mrb[132].mxu0 }
 0x3c6   : > { %v3618_v24 = vpop.f32.mrb[133].mxu0 }
 0x3c7   : > { %v3619_v19 = vpop.f32.mrb[134].mxu0 }
 0x3c8   : > { %v3724_v50 = vpack.c.bf16 %v3619_v19, %v3616_v17  ;;  %v3621_v57 = vpop.f32.mrb[135].mxu0 }
 0x3ca   : > { %7036 = vmatmul.mubr.bf16.gmra.mrb[152].mxu1 %v3724_v50 }
 0x3cd   : > { %v3624_v4 = vpop.f32.mrb[136].mxu0 }
 0x3ce   : > { %v3626_v59 = vpop.f32.mrb[137].mxu0 }
 0x3cf   : > { %v3627_v35 = vpop.f32.mrb[138].mxu0 }
 0x3d0   : > { %v3725_v36 = vpack.c.bf16 %v3627_v35, %v3624_v4  ;;  %v3629_v5 = vpop.f32.mrb[139].mxu0 }
 0x3d2   : > { %7039 = vmatprep.mubr.bf16.mxu1 %v3725_v36  ;;  %v10127_v36 = vpop.permute.xlu0 %3822 }
 0x3d5   : > { %v3632_v39 = vpop.f32.mrb[140].mxu0 }
 0x3d6   : > { %v3634_v38 = vpop.f32.mrb[141].mxu0 }
 0x3d7   : > { %v3635_v29 = vpop.f32.mrb[142].mxu0 }
 0x3d8   : > { %v3726_v53 = vpack.c.bf16 %v3635_v29, %v3632_v39  ;;  %v3637_v15 = vpop.f32.mrb[143].mxu0  ;;  %v10129_v39 = vpop.permute.xlu1 %4526 }
 0x3da   : > { %7040 = vmatmul.mubr.bf16.gmra.mrb[156].mxu1 %v3726_v53 }
 0x3dd   : > { %v3640_v20 = vpop.f32.mrb[144].mxu0 }
 0x3de   : > { %v3642_v9 = vpop.f32.mrb[145].mxu0 }
 0x3df   : > { %v3643_v25 = vpop.f32.mrb[146].mxu0 }
 0x3e0   : > { %v3727_v2 = vpack.c.bf16 %v3643_v25, %v3640_v20  ;;  %v3645_v62 = vpop.f32.mrb[147].mxu0 }
 0x3e2   : > { %7043 = vmatprep.mubr.bf16.mxu1 %v3727_v2 }
 0x3e5   : > { %v3648_v43 = vpop.f32.mrb[148].mxu0 }
 0x3e6   : > { %v3650_v12 = vpop.f32.mrb[149].mxu0 }
 0x3e7   : > { %v3651_v33 = vpop.f32.mrb[150].mxu0  ;;  %v10135_v12 = vpop.permute.xlu0 %3827 }
 0x3e8   : > { %v3728_v58 = vpack.c.bf16 %v3651_v33, %v3648_v43  ;;  %v3653_v54 = vpop.f32.mrb[151].mxu0 }
 0x3ea   : > { %7044 = vmatmul.mubr.bf16.gmra.mrb[160].mxu1 %v3728_v58  ;;  %v10137_v58 = vpop.permute.xlu1 %4530 }
 0x3ed   : > { %v3656_v31 = vpop.f32.mrb[152].mxu0 }
 0x3ee   : > { %v3658_v22 = vpop.f32.mrb[153].mxu0 }
 0x3ef   : > { %v3659_v23 = vpop.f32.mrb[154].mxu0 }
 0x3f0   : > { %v3729_v48 = vpack.c.bf16 %v3659_v23, %v3656_v31  ;;  %v3661_v6 = vpop.f32.mrb[155].mxu0 }
 0x3f2   : > { %7047 = vmatprep.mubr.bf16.mxu1 %v3729_v48 }
 0x3f5   : > { %v3664_v49 = vpop.f32.mrb[156].mxu0 }
 0x3f6   : > { %v3666_v26 = vpop.f32.mrb[157].mxu0  ;;  %v6779_v52 = vpop.f32.mrb[80].mxu1 }
 0x3f7   : > { %v3667_v11 = vpop.f32.mrb[158].mxu0  ;;  %v6780_v16 = vpop.f32.mrb[81].mxu1 }
 0x3f8   : > { %v3730_v45 = vpack.c.bf16 %v3667_v11, %v3664_v49  ;;  %v10115_v56 = vadd.f32 %v6780_v16, %v6779_v52  ;;  %v6782_v37 = vpop.f32.mrb[82].mxu1  ;;  %v3669_v28 = vpop.f32.mrb[159].mxu0 }
 0x3f9   : > { %v6783_v60 = vpop.f32.mrb[83].mxu1  ;;  %v10143_v16 = vpop.permute.xlu0 %3842 }
 0x3fa   : > { %v10117_v13 = vadd.f32 %v6783_v60, %v6782_v37  ;;  %7048 = vmatmul.mubr.bf16.gmra.mrb[164].mxu1 %v3730_v45  ;;  %v10145_v37 = vpop.permute.xlu1 %3892 }
 0x3fd   : > { %v3672_v40 = vpop.f32.mrb[160].mxu0 }
 0x3fe   : > { %v6785_v21 = vpop.f32.mrb[84].mxu1  ;;  %v3674_v63 = vpop.f32.mrb[161].mxu0 }
 0x3ff   : > { %v6786_v17 = vpop.f32.mrb[85].mxu1  ;;  %v3675_v24 = vpop.f32.mrb[162].mxu0 }
 0x400   : > { %v10123_v19 = vadd.f32 %v6786_v17, %v6785_v21  ;;  %v6788_v50 = vpop.f32.mrb[86].mxu1  ;;  %v3731_v57 = vpack.c.bf16 %v3675_v24, %v3672_v40  ;;  %v3677_v4 = vpop.f32.mrb[163].mxu0 }
 0x401   : > { %v6789_v59 = vpop.f32.mrb[87].mxu1 }
 0x402   : > { %v10125_v35 = vadd.f32 %v6789_v59, %v6788_v50  ;;  %7051 = vmatprep.mubr.bf16.mxu1 %v3731_v57  ;;  %v10149_v57 = vpop.permute.xlu0 %3847 }
 0x405   : > { %v3680_v5 = vpop.f32.mrb[164].mxu0 }
 0x406   : > { %v3682_v38 = vpop.f32.mrb[165].mxu0  ;;  %v6791_v29 = vpop.f32.mrb[88].mxu1 }
 0x407   : > { %v3683_v53 = vpop.f32.mrb[166].mxu0  ;;  %v6792_v15 = vpop.f32.mrb[89].mxu1 }
 0x408   : > { %v3732_v20 = vpack.c.bf16 %v3683_v53, %v3680_v5  ;;  %v10131_v9 = vadd.f32 %v6792_v15, %v6791_v29  ;;  %v6794_v25 = vpop.f32.mrb[90].mxu1  ;;  %v3685_v2 = vpop.f32.mrb[167].mxu0 }
 0x409   : > { %v6795_v62 = vpop.f32.mrb[91].mxu1  ;;  %v10154_v5 = vpop.permute.xlu0 %3862 }
 0x40a   : > { %v10133_v43 = vadd.f32 %v6795_v62, %v6794_v25  ;;  %7052 = vmatmul.mubr.bf16.gmra.mrb[168].mxu1 %v3732_v20  ;;  %v10156_v38 = vpop.permute.xlu1 %4538 }
 0x40b   : > { %11897 = vst [vmem:[#allocation22_spill] sm:$0xff] %v10156_v38 }
 0x40d   : > { %v3688_v33 = vpop.f32.mrb[168].mxu0  ;;  %v10160_v25 = vpop.permute.xlu0 %3867 }
 0x40e   : > { %v6797_v54 = vpop.f32.mrb[92].mxu1  ;;  %v3690_v31 = vpop.f32.mrb[169].mxu0 }
 0x40f   : > { %v6798_v22 = vpop.f32.mrb[93].mxu1  ;;  %v3691_v23 = vpop.f32.mrb[170].mxu0 }
 0x410   : > { %v10139_v48 = vadd.f32 %v6798_v22, %v6797_v54  ;;  %v6800_v6 = vpop.f32.mrb[94].mxu1  ;;  %v3733_v49 = vpack.c.bf16 %v3691_v23, %v3688_v33  ;;  %v3693_v26 = vpop.f32.mrb[171].mxu0  ;;  %v10167_v33 = vld [vmem:[%s11671_s5 + $0x8] sm:$0x3] }
 0x411   : > { %v6801_v52 = vpop.f32.mrb[95].mxu1  ;;  %v10169_v54 = vpop.permute.xlu1 %3897  ;;  %v11898_v22 = vld [vmem:[#allocation9_spill] sm:$0xff] }
 0x412   : > { %v10141_v11 = vadd.f32 %v6801_v52, %v6800_v6  ;;  %7055 = vmatprep.mubr.bf16.mxu1 %v3733_v49  ;;  %v3883_v31 = vpop.permute.xlu0 %3882  ;;  %v10173_v23 = vrot.slane %v10167_v33, %v11898_v22 }
 0x415   : > { %v3696_v45 = vpop.f32.mrb[172].mxu0 }
 0x416   : > { %v3698_v28 = vpop.f32.mrb[173].mxu0  ;;  %v6803_v60 = vpop.f32.mrb[96].mxu1 }
 0x417   : > { %v3699_v40 = vpop.f32.mrb[174].mxu0  ;;  %v6804_v21 = vpop.f32.mrb[97].mxu1 }
 0x418   : > { %v3734_v63 = vpack.c.bf16 %v3699_v40, %v3696_v45  ;;  %v10147_v17 = vadd.f32 %v6804_v21, %v6803_v60  ;;  %v6806_v24 = vpop.f32.mrb[98].mxu1  ;;  %v3701_v50 = vpop.f32.mrb[175].mxu0  ;;  %v3992_v45 = vmul.f32 %v10173_v23, %v3883_v31 }
 0x419   : > { %v6807_v4 = vpop.f32.mrb[99].mxu1  ;;  %v10178_v28 = vpop.permute.xlu1 %4542 }
 0x41a   : > { %v10151_v59 = vadd.f32 %v6807_v4, %v6806_v24  ;;  %7056 = vmatmul.mubr.bf16.gmra.mrb[172].mxu1 %v3734_v63  ;;  %11899 = vst [vmem:[#allocation24_spill] sm:$0xff] %v10178_v28  ;;  %v3888_v21 = vpop.permute.xlu0 %3887 }
 0x41b   : > { %5381 = vmatprep.mubr.bf16.mxu1 %v11894_v0  ;;  %v3993_v50 = vmul.f32 %v10173_v23, %v3888_v21 }
 0x41d   : > { %v10183_v4 = vpop.permute.xlu1 %4546 }
 0x41e   : > { %v6809_v29 = vpop.f32.mrb[100].mxu1  ;;  %11900 = vst [vmem:[#allocation26_spill] sm:$0xff] %v10183_v4  ;;  %v3903_v22 = vpop.permute.xlu0 %3902 }
 0x41f   : > { %v6810_v53 = vpop.f32.mrb[101].mxu1  ;;  %v3996_v21 = vmul.f32 %v10173_v23, %v3903_v22 }
 0x420   : > { %v10158_v15 = vadd.f32 %v6810_v53, %v6809_v29  ;;  %v6812_v20 = vpop.f32.mrb[102].mxu1 }
 0x421   : > { %v6813_v2 = vpop.f32.mrb[103].mxu1  ;;  %v10189_v31 = vpop.permute.xlu1 %3912 }
 0x422   : > { %v10162_v62 = vadd.f32 %v6813_v2, %v6812_v20  ;;  %11901 = vst [vmem:[#allocation35_spill] sm:$0xff] %v10189_v31 }
 0x425   : > { %v10194_v4 = vpop.permute.xlu1 %4554 }
 0x426   : > { %v6815_v6 = vpop.f32.mrb[104].mxu1  ;;  %11903 = vst [vmem:[#allocation27_spill] sm:$0xff] %v10194_v4 }
 0x427   : > { %v6816_v49 = vpop.f32.mrb[105].mxu1 }
 0x428   : > { %v10175_v26 = vadd.f32 %v6816_v49, %v6815_v6  ;;  %v6818_v52 = vpop.f32.mrb[106].mxu1 }
 0x429   : > { %v6819_v60 = vpop.f32.mrb[107].mxu1  ;;  %v3918_v38 = vpop.permute.xlu1 %3917 }
 0x42a   : > { %v6820_v40 = vadd.f32 %v6819_v60, %v6818_v52  ;;  %v3999_v22 = vmul.f32 %v10173_v23, %v3918_v38 }
 0x42c   : > { %v10180_v63 = vadd.f32 %v6820_v40, %v3992_v45 }
 0x42e   : > { %v6821_v24 = vpop.f32.mrb[108].mxu1 }
 0x42f   : > { %v6822_v29 = vpop.f32.mrb[109].mxu1 }
 0x430   : > { %v6823_v53 = vadd.f32 %v6822_v29, %v6821_v24  ;;  %v6824_v20 = vpop.f32.mrb[110].mxu1  ;;  %v3908_v24 = vpop.permute.xlu0 %3907 }
 0x431   : > { %v6825_v2 = vpop.f32.mrb[111].mxu1 }
 0x432   : > { %v10185_v6 = vadd.f32 %v6825_v2, %v6824_v20  ;;  %v10187_v49 = vadd.f32 %v6823_v53, %v3993_v50  ;;  %v3997_v50 = vmul.f32 %v10173_v23, %v3908_v24 }
 0x436   : > { %v6827_v52 = vpop.f32.mrb[112].mxu1 }
 0x437   : > { %v6828_v60 = vpop.f32.mrb[113].mxu1 }
 0x438   : > { %v10191_v45 = vadd.f32 %v6828_v60, %v6827_v52  ;;  %v6830_v40 = vpop.f32.mrb[114].mxu1 }
 0x439   : > { %v6831_v0 = vpop.f32.mrb[115].mxu1 }
 0x43a   : > { %11902 = vst [vmem:[#allocation34_spill] sm:$0xff] %v10191_v45  ;;  %v6832_v7 = vadd.f32 %v6831_v0, %v6830_v40  ;;  %v3923_v40 = vpop.permute.xlu1 %3922 }
 0x43c   : > { %v10196_v29 = vadd.f32 %v6832_v7, %v3996_v21  ;;  %v4000_v7 = vmul.f32 %v10173_v23, %v3923_v40 }
 0x43e   : > { %11904 = vst [vmem:[#allocation28_spill] sm:$0xff] %v10196_v29  ;;  %v6833_v20 = vpop.f32.mrb[116].mxu1 }
 0x43f   : > { %v6834_v53 = vpop.f32.mrb[117].mxu1 }
 0x440   : > { %v6835_v2 = vadd.f32 %v6834_v53, %v6833_v20  ;;  %v6836_v28 = vpop.f32.mrb[118].mxu1 }
 0x441   : > { %v6837_v30 = vpop.f32.mrb[119].mxu1 }
 0x442   : > { %v10199_v52 = vadd.f32 %v6837_v30, %v6836_v28  ;;  %v10201_v60 = vadd.f32 %v6835_v2, %v3997_v50 }
 0x444   : > { %11905 = vst [vmem:[#allocation29_spill] sm:$0xff] %v10199_v52  ;;  %11906 = vst [vmem:[#allocation30_spill] sm:$0xff] %v10201_v60 }
 0x446   : > { %v6839_v0 = vpop.f32.mrb[120].mxu1 }
 0x447   : > { %v6840_v4 = vpop.f32.mrb[121].mxu1 }
 0x448   : > { %v6841_v21 = vadd.f32 %v6840_v4, %v6839_v0  ;;  %v6842_v51 = vpop.f32.mrb[122].mxu1 }
 0x449   : > { %v6843_v29 = vpop.f32.mrb[123].mxu1 }
 0x44a   : > { %v6844_v24 = vadd.f32 %v6843_v29, %v6842_v51  ;;  %v10205_v45 = vadd.f32 %v6841_v21, %v3999_v22  ;;  %v3948_v51 = vpop.permute.xlu0 %3947 }
 0x44c   : > { %11907 = vst [vmem:[#allocation14_spill] sm:$0xff] %v10205_v45  ;;  %v10207_v20 = vadd.f32 %v6844_v24, %v4000_v7  ;;  %v4005_v7 = vmul.f32 %v10173_v23, %v3948_v51 }
 0x44e   : > { %11908 = vst [vmem:[#allocation12_spill] sm:$0xff] %v10207_v20  ;;  %v6845_v53 = vpop.f32.mrb[124].mxu1 }
 0x44f   : > { %v6846_v30 = vpop.f32.mrb[125].mxu1 }
 0x450   : > { %v10209_v28 = vadd.f32 %v6846_v30, %v6845_v53  ;;  %v6848_v50 = vpop.f32.mrb[126].mxu1 }
 0x451   : > { %v6849_v2 = vpop.f32.mrb[127].mxu1 }
 0x452   : > { %v10211_v38 = vadd.f32 %v6849_v2, %v6848_v50 }
 0x456   : > { %v6851_v52 = vpop.f32.mrb[128].mxu1 }
 0x457   : > { %v6852_v60 = vpop.f32.mrb[129].mxu1 }
 0x458   : > { %v10213_v31 = vadd.f32 %v6852_v60, %v6851_v52  ;;  %v6854_v4 = vpop.f32.mrb[130].mxu1 }
 0x459   : > { %v6855_v0 = vpop.f32.mrb[131].mxu1 }
 0x45a   : > { %11909 = vst [vmem:[#allocation31_spill] sm:$0xff] %v10213_v31  ;;  %v10215_v40 = vadd.f32 %v6855_v0, %v6854_v4 }
 0x45c   : > { %11910 = vst [vmem:[#allocation32_spill] sm:$0xff] %v10215_v40 }
 0x45e   : > { %v6857_v29 = vpop.f32.mrb[132].mxu1 }
 0x45f   : > { %v6858_v22 = vpop.f32.mrb[133].mxu1 }
 0x460   : > { %v6859_v21 = vadd.f32 %v6858_v22, %v6857_v29  ;;  %v6860_v24 = vpop.f32.mrb[134].mxu1 }
 0x461   : > { %v6861_v53 = vpop.f32.mrb[135].mxu1 }
 0x462   : > { %v10218_v30 = vadd.f32 %v6861_v53, %v6860_v24  ;;  %v10220_v50 = vadd.f32 %v6859_v21, %v4005_v7  ;;  %v3981_v7 = vmul.f32 %v10173_v23, %v10135_v12  ;;  %v3979_v21 = vmul.f32 %v10173_v23, %v10119_v8  ;;  %v4487_v53 = vpop.permute.xlu0 %4486 }
 0x464   : > { %v4190_v12 = vadd.f32 %v10115_v56, %v3979_v21 }
 0x466   : > { %v6863_v2 = vpop.f32.mrb[136].mxu1 }
 0x467   : > { %v6864_v20 = vpop.f32.mrb[137].mxu1 }
 0x468   : > { %v10222_v52 = vadd.f32 %v6864_v20, %v6863_v2  ;;  %v6866_v60 = vpop.f32.mrb[138].mxu1  ;;  %v11912_v20 = vld [vmem:[#allocation10_spill] sm:$0xff] }
 0x469   : > { %v6867_v31 = vpop.f32.mrb[139].mxu1  ;;  %v10236_v24 = vrot.slane %v10167_v33, %v11912_v20 }
 0x46a   : > { %v10224_v4 = vadd.f32 %v6867_v31, %v6866_v60  ;;  %v3982_v31 = vmul.f32 %v10173_v23, %v10091_v3  ;;  %v4198_v60 = vadd.f32 %v10123_v19, %v3981_v7 }
 0x46b   : > { %v4611_v2 = vmul.f32 %v10236_v24, %v4487_v53  ;;  %v4609_v3 = vmul.f32 %v10236_v24, %v10087_v1  ;;  %v4610_v56 = vmul.f32 %v10236_v24, %v10089_v47  ;;  %v4612_v7 = vmul.f32 %v10236_v24, %v10093_v14  ;;  %v7696_v47 = vld [vmem:[%s7992_s14 + $0x18] sm:$0xff] }
 0x46c   : > { %11911 = vst [vmem:[#allocation17_spill] sm:$0xff] %v10224_v4  ;;  %v4201_v33 = vadd.f32 %v10125_v35, %v3982_v31  ;;  %v7693_v31 = vld [vmem:[%s7992_s14 + $0x10] sm:$0xff]  ;;  %v3985_v14 = vmul.f32 %v10173_v23, %v10149_v57 }
 0x46e   : > { %v6869_v0 = vpop.f32.mrb[140].mxu1 }
 0x46f   : > { %v6870_v40 = vpop.f32.mrb[141].mxu1 }
 0x470   : > { %v10226_v45 = vadd.f32 %v6870_v40, %v6869_v0  ;;  %v6872_v51 = vpop.f32.mrb[142].mxu1  ;;  %v3980_v40 = vmul.f32 %v10173_v23, %v10127_v36 }
 0x471   : > { %v6873_v29 = vpop.f32.mrb[143].mxu1 }
 0x472   : > { %v10228_v22 = vadd.f32 %v6873_v29, %v6872_v51  ;;  %v4193_v36 = vadd.f32 %v10117_v13, %v3980_v40 }
 0x47d   : > { %v7029_v0 = vpop.f32.mrb[144].mxu1 }
 0x47e   : > { %v4359_v8 = vadd.f32 %v7029_v0, %v4198_v60  ;;  %v4350_v51 = vpop.f32.mrb[145].mxu1 }
 0x47f   : > { %v4351_v29 = vadd.f32 %v4350_v51, %v4190_v12  ;;  %v7030_v20 = vpop.f32.mrb[146].mxu1  ;;  %v7694_v12 = vld [vmem:[%s7992_s14] sm:$0xff]  ;;  %v3984_v51 = vmul.f32 %v10173_v23, %v10143_v16 }
 0x480   : > { %v4643_v53 = vadd.f32 %v4611_v2, %v4359_v8  ;;  %v4362_v4 = vadd.f32 %v7030_v20, %v4201_v33  ;;  %v4353_v19 = vpop.f32.mrb[147].mxu1  ;;  %v7695_v20 = vld [vmem:[%s7992_s14 + $0x8] sm:$0xff]  ;;  %v3986_v8 = vmul.f32 %v10173_v23, %v10101_v18  ;;  %v4214_v33 = vadd.f32 %v10139_v48, %v3985_v14 }
 0x481   : > { %v4641_v35 = vadd.f32 %v4609_v3, %v4351_v29  ;;  %v4354_v21 = vadd.f32 %v4353_v19, %v4193_v36  ;;  %v4503_v3 = vpop.permute.xlu0 %4502  ;;  %v4613_v18 = vmul.f32 %v10236_v24, %v10097_v34  ;;  %v4209_v16 = vadd.f32 %v10133_v43, %v3984_v51  ;;  %v7699_v14 = vld [vmem:[%s7992_s14 + $0x28] sm:$0xff] }
 0x482   : > { %v10254_v60 = vadd.f32 %v7693_v31, %v4643_v53  ;;  %v4644_v1 = vadd.f32 %v4612_v7, %v4362_v4  ;;  %v3983_v4 = vmul.f32 %v10173_v23, %v10095_v46  ;;  %v4615_v57 = vmul.f32 %v10236_v24, %v4503_v3 }
 0x483   : > { %v4642_v0 = vadd.f32 %v4610_v56, %v4354_v21  ;;  %v10257_v13 = vadd.f32 %v7694_v12, %v4641_v35  ;;  %v4217_v46 = vadd.f32 %v10141_v11, %v3986_v8  ;;  %v4614_v21 = vmul.f32 %v10236_v24, %v10099_v42  ;;  %v7700_v42 = vld [vmem:[%s7992_s14 + $0x38] sm:$0xff] }
 0x484   : > { %11913 = vst [vmem:[#allocation33_spill] sm:$0xff] %v10254_v60  ;;  %4709 = vadd.xlane.f32.xlu1 %v10254_v60  ;;  %v10265_v2 = vadd.f32 %v7696_v47, %v4644_v1  ;;  %v4206_v36 = vadd.f32 %v10131_v9, %v3983_v4  ;;  %v4616_v31 = vmul.f32 %v10236_v24, %v10103_v55  ;;  %v7698_v47 = vld [vmem:[%s7992_s14 + $0x20] sm:$0xff] }
 0x485   : > { %11914 = vst [vmem:[#allocation16_spill] sm:$0xff] %v10257_v13  ;;  %4705 = vadd.xlane.f32.xlu0 %v10257_v13  ;;  %v10262_v40 = vadd.f32 %v7695_v20, %v4642_v0  ;;  %v7697_v0 = vld [vmem:[%s7992_s14 + $0x30] sm:$0xff]  ;;  %v3989_v55 = vmul.f32 %v10173_v23, %v10160_v25  ;;  %v3987_v51 = vmul.f32 %v10173_v23, %v10105_v61 }
 0x486   : > { %11916 = vst [vmem:[#allocation23_spill] sm:$0xff] %v10265_v2  ;;  %v3990_v3 = vmul.f32 %v10173_v23, %v10111_v10 }
 0x487   : > { %11915 = vst [vmem:[#allocation18_spill] sm:$0xff] %v10262_v40  ;;  %v4222_v25 = vadd.f32 %v10147_v17, %v3987_v51  ;;  %v4620_v17 = vmul.f32 %v10236_v24, %v10113_v32 }
 0x488   : > { %4707 = vadd.xlane.f32.xlu1 %v10262_v40 }
 0x489   : > { %4711 = vadd.xlane.f32.xlu0 %v10265_v2 }
 0x48d   : > { %v7033_v29 = vpop.f32.mrb[148].mxu1 }
 0x48e   : > { %v4375_v53 = vadd.f32 %v7033_v29, %v4214_v33  ;;  %v4366_v19 = vpop.f32.mrb[149].mxu1  ;;  %v10307_v33 = vpop.permute.xlu1 %4558  ;;  %v3988_v29 = vmul.f32 %v10173_v23, %v10154_v5 }
 0x48f   : > { %v4367_v56 = vadd.f32 %v4366_v19, %v4206_v36  ;;  %v7034_v7 = vpop.f32.mrb[150].mxu1  ;;  %v4230_v36 = vadd.f32 %v10158_v15, %v3989_v55  ;;  %v4617_v15 = vmul.f32 %v10236_v24, %v10107_v44  ;;  %v7702_v44 = vld [vmem:[%s7992_s14 + $0x58] sm:$0xff] }
 0x490   : > { %v4647_v48 = vadd.f32 %v4615_v57, %v4375_v53  ;;  %v4378_v35 = vadd.f32 %v7034_v7, %v4217_v46  ;;  %v4369_v9 = vpop.f32.mrb[151].mxu1  ;;  %v4519_v57 = vpop.permute.xlu0 %4518  ;;  %v4225_v5 = vadd.f32 %v10151_v59, %v3988_v29 }
 0x491   : > { %v4645_v11 = vadd.f32 %v4613_v18, %v4367_v56  ;;  %v4370_v1 = vadd.f32 %v4369_v9, %v4209_v16  ;;  %v4619_v19 = vmul.f32 %v10236_v24, %v4519_v57  ;;  %v4233_v18 = vadd.f32 %v10162_v62, %v3990_v3 }
 0x492   : > { %v10289_v12 = vadd.f32 %v7697_v0, %v4647_v48  ;;  %v4648_v34 = vadd.f32 %v4616_v31, %v4378_v35  ;;  %v10318_v56 = vpop.permute.xlu1 %3927  ;;  %v4618_v62 = vmul.f32 %v10236_v24, %v10109_v27  ;;  %v7704_v27 = vld [vmem:[%s7992_s14 + $0x48] sm:$0xff] }
 0x493   : > { %v4646_v20 = vadd.f32 %v4614_v21, %v4370_v1  ;;  %v10292_v43 = vadd.f32 %v7698_v47, %v4645_v11  ;;  %v7701_v11 = vld [vmem:[%s7992_s14 + $0x50] sm:$0xff] }
 0x494   : > { %11917 = vst [vmem:[#allocation15_spill] sm:$0xff] %v10289_v12  ;;  %4717 = vadd.xlane.f32.xlu0 %v10289_v12  ;;  %v10300_v8 = vadd.f32 %v7700_v42, %v4648_v34  ;;  %v7703_v34 = vld [vmem:[%s7992_s14 + $0x40] sm:$0xff]  ;;  %v3994_v42 = vmul.f32 %v10173_v23, %v10145_v37 }
 0x495   : > { %11918 = vst [vmem:[#allocation11_spill] sm:$0xff] %v10292_v43  ;;  %4713 = vadd.xlane.f32.xlu1 %v10292_v43  ;;  %v10297_v4 = vadd.f32 %v7699_v14, %v4646_v20  ;;  %v3991_v14 = vmul.f32 %v10173_v23, %v10121_v41  ;;  %v4621_v41 = vmul.f32 %v10236_v24, %v10129_v39 }
 0x496   : > { %11920 = vst [vmem:[#allocation19_spill] sm:$0xff] %v10300_v8  ;;  %v3933_v32 = vpop.permute.xlu1 %3932  ;;  %v4249_v57 = vadd.f32 %v10185_v6, %v3994_v42  ;;  %v7706_v6 = vld [vmem:[%s7992_s14 + $0x68] sm:$0xff] }
 0x497   : > { %11919 = vst [vmem:[#allocation13_spill] sm:$0xff] %v10297_v4  ;;  %v4238_v3 = vadd.f32 %v10175_v26, %v3991_v14 }
 0x498   : > { %4715 = vadd.xlane.f32.xlu0 %v10297_v4 }
 0x499   : > { %4719 = vadd.xlane.f32.xlu1 %v10300_v8 }
 0x49a   : > { %v10347_v55 = vpop.permute.xlu1 %4566 }
 0x49d   : > { %v7037_v53 = vpop.f32.mrb[152].mxu1 }
 0x49e   : > { %v4391_v46 = vadd.f32 %v7037_v53, %v4230_v36  ;;  %v4382_v61 = vpop.f32.mrb[153].mxu1 }
 0x49f   : > { %v4383_v7 = vadd.f32 %v4382_v61, %v4222_v25  ;;  %v7038_v10 = vpop.f32.mrb[154].mxu1  ;;  %v3938_v61 = vpop.permute.xlu1 %3937 }
 0x4a0   : > { %v4651_v16 = vadd.f32 %v4619_v19, %v4391_v46  ;;  %v4394_v48 = vadd.f32 %v7038_v10, %v4233_v18  ;;  %v4385_v35 = vpop.f32.mrb[155].mxu1  ;;  %v4622_v46 = vmul.f32 %v10236_v24, %v10137_v58  ;;  %v11927_v58 = vld [vmem:[#allocation35_spill] sm:$0xff] }
 0x4a1   : > { %v4386_v9 = vadd.f32 %v4385_v35, %v4225_v5  ;;  %v4649_v21 = vadd.f32 %v4617_v15, %v4383_v7  ;;  %v7705_v7 = vld [vmem:[%s7992_s14 + $0x60] sm:$0xff]  ;;  %v3995_v15 = vmul.f32 %v10173_v23, %v10169_v54 }
 0x4a2   : > { %v4652_v31 = vadd.f32 %v4620_v17, %v4394_v48  ;;  %v10328_v1 = vadd.f32 %v7701_v11, %v4651_v16  ;;  %v3998_v17 = vmul.f32 %v10173_v23, %v11927_v58  ;;  %v11928_v48 = vld [vmem:[#allocation34_spill] sm:$0xff]  ;;  %v11931_v54 = vld [vmem:[#allocation28_spill] sm:$0xff] }
 0x4a3   : > { %v4650_v59 = vadd.f32 %v4618_v62, %v4386_v9  ;;  %v10336_v20 = vadd.f32 %v7703_v34, %v4649_v21  ;;  %v3943_v5 = vpop.permute.xlu1 %3942  ;;  %v4254_v35 = vadd.f32 %v11928_v48, %v3995_v15  ;;  %v11929_v9 = vld [vmem:[#allocation30_spill] sm:$0xff]  ;;  %v11935_v58 = vld [vmem:[#allocation12_spill] sm:$0xff] }
 0x4a4   : > { %11921 = vst [vmem:[#allocation25_spill] sm:$0xff] %v10328_v1  ;;  %4725 = vadd.xlane.f32.xlu1 %v10328_v1  ;;  %v10332_v0 = vadd.f32 %v7702_v44, %v4652_v31  ;;  %v11930_v31 = vld [vmem:[#allocation29_spill] sm:$0xff]  ;;  %v4004_v48 = vmul.f32 %v10173_v23, %v3943_v5 }
 0x4a5   : > { %11923 = vst [vmem:[#allocation37_spill] sm:$0xff] %v10336_v20  ;;  %v10340_v47 = vadd.f32 %v7704_v27, %v4650_v59  ;;  %v4265_v11 = vadd.f32 %v11930_v31, %v3998_v17  ;;  %v4003_v17 = vmul.f32 %v10173_v23, %v3938_v61 }
 0x4a6   : > { %11922 = vst [vmem:[#allocation36_spill] sm:$0xff] %v10332_v0  ;;  %4727 = vadd.xlane.f32.xlu0 %v10332_v0 }
 0x4a7   : > { %11924 = vst [vmem:[#allocation38_spill] sm:$0xff] %v10340_v47  ;;  %v10373_v16 = vpop.permute.xlu1 %4578 }
 0x4a8   : > { %4721 = vadd.xlane.f32.xlu1 %v10336_v20 }
 0x4aa   : > { %4723 = vadd.xlane.f32.xlu0 %v10340_v47 }
 0x4ab   : > { %v3953_v42 = vpop.permute.xlu1 %3952 }
 0x4ad   : > { %v7041_v51 = vpop.f32.mrb[156].mxu1 }
 0x4ae   : > { %v10351_v29 = vadd.f32 %v7041_v51, %v10187_v49  ;;  %v4398_v36 = vpop.f32.mrb[157].mxu1  ;;  %v11932_v51 = vld [vmem:[#allocation20_spill] sm:$0xff] }
 0x4af   : > { %v4399_v53 = vadd.f32 %v4398_v36, %v4238_v3  ;;  %v7042_v37 = vpop.f32.mrb[158].mxu1  ;;  %v4001_v3 = vmul.f32 %v10173_v23, %v10318_v56  ;;  %v10386_v36 = vpop.permute.xlu1 %4586 }
 0x4b0   : > { %v10356_v25 = vadd.f32 %v7042_v37, %v4249_v57  ;;  %v4401_v19 = vpop.f32.mrb[159].mxu1  ;;  %v4002_v57 = vmul.f32 %v10173_v23, %v3933_v32 }
 0x4b1   : > { %v4653_v26 = vadd.f32 %v4621_v41, %v4399_v53  ;;  %v4402_v49 = vadd.f32 %v4401_v19, %v10180_v63  ;;  %v4278_v41 = vadd.f32 %v10209_v28, %v4001_v3  ;;  %v11933_v53 = vld [vmem:[#allocation21_spill] sm:$0xff] }
 0x4b3   : > { %v4654_v18 = vadd.f32 %v4622_v46, %v4402_v49  ;;  %v10362_v10 = vadd.f32 %v7705_v7, %v4653_v26  ;;  %v4281_v26 = vadd.f32 %v10211_v38, %v4002_v57  ;;  %v3958_v49 = vpop.permute.xlu1 %3957  ;;  %v4535_v57 = vpop.permute.xlu0 %4534 }
 0x4b5   : > { %11925 = vst [vmem:[#allocation39_spill] sm:$0xff] %v10362_v10  ;;  %4729 = vadd.xlane.f32.xlu1 %v10362_v10  ;;  %v10366_v39 = vadd.f32 %v7706_v6, %v4654_v18  ;;  %v11934_v18 = vld [vmem:[#allocation14_spill] sm:$0xff] }
 0x4b7   : > { %11926 = vst [vmem:[#allocation40_spill] sm:$0xff] %v10366_v39  ;;  %4731 = vadd.xlane.f32.xlu0 %v10366_v39  ;;  %v3963_v28 = vpop.permute.xlu1 %3962 }
 0x4bd   : > { %v7045_v63 = vpop.f32.mrb[160].mxu1 }
 0x4be   : > { %v10377_v62 = vadd.f32 %v7045_v63, %v11929_v9  ;;  %v4414_v21 = vpop.f32.mrb[161].mxu1  ;;  %v4006_v63 = vmul.f32 %v10173_v23, %v3953_v42  ;;  %v11936_v9 = vld [vmem:[#allocation31_spill] sm:$0xff] }
 0x4bf   : > { %v4415_v59 = vadd.f32 %v4414_v21, %v4254_v35  ;;  %v7046_v44 = vpop.f32.mrb[162].mxu1  ;;  %v10405_v35 = vpop.permute.xlu1 %4590  ;;  %v4286_v21 = vadd.f32 %v11936_v9, %v4003_v17  ;;  %v4007_v9 = vmul.f32 %v10173_v23, %v3958_v49 }
 0x4c0   : > { %v10380_v34 = vadd.f32 %v7046_v44, %v4265_v11  ;;  %v4417_v27 = vpop.f32.mrb[163].mxu1  ;;  %v4297_v44 = vadd.f32 %v10218_v30, %v4006_v63 }
 0x4c1   : > { %v4418_v14 = vadd.f32 %v4417_v27, %v11931_v54 }
 0x4c3   : > { %v3968_v3 = vpop.permute.xlu1 %3967 }
 0x4c4   : > { %v4009_v17 = vmul.f32 %v10173_v23, %v3968_v3  ;;  %v7709_v3 = vld [vmem:[%s7992_s14 + $0x80] sm:$0xff] }
 0x4c6   : > { %4598 = vperm.xlu1 %7163, %v11932_v51   ;;  %v11937_v51 = vld [vmem:[#allocation32_spill] sm:$0xff]  ;;  %v4310_v49 = vadd.f32 %v10226_v45, %v4009_v17 }
 0x4c7   : > { %v4289_v61 = vadd.f32 %v11937_v51, %v4004_v48  ;;  %v7707_v48 = vld [vmem:[%s7992_s14 + $0x70] sm:$0xff]  ;;  %v11943_v51 = vld [vmem:[#allocation27_spill] sm:$0xff] }
 0x4cd   : > { %4602 = vperm.xlu0 %7157, %v11933_v53   ;;  %v7049_v37 = vpop.f32.mrb[164].mxu1  ;;  %v4623_v53 = vmul.f32 %v10236_v24, %v4535_v57 }
 0x4ce   : > { %v10391_v19 = vadd.f32 %v7049_v37, %v4278_v41  ;;  %v4430_v46 = vpop.f32.mrb[165].mxu1 }
 0x4cf   : > { %v10395_v7 = vadd.f32 %v4430_v46, %v11934_v18  ;;  %v7050_v6 = vpop.f32.mrb[166].mxu1  ;;  %v4655_v30 = vadd.f32 %v4623_v53, %v10351_v29  ;;  %v11939_v46 = vld [vmem:[#allocation24_spill] sm:$0xff]  ;;  %v4302_v53 = vadd.f32 %v10222_v52, %v4007_v9 }
 0x4d0   : > { %v10397_v56 = vadd.f32 %v7050_v6, %v4281_v26  ;;  %v4433_v15 = vpop.f32.mrb[167].mxu1  ;;  %v4625_v26 = vmul.f32 %v10236_v24, %v11939_v46  ;;  %v3973_v6 = vpop.permute.xlu1 %3972 }
 0x4d1   : > { %v10400_v32 = vadd.f32 %v4433_v15, %v11935_v58  ;;  %v11940_v15 = vld [vmem:[#allocation26_spill] sm:$0xff]  ;;  %v4010_v29 = vmul.f32 %v10173_v23, %v3973_v6 }
 0x4d2   : > { %v4626_v58 = vmul.f32 %v10236_v24, %v11940_v15  ;;  %v4657_v63 = vadd.f32 %v4625_v26, %v4415_v59  ;;  %v4008_v59 = vmul.f32 %v10173_v23, %v3963_v28  ;;  %v7710_v28 = vld [vmem:[%s7992_s14 + $0x88] sm:$0xff] }
 0x4d3   : > { %v11946_v26 = vld [vmem:[#allocation17_spill] sm:$0xff] }
 0x4d4   : > { %v10446_v57 = vadd.f32 %v7709_v3, %v4657_v63 }
 0x4d6   : > { %11944 = vst [vmem:[#allocation30_spill] sm:$0xff] %v10446_v57 }
 0x4dd   : > { %v7053_v38 = vpop.f32.mrb[168].mxu1 }
 0x4de   : > { %v10409_v31 = vadd.f32 %v7053_v38, %v10220_v50  ;;  %v4446_v11 = vpop.f32.mrb[169].mxu1  ;;  %v11938_v50 = vld [vmem:[#allocation22_spill] sm:$0xff]  ;;  %v10430_v38 = vadd.f32 %v7707_v48, %v4655_v30 }
 0x4df   : > { %v10412_v27 = vadd.f32 %v4446_v11, %v4286_v21  ;;  %v7054_v54 = vpop.f32.mrb[170].mxu1  ;;  %v4624_v37 = vmul.f32 %v10236_v24, %v11938_v50  ;;  %v4551_v21 = vpop.permute.xlu0 %4550 }
 0x4e0   : > { %v10415_v42 = vadd.f32 %v7054_v54, %v4297_v44  ;;  %v4449_v5 = vpop.f32.mrb[171].mxu1  ;;  %11941 = vst [vmem:[#allocation35_spill] sm:$0xff] %v10430_v38  ;;  %v4627_v11 = vmul.f32 %v10236_v24, %v4551_v21  ;;  %v4658_v44 = vadd.f32 %v4626_v58, %v4418_v14 }
 0x4e1   : > { %v10417_v41 = vadd.f32 %v4449_v5, %v4289_v61  ;;  %v4656_v18 = vadd.f32 %v4624_v37, %v10356_v25  ;;  %v7708_v25 = vld [vmem:[%s7992_s14 + $0x78] sm:$0xff]  ;;  %v4628_v61 = vmul.f32 %v10236_v24, %v11943_v51 }
 0x4e2   : > { %v4659_v5 = vadd.f32 %v4627_v11, %v10377_v62  ;;  %v4313_v62 = vadd.f32 %v10228_v22, %v4010_v29  ;;  %v10455_v30 = vadd.f32 %v7710_v28, %v4658_v44  ;;  %v7712_v22 = vld [vmem:[%s7992_s14 + $0x98] sm:$0xff]  ;;  %v7332_v29 = vld [vmem:[%s11672_s6] ss:$8 sps:$4 sm:$0xff]   ;;  %v7334_v11 = vld [vmem:[%s11672_s6 + $0x4] ss:$8 sps:$4 sm:$0xff]  }
 0x4e3   : > { %v10437_v54 = vadd.f32 %v7708_v25, %v4656_v18  ;;  %v4660_v50 = vadd.f32 %v4628_v61, %v10380_v34  ;;  %v4305_v18 = vadd.f32 %v11946_v26, %v4008_v59  ;;  %v7711_v34 = vld [vmem:[%s7992_s14 + $0x90] sm:$0xff]  ;;  %v4563_v63 = vpop.permute.xlu0 %4562  ;;  %5349 = vmatprep.subr.bf16.mxu1 %v7334_v11  ;;  %v4629_v61 = vmul.f32 %v10236_v24, %v10307_v33 }
 0x4e4   : > { %11945 = vst [vmem:[#allocation29_spill] sm:$0xff] %v10455_v30  ;;  %v10464_v15 = vadd.f32 %v7711_v34, %v4659_v5  ;;  %5350 = vmatpush1.bf16.msra.mxu1 %v7332_v29  ;;  %v4631_v34 = vmul.f32 %v10236_v24, %v10347_v55 }
 0x4e5   : > { %11942 = vst [vmem:[#allocation34_spill] sm:$0xff] %v10437_v54  ;;  %v10470_v17 = vadd.f32 %v7712_v22, %v4660_v50 }
 0x4e6   : > { %11947 = vst [vmem:[#allocation28_spill] sm:$0xff] %v10464_v15  ;;  %v4663_v29 = vadd.f32 %v4631_v34, %v10391_v19 }
 0x4e7   : > { %11948 = vst [vmem:[#allocation20_spill] sm:$0xff] %v10470_v17  ;;  %v4571_v48 = vpop.permute.xlu0 %4570 }
 0x4ea   : > { %4733 = vadd.xlane.f32.xlu1 %v10430_v38 }
 0x4eb   : > { %v4575_v9 = vpop.permute.xlu0 %4574 }
 0x4ec   : > { %4735 = vadd.xlane.f32.xlu0 %v10437_v54 }
 0x4ed   : > { %v7057_v14 = vpop.f32.mrb[172].mxu1 }
 0x4ee   : > { %v10450_v37 = vadd.f32 %v7057_v14, %v4310_v49  ;;  %4737 = vadd.xlane.f32.xlu1 %v10446_v57  ;;  %v4462_v23 = vpop.f32.mrb[173].mxu1  ;;  %v4661_v14 = vadd.f32 %v4629_v61, %v10395_v7 }
 0x4ef   : > { %v10457_v45 = vadd.f32 %v4462_v23, %v4302_v53  ;;  %v7058_v46 = vpop.f32.mrb[174].mxu1  ;;  %v10473_v21 = vpop.permute.xlu0 %4582 }
 0x4f0   : > { %v10460_v6 = vadd.f32 %v7058_v46, %v4313_v62  ;;  %4739 = vadd.xlane.f32.xlu0 %v10455_v30  ;;  %v4465_v52 = vpop.f32.mrb[175].mxu1  ;;  %v4630_v62 = vmul.f32 %v10236_v24, %v4563_v63 }
 0x4f1   : > { %v10466_v58 = vadd.f32 %v4465_v52, %v4305_v18  ;;  %v7713_v18 = vld [vmem:[%s7992_s14 + $0xa0] sm:$0xff] }
 0x4f2   : > { %4741 = vadd.xlane.f32.xlu1 %v10464_v15  ;;  %v4662_v28 = vadd.f32 %v4630_v62, %v10400_v32  ;;  %v10513_v52 = vadd.f32 %v7713_v18, %v4661_v14  ;;  %v7714_v32 = vld [vmem:[%s7992_s14 + $0xa8] sm:$0xff] }
 0x4f3   : > { %v10481_v44 = vpop.permute.xlu0 %4594 }
 0x4f4   : > { %4743 = vadd.xlane.f32.xlu0 %v10470_v17  ;;  %11949 = vst [vmem:[#allocation21_spill] sm:$0xff] %v10513_v52  ;;  %v10519_v22 = vadd.f32 %v7714_v32, %v4662_v28  ;;  %v7716_v28 = vld [vmem:[%s7992_s14 + $0xb8] sm:$0xff] }
 0x4f6   : > { %11950 = vst [vmem:[#allocation14_spill] sm:$0xff] %v10519_v22 }
 0x511   : > { %v4710_v25 = vpop.xlane.xlu1 %4709 }
 0x512   : > { %v4706_v59 = vpop.xlane.xlu0 %4705  ;;  %v10494_v53 = vmul.f32 0.015625, %v4710_v25  ;;  %v4632_v25 = vmul.f32 %v10236_v24, %v4571_v48 }
 0x513   : > { %v10483_v51 = vmul.f32 0.015625, %v4706_v59 }
 0x514   : > { %v10510_v26 = vsub.f32 %v10254_v60, %v10494_v53  ;;  %v4664_v59 = vadd.f32 %v4632_v25, %v10397_v56  ;;  %v7357_v60 = vld [vmem:[#allocation2] sm:$0xff]  }
 0x515   : > { %v10489_v5 = vsub.f32 %v10257_v13, %v10483_v51  ;;  %v4708_v49 = vpop.xlane.xlu1 %4707 }
 0x516   : > { %v10491_v3 = vmul.f32 0.015625, %v4708_v49  ;;  %v4712_v50 = vpop.xlane.xlu0 %4711  ;;  %v4835_v11 = vmul.f32 %v10510_v26, %v10510_v26 }
 0x517   : > { %v4833_v23 = vmul.f32 %v10489_v5, %v10489_v5  ;;  %v10504_v46 = vmul.f32 0.015625, %v4712_v50  ;;  %v7715_v50 = vld [vmem:[%s7992_s14 + $0xb0] sm:$0xff] }
 0x518   : > { %v10501_v33 = vsub.f32 %v10262_v40, %v10491_v3  ;;  %v10536_v19 = vadd.f32 %v7715_v50, %v4663_v29  ;;  %v4634_v29 = vmul.f32 %v10236_v24, %v10373_v16 }
 0x519   : > { %4865 = vadd.xlane.f32.xlu1 %v4833_v23  ;;  %v10523_v63 = vsub.f32 %v10265_v2, %v10504_v46  ;;  %v4633_v23 = vmul.f32 %v10236_v24, %v4575_v9  ;;  %v7356_v2 = vld [vmem:[#allocation2 + $0x40] sm:$0xff]  }
 0x51a   : > { %v4834_v7 = vmul.f32 %v10501_v33, %v10501_v33  ;;  %11951 = vst [vmem:[#allocation12_spill] sm:$0xff] %v10536_v19  ;;  %v4666_v25 = vadd.f32 %v4634_v29, %v10417_v41  ;;  %v7718_v41 = vld [vmem:[%s7992_s14 + $0xc8] sm:$0xff]  ;;  %6899 = vmatprep.subr.bf16.mxu0 %v7356_v2 }
 0x51b   : > { %v4836_v49 = vmul.f32 %v10523_v63, %v10523_v63  ;;  %v4665_v18 = vadd.f32 %v4633_v23, %v10412_v27  ;;  %6900 = vmatpush3.bf16.msra.mxu0 %v7357_v60 }
 0x51c   : > { %4867 = vadd.xlane.f32.xlu0 %v4834_v7  ;;  %v10547_v7 = vadd.f32 %v7716_v28, %v4664_v59  ;;  %v10577_v50 = vadd.f32 %v7718_v41, %v4666_v25  ;;  %v7719_v25 = vld [vmem:[%s7992_s14 + $0xd0] sm:$0xff] }
 0x51d   : > { %4745 = vadd.xlane.f32.xlu1 %v10513_v52 }
 0x51e   : > { %11952 = vst [vmem:[#allocation31_spill] sm:$0xff] %v10547_v7  ;;  %11953 = vst [vmem:[#allocation32_spill] sm:$0xff] %v10577_v50 }
 0x520   : > { %4747 = vadd.xlane.f32.xlu0 %v10519_v22 }
 0x521   : > { %v4718_v55 = vpop.xlane.xlu0 %4717  ;;  %4869 = vadd.xlane.f32.xlu1 %v4835_v11 }
 0x522   : > { %v4714_v61 = vpop.xlane.xlu1 %4713  ;;  %v10550_v34 = vmul.f32 0.015625, %v4718_v55 }
 0x523   : > { %v10533_v14 = vmul.f32 0.015625, %v4714_v61  ;;  %v7717_v61 = vld [vmem:[%s7992_s14 + $0xc0] sm:$0xff] }
 0x524   : > { %4871 = vadd.xlane.f32.xlu0 %v4836_v49  ;;  %v10568_v59 = vsub.f32 %v10289_v12, %v10550_v34  ;;  %v10571_v16 = vadd.f32 %v7717_v61, %v4665_v18  ;;  %v4635_v49 = vmul.f32 %v10236_v24, %v10473_v21  ;;  %v4636_v18 = vmul.f32 %v10236_v24, %v10386_v36  ;;  %v7720_v36 = vld [vmem:[%s7992_s14 + $0xd8] sm:$0xff] }
 0x525   : > { %v10541_v48 = vsub.f32 %v10292_v43, %v10533_v14  ;;  %v4716_v62 = vpop.xlane.xlu0 %4715  ;;  %4749 = vadd.xlane.f32.xlu1 %v10536_v19 }
 0x526   : > { %v10544_v56 = vmul.f32 0.015625, %v4716_v62  ;;  %v4720_v32 = vpop.xlane.xlu1 %4719  ;;  %v4667_v62 = vadd.f32 %v4635_v49, %v10409_v31  ;;  %v4839_v28 = vmul.f32 %v10568_v59, %v10568_v59 }
 0x527   : > { %v4837_v9 = vmul.f32 %v10541_v48, %v10541_v48  ;;  %v10562_v27 = vmul.f32 0.015625, %v4720_v32  ;;  %v4668_v32 = vadd.f32 %v4636_v18, %v10415_v42  ;;  %v4637_v42 = vmul.f32 %v10236_v24, %v10405_v35 }
 0x528   : > { %4751 = vadd.xlane.f32.xlu0 %v10547_v7  ;;  %v10559_v11 = vsub.f32 %v10297_v4, %v10544_v56 }
 0x529   : > { %4873 = vadd.xlane.f32.xlu1 %v4837_v9  ;;  %v10581_v23 = vsub.f32 %v10300_v8, %v10562_v27  ;;  %v10599_v49 = vadd.f32 %v7720_v36, %v4668_v32 }
 0x52a   : > { %v4838_v55 = vmul.f32 %v10559_v11, %v10559_v11 }
 0x52b   : > { %v4840_v9 = vmul.f32 %v10581_v23, %v10581_v23  ;;  %11954 = vst [vmem:[#allocation22_spill] sm:$0xff] %v10599_v49 }
 0x52c   : > { %4875 = vadd.xlane.f32.xlu0 %v4838_v55  ;;  %v10593_v55 = vadd.f32 %v7719_v25, %v4667_v62  ;;  %v4638_v62 = vmul.f32 %v10236_v24, %v10481_v44  ;;  %v7337_v44 = vld [vmem:[%s11672_s6 + $0x14] ss:$8 sps:$4 sm:$0xff]  }
 0x52d   : > { %4753 = vadd.xlane.f32.xlu1 %v10571_v16  ;;  %5351 = vmatprep.subr.bf16.mxu1 %v7337_v44 }
 0x530   : > { %4755 = vadd.xlane.f32.xlu0 %v10577_v50 }
 0x531   : > { %v4726_v21 = vpop.xlane.xlu1 %4725  ;;  %4877 = vadd.xlane.f32.xlu1 %v4839_v28 }
 0x532   : > { %v10613_v32 = vmul.f32 0.015625, %v4726_v21 }
 0x533   : > { %v4728_v29 = vpop.xlane.xlu0 %4727 }
 0x534   : > { %4879 = vadd.xlane.f32.xlu0 %v4840_v9  ;;  %v4669_v9 = vadd.f32 %v4637_v42, %v10457_v45  ;;  %v4670_v45 = vadd.f32 %v4638_v62, %v10466_v58  ;;  %v10628_v21 = vmul.f32 0.015625, %v4728_v29  ;;  %v7340_v42 = vld [vmem:[%s11672_s6 + $0x24] ss:$8 sps:$4 sm:$0xff]   ;;  %v7343_v62 = vld [vmem:[%s11672_s6 + $0x34] ss:$8 sps:$4 sm:$0xff]  }
 0x535   : > { %v4722_v31 = vpop.xlane.xlu1 %4721  ;;  %4757 = vadd.xlane.f32.xlu1 %v10593_v55  ;;  %v7721_v58 = vld [vmem:[%s7992_s14 + $0xe0] sm:$0xff] }
 0x536   : > { %v10596_v61 = vmul.f32 0.015625, %v4722_v31  ;;  %v7335_v31 = vld [vmem:[%s11672_s6 + $0x10] ss:$8 sps:$4 sm:$0xff]   ;;  %v10643_v29 = vadd.f32 %v7721_v58, %v4669_v9  ;;  %v10654_v44 = vsub.f32 %v10332_v0, %v10628_v21 }
 0x537   : > { %v4724_v41 = vpop.xlane.xlu0 %4723  ;;  %5352 = vmatpush1.bf16.msra.mxu1 %v7335_v31  ;;  %v7341_v9 = vld [vmem:[%s11672_s6 + $0x30] ss:$8 sps:$4 sm:$0xff]  }
 0x538   : > { %v10605_v28 = vsub.f32 %v10336_v20, %v10596_v61  ;;  %v10607_v18 = vmul.f32 0.015625, %v4724_v41  ;;  %4759 = vadd.xlane.f32.xlu0 %v10599_v49  ;;  %v7338_v41 = vld [vmem:[%s11672_s6 + $0x20] ss:$8 sps:$4 sm:$0xff]   ;;  %5353 = vmatprep.subr.bf16.mxu1 %v7340_v42  ;;  %v4844_v58 = vmul.f32 %v10654_v44, %v10654_v44 }
 0x53a   : > { %v4841_v25 = vmul.f32 %v10605_v28, %v10605_v28  ;;  %v10619_v35 = vsub.f32 %v10340_v47, %v10607_v18  ;;  %v10640_v47 = vsub.f32 %v10328_v1, %v10613_v32 }
 0x53b   : > { %5354 = vmatpush1.bf16.msra.mxu1 %v7338_v41  ;;  %v7344_v41 = vld [vmem:[%s11672_s6 + $0x40] ss:$8 sps:$4 sm:$0xff]  }
 0x53c   : > { %4881 = vadd.xlane.f32.xlu1 %v4841_v25  ;;  %v4842_v36 = vmul.f32 %v10619_v35, %v10619_v35  ;;  %v7722_v25 = vld [vmem:[%s7992_s14 + $0xe8] sm:$0xff]  ;;  %v4843_v42 = vmul.f32 %v10640_v47, %v10640_v47  ;;  %5355 = vmatprep.subr.bf16.mxu1 %v7343_v62  ;;  %v7349_v62 = vld [vmem:[%s11672_s6 + $0x54] ss:$8 sps:$4 sm:$0xff]  }
 0x53d   : > { %v10650_v31 = vadd.f32 %v7722_v25, %v4670_v45  ;;  %v7346_v45 = vld [vmem:[%s11672_s6 + $0x44] ss:$8 sps:$4 sm:$0xff]  }
 0x53e   : > { %4883 = vadd.xlane.f32.xlu0 %v4842_v36 }
 0x53f   : > { %5356 = vmatpush1.bf16.msra.mxu1 %v7341_v9  ;;  %v7347_v9 = vld [vmem:[%s11672_s6 + $0x50] ss:$8 sps:$4 sm:$0xff]  }
 0x540   : > { %4761 = vadd.xlane.f32.xlu1 %v10643_v29  ;;  %5357 = vmatprep.subr.bf16.mxu1 %v7346_v45  ;;  %v7352_v45 = vld [vmem:[%s11672_s6 + $0x64] ss:$8 sps:$4 sm:$0xff]  }
 0x542   : > { %v4730_v36 = vpop.xlane.xlu1 %4729  ;;  %4763 = vadd.xlane.f32.xlu0 %v10650_v31 }
 0x543   : > { %v10673_v0 = vmul.f32 0.015625, %v4730_v36  ;;  %5358 = vmatpush1.bf16.msra.mxu1 %v7344_v41 }
 0x544   : > { %4885 = vadd.xlane.f32.xlu1 %v4843_v42  ;;  %v4732_v1 = vpop.xlane.xlu0 %4731  ;;  %5359 = vmatprep.subr.bf16.mxu1 %v7349_v62  ;;  %v7350_v62 = vld [vmem:[%s11672_s6 + $0x60] ss:$8 sps:$4 sm:$0xff]  }
 0x545   : > { %v10685_v36 = vsub.f32 %v10362_v10, %v10673_v0 }
 0x546   : > { %v4599_v25 = vpop.permute.xlu1 %4598  ;;  %4887 = vadd.xlane.f32.xlu0 %v4844_v58  ;;  %v7723_v58 = vld [vmem:[%s7992_s14 + $0xf0] sm:$0xff] }
 0x547   : > { %v4639_v42 = vmul.f32 %v10236_v24, %v4599_v25  ;;  %5360 = vmatpush1.bf16.msra.mxu1 %v7347_v9  ;;  %v7353_v9 = vld [vmem:[%s11672_s6 + $0x70] ss:$8 sps:$4 sm:$0xff]  }
 0x548   : > { %5361 = vmatprep.subr.bf16.mxu1 %v7352_v45 }
 0x549   : > { %v4671_v20 = vadd.f32 %v4639_v42, %v10450_v37  ;;  %v10690_v37 = vmul.f32 0.015625, %v4732_v1  ;;  %v7355_v42 = vld [vmem:[%s11672_s6 + $0x74] ss:$8 sps:$4 sm:$0xff]   ;;  %v4845_v1 = vmul.f32 %v10685_v36, %v10685_v36 }
 0x54b   : > { %v10688_v25 = vadd.f32 %v7723_v58, %v4671_v20  ;;  %v7724_v58 = vld [vmem:[%s7992_s14 + $0xf8] sm:$0xff]  ;;  %5362 = vmatpush1.bf16.msra.mxu1 %v7350_v62 }
 0x54c   : > { %v4603_v8 = vpop.permute.xlu0 %4602  ;;  %5363 = vmatprep.subr.bf16.mxu1 %v7355_v42 }
 0x54d   : > { %v4640_v41 = vmul.f32 %v10236_v24, %v4603_v8  ;;  %4765 = vadd.xlane.f32.xlu1 %v10688_v25  ;;  %v10708_v8 = vsub.f32 %v10366_v39, %v10690_v37 }
 0x54f   : > { %v4672_v20 = vadd.f32 %v4640_v41, %v10460_v6  ;;  %v4846_v6 = vmul.f32 %v10708_v8, %v10708_v8  ;;  %5364 = vmatpush1.bf16.msra.mxu1 %v7353_v9 }
 0x551   : > { %4889 = vadd.xlane.f32.xlu1 %v4845_v1  ;;  %v10704_v24 = vadd.f32 %v7724_v58, %v4672_v20 }
 0x553   : > { %4767 = vadd.xlane.f32.xlu0 %v10704_v24 }
 0x557   : > { %4891 = vadd.xlane.f32.xlu0 %v4846_v6 }
 0x577   : > { %v4734_v45 = vpop.xlane.xlu1 %4733 }
 0x578   : > { %v10716_v41 = vmul.f32 0.015625, %v4734_v45 }
 0x579   : > { %v4736_v20 = vpop.xlane.xlu0 %4735 }
 0x57a   : > { %v10720_v1 = vsub.f32 %v10430_v38, %v10716_v41  ;;  %v10722_v62 = vmul.f32 0.015625, %v4736_v20 }
 0x57b   : > { %v4738_v58 = vpop.xlane.xlu1 %4737 }
 0x57c   : > { %v10724_v39 = vmul.f32 0.015625, %v4738_v58  ;;  %v4847_v42 = vmul.f32 %v10720_v1, %v10720_v1  ;;  %v10730_v9 = vsub.f32 %v10437_v54, %v10722_v62 }
 0x57d   : > { %v4740_v6 = vpop.xlane.xlu0 %4739 }
 0x57e   : > { %v10734_v45 = vsub.f32 %v10446_v57, %v10724_v39  ;;  %v10736_v10 = vmul.f32 0.015625, %v4740_v6  ;;  %4893 = vadd.xlane.f32.xlu1 %v4847_v42  ;;  %v4848_v20 = vmul.f32 %v10730_v9, %v10730_v9 }
 0x57f   : > { %v4742_v58 = vpop.xlane.xlu1 %4741 }
 0x580   : > { %11955 = vst [vmem:[#allocation24_spill] sm:$0xff] %v10734_v45  ;;  %v10740_v38 = vmul.f32 0.015625, %v4742_v58  ;;  %4895 = vadd.xlane.f32.xlu0 %v4848_v20  ;;  %v4849_v12 = vmul.f32 %v10734_v45, %v10734_v45  ;;  %v10746_v54 = vsub.f32 %v10455_v30, %v10736_v10 }
 0x581   : > { %v4744_v4 = vpop.xlane.xlu0 %4743 }
 0x582   : > { %11956 = vst [vmem:[#allocation26_spill] sm:$0xff] %v10746_v54  ;;  %v10750_v6 = vsub.f32 %v10464_v15, %v10740_v38  ;;  %v10752_v42 = vmul.f32 0.015625, %v4744_v4  ;;  %4897 = vadd.xlane.f32.xlu1 %v4849_v12  ;;  %v4850_v58 = vmul.f32 %v10746_v54, %v10746_v54  ;;  %v4929_v4 = vmul.f32 64.0, %v10483_v51 }
 0x583   : > { %v4930_v12 = vmul.f32 64.0, %v10491_v3 }
 0x584   : > { %11957 = vst [vmem:[#allocation27_spill] sm:$0xff] %v10750_v6  ;;  %4899 = vadd.xlane.f32.xlu0 %v4850_v58  ;;  %v4851_v20 = vmul.f32 %v10750_v6, %v10750_v6  ;;  %v10760_v57 = vsub.f32 %v10470_v17, %v10752_v42  ;;  %v4961_v15 = vmul.f32 %v4929_v4, %v10483_v51  ;;  %v4932_v51 = vmul.f32 64.0, %v10504_v46 }
 0x585   : > { %v4962_v40 = vmul.f32 %v4930_v12, %v10491_v3 }
 0x586   : > { %11958 = vst [vmem:[#allocation17_spill] sm:$0xff] %v10760_v57  ;;  %4901 = vadd.xlane.f32.xlu1 %v4851_v20  ;;  %v4852_v30 = vmul.f32 %v10760_v57, %v10760_v57  ;;  %v4931_v20 = vmul.f32 64.0, %v10494_v53 }
 0x588   : > { %4903 = vadd.xlane.f32.xlu0 %v4852_v30  ;;  %v4963_v3 = vmul.f32 %v4931_v20, %v10494_v53  ;;  %v4933_v53 = vmul.f32 64.0, %v10533_v14 }
 0x5a6   : > { %v4866_v43 = vpop.xlane.xlu1 %4865 }
 0x5a7   : > { %v4993_v58 = vsub.f32 %v4866_v43, %v4961_v15 }
 0x5a9   : > { %v5025_v13 = vmul.f32 0.015625, %v4993_v58  ;;  %v4868_v17 = vpop.xlane.xlu0 %4867 }
 0x5aa   : > { %v4994_v6 = vsub.f32 %v4868_v17, %v4962_v40  ;;  %v4746_v57 = vpop.xlane.xlu1 %4745 }
 0x5ab   : > { %v5057_v30 = vadd.f32 1e-05, %v5025_v13  ;;  %v10769_v54 = vmul.f32 0.015625, %v4746_v57  ;;  %v4964_v57 = vmul.f32 %v4932_v51, %v10504_v46 }
 0x5ac   : > { %v5026_v45 = vmul.f32 0.015625, %v4994_v6 }
 0x5ad   : > { %7500 = vrsqrt.f32 %v5057_v30  ;;  %v10774_v43 = vsub.f32 %v10513_v52, %v10769_v54  ;;  %v4748_v15 = vpop.xlane.xlu0 %4747  ;;  %v11960_v30 = vld [vmem:[#allocation8_spill] sm:$0xff] }
 0x5ae   : > { %v5058_v4 = vadd.f32 1e-05, %v5026_v45  ;;  %v10777_v12 = vmul.f32 0.015625, %v4748_v15  ;;  %v4870_v40 = vpop.xlane.xlu1 %4869  ;;  %v5155_v15 = vsub.s32 5, %v11960_v30 }
 0x5af   : > { %v4995_v2 = vsub.f32 %v4870_v40, %v4963_v3  ;;  %v4853_v60 = vmul.f32 %v10774_v43, %v10774_v43 }
 0x5b0   : > { %7502 = vrsqrt.f32 %v5058_v4  ;;  %v10783_v13 = vsub.f32 %v10519_v22, %v10777_v12  ;;  %v4934_v22 = vmul.f32 64.0, %v10544_v56 }
 0x5b1   : > { %v5027_v17 = vmul.f32 0.015625, %v4995_v2  ;;  %v4872_v6 = vpop.xlane.xlu0 %4871  ;;  %4905 = vadd.xlane.f32.xlu1 %v4853_v60  ;;  %v4965_v2 = vmul.f32 %v4933_v53, %v10533_v14 }
 0x5b2   : > { %11959 = vst [vmem:[#allocation41_spill] sm:$0xff] %v10783_v13  ;;  %v4996_v45 = vsub.f32 %v4872_v6, %v4964_v57  ;;  %v4750_v58 = vpop.xlane.xlu1 %4749  ;;  %v4854_v20 = vmul.f32 %v10783_v13, %v10783_v13  ;;  %v4966_v53 = vmul.f32 %v4934_v22, %v10544_v56 }
 0x5b3   : > { %v5059_v3 = vadd.f32 1e-05, %v5027_v17  ;;  %v10790_v4 = vmul.f32 0.015625, %v4750_v58  ;;  %v5191_v17 = vsub.s32 6, %v11960_v30  ;;  %v4935_v30 = vmul.f32 64.0, %v10550_v34 }
 0x5b4   : > { %v5028_v40 = vmul.f32 0.015625, %v4996_v45  ;;  %4907 = vadd.xlane.f32.xlu0 %v4854_v20  ;;  %v7725_v45 = vld [vmem:[%s11671_s5] sm:$0xff] }
 0x5b5   : > { %7504 = vrsqrt.f32 %v5059_v3  ;;  %v10795_v46 = vsub.f32 %v10536_v19, %v10790_v4  ;;  %v4752_v51 = vpop.xlane.xlu0 %4751  ;;  %v10804_v20 = vrot.slane %v7725_v45, %v5155_v15 }
 0x5b6   : > { %v5060_v60 = vadd.f32 1e-05, %v5028_v40  ;;  %v10798_v57 = vmul.f32 0.015625, %v4752_v51  ;;  %v4874_v6 = vpop.xlane.xlu1 %4873 }
 0x5b7   : > { %11961 = vst [vmem:[#allocation42_spill] sm:$0xff] %v10795_v46  ;;  %v7501_v58 = vpop.eup %7500  ;;  %v4997_v3 = vsub.f32 %v4874_v6, %v4965_v2  ;;  %v4855_v19 = vmul.f32 %v10795_v46, %v10795_v46  ;;  %v10817_v46 = vrot.slane %v7725_v45, %v5191_v17  ;;  %v4967_v45 = vmul.f32 %v4935_v30, %v10550_v34 }
 0x5b8   : > { %v5121_v52 = vmul.f32 %v7501_v58, %v10489_v5  ;;  %7506 = vrsqrt.f32 %v5060_v60  ;;  %v10811_v14 = vsub.f32 %v10547_v7, %v10798_v57 }
 0x5b9   : > { %v5029_v40 = vmul.f32 0.015625, %v4997_v3  ;;  %v4876_v51 = vpop.xlane.xlu0 %4875  ;;  %4909 = vadd.xlane.f32.xlu1 %v4855_v19  ;;  %v4936_v19 = vmul.f32 64.0, %v10562_v27 }
 0x5ba   : > { %v7503_v15 = vpop.eup %7502  ;;  %v4998_v13 = vsub.f32 %v4876_v51, %v4966_v53  ;;  %v4754_v2 = vpop.xlane.xlu1 %4753  ;;  %v4856_v6 = vmul.f32 %v10811_v14, %v10811_v14  ;;  %v5157_v5 = vmul.f32 %v10804_v20, %v5121_v52 }
 0x5bb   : > { %v5122_v60 = vmul.f32 %v7503_v15, %v10501_v33  ;;  %v5061_v58 = vadd.f32 1e-05, %v5029_v40  ;;  %v10821_v7 = vmul.f32 0.015625, %v4754_v2  ;;  %v4968_v34 = vmul.f32 %v4936_v19, %v10562_v27 }
 0x5bc   : > { %v5030_v22 = vmul.f32 0.015625, %v4998_v13  ;;  %4911 = vadd.xlane.f32.xlu0 %v4856_v6  ;;  %v5193_v15 = vadd.f32 %v10817_v46, %v5157_v5 }
 0x5bd   : > { %v5158_v56 = vmul.f32 %v10804_v20, %v5122_v60  ;;  %7508 = vrsqrt.f32 %v5061_v58  ;;  %v10827_v3 = vsub.f32 %v10571_v16, %v10821_v7  ;;  %v4756_v17 = vpop.xlane.xlu0 %4755 }
 0x5be   : > { %v5062_v52 = vadd.f32 1e-05, %v5030_v22  ;;  %v10830_v53 = vmul.f32 0.015625, %v4756_v17  ;;  %v4878_v33 = vpop.xlane.xlu1 %4877 }
 0x5bf   : > { %v7505_v40 = vpop.eup %7504  ;;  %v4999_v51 = vsub.f32 %v4878_v33, %v4967_v45  ;;  %v4857_v13 = vmul.f32 %v10827_v3, %v10827_v3  ;;  %v5194_v2 = vadd.f32 %v10817_v46, %v5158_v56 }
 0x5c0   : > { %7510 = vrsqrt.f32 %v5062_v52  ;;  %v10838_v6 = vsub.f32 %v10577_v50, %v10830_v53  ;;  %v5123_v30 = vmul.f32 %v7505_v40, %v10510_v26  ;;  %v4937_v26 = vmul.f32 64.0, %v10596_v61 }
 0x5c1   : > { %v5031_v60 = vmul.f32 0.015625, %v4999_v51  ;;  %v4880_v58 = vpop.xlane.xlu0 %4879  ;;  %4913 = vadd.xlane.f32.xlu1 %v4857_v13  ;;  %v5225_v22 = vpack.c.bf16 %v5194_v2, %v5193_v15  ;;  %v11962_v40 = vmov 0  }
 0x5c2   : > { %v7507_v17 = vpop.eup %7506  ;;  %v5000_v45 = vsub.f32 %v4880_v58, %v4968_v34  ;;  %v4758_v33 = vpop.xlane.xlu1 %4757  ;;  %v4858_v5 = vmul.f32 %v10838_v6, %v10838_v6  ;;  %v5159_v27 = vmul.f32 %v10804_v20, %v5123_v30 }
 0x5c3   : > { %v5063_v56 = vadd.f32 1e-05, %v5031_v60  ;;  %v10844_v52 = vmul.f32 0.015625, %v4758_v33  ;;  %5382 = vmatmul.mubr.bf16.vlgmr.msra.gmra.mrb[176].mxu1 %v5225_v22  ;;  %v5124_v50 = vmul.f32 %v7507_v17, %v10523_v63  ;;  %v4938_v63 = vmul.f32 64.0, %v10607_v18 }
 0x5c4   : > { %v5032_v19 = vmul.f32 0.015625, %v5000_v45  ;;  %4915 = vadd.xlane.f32.xlu0 %v4858_v5  ;;  %5391 = vmatprep.mubr.bf16.mxu1 %v11962_v40  ;;  %v5195_v58 = vadd.f32 %v10817_v46, %v5159_v27 }
 0x5c5   : > { %7512 = vrsqrt.f32 %v5063_v56  ;;  %v10852_v51 = vsub.f32 %v10593_v55, %v10844_v52  ;;  %v4760_v13 = vpop.xlane.xlu0 %4759  ;;  %v5160_v15 = vmul.f32 %v10804_v20, %v5124_v50  ;;  %v4969_v50 = vmul.f32 %v4937_v26, %v10596_v61 }
 0x5c6   : > { %v5064_v2 = vadd.f32 1e-05, %v5032_v19  ;;  %v10855_v34 = vmul.f32 0.015625, %v4760_v13  ;;  %v4970_v13 = vmul.f32 %v4938_v63, %v10607_v18  ;;  %v4940_v18 = vmul.f32 64.0, %v10628_v21 }
 0x5c7   : > { %v7509_v30 = vpop.eup %7508  ;;  %v4859_v60 = vmul.f32 %v10852_v51, %v10852_v51  ;;  %v5196_v22 = vadd.f32 %v10817_v46, %v5160_v15 }
 0x5c8   : > { %7514 = vrsqrt.f32 %v5064_v2  ;;  %v10864_v17 = vsub.f32 %v10599_v49, %v10855_v34  ;;  %v5125_v45 = vmul.f32 %v7509_v30, %v10541_v48  ;;  %v4939_v2 = vmul.f32 64.0, %v10613_v32 }
 0x5c9   : > { %v4882_v33 = vpop.xlane.xlu1 %4881  ;;  %4917 = vadd.xlane.f32.xlu1 %v4859_v60  ;;  %v5226_v5 = vpack.c.bf16 %v5196_v22, %v5195_v58 }
 0x5ca   : > { %v7511_v56 = vpop.eup %7510  ;;  %v5001_v19 = vsub.f32 %v4882_v33, %v4969_v50  ;;  %v4860_v27 = vmul.f32 %v10864_v17, %v10864_v17  ;;  %v5161_v61 = vmul.f32 %v10804_v20, %v5125_v45 }
 0x5cb   : > { %v4884_v15 = vpop.xlane.xlu0 %4883  ;;  %5392 = vmatmul.mubr.bf16.gmra.mrb[180].mxu1 %v5226_v5  ;;  %v5126_v49 = vmul.f32 %v7511_v56, %v10559_v11  ;;  %v4971_v11 = vmul.f32 %v4939_v2, %v10613_v32 }
 0x5cc   : > { %v5033_v26 = vmul.f32 0.015625, %v5001_v19  ;;  %v5002_v48 = vsub.f32 %v4884_v15, %v4970_v13  ;;  %4919 = vadd.xlane.f32.xlu0 %v4860_v27  ;;  %5401 = vmatprep.mubr.bf16.mxu1 %v11962_v40  ;;  %v5197_v45 = vadd.f32 %v10817_v46, %v5161_v61  ;;  %v7358_v13 = vld [vmem:[#allocation2 + $0x48] sm:$0xff]  }
 0x5cd   : > { %v4762_v30 = vpop.xlane.xlu1 %4761  ;;  %v5162_v60 = vmul.f32 %v10804_v20, %v5126_v49  ;;  %v7359_v27 = vld [vmem:[#allocation2 + $0x8] sm:$0xff]   ;;  %6901 = vmatprep.subr.bf16.mxu0 %v7358_v13 }
 0x5ce   : > { %v5065_v63 = vadd.f32 1e-05, %v5033_v26  ;;  %v5034_v58 = vmul.f32 0.015625, %v5002_v48  ;;  %v10877_v22 = vmul.f32 0.015625, %v4762_v30  ;;  %v4972_v48 = vmul.f32 %v4940_v18, %v10628_v21  ;;  %6902 = vmatpush3.bf16.msra.mxu0 %v7359_v27 }
 0x5cf   : > { %v7513_v50 = vpop.eup %7512  ;;  %v4764_v33 = vpop.xlane.xlu0 %4763  ;;  %v5198_v5 = vadd.f32 %v10817_v46, %v5162_v60  ;;  %v4941_v27 = vmul.f32 64.0, %v10673_v0 }
 0x5d0   : > { %7516 = vrsqrt.f32 %v5065_v63  ;;  %v5066_v56 = vadd.f32 1e-05, %v5034_v58  ;;  %v10884_v19 = vsub.f32 %v10643_v29, %v10877_v22  ;;  %v10886_v49 = vmul.f32 0.015625, %v4764_v33 }
 0x5d1   : > { %v4886_v15 = vpop.xlane.xlu1 %4885  ;;  %v5227_v26 = vpack.c.bf16 %v5198_v5, %v5197_v45  ;;  %v5127_v32 = vmul.f32 %v7513_v50, %v10568_v59 }
 0x5d2   : > { %v7515_v2 = vpop.eup %7514  ;;  %7518 = vrsqrt.f32 %v5066_v56  ;;  %v10892_v61 = vsub.f32 %v10650_v31, %v10886_v49  ;;  %v5003_v30 = vsub.f32 %v4886_v15, %v4971_v11  ;;  %v4861_v60 = vmul.f32 %v10884_v19, %v10884_v19 }
 0x5d3   : > { %5402 = vmatmul.mubr.bf16.gmra.mrb[184].mxu1 %v5227_v26  ;;  %v4888_v63 = vpop.xlane.xlu0 %4887  ;;  %v5128_v58 = vmul.f32 %v7515_v2, %v10581_v23  ;;  %v5163_v33 = vmul.f32 %v10804_v20, %v5127_v32 }
 0x5d4   : > { %v5035_v21 = vmul.f32 0.015625, %v5003_v30  ;;  %v5004_v59 = vsub.f32 %v4888_v63, %v4972_v48  ;;  %4921 = vadd.xlane.f32.xlu1 %v4861_v60  ;;  %v4862_v18 = vmul.f32 %v10892_v61, %v10892_v61  ;;  %5411 = vmatprep.mubr.bf16.mxu1 %v11962_v40  ;;  %v4973_v60 = vmul.f32 %v4941_v27, %v10673_v0 }
 0x5d5   : > { %v5164_v50 = vmul.f32 %v10804_v20, %v5128_v58  ;;  %v5199_v5 = vadd.f32 %v10817_v46, %v5163_v33 }
 0x5d6   : > { %v5067_v11 = vadd.f32 1e-05, %v5035_v21  ;;  %v5036_v45 = vmul.f32 0.015625, %v5004_v59  ;;  %4923 = vadd.xlane.f32.xlu0 %v4862_v18  ;;  %v4942_v21 = vmul.f32 64.0, %v10690_v37 }
 0x5d7   : > { %v5200_v23 = vadd.f32 %v10817_v46, %v5164_v50 }
 0x5d8   : > { %7520 = vrsqrt.f32 %v5067_v11  ;;  %v5068_v56 = vadd.f32 1e-05, %v5036_v45 }
 0x5d9   : > { %v5228_v13 = vpack.c.bf16 %v5200_v23, %v5199_v5  ;;  %v4974_v23 = vmul.f32 %v4942_v21, %v10690_v37 }
 0x5da   : > { %v7517_v15 = vpop.eup %7516  ;;  %7522 = vrsqrt.f32 %v5068_v56  ;;  %v4766_v26 = vpop.xlane.xlu1 %4765 }
 0x5db   : > { %v10905_v48 = vmul.f32 0.015625, %v4766_v26  ;;  %5412 = vmatmul.mubr.bf16.gmra.mrb[188].mxu1 %v5228_v13  ;;  %v5129_v32 = vmul.f32 %v7517_v15, %v10605_v28 }
 0x5dc   : > { %v7519_v2 = vpop.eup %7518  ;;  %5421 = vmatprep.mubr.bf16.mxu1 %v11962_v40 }
 0x5dd   : > { %v10911_v30 = vsub.f32 %v10688_v25, %v10905_v48  ;;  %v5130_v63 = vmul.f32 %v7519_v2, %v10619_v35  ;;  %v5165_v58 = vmul.f32 %v10804_v20, %v5129_v32 }
 0x5de   : > { %v4890_v33 = vpop.xlane.xlu1 %4889 }
 0x5df   : > { %v5005_v59 = vsub.f32 %v4890_v33, %v4973_v60  ;;  %v4863_v28 = vmul.f32 %v10911_v30, %v10911_v30  ;;  %v5166_v18 = vmul.f32 %v10804_v20, %v5130_v63  ;;  %v5201_v0 = vadd.f32 %v10817_v46, %v5165_v58 }
 0x5e0   : > { %v4768_v50 = vpop.xlane.xlu0 %4767 }
 0x5e1   : > { %v5037_v11 = vmul.f32 0.015625, %v5005_v59  ;;  %v10920_v45 = vmul.f32 0.015625, %v4768_v50  ;;  %4925 = vadd.xlane.f32.xlu1 %v4863_v28  ;;  %v5202_v35 = vadd.f32 %v10817_v46, %v5166_v18  ;;  %v7360_v18 = vld [vmem:[#allocation2 + $0x50] sm:$0xff]  }
 0x5e2   : > { %v7521_v5 = vpop.eup %7520  ;;  %v7361_v50 = vld [vmem:[#allocation2 + $0x10] sm:$0xff]   ;;  %6903 = vmatprep.subr.bf16.mxu0 %v7360_v18 }
 0x5e3   : > { %v5069_v56 = vadd.f32 1e-05, %v5037_v11  ;;  %v10927_v13 = vsub.f32 %v10704_v24, %v10920_v45  ;;  %v5229_v27 = vpack.c.bf16 %v5202_v35, %v5201_v0  ;;  %v5131_v15 = vmul.f32 %v7521_v5, %v10640_v47  ;;  %6904 = vmatpush3.bf16.msra.mxu0 %v7361_v50 }
 0x5e4   : > { %v7523_v26 = vpop.eup %7522  ;;  %v4892_v32 = vpop.xlane.xlu0 %4891 }
 0x5e5   : > { %7524 = vrsqrt.f32 %v5069_v56  ;;  %v5006_v2 = vsub.f32 %v4892_v32, %v4974_v23  ;;  %5422 = vmatmul.mubr.bf16.gmra.mrb[192].mxu1 %v5229_v27  ;;  %v4864_v60 = vmul.f32 %v10927_v13, %v10927_v13  ;;  %v5132_v63 = vmul.f32 %v7523_v26, %v10654_v44  ;;  %v7362_v26 = vld [vmem:[#allocation2 + $0x58] sm:$0xff]  }
 0x5e6   : > { %5431 = vmatprep.mubr.bf16.mxu1 %v11962_v40  ;;  %v5167_v37 = vmul.f32 %v10804_v20, %v5131_v15  ;;  %v7363_v32 = vld [vmem:[#allocation2 + $0x18] sm:$0xff]   ;;  %6905 = vmatprep.subr.bf16.mxu0 %v7362_v26 }
 0x5e7   : > { %v5038_v58 = vmul.f32 0.015625, %v5006_v2  ;;  %4927 = vadd.xlane.f32.xlu0 %v4864_v60  ;;  %v5168_v33 = vmul.f32 %v10804_v20, %v5132_v63  ;;  %6906 = vmatpush3.bf16.msra.mxu0 %v7363_v32  ;;  %v4945_v60 = vmul.f32 64.0, %v10724_v39 }
 0x5e8   : > { %v5203_v47 = vadd.f32 %v10817_v46, %v5167_v37 }
 0x5e9   : > { %v5070_v21 = vadd.f32 1e-05, %v5038_v58  ;;  %v5204_v59 = vadd.f32 %v10817_v46, %v5168_v33  ;;  %v4946_v33 = vmul.f32 64.0, %v10736_v10  ;;  %v4977_v18 = vmul.f32 %v4945_v60, %v10724_v39 }
 0x5eb   : > { %7526 = vrsqrt.f32 %v5070_v21  ;;  %v5230_v28 = vpack.c.bf16 %v5204_v59, %v5203_v47  ;;  %v4947_v47 = vmul.f32 64.0, %v10740_v38 }
 0x5ed   : > { %5432 = vmatmul.mubr.bf16.gmra.mrb[196].mxu1 %v5230_v28 }
 0x5ee   : > { %5441 = vmatprep.mubr.bf16.mxu1 %v11962_v40 }
 0x5ef   : > { %v7525_v44 = vpop.eup %7524 }
 0x5f0   : > { %v5133_v11 = vmul.f32 %v7525_v44, %v10685_v36  ;;  %v4943_v36 = vmul.f32 64.0, %v10716_v41  ;;  %v4948_v44 = vmul.f32 64.0, %v10752_v42 }
 0x5f2   : > { %v5169_v5 = vmul.f32 %v10804_v20, %v5133_v11  ;;  %v4975_v2 = vmul.f32 %v4943_v36, %v10716_v41  ;;  %v4980_v26 = vmul.f32 %v4948_v44, %v10752_v42 }
 0x5f4   : > { %v5205_v56 = vadd.f32 %v10817_v46, %v5169_v5 }
 0x5f5   : > { %v7527_v0 = vpop.eup %7526 }
 0x5f6   : > { %v5134_v35 = vmul.f32 %v7527_v0, %v10708_v8  ;;  %v4944_v8 = vmul.f32 64.0, %v10722_v62 }
 0x5f8   : > { %v5170_v23 = vmul.f32 %v10804_v20, %v5134_v35  ;;  %v4976_v58 = vmul.f32 %v4944_v8, %v10722_v62  ;;  %v4978_v35 = vmul.f32 %v4946_v33, %v10736_v10  ;;  %v4979_v62 = vmul.f32 %v4947_v47, %v10740_v38 }
 0x5fa   : > { %v5206_v27 = vadd.f32 %v10817_v46, %v5170_v23 }
 0x5fc   : > { %v5231_v15 = vpack.c.bf16 %v5206_v27, %v5205_v56 }
 0x5fe   : > { %5442 = vmatmul.mubr.bf16.gmra.mrb[200].mxu1 %v5231_v15 }
 0x5ff   : > { %5451 = vmatprep.mubr.bf16.mxu1 %v11962_v40 }
 0x60b   : > { %v4894_v63 = vpop.xlane.xlu1 %4893 }
 0x60c   : > { %v5007_v37 = vsub.f32 %v4894_v63, %v4975_v2 }
 0x60d   : > { %v4896_v21 = vpop.xlane.xlu0 %4895 }
 0x60e   : > { %v5039_v59 = vmul.f32 0.015625, %v5007_v37  ;;  %v5008_v28 = vsub.f32 %v4896_v21, %v4976_v58 }
 0x60f   : > { %v4898_v50 = vpop.xlane.xlu1 %4897 }
 0x610   : > { %v5071_v11 = vadd.f32 1e-05, %v5039_v59  ;;  %v5040_v41 = vmul.f32 0.015625, %v5008_v28  ;;  %v5009_v0 = vsub.f32 %v4898_v50, %v4977_v18  ;;  %v11963_v18 = vld [vmem:[#allocation24_spill] sm:$0xff] }
 0x611   : > { %v4900_v5 = vpop.xlane.xlu0 %4899 }
 0x612   : > { %7528 = vrsqrt.f32 %v5071_v11  ;;  %v5072_v23 = vadd.f32 1e-05, %v5040_v41  ;;  %v5041_v56 = vmul.f32 0.015625, %v5009_v0  ;;  %v5010_v27 = vsub.f32 %v4900_v5, %v4978_v35  ;;  %v11964_v0 = vld [vmem:[#allocation26_spill] sm:$0xff] }
 0x613   : > { %v4902_v15 = vpop.xlane.xlu1 %4901 }
 0x614   : > { %7530 = vrsqrt.f32 %v5072_v23  ;;  %v5073_v39 = vadd.f32 1e-05, %v5041_v56  ;;  %v5042_v32 = vmul.f32 0.015625, %v5010_v27  ;;  %v5011_v36 = vsub.f32 %v4902_v15, %v4979_v62  ;;  %v11965_v23 = vld [vmem:[#allocation27_spill] sm:$0xff] }
 0x615   : > { %v4904_v8 = vpop.xlane.xlu0 %4903 }
 0x616   : > { %7532 = vrsqrt.f32 %v5073_v39  ;;  %v5074_v2 = vadd.f32 1e-05, %v5042_v32  ;;  %v5043_v60 = vmul.f32 0.015625, %v5011_v36  ;;  %v5012_v63 = vsub.f32 %v4904_v8, %v4980_v26  ;;  %v11966_v39 = vld [vmem:[#allocation17_spill] sm:$0xff] }
 0x618   : > { %7534 = vrsqrt.f32 %v5074_v2  ;;  %v5075_v10 = vadd.f32 1e-05, %v5043_v60  ;;  %v5044_v37 = vmul.f32 0.015625, %v5012_v63 }
 0x61a   : > { %7536 = vrsqrt.f32 %v5075_v10  ;;  %v5076_v38 = vadd.f32 1e-05, %v5044_v37  ;;  %v7364_v37 = vld [vmem:[#allocation2 + $0x60] sm:$0xff]  }
 0x61b   : > { %6907 = vmatprep.subr.bf16.mxu0 %v7364_v37 }
 0x61c   : > { %v7529_v58 = vpop.eup %7528  ;;  %7538 = vrsqrt.f32 %v5076_v38  ;;  %v7365_v38 = vld [vmem:[#allocation2 + $0x20] sm:$0xff]  }
 0x61d   : > { %v5135_v33 = vmul.f32 %v7529_v58, %v10720_v1  ;;  %v7366_v58 = vld [vmem:[#allocation2 + $0x68] sm:$0xff]   ;;  %6908 = vmatpush3.bf16.msra.mxu0 %v7365_v38 }
 0x61e   : > { %v7531_v21 = vpop.eup %7530  ;;  %6909 = vmatprep.subr.bf16.mxu0 %v7366_v58 }
 0x61f   : > { %v5136_v42 = vmul.f32 %v7531_v21, %v10730_v9  ;;  %v5171_v47 = vmul.f32 %v10804_v20, %v5135_v33  ;;  %v7367_v33 = vld [vmem:[#allocation2 + $0x28] sm:$0xff]   ;;  %v7368_v21 = vld [vmem:[#allocation2 + $0x70] sm:$0xff]  }
 0x620   : > { %v7533_v59 = vpop.eup %7532 }
 0x621   : > { %v5172_v28 = vmul.f32 %v10804_v20, %v5136_v42  ;;  %v5137_v50 = vmul.f32 %v7533_v59, %v11963_v18  ;;  %v5207_v11 = vadd.f32 %v10817_v46, %v5171_v47  ;;  %6910 = vmatpush3.bf16.msra.mxu0 %v7367_v33  ;;  %v7369_v42 = vld [vmem:[#allocation2 + $0x30] sm:$0xff]   ;;  %v7370_v47 = vld [vmem:[#allocation2 + $0x78] sm:$0xff]   ;;  %v4949_v59 = vmul.f32 64.0, %v10769_v54 }
 0x622   : > { %v7535_v44 = vpop.eup %7534  ;;  %6911 = vmatprep.subr.bf16.mxu0 %v7368_v21  ;;  %v4950_v18 = vmul.f32 64.0, %v10777_v12 }
 0x623   : > { %v5208_v41 = vadd.f32 %v10817_v46, %v5172_v28  ;;  %v5138_v35 = vmul.f32 %v7535_v44, %v11964_v0  ;;  %v5173_v5 = vmul.f32 %v10804_v20, %v5137_v50  ;;  %v7371_v28 = vld [vmem:[#allocation2 + $0x38] sm:$0xff]   ;;  %v4981_v50 = vmul.f32 %v4949_v59, %v10769_v54 }
 0x624   : > { %v7537_v1 = vpop.eup %7536 }
 0x625   : > { %v5232_v62 = vpack.c.bf16 %v5208_v41, %v5207_v11  ;;  %v5174_v9 = vmul.f32 %v10804_v20, %v5138_v35  ;;  %v5139_v56 = vmul.f32 %v7537_v1, %v11965_v23  ;;  %v5209_v15 = vadd.f32 %v10817_v46, %v5173_v5  ;;  %6912 = vmatpush3.bf16.msra.mxu0 %v7369_v42 }
 0x626   : > { %v7539_v27 = vpop.eup %7538  ;;  %6913 = vmatprep.subr.bf16.mxu0 %v7370_v47  ;;  %v4982_v41 = vmul.f32 %v4950_v18, %v10777_v12  ;;  %v4951_v5 = vmul.f32 64.0, %v10790_v4  ;;  %v4952_v23 = vmul.f32 64.0, %v10798_v57  ;;  %v4955_v42 = vmul.f32 64.0, %v10844_v52  ;;  %v11967_v18 = vld [vmem:[#allocation41_spill] sm:$0xff] }
 0x627   : > { %5452 = vmatmul.mubr.bf16.gmra.mrb[204].mxu1 %v5232_v62  ;;  %v5210_v26 = vadd.f32 %v10817_v46, %v5174_v9  ;;  %v5140_v32 = vmul.f32 %v7539_v27, %v11966_v39  ;;  %v5175_v36 = vmul.f32 %v10804_v20, %v5139_v56 }
 0x628   : > { %5461 = vmatprep.mubr.bf16.mxu1 %v11962_v40  ;;  %v4983_v56 = vmul.f32 %v4951_v5, %v10790_v4 }
 0x629   : > { %v5233_v8 = vpack.c.bf16 %v5210_v26, %v5209_v15  ;;  %v5176_v2 = vmul.f32 %v10804_v20, %v5140_v32  ;;  %v5211_v60 = vadd.f32 %v10817_v46, %v5175_v36  ;;  %6914 = vmatpush3.bf16.msra.mxu0 %v7371_v28  ;;  %v4984_v26 = vmul.f32 %v4952_v23, %v10798_v57  ;;  %v11968_v23 = vld [vmem:[#allocation42_spill] sm:$0xff] }
 0x62a   : > { %v4953_v32 = vmul.f32 64.0, %v10821_v7 }
 0x62b   : > { %v5212_v63 = vadd.f32 %v10817_v46, %v5176_v2 }
 0x62d   : > { %v5234_v10 = vpack.c.bf16 %v5212_v63, %v5211_v60  ;;  %v4954_v60 = vmul.f32 64.0, %v10830_v53  ;;  %v4985_v63 = vmul.f32 %v4953_v32, %v10821_v7 }
 0x62f   : > { %5462 = vmatmul.mubr.bf16.gmra.mrb[208].mxu1 %v5233_v8  ;;  %v4986_v58 = vmul.f32 %v4954_v60, %v10830_v53  ;;  %v4958_v60 = vmul.f32 64.0, %v10886_v49 }
 0x630   : > { %5471 = vmatprep.mubr.bf16.mxu1 %v11962_v40 }
 0x637   : > { %5472 = vmatmul.mubr.bf16.gmra.mrb[212].mxu1 %v5234_v10 }
 0x638   : > { %5481 = vmatprep.mubr.bf16.mxu1 %v11962_v40 }
 0x63e   : > { %v4906_v44 = vpop.xlane.xlu1 %4905 }
 0x63f   : > { %v5013_v11 = vsub.f32 %v4906_v44, %v4981_v50 }
 0x641   : > { %v5045_v0 = vmul.f32 0.015625, %v5013_v11  ;;  %v4908_v35 = vpop.xlane.xlu0 %4907  ;;  %v4956_v11 = vmul.f32 64.0, %v10855_v34 }
 0x642   : > { %v5014_v1 = vsub.f32 %v4908_v35, %v4982_v41  ;;  %v4987_v41 = vmul.f32 %v4955_v42, %v10844_v52 }
 0x643   : > { %v5077_v62 = vadd.f32 1e-05, %v5045_v0 }
 0x644   : > { %v5046_v9 = vmul.f32 0.015625, %v5014_v1 }
 0x645   : > { %7540 = vrsqrt.f32 %v5077_v62 }
 0x646   : > { %v5078_v27 = vadd.f32 1e-05, %v5046_v9  ;;  %v4910_v15 = vpop.xlane.xlu1 %4909  ;;  %v4988_v9 = vmul.f32 %v4956_v11, %v10855_v34 }
 0x647   : > { %v5015_v54 = vsub.f32 %v4910_v15, %v4983_v56 }
 0x648   : > { %7542 = vrsqrt.f32 %v5078_v27 }
 0x649   : > { %v5047_v39 = vmul.f32 0.015625, %v5015_v54  ;;  %v4912_v12 = vpop.xlane.xlu0 %4911 }
 0x64a   : > { %v5016_v36 = vsub.f32 %v4912_v12, %v4984_v26 }
 0x64b   : > { %v5079_v8 = vadd.f32 1e-05, %v5047_v39 }
 0x64c   : > { %v5048_v2 = vmul.f32 0.015625, %v5016_v36 }
 0x64d   : > { %7544 = vrsqrt.f32 %v5079_v8  ;;  %v4957_v8 = vmul.f32 64.0, %v10877_v22 }
 0x64e   : > { %v5080_v10 = vadd.f32 1e-05, %v5048_v2  ;;  %v4914_v4 = vpop.xlane.xlu1 %4913 }
 0x64f   : > { %v7541_v37 = vpop.eup %7540  ;;  %v5017_v38 = vsub.f32 %v4914_v4, %v4985_v63 }
 0x650   : > { %7546 = vrsqrt.f32 %v5080_v10  ;;  %v5141_v57 = vmul.f32 %v7541_v37, %v10774_v43 }
 0x651   : > { %v5049_v33 = vmul.f32 0.015625, %v5017_v38  ;;  %v4916_v21 = vpop.xlane.xlu0 %4915 }
 0x652   : > { %v7543_v47 = vpop.eup %7542  ;;  %v5018_v59 = vsub.f32 %v4916_v21, %v4986_v58  ;;  %v5177_v7 = vmul.f32 %v10804_v20, %v5141_v57  ;;  %v4990_v21 = vmul.f32 %v4958_v60, %v10886_v49 }
 0x653   : > { %v5081_v28 = vadd.f32 1e-05, %v5049_v33  ;;  %v5142_v50 = vmul.f32 %v7543_v47, %v11967_v18 }
 0x654   : > { %v5050_v44 = vmul.f32 0.015625, %v5018_v59  ;;  %v5213_v1 = vadd.f32 %v10817_v46, %v5177_v7 }
 0x655   : > { %7548 = vrsqrt.f32 %v5081_v28  ;;  %v5178_v53 = vmul.f32 %v10804_v20, %v5142_v50 }
 0x656   : > { %v5082_v43 = vadd.f32 1e-05, %v5050_v44  ;;  %v4918_v0 = vpop.xlane.xlu1 %4917 }
 0x657   : > { %v7545_v35 = vpop.eup %7544  ;;  %v5019_v5 = vsub.f32 %v4918_v0, %v4987_v41  ;;  %v5214_v62 = vadd.f32 %v10817_v46, %v5178_v53  ;;  %v4959_v53 = vmul.f32 64.0, %v10905_v48 }
 0x658   : > { %7550 = vrsqrt.f32 %v5082_v43  ;;  %v5143_v56 = vmul.f32 %v7545_v35, %v11968_v23 }
 0x659   : > { %v5051_v27 = vmul.f32 0.015625, %v5019_v5  ;;  %v4920_v15 = vpop.xlane.xlu0 %4919  ;;  %v5235_v54 = vpack.c.bf16 %v5214_v62, %v5213_v1  ;;  %v4991_v5 = vmul.f32 %v4959_v53, %v10905_v48 }
 0x65a   : > { %v7547_v26 = vpop.eup %7546  ;;  %v5020_v52 = vsub.f32 %v4920_v15, %v4988_v9  ;;  %v5179_v32 = vmul.f32 %v10804_v20, %v5143_v56  ;;  %v4960_v56 = vmul.f32 64.0, %v10920_v45 }
 0x65b   : > { %v5083_v39 = vadd.f32 1e-05, %v5051_v27  ;;  %5482 = vmatmul.mubr.bf16.gmra.mrb[216].mxu1 %v5235_v54  ;;  %v5144_v12 = vmul.f32 %v7547_v26, %v10811_v14  ;;  %v4989_v14 = vmul.f32 %v4957_v8, %v10877_v22 }
 0x65c   : > { %v5052_v36 = vmul.f32 0.015625, %v5020_v52  ;;  %5491 = vmatprep.mubr.bf16.mxu1 %v11962_v40  ;;  %v5215_v10 = vadd.f32 %v10817_v46, %v5179_v32  ;;  %v4992_v26 = vmul.f32 %v4960_v56, %v10920_v45 }
 0x65d   : > { %7552 = vrsqrt.f32 %v5083_v39  ;;  %v5180_v34 = vmul.f32 %v10804_v20, %v5144_v12 }
 0x65e   : > { %v5084_v2 = vadd.f32 1e-05, %v5052_v36 }
 0x65f   : > { %v7549_v63 = vpop.eup %7548  ;;  %v5216_v4 = vadd.f32 %v10817_v46, %v5180_v34 }
 0x660   : > { %7554 = vrsqrt.f32 %v5084_v2  ;;  %v5145_v37 = vmul.f32 %v7549_v63, %v10827_v3 }
 0x661   : > { %v4922_v38 = vpop.xlane.xlu1 %4921  ;;  %v5236_v58 = vpack.c.bf16 %v5216_v4, %v5215_v10 }
 0x662   : > { %v7551_v57 = vpop.eup %7550  ;;  %v5021_v33 = vsub.f32 %v4922_v38, %v4989_v14  ;;  %v5181_v59 = vmul.f32 %v10804_v20, %v5145_v37 }
 0x663   : > { %v4924_v42 = vpop.xlane.xlu0 %4923  ;;  %5492 = vmatmul.mubr.bf16.gmra.mrb[220].mxu1 %v5236_v58  ;;  %v5146_v47 = vmul.f32 %v7551_v57, %v10838_v6 }
 0x664   : > { %v5053_v28 = vmul.f32 0.015625, %v5021_v33  ;;  %v5022_v18 = vsub.f32 %v4924_v42, %v4990_v21  ;;  %5501 = vmatprep.mubr.bf16.mxu1 %v11962_v40  ;;  %v5217_v44 = vadd.f32 %v10817_v46, %v5181_v59  ;;  %v11969_v33 = vld [vmem:[#allocation9_spill] sm:$0xff] }
 0x665   : > { %v5182_v22 = vmul.f32 %v10804_v20, %v5146_v47 }
 0x666   : > { %v5085_v50 = vadd.f32 1e-05, %v5053_v28  ;;  %v5054_v3 = vmul.f32 0.015625, %v5022_v18 }
 0x667   : > { %v7553_v7 = vpop.eup %7552  ;;  %v5218_v11 = vadd.f32 %v10817_v46, %v5182_v22 }
 0x668   : > { %7556 = vrsqrt.f32 %v5085_v50  ;;  %v5086_v49 = vadd.f32 1e-05, %v5054_v3  ;;  %v5147_v41 = vmul.f32 %v7553_v7, %v10852_v51 }
 0x669   : > { %v5237_v6 = vpack.c.bf16 %v5218_v11, %v5217_v44 }
 0x66a   : > { %v7555_v43 = vpop.eup %7554  ;;  %7558 = vrsqrt.f32 %v5086_v49  ;;  %v5183_v35 = vmul.f32 %v10804_v20, %v5147_v41 }
 0x66b   : > { %5502 = vmatmul.mubr.bf16.gmra.mrb[224].mxu1 %v5237_v6  ;;  %v5148_v0 = vmul.f32 %v7555_v43, %v10864_v17 }
 0x66c   : > { %5511 = vmatprep.mubr.bf16.mxu1 %v11962_v40  ;;  %v5219_v51 = vadd.f32 %v10817_v46, %v5183_v35 }
 0x66d   : > { %v5184_v1 = vmul.f32 %v10804_v20, %v5148_v0 }
 0x66e   : > { %v4926_v62 = vpop.xlane.xlu1 %4925 }
 0x66f   : > { %v5023_v9 = vsub.f32 %v4926_v62, %v4991_v5  ;;  %v5220_v23 = vadd.f32 %v10817_v46, %v5184_v1 }
 0x671   : > { %v5055_v27 = vmul.f32 0.015625, %v5023_v9  ;;  %v5238_v15 = vpack.c.bf16 %v5220_v23, %v5219_v51 }
 0x672   : > { %v7557_v54 = vpop.eup %7556 }
 0x673   : > { %v5087_v17 = vadd.f32 1e-05, %v5055_v27  ;;  %5512 = vmatmul.mubr.bf16.gmra.mrb[228].mxu1 %v5238_v15  ;;  %v5149_v52 = vmul.f32 %v7557_v54, %v10884_v19 }
 0x674   : > { %v7559_v48 = vpop.eup %7558  ;;  %v4928_v39 = vpop.xlane.xlu0 %4927  ;;  %5521 = vmatprep.mubr.bf16.mxu1 %v11962_v40 }
 0x675   : > { %7560 = vrsqrt.f32 %v5087_v17  ;;  %v5024_v12 = vsub.f32 %v4928_v39, %v4992_v26  ;;  %v5150_v32 = vmul.f32 %v7559_v48, %v10892_v61  ;;  %v5185_v36 = vmul.f32 %v10804_v20, %v5149_v52 }
 0x677   : > { %v5056_v8 = vmul.f32 0.015625, %v5024_v12  ;;  %v5186_v34 = vmul.f32 %v10804_v20, %v5150_v32  ;;  %v5221_v60 = vadd.f32 %v10817_v46, %v5185_v36 }
 0x679   : > { %v5088_v2 = vadd.f32 1e-05, %v5056_v8  ;;  %v5222_v45 = vadd.f32 %v10817_v46, %v5186_v34 }
 0x67b   : > { %7562 = vrsqrt.f32 %v5088_v2  ;;  %v5239_v19 = vpack.c.bf16 %v5222_v45, %v5221_v60 }
 0x67d   : > { %5522 = vmatmul.mubr.bf16.gmra.mrb[232].mxu1 %v5239_v19 }
 0x67e   : > { %5531 = vmatprep.mubr.bf16.mxu1 %v11962_v40  ;;  %v5257_v40 = vld [vmem:[%s11673_s7] sm:$0x3] }
 0x67f   : > { %v7561_v63 = vpop.eup %7560  ;;  %v11048_v21 = vrot.slane %v5257_v40, %v11969_v33 }
 0x680   : > { %v5151_v10 = vmul.f32 %v7561_v63, %v10911_v30  ;;  %v11970_v30 = vld [vmem:[#allocation10_spill] sm:$0xff] }
 0x681   : > { %v11051_v42 = vrot.slane %v5257_v40, %v11970_v30 }
 0x682   : > { %v5187_v14 = vmul.f32 %v10804_v20, %v5151_v10 }
 0x684   : > { %v5223_v38 = vadd.f32 %v10817_v46, %v5187_v14 }
 0x685   : > { %v7563_v4 = vpop.eup %7562 }
 0x686   : > { %v5152_v61 = vmul.f32 %v7563_v4, %v10927_v13 }
 0x688   : > { %v5188_v37 = vmul.f32 %v10804_v20, %v5152_v61 }
 0x68a   : > { %v5224_v58 = vadd.f32 %v10817_v46, %v5188_v37 }
 0x68c   : > { %v5240_v57 = vpack.c.bf16 %v5224_v58, %v5223_v38 }
 0x68e   : > { %5532 = vmatmul.mubr.bf16.gmra.mrb[236].mxu1 %v5240_v57 }
 0x696   : > { %v5383_v13 = vpop.f32.mrb[176].mxu1 }
 0x697   : > { %v5384_v47 = vadd.f32 %v5383_v13, %v11048_v21  ;;  %v5385_v20 = vpop.f32.mrb[177].mxu1 }
 0x698   : > { %v5386_v59 = vadd.f32 %v5385_v20, %v11051_v42  ;;  %v5387_v28 = vpop.f32.mrb[178].mxu1 }
 0x699   : > { %v5606_v46 = vmul.f32 0.044715, %v5384_v47  ;;  %v5388_v18 = vadd.f32 %v5387_v28, %v11048_v21  ;;  %v5389_v22 = vpop.f32.mrb[179].mxu1  ;;  %v5542_v61 = vmul.f32 0.5, %v5384_v47 }
 0x69a   : > { %v5607_v50 = vmul.f32 0.044715, %v5386_v59  ;;  %v11057_v3 = vadd.f32 %v5389_v22, %v11051_v42  ;;  %v5543_v58 = vmul.f32 0.5, %v5386_v59 }
 0x69b   : > { %v5670_v7 = vmul.f32 %v5606_v46, %v5384_v47  ;;  %v5608_v44 = vmul.f32 0.044715, %v5388_v18  ;;  %v5544_v20 = vmul.f32 0.5, %v5388_v18 }
 0x69c   : > { %v5671_v11 = vmul.f32 %v5607_v50, %v5386_v59  ;;  %v5609_v49 = vmul.f32 0.044715, %v11057_v3 }
 0x69d   : > { %v5734_v41 = vmul.f32 %v5670_v7, %v5384_v47  ;;  %v5672_v6 = vmul.f32 %v5608_v44, %v5388_v18 }
 0x69e   : > { %v5735_v53 = vmul.f32 %v5671_v11, %v5386_v59  ;;  %v5673_v43 = vmul.f32 %v5609_v49, %v11057_v3  ;;  %v5393_v0 = vpop.f32.mrb[180].mxu1 }
 0x69f   : > { %v5798_v35 = vadd.f32 %v5734_v41, %v5384_v47  ;;  %v5736_v5 = vmul.f32 %v5672_v6, %v5388_v18  ;;  %v11062_v1 = vadd.f32 %v5393_v0, %v11048_v21  ;;  %v5395_v62 = vpop.f32.mrb[181].mxu1 }
 0x6a0   : > { %v5737_v9 = vmul.f32 %v5673_v43, %v11057_v3  ;;  %v5396_v51 = vadd.f32 %v5395_v62, %v11051_v42  ;;  %v5397_v23 = vpop.f32.mrb[182].mxu1  ;;  %v5799_v56 = vadd.f32 %v5735_v53, %v5386_v59 }
 0x6a1   : > { %v5862_v27 = vmul.f32 0.7978846, %v5798_v35  ;;  %v5800_v15 = vadd.f32 %v5736_v5, %v5388_v18  ;;  %v5610_v54 = vmul.f32 0.044715, %v11062_v1  ;;  %v11068_v17 = vadd.f32 %v5397_v23, %v11048_v21  ;;  %v5399_v26 = vpop.f32.mrb[183].mxu1 }
 0x6a2   : > { %v5611_v52 = vmul.f32 0.044715, %v5396_v51  ;;  %v5400_v48 = vadd.f32 %v5399_v26, %v11051_v42  ;;  %v5801_v39 = vadd.f32 %v5737_v9, %v11057_v3  ;;  %v5863_v12 = vmul.f32 0.7978846, %v5799_v56 }
 0x6a3   : > { %7564 = vtanh.f32 %v5862_v27  ;;  %v5864_v32 = vmul.f32 0.7978846, %v5800_v15  ;;  %v5674_v36 = vmul.f32 %v5610_v54, %v11062_v1  ;;  %v5612_v8 = vmul.f32 0.044715, %v11068_v17 }
 0x6a4   : > { %v5675_v34 = vmul.f32 %v5611_v52, %v5396_v51  ;;  %v5613_v2 = vmul.f32 0.044715, %v5400_v48  ;;  %v5865_v60 = vmul.f32 0.7978846, %v5801_v39  ;;  %7566 = vtanh.f32 %v5863_v12 }
 0x6a5   : > { %7568 = vtanh.f32 %v5864_v32  ;;  %v5738_v45 = vmul.f32 %v5674_v36, %v11062_v1  ;;  %v5676_v19 = vmul.f32 %v5612_v8, %v11068_v17  ;;  %v5545_v5 = vmul.f32 0.5, %v11057_v3 }
 0x6a6   : > { %v5739_v63 = vmul.f32 %v5675_v34, %v5396_v51  ;;  %v5677_v10 = vmul.f32 %v5613_v2, %v5400_v48  ;;  %v5403_v4 = vpop.f32.mrb[184].mxu1  ;;  %7570 = vtanh.f32 %v5865_v60  ;;  %v11099_v62 = vmul.f32 0.5, %v5396_v51 }
 0x6a7   : > { %v5740_v14 = vmul.f32 %v5676_v19, %v11068_v17  ;;  %v11078_v37 = vadd.f32 %v5403_v4, %v11048_v21  ;;  %v5405_v38 = vpop.f32.mrb[185].mxu1  ;;  %v5802_v13 = vadd.f32 %v5738_v45, %v11062_v1  ;;  %v11102_v15 = vmul.f32 0.5, %v5400_v48 }
 0x6a8   : > { %v5741_v57 = vmul.f32 %v5677_v10, %v5400_v48  ;;  %v11081_v40 = vadd.f32 %v5405_v38, %v11051_v42  ;;  %v5407_v33 = vpop.f32.mrb[186].mxu1  ;;  %v5803_v30 = vadd.f32 %v5739_v63, %v5396_v51 }
 0x6a9   : > { %v5614_v28 = vmul.f32 0.044715, %v11078_v37  ;;  %v11086_v47 = vadd.f32 %v5407_v33, %v11048_v21  ;;  %v5409_v46 = vpop.f32.mrb[187].mxu1  ;;  %v5804_v22 = vadd.f32 %v5740_v14, %v11068_v17  ;;  %v5866_v18 = vmul.f32 0.7978846, %v5802_v13 }
 0x6aa   : > { %v5615_v50 = vmul.f32 0.044715, %v11081_v40  ;;  %v11091_v59 = vadd.f32 %v5409_v46, %v11051_v42  ;;  %v5805_v7 = vadd.f32 %v5741_v57, %v5400_v48  ;;  %v5867_v44 = vmul.f32 0.7978846, %v5803_v30 }
 0x6ab   : > { %v5678_v11 = vmul.f32 %v5614_v28, %v11078_v37  ;;  %v5616_v49 = vmul.f32 0.044715, %v11086_v47  ;;  %v5868_v41 = vmul.f32 0.7978846, %v5804_v22 }
 0x6ac   : > { %v5679_v6 = vmul.f32 %v5615_v50, %v11081_v40  ;;  %v5617_v53 = vmul.f32 0.044715, %v11091_v59  ;;  %v5869_v43 = vmul.f32 0.7978846, %v5805_v7  ;;  %7572 = vtanh.f32 %v5867_v44 }
 0x6ad   : > { %v7565_v0 = vpop.eup %7564  ;;  %v5680_v35 = vmul.f32 %v5616_v49, %v11086_v47  ;;  %7574 = vtanh.f32 %v5866_v18  ;;  %v5742_v51 = vmul.f32 %v5678_v11, %v11078_v37  ;;  %v5546_v50 = vmul.f32 0.5, %v11062_v1 }
 0x6ae   : > { %v7567_v9 = vpop.eup %7566  ;;  %v5681_v23 = vmul.f32 %v5617_v53, %v11091_v59  ;;  %v5413_v56 = vpop.f32.mrb[188].mxu1  ;;  %v5990_v27 = vadd.f32 1.0, %v7565_v0  ;;  %7576 = vtanh.f32 %v5869_v43  ;;  %v5743_v26 = vmul.f32 %v5679_v6, %v11081_v40 }
 0x6af   : > { %v7569_v54 = vpop.eup %7568  ;;  %v11106_v52 = vadd.f32 %v5413_v56, %v11048_v21  ;;  %v5415_v39 = vpop.f32.mrb[189].mxu1  ;;  %v5991_v12 = vadd.f32 1.0, %v7567_v9  ;;  %7578 = vtanh.f32 %v5868_v41  ;;  %v5744_v34 = vmul.f32 %v5680_v35, %v11086_v47 }
 0x6b0   : > { %v7571_v3 = vpop.eup %7570  ;;  %v5745_v32 = vmul.f32 %v5681_v23, %v11091_v59  ;;  %v11111_v36 = vadd.f32 %v5415_v39, %v11051_v42  ;;  %v5417_v48 = vpop.f32.mrb[190].mxu1  ;;  %v5992_v8 = vadd.f32 1.0, %v7569_v54  ;;  %v6054_v19 = vmul.f32 %v5990_v27, %v5542_v61 }
 0x6b1   : > { %v11115_v2 = vadd.f32 %v5417_v48, %v11048_v21  ;;  %v5419_v60 = vpop.f32.mrb[191].mxu1  ;;  %v5993_v45 = vadd.f32 1.0, %v7571_v3  ;;  %v5618_v63 = vmul.f32 0.044715, %v11106_v52  ;;  %v6055_v57 = vmul.f32 %v5991_v12, %v5543_v58 }
 0x6b2   : > { %v5619_v10 = vmul.f32 0.044715, %v11111_v36  ;;  %v11120_v4 = vadd.f32 %v5419_v60, %v11051_v42  ;;  %v6056_v14 = vmul.f32 %v5992_v8, %v5544_v20  ;;  %v5807_v30 = vadd.f32 %v5743_v26, %v11081_v40 }
 0x6b3   : > { %v5620_v38 = vmul.f32 0.044715, %v11115_v2  ;;  %v6057_v33 = vmul.f32 %v5993_v45, %v5545_v5  ;;  %v5809_v61 = vadd.f32 %v5745_v32, %v11091_v59  ;;  %v5548_v7 = vmul.f32 0.5, %v11068_v17 }
 0x6b4   : > { %v5683_v13 = vmul.f32 %v5619_v10, %v11111_v36  ;;  %v5621_v28 = vmul.f32 0.044715, %v11120_v4  ;;  %v6118_v46 = vpack.c.bf16 %v6056_v14, %v6054_v19  ;;  %v5871_v44 = vmul.f32 0.7978846, %v5807_v30 }
 0x6b5   : > { %v6119_v22 = vpack.c.bf16 %v6057_v33, %v6055_v57  ;;  %v5682_v11 = vmul.f32 %v5618_v63, %v11106_v52  ;;  %v5684_v58 = vmul.f32 %v5620_v38, %v11115_v2  ;;  %v5873_v18 = vmul.f32 0.7978846, %v5809_v61 }
 0x6b6   : > { %v7573_v20 = vpop.eup %7572  ;;  %v5685_v49 = vmul.f32 %v5621_v28, %v11120_v4  ;;  %v5747_v6 = vmul.f32 %v5683_v13, %v11111_v36  ;;  %7580 = vtanh.f32 %v5871_v44  ;;  %v5806_v43 = vadd.f32 %v5742_v51, %v11078_v37 }
 0x6b7   : > { %v7575_v41 = vpop.eup %7574  ;;  %6314 = vmatprep.mubr.bf16.mxu0 %v6119_v22  ;;  %v5995_v53 = vadd.f32 1.0, %v7573_v20  ;;  %7582 = vtanh.f32 %v5873_v18  ;;  %v5808_v5 = vadd.f32 %v5744_v34, %v11086_v47  ;;  %v5746_v38 = vmul.f32 %v5682_v11, %v11106_v52 }
 0x6b8   : > { %v7577_v1 = vpop.eup %7576  ;;  %v5749_v17 = vmul.f32 %v5685_v49, %v11120_v4  ;;  %v5423_v0 = vpop.f32.mrb[192].mxu1  ;;  %6315 = vmatmul.mubr.bf16.vlgmr.msra.gmra.mrb[176].mxu0 %v6118_v46  ;;  %v5994_v35 = vadd.f32 1.0, %v7575_v41  ;;  %v5870_v26 = vmul.f32 0.7978846, %v5806_v43  ;;  %v5551_v13 = vmul.f32 0.5, %v11081_v40 }
 0x6b9   : > { %v7579_v9 = vpop.eup %7578  ;;  %v11137_v23 = vadd.f32 %v5423_v0, %v11048_v21  ;;  %v5425_v56 = vpop.f32.mrb[193].mxu1  ;;  %v5997_v27 = vadd.f32 1.0, %v7577_v1  ;;  %v6059_v54 = vmul.f32 %v5995_v53, %v11099_v62  ;;  %v5872_v32 = vmul.f32 0.7978846, %v5808_v5 }
 0x6ba   : > { %v11141_v39 = vadd.f32 %v5425_v56, %v11051_v42  ;;  %v5427_v12 = vpop.f32.mrb[194].mxu1  ;;  %v5996_v3 = vadd.f32 1.0, %v7579_v9  ;;  %v6058_v51 = vmul.f32 %v5994_v35, %v5546_v50  ;;  %7584 = vtanh.f32 %v5870_v26 }
 0x6bb   : > { %v5622_v48 = vmul.f32 0.044715, %v11137_v23  ;;  %v11145_v8 = vadd.f32 %v5427_v12, %v11048_v21  ;;  %v5429_v34 = vpop.f32.mrb[195].mxu1  ;;  %v6061_v60 = vmul.f32 %v5997_v27, %v11102_v15  ;;  %7586 = vtanh.f32 %v5872_v32 }
 0x6bc   : > { %v5623_v45 = vmul.f32 0.044715, %v11141_v39  ;;  %v11150_v62 = vadd.f32 %v5429_v34, %v11051_v42  ;;  %v6060_v19 = vmul.f32 %v5996_v3, %v5548_v7  ;;  %v5550_v15 = vmul.f32 0.5, %v11078_v37 }
 0x6bd   : > { %v5686_v63 = vmul.f32 %v5622_v48, %v11137_v23  ;;  %v5624_v10 = vmul.f32 0.044715, %v11145_v8  ;;  %v6121_v14 = vpack.c.bf16 %v6061_v60, %v6059_v54  ;;  %v5811_v28 = vadd.f32 %v5747_v6, %v11111_v36 }
 0x6be   : > { %v5687_v57 = vmul.f32 %v5623_v45, %v11141_v39  ;;  %v6120_v33 = vpack.c.bf16 %v6060_v19, %v6058_v51  ;;  %v5625_v30 = vmul.f32 0.044715, %v11150_v62  ;;  %v5813_v46 = vadd.f32 %v5749_v17, %v11120_v4 }
 0x6bf   : > { %6322 = vmatprep.mubr.bf16.mxu0 %v6121_v14  ;;  %v5748_v61 = vmul.f32 %v5684_v58, %v11115_v2  ;;  %v5750_v22 = vmul.f32 %v5686_v63, %v11137_v23  ;;  %v5553_v7 = vmul.f32 0.5, %v11091_v59  ;;  %v5552_v44 = vmul.f32 0.5, %v11086_v47 }
 0x6c0   : > { %v5433_v50 = vpop.f32.mrb[196].mxu1  ;;  %6323 = vmatmul.mubr.bf16.gmra.mrb[180].mxu0 %v6120_v33  ;;  %v7581_v37 = vpop.eup %7580  ;;  %v5688_v20 = vmul.f32 %v5624_v10, %v11145_v8  ;;  %v5875_v49 = vmul.f32 0.7978846, %v5811_v28  ;;  %v5877_v18 = vmul.f32 0.7978846, %v5813_v46  ;;  %v5751_v58 = vmul.f32 %v5687_v57, %v11141_v39 }
 0x6c1   : > { %v11167_v11 = vadd.f32 %v5433_v50, %v11048_v21  ;;  %v5435_v40 = vpop.f32.mrb[197].mxu1  ;;  %v7583_v41 = vpop.eup %7582  ;;  %v5999_v43 = vadd.f32 1.0, %v7581_v37  ;;  %v5810_v59 = vadd.f32 %v5746_v38, %v11106_v52  ;;  %v5689_v47 = vmul.f32 %v5625_v30, %v11150_v62 }
 0x6c2   : > { %v11171_v6 = vadd.f32 %v5435_v40, %v11051_v42  ;;  %v5437_v53 = vpop.f32.mrb[198].mxu1  ;;  %v6001_v0 = vadd.f32 1.0, %v7583_v41  ;;  %7588 = vtanh.f32 %v5875_v49  ;;  %v5812_v12 = vadd.f32 %v5748_v61, %v11115_v2 }
 0x6c3   : > { %v11176_v1 = vadd.f32 %v5437_v53, %v11048_v21  ;;  %v5439_v17 = vpop.f32.mrb[199].mxu1  ;;  %v5626_v35 = vmul.f32 0.044715, %v11167_v11  ;;  %7590 = vtanh.f32 %v5877_v18  ;;  %v6063_v54 = vmul.f32 %v5999_v43, %v5551_v13 }
 0x6c4   : > { %v5627_v5 = vmul.f32 0.044715, %v11171_v6  ;;  %v11181_v9 = vadd.f32 %v5439_v17, %v11051_v42  ;;  %v7585_v56 = vpop.eup %7584  ;;  %v6065_v26 = vmul.f32 %v6001_v0, %v5553_v7  ;;  %v5874_v34 = vmul.f32 0.7978846, %v5810_v59 }
 0x6c5   : > { %v5628_v27 = vmul.f32 0.044715, %v11176_v1  ;;  %v7587_v3 = vpop.eup %7586  ;;  %v5998_v48 = vadd.f32 1.0, %v7585_v56  ;;  %v5752_v60 = vmul.f32 %v5688_v20, %v11145_v8  ;;  %v5753_v45 = vmul.f32 %v5689_v47, %v11150_v62 }
 0x6c6   : > { %v5691_v51 = vmul.f32 %v5627_v5, %v11171_v6  ;;  %v5629_v32 = vmul.f32 0.044715, %v11181_v9  ;;  %v6123_v19 = vpack.c.bf16 %v6065_v26, %v6063_v54  ;;  %v6000_v63 = vadd.f32 1.0, %v7587_v3 }
 0x6c7   : > { %v5690_v10 = vmul.f32 %v5626_v35, %v11167_v11  ;;  %v5692_v14 = vmul.f32 %v5628_v27, %v11176_v1  ;;  %v5876_v57 = vmul.f32 0.7978846, %v5812_v12  ;;  %v6062_v30 = vmul.f32 %v5998_v48, %v5550_v15 }
 0x6c8   : > { %v5693_v38 = vmul.f32 %v5629_v32, %v11181_v9  ;;  %v5755_v33 = vmul.f32 %v5691_v51, %v11171_v6  ;;  %6330 = vmatprep.mubr.bf16.mxu0 %v6123_v19  ;;  %v6064_v13 = vmul.f32 %v6000_v63, %v5552_v44  ;;  %7592 = vtanh.f32 %v5874_v34 }
 0x6c9   : > { %7594 = vtanh.f32 %v5876_v57  ;;  %v5815_v46 = vadd.f32 %v5751_v58, %v11141_v39  ;;  %v5555_v50 = vmul.f32 0.5, %v11111_v36  ;;  %v5557_v7 = vmul.f32 0.5, %v11120_v4 }
 0x6ca   : > { %v5757_v28 = vmul.f32 %v5693_v38, %v11181_v9  ;;  %v6122_v61 = vpack.c.bf16 %v6064_v13, %v6062_v30  ;;  %v5817_v37 = vadd.f32 %v5753_v45, %v11150_v62  ;;  %v5754_v20 = vmul.f32 %v5690_v10, %v11167_v11 }
 0x6cb   : > { %v5879_v40 = vmul.f32 0.7978846, %v5815_v46  ;;  %v5814_v49 = vadd.f32 %v5750_v22, %v11137_v23  ;;  %v5816_v15 = vadd.f32 %v5752_v60, %v11145_v8  ;;  %v5756_v18 = vmul.f32 %v5692_v14, %v11176_v1 }
 0x6cc   : > { %v7589_v44 = vpop.eup %7588  ;;  %6331 = vmatmul.mubr.bf16.gmra.mrb[184].mxu0 %v6122_v61  ;;  %v5881_v41 = vmul.f32 0.7978846, %v5817_v37  ;;  %v5819_v58 = vadd.f32 %v5755_v33, %v11171_v6  ;;  %v5821_v36 = vadd.f32 %v5757_v28, %v11181_v9  ;;  %v5554_v35 = vmul.f32 0.5, %v11106_v52 }
 0x6cd   : > { %v7591_v53 = vpop.eup %7590  ;;  %v6003_v4 = vadd.f32 1.0, %v7589_v44  ;;  %7596 = vtanh.f32 %v5879_v40  ;;  %v5878_v43 = vmul.f32 0.7978846, %v5814_v49  ;;  %v5880_v59 = vmul.f32 0.7978846, %v5816_v15 }
 0x6ce   : > { %v6005_v47 = vadd.f32 1.0, %v7591_v53  ;;  %7598 = vtanh.f32 %v5881_v41  ;;  %v5883_v17 = vmul.f32 0.7978846, %v5819_v58  ;;  %v5885_v22 = vmul.f32 0.7978846, %v5821_v36 }
 0x6cf   : > { %v6067_v0 = vmul.f32 %v6003_v4, %v5555_v50  ;;  %v5556_v5 = vmul.f32 0.5, %v11115_v2  ;;  %7600 = vtanh.f32 %v5878_v43  ;;  %v5818_v54 = vadd.f32 %v5754_v20, %v11167_v11 }
 0x6d0   : > { %v6069_v56 = vmul.f32 %v6005_v47, %v5557_v7  ;;  %7602 = vtanh.f32 %v5880_v59  ;;  %v5820_v26 = vadd.f32 %v5756_v18, %v11176_v1  ;;  %v5559_v51 = vmul.f32 0.5, %v11141_v39 }
 0x6d1   : > { %v5443_v27 = vpop.f32.mrb[200].mxu1  ;;  %v5561_v32 = vmul.f32 0.5, %v11150_v62  ;;  %7604 = vtanh.f32 %v5883_v17  ;;  %v5882_v60 = vmul.f32 0.7978846, %v5818_v54  ;;  %v5558_v13 = vmul.f32 0.5, %v11137_v23 }
 0x6d2   : > { %v11209_v12 = vadd.f32 %v5443_v27, %v11048_v21  ;;  %v5445_v3 = vpop.f32.mrb[201].mxu1  ;;  %v7593_v52 = vpop.eup %7592  ;;  %v6125_v48 = vpack.c.bf16 %v6069_v56, %v6067_v0  ;;  %7606 = vtanh.f32 %v5885_v22  ;;  %v5884_v39 = vmul.f32 0.7978846, %v5820_v26 }
 0x6d3   : > { %v11214_v2 = vadd.f32 %v5445_v3, %v11051_v42  ;;  %v5447_v34 = vpop.f32.mrb[202].mxu1  ;;  %v7595_v45 = vpop.eup %7594  ;;  %v6002_v19 = vadd.f32 1.0, %v7593_v52  ;;  %7608 = vtanh.f32 %v5882_v60  ;;  %v5560_v40 = vmul.f32 0.5, %v11145_v8 }
 0x6d4   : > { %v5630_v63 = vmul.f32 0.044715, %v11209_v12  ;;  %v11218_v10 = vadd.f32 %v5447_v34, %v11048_v21  ;;  %v5449_v14 = vpop.f32.mrb[203].mxu1  ;;  %6338 = vmatprep.mubr.bf16.mxu0 %v6125_v48  ;;  %v6004_v62 = vadd.f32 1.0, %v7595_v45  ;;  %7610 = vtanh.f32 %v5884_v39 }
 0x6d5   : > { %v5631_v38 = vmul.f32 0.044715, %v11214_v2  ;;  %v11222_v57 = vadd.f32 %v5449_v14, %v11051_v42  ;;  %v6066_v28 = vmul.f32 %v6002_v19, %v5554_v35  ;;  %v5563_v49 = vmul.f32 0.5, %v11171_v6 }
 0x6d6   : > { %v5694_v33 = vmul.f32 %v5630_v63, %v11209_v12  ;;  %v5632_v30 = vmul.f32 0.044715, %v11218_v10  ;;  %v6068_v46 = vmul.f32 %v6004_v62, %v5556_v5  ;;  %v5565_v4 = vmul.f32 0.5, %v11181_v9 }
 0x6d7   : > { %v5695_v61 = vmul.f32 %v5631_v38, %v11214_v2  ;;  %v5633_v50 = vmul.f32 0.044715, %v11222_v57  ;;  %v7597_v7 = vpop.eup %7596  ;;  %v5562_v62 = vmul.f32 0.5, %v11167_v11  ;;  %v5564_v38 = vmul.f32 0.5, %v11176_v1 }
 0x6d8   : > { %v5758_v37 = vmul.f32 %v5694_v33, %v11209_v12  ;;  %v5696_v20 = vmul.f32 %v5632_v30, %v11218_v10  ;;  %v7599_v15 = vpop.eup %7598  ;;  %v6124_v44 = vpack.c.bf16 %v6068_v46, %v6066_v28  ;;  %v6007_v41 = vadd.f32 1.0, %v7597_v7 }
 0x6d9   : > { %v5759_v23 = vmul.f32 %v5695_v61, %v11214_v2  ;;  %v5697_v18 = vmul.f32 %v5633_v50, %v11222_v57  ;;  %v7601_v58 = vpop.eup %7600  ;;  %v6009_v53 = vadd.f32 1.0, %v7599_v15  ;;  %v5567_v11 = vmul.f32 0.5, %v11214_v2 }
 0x6da   : > { %v5760_v36 = vmul.f32 %v5696_v20, %v11218_v10  ;;  %v5822_v43 = vadd.f32 %v5758_v37, %v11209_v12  ;;  %v7603_v59 = vpop.eup %7602  ;;  %6339 = vmatmul.mubr.bf16.gmra.mrb[188].mxu0 %v6124_v44  ;;  %v6071_v6 = vmul.f32 %v6007_v41, %v5559_v51  ;;  %v6006_v47 = vadd.f32 1.0, %v7601_v58 }
 0x6db   : > { %v5761_v8 = vmul.f32 %v5697_v18, %v11222_v57  ;;  %v5823_v17 = vadd.f32 %v5759_v23, %v11214_v2  ;;  %v7605_v22 = vpop.eup %7604  ;;  %v6073_v0 = vmul.f32 %v6009_v53, %v5561_v32  ;;  %v6008_v35 = vadd.f32 1.0, %v7603_v59 }
 0x6dc   : > { %v5824_v5 = vadd.f32 %v5760_v36, %v11218_v10  ;;  %v5886_v56 = vmul.f32 0.7978846, %v5822_v43  ;;  %v7607_v27 = vpop.eup %7606  ;;  %v6070_v54 = vmul.f32 %v6006_v47, %v5558_v13  ;;  %v6011_v26 = vadd.f32 1.0, %v7605_v22 }
 0x6dd   : > { %v5825_v9 = vadd.f32 %v5761_v8, %v11222_v57  ;;  %v5887_v3 = vmul.f32 0.7978846, %v5823_v17  ;;  %v6127_v52 = vpack.c.bf16 %v6073_v0, %v6071_v6  ;;  %v6072_v48 = vmul.f32 %v6008_v35, %v5560_v40  ;;  %v7609_v51 = vpop.eup %7608 }
 0x6de   : > { %v6013_v34 = vadd.f32 1.0, %v7607_v27  ;;  %v5888_v60 = vmul.f32 0.7978846, %v5824_v5  ;;  %v6075_v45 = vmul.f32 %v6011_v26, %v5563_v49  ;;  %v7611_v63 = vpop.eup %7610  ;;  %v6010_v39 = vadd.f32 1.0, %v7609_v51 }
 0x6df   : > { %v5889_v19 = vmul.f32 0.7978846, %v5825_v9  ;;  %7612 = vtanh.f32 %v5887_v3  ;;  %6346 = vmatprep.mubr.bf16.mxu0 %v6127_v52  ;;  %v6126_v32 = vpack.c.bf16 %v6072_v48, %v6070_v54  ;;  %v6012_v33 = vadd.f32 1.0, %v7611_v63 }
 0x6e0   : > { %v6077_v14 = vmul.f32 %v6013_v34, %v5565_v4  ;;  %7614 = vtanh.f32 %v5886_v56  ;;  %v6074_v13 = vmul.f32 %v6010_v39, %v5562_v62  ;;  %v5569_v1 = vmul.f32 0.5, %v11222_v57 }
 0x6e1   : > { %7616 = vtanh.f32 %v5889_v19  ;;  %v6076_v28 = vmul.f32 %v6012_v33, %v5564_v38  ;;  %v5566_v15 = vmul.f32 0.5, %v11209_v12  ;;  %v5568_v44 = vmul.f32 0.5, %v11218_v10 }
 0x6e2   : > { %v6129_v30 = vpack.c.bf16 %v6077_v14, %v6075_v45  ;;  %7618 = vtanh.f32 %v5888_v60  ;;  %6347 = vmatmul.mubr.bf16.gmra.mrb[192].mxu0 %v6126_v32 }
 0x6e3   : > { %v6128_v46 = vpack.c.bf16 %v6076_v28, %v6074_v13 }
 0x6e4   : > { %6354 = vmatprep.mubr.bf16.mxu0 %v6129_v30 }
 0x6e9   : > { %v7613_v61 = vpop.eup %7612 }
 0x6ea   : > { %v7615_v50 = vpop.eup %7614  ;;  %v6015_v7 = vadd.f32 1.0, %v7613_v61  ;;  %6355 = vmatmul.mubr.bf16.gmra.mrb[196].mxu0 %v6128_v46 }
 0x6eb   : > { %v7617_v37 = vpop.eup %7616  ;;  %v6014_v20 = vadd.f32 1.0, %v7615_v50 }
 0x6ec   : > { %v7619_v40 = vpop.eup %7618  ;;  %v6017_v49 = vadd.f32 1.0, %v7617_v37  ;;  %v6079_v18 = vmul.f32 %v6015_v7, %v5567_v11 }
 0x6ed   : > { %v6016_v23 = vadd.f32 1.0, %v7619_v40  ;;  %v6078_v58 = vmul.f32 %v6014_v20, %v5566_v15 }
 0x6ee   : > { %v6081_v41 = vmul.f32 %v6017_v49, %v5569_v1 }
 0x6ef   : > { %v6080_v36 = vmul.f32 %v6016_v23, %v5568_v44 }
 0x6f0   : > { %v6131_v53 = vpack.c.bf16 %v6081_v41, %v6079_v18 }
 0x6f1   : > { %v6130_v4 = vpack.c.bf16 %v6080_v36, %v6078_v58 }
 0x6f2   : > { %6362 = vmatprep.mubr.bf16.mxu0 %v6131_v53 }
 0x6f3   : > { %6363 = vmatmul.mubr.bf16.gmra.mrb[200].mxu0 %v6130_v4 }
 0x6fa   : > { %v5453_v43 = vpop.f32.mrb[204].mxu1 }
 0x6fb   : > { %v11249_v59 = vadd.f32 %v5453_v43, %v11048_v21  ;;  %v5455_v2 = vpop.f32.mrb[205].mxu1 }
 0x6fc   : > { %v11252_v57 = vadd.f32 %v5455_v2, %v11051_v42  ;;  %v5457_v12 = vpop.f32.mrb[206].mxu1 }
 0x6fd   : > { %v5634_v10 = vmul.f32 0.044715, %v11249_v59  ;;  %v11256_v8 = vadd.f32 %v5457_v12, %v11048_v21  ;;  %v5459_v6 = vpop.f32.mrb[207].mxu1 }
 0x6fe   : > { %v5635_v47 = vmul.f32 0.044715, %v11252_v57  ;;  %v11260_v17 = vadd.f32 %v5459_v6, %v11051_v42 }
 0x6ff   : > { %v5698_v22 = vmul.f32 %v5634_v10, %v11249_v59  ;;  %v5636_v0 = vmul.f32 0.044715, %v11256_v8 }
 0x700   : > { %v5699_v35 = vmul.f32 %v5635_v47, %v11252_v57  ;;  %v5637_v5 = vmul.f32 0.044715, %v11260_v17 }
 0x701   : > { %v5762_v56 = vmul.f32 %v5698_v22, %v11249_v59  ;;  %v5700_v27 = vmul.f32 %v5636_v0, %v11256_v8 }
 0x702   : > { %v5763_v54 = vmul.f32 %v5699_v35, %v11252_v57  ;;  %v5701_v26 = vmul.f32 %v5637_v5, %v11260_v17  ;;  %v5463_v9 = vpop.f32.mrb[208].mxu1 }
 0x703   : > { %v5764_v3 = vmul.f32 %v5700_v27, %v11256_v8  ;;  %v11272_v52 = vadd.f32 %v5463_v9, %v11048_v21  ;;  %v5465_v48 = vpop.f32.mrb[209].mxu1  ;;  %v5826_v34 = vadd.f32 %v5762_v56, %v11249_v59 }
 0x704   : > { %v5765_v60 = vmul.f32 %v5701_v26, %v11260_v17  ;;  %v11277_v51 = vadd.f32 %v5465_v48, %v11051_v42  ;;  %v5467_v45 = vpop.f32.mrb[210].mxu1  ;;  %v5827_v19 = vadd.f32 %v5763_v54, %v11252_v57 }
 0x705   : > { %v5638_v63 = vmul.f32 0.044715, %v11272_v52  ;;  %v11282_v32 = vadd.f32 %v5467_v45, %v11048_v21  ;;  %v5469_v14 = vpop.f32.mrb[211].mxu1  ;;  %v5828_v39 = vadd.f32 %v5764_v3, %v11256_v8  ;;  %v5890_v62 = vmul.f32 0.7978846, %v5826_v34 }
 0x706   : > { %v5639_v38 = vmul.f32 0.044715, %v11277_v51  ;;  %v11287_v33 = vadd.f32 %v5469_v14, %v11051_v42  ;;  %v5829_v30 = vadd.f32 %v5765_v60, %v11260_v17  ;;  %v5891_v13 = vmul.f32 0.7978846, %v5827_v19 }
 0x707   : > { %v5702_v28 = vmul.f32 %v5638_v63, %v11272_v52  ;;  %v5640_v46 = vmul.f32 0.044715, %v11282_v32  ;;  %v5892_v61 = vmul.f32 0.7978846, %v5828_v39  ;;  %7620 = vtanh.f32 %v5890_v62 }
 0x708   : > { %v5703_v50 = vmul.f32 %v5639_v38, %v11277_v51  ;;  %v5641_v7 = vmul.f32 0.044715, %v11287_v33  ;;  %v5893_v37 = vmul.f32 0.7978846, %v5829_v30  ;;  %7622 = vtanh.f32 %v5891_v13 }
 0x709   : > { %v5766_v20 = vmul.f32 %v5702_v28, %v11272_v52  ;;  %v5704_v40 = vmul.f32 %v5640_v46, %v11282_v32  ;;  %7624 = vtanh.f32 %v5892_v61  ;;  %v5570_v34 = vmul.f32 0.5, %v11249_v59 }
 0x70a   : > { %v5767_v11 = vmul.f32 %v5703_v50, %v11277_v51  ;;  %v5705_v1 = vmul.f32 %v5641_v7, %v11287_v33  ;;  %v5473_v49 = vpop.f32.mrb[212].mxu1  ;;  %7626 = vtanh.f32 %v5893_v37  ;;  %v5571_v62 = vmul.f32 0.5, %v11252_v57 }
 0x70b   : > { %v5768_v15 = vmul.f32 %v5704_v40, %v11282_v32  ;;  %v11300_v44 = vadd.f32 %v5473_v49, %v11048_v21  ;;  %v5475_v23 = vpop.f32.mrb[213].mxu1  ;;  %v5830_v53 = vadd.f32 %v5766_v20, %v11272_v52  ;;  %v5572_v59 = vmul.f32 0.5, %v11256_v8 }
 0x70c   : > { %v5769_v18 = vmul.f32 %v5705_v1, %v11287_v33  ;;  %v11304_v41 = vadd.f32 %v5475_v23, %v11051_v42  ;;  %v5477_v58 = vpop.f32.mrb[214].mxu1  ;;  %v5831_v36 = vadd.f32 %v5767_v11, %v11277_v51  ;;  %v5573_v61 = vmul.f32 0.5, %v11260_v17 }
 0x70d   : > { %v5642_v4 = vmul.f32 0.044715, %v11300_v44  ;;  %v11310_v43 = vadd.f32 %v5477_v58, %v11048_v21  ;;  %v5479_v2 = vpop.f32.mrb[215].mxu1  ;;  %v5832_v12 = vadd.f32 %v5768_v15, %v11282_v32  ;;  %v5894_v5 = vmul.f32 0.7978846, %v5830_v53 }
 0x70e   : > { %v5643_v10 = vmul.f32 0.044715, %v11304_v41  ;;  %v11315_v6 = vadd.f32 %v5479_v2, %v11051_v42  ;;  %v5833_v47 = vadd.f32 %v5769_v18, %v11287_v33  ;;  %v5895_v22 = vmul.f32 0.7978846, %v5831_v36 }
 0x70f   : > { %v5706_v0 = vmul.f32 %v5642_v4, %v11300_v44  ;;  %v5644_v35 = vmul.f32 0.044715, %v11310_v43  ;;  %v5896_v56 = vmul.f32 0.7978846, %v5832_v12 }
 0x710   : > { %v5707_v27 = vmul.f32 %v5643_v10, %v11304_v41  ;;  %v5645_v54 = vmul.f32 0.044715, %v11315_v6  ;;  %v5897_v26 = vmul.f32 0.7978846, %v5833_v47  ;;  %7628 = vtanh.f32 %v5895_v22 }
 0x711   : > { %v7621_v9 = vpop.eup %7620  ;;  %v5770_v3 = vmul.f32 %v5706_v0, %v11300_v44  ;;  %v5708_v48 = vmul.f32 %v5644_v35, %v11310_v43  ;;  %7630 = vtanh.f32 %v5894_v5  ;;  %v5575_v10 = vmul.f32 0.5, %v11277_v51 }
 0x712   : > { %v7623_v60 = vpop.eup %7622  ;;  %v5771_v45 = vmul.f32 %v5707_v27, %v11304_v41  ;;  %v5709_v19 = vmul.f32 %v5645_v54, %v11315_v6  ;;  %v6018_v63 = vadd.f32 1.0, %v7621_v9  ;;  %7632 = vtanh.f32 %v5897_v26 }
 0x713   : > { %v7625_v14 = vpop.eup %7624  ;;  %v5772_v39 = vmul.f32 %v5708_v48, %v11310_v43  ;;  %v6019_v38 = vadd.f32 1.0, %v7623_v60  ;;  %7634 = vtanh.f32 %v5896_v56  ;;  %v5834_v37 = vadd.f32 %v5770_v3, %v11300_v44 }
 0x714   : > { %v7627_v30 = vpop.eup %7626  ;;  %v5773_v13 = vmul.f32 %v5709_v19, %v11315_v6  ;;  %v6020_v28 = vadd.f32 1.0, %v7625_v14  ;;  %v5835_v46 = vadd.f32 %v5771_v45, %v11304_v41  ;;  %v6082_v7 = vmul.f32 %v6018_v63, %v5570_v34 }
 0x715   : > { %v6021_v50 = vadd.f32 1.0, %v7627_v30  ;;  %v5836_v11 = vadd.f32 %v5772_v39, %v11310_v43  ;;  %v6083_v1 = vmul.f32 %v6019_v38, %v5571_v62  ;;  %v5898_v15 = vmul.f32 0.7978846, %v5834_v37 }
 0x716   : > { %v6084_v20 = vmul.f32 %v6020_v28, %v5572_v59  ;;  %v5837_v40 = vadd.f32 %v5773_v13, %v11315_v6  ;;  %v5899_v57 = vmul.f32 0.7978846, %v5835_v46  ;;  %v5577_v47 = vmul.f32 0.5, %v11287_v33 }
 0x717   : > { %v6085_v49 = vmul.f32 %v6021_v50, %v5573_v61  ;;  %v5900_v18 = vmul.f32 0.7978846, %v5836_v11  ;;  %v5574_v0 = vmul.f32 0.5, %v11272_v52  ;;  %v5576_v35 = vmul.f32 0.5, %v11282_v32 }
 0x718   : > { %v6132_v23 = vpack.c.bf16 %v6084_v20, %v6082_v7  ;;  %v5901_v8 = vmul.f32 0.7978846, %v5837_v40  ;;  %7636 = vtanh.f32 %v5899_v57  ;;  %v5579_v19 = vmul.f32 0.5, %v11304_v41 }
 0x719   : > { %v6133_v58 = vpack.c.bf16 %v6085_v49, %v6083_v1  ;;  %7638 = vtanh.f32 %v5898_v15  ;;  %v5581_v52 = vmul.f32 0.5, %v11315_v6  ;;  %v5578_v63 = vmul.f32 0.5, %v11300_v44 }
 0x71a   : > { %v7629_v17 = vpop.eup %7628  ;;  %7640 = vtanh.f32 %v5901_v8  ;;  %v5580_v14 = vmul.f32 0.5, %v11310_v43 }
 0x71b   : > { %v7631_v36 = vpop.eup %7630  ;;  %6370 = vmatprep.mubr.bf16.mxu0 %v6133_v58  ;;  %v6023_v53 = vadd.f32 1.0, %v7629_v17  ;;  %7642 = vtanh.f32 %v5900_v18 }
 0x71c   : > { %v7633_v4 = vpop.eup %7632  ;;  %6371 = vmatmul.mubr.bf16.gmra.mrb[204].mxu0 %v6132_v23  ;;  %v6022_v2 = vadd.f32 1.0, %v7631_v36 }
 0x71d   : > { %v7635_v12 = vpop.eup %7634  ;;  %v6025_v22 = vadd.f32 1.0, %v7633_v4  ;;  %v6087_v56 = vmul.f32 %v6023_v53, %v5575_v10 }
 0x71e   : > { %v6024_v5 = vadd.f32 1.0, %v7635_v12  ;;  %v6086_v54 = vmul.f32 %v6022_v2, %v5574_v0 }
 0x71f   : > { %v6089_v27 = vmul.f32 %v6025_v22, %v5577_v47 }
 0x720   : > { %v6088_v26 = vmul.f32 %v6024_v5, %v5576_v35 }
 0x721   : > { %v6135_v9 = vpack.c.bf16 %v6089_v27, %v6087_v56 }
 0x722   : > { %v7637_v3 = vpop.eup %7636  ;;  %v6134_v48 = vpack.c.bf16 %v6088_v26, %v6086_v54 }
 0x723   : > { %v7639_v34 = vpop.eup %7638  ;;  %6378 = vmatprep.mubr.bf16.mxu0 %v6135_v9  ;;  %v6027_v60 = vadd.f32 1.0, %v7637_v3 }
 0x724   : > { %v7641_v45 = vpop.eup %7640  ;;  %6379 = vmatmul.mubr.bf16.gmra.mrb[208].mxu0 %v6134_v48  ;;  %v6026_v51 = vadd.f32 1.0, %v7639_v34 }
 0x725   : > { %v7643_v33 = vpop.eup %7642  ;;  %v6029_v32 = vadd.f32 1.0, %v7641_v45  ;;  %v6091_v62 = vmul.f32 %v6027_v60, %v5579_v19 }
 0x726   : > { %v6028_v39 = vadd.f32 1.0, %v7643_v33  ;;  %v6090_v30 = vmul.f32 %v6026_v51, %v5578_v63 }
 0x727   : > { %v6093_v38 = vmul.f32 %v6029_v32, %v5581_v52 }
 0x728   : > { %v6092_v13 = vmul.f32 %v6028_v39, %v5580_v14 }
 0x729   : > { %v6137_v59 = vpack.c.bf16 %v6093_v38, %v6091_v62 }
 0x72a   : > { %v6136_v28 = vpack.c.bf16 %v6092_v13, %v6090_v30 }
 0x72b   : > { %6386 = vmatprep.mubr.bf16.mxu0 %v6137_v59 }
 0x72c   : > { %6387 = vmatmul.mubr.bf16.gmra.mrb[212].mxu0 %v6136_v28 }
 0x72e   : > { %v5483_v46 = vpop.f32.mrb[216].mxu1 }
 0x72f   : > { %v5484_v61 = vadd.f32 %v5483_v46, %v11048_v21  ;;  %v5485_v41 = vpop.f32.mrb[217].mxu1 }
 0x730   : > { %v5486_v6 = vadd.f32 %v5485_v41, %v11051_v42  ;;  %v5487_v50 = vpop.f32.mrb[218].mxu1 }
 0x731   : > { %v5646_v7 = vmul.f32 0.044715, %v5484_v61  ;;  %v5488_v44 = vadd.f32 %v5487_v50, %v11048_v21  ;;  %v5489_v43 = vpop.f32.mrb[219].mxu1  ;;  %v5582_v38 = vmul.f32 0.5, %v5484_v61 }
 0x732   : > { %v5647_v37 = vmul.f32 0.044715, %v5486_v6  ;;  %v11348_v20 = vadd.f32 %v5489_v43, %v11051_v42  ;;  %v5583_v62 = vmul.f32 0.5, %v5486_v6 }
 0x733   : > { %v5710_v40 = vmul.f32 %v5646_v7, %v5484_v61  ;;  %v5648_v57 = vmul.f32 0.044715, %v5488_v44  ;;  %v5584_v43 = vmul.f32 0.5, %v5488_v44 }
 0x734   : > { %v5711_v11 = vmul.f32 %v5647_v37, %v5486_v6  ;;  %v5649_v1 = vmul.f32 0.044715, %v11348_v20 }
 0x735   : > { %v5774_v49 = vmul.f32 %v5710_v40, %v5484_v61  ;;  %v5712_v15 = vmul.f32 %v5648_v57, %v5488_v44 }
 0x736   : > { %v5775_v23 = vmul.f32 %v5711_v11, %v5486_v6  ;;  %v5713_v8 = vmul.f32 %v5649_v1, %v11348_v20  ;;  %v5493_v18 = vpop.f32.mrb[220].mxu1 }
 0x737   : > { %v5776_v58 = vmul.f32 %v5712_v15, %v5488_v44  ;;  %v11353_v17 = vadd.f32 %v5493_v18, %v11048_v21  ;;  %v5495_v36 = vpop.f32.mrb[221].mxu1  ;;  %v5838_v53 = vadd.f32 %v5774_v49, %v5484_v61 }
 0x738   : > { %v5777_v4 = vmul.f32 %v5713_v8, %v11348_v20  ;;  %v5496_v2 = vadd.f32 %v5495_v36, %v11051_v42  ;;  %v5497_v12 = vpop.f32.mrb[222].mxu1  ;;  %v5839_v10 = vadd.f32 %v5775_v23, %v5486_v6  ;;  %v5585_v36 = vmul.f32 0.5, %v11348_v20 }
 0x739   : > { %v5650_v47 = vmul.f32 0.044715, %v11353_v17  ;;  %v11359_v22 = vadd.f32 %v5497_v12, %v11048_v21  ;;  %v5499_v0 = vpop.f32.mrb[223].mxu1  ;;  %v5840_v35 = vadd.f32 %v5776_v58, %v5488_v44  ;;  %v5902_v5 = vmul.f32 0.7978846, %v5838_v53 }
 0x73a   : > { %v5651_v56 = vmul.f32 0.044715, %v5496_v2  ;;  %v5500_v27 = vadd.f32 %v5499_v0, %v11051_v42  ;;  %v5841_v54 = vadd.f32 %v5777_v4, %v11348_v20  ;;  %v5903_v26 = vmul.f32 0.7978846, %v5839_v10 }
 0x73b   : > { %v5714_v9 = vmul.f32 %v5650_v47, %v11353_v17  ;;  %v5652_v3 = vmul.f32 0.044715, %v11359_v22  ;;  %v5904_v48 = vmul.f32 0.7978846, %v5840_v35  ;;  %7644 = vtanh.f32 %v5902_v5 }
 0x73c   : > { %v5715_v34 = vmul.f32 %v5651_v56, %v5496_v2  ;;  %v5653_v60 = vmul.f32 0.044715, %v5500_v27  ;;  %v5905_v45 = vmul.f32 0.7978846, %v5841_v54  ;;  %7646 = vtanh.f32 %v5903_v26 }
 0x73d   : > { %v5778_v51 = vmul.f32 %v5714_v9, %v11353_v17  ;;  %v5716_v33 = vmul.f32 %v5652_v3, %v11359_v22  ;;  %7648 = vtanh.f32 %v5904_v48  ;;  %v11390_v53 = vmul.f32 0.5, %v5496_v2 }
 0x73e   : > { %v5779_v19 = vmul.f32 %v5715_v34, %v5496_v2  ;;  %v5717_v52 = vmul.f32 %v5653_v60, %v5500_v27  ;;  %v5503_v32 = vpop.f32.mrb[224].mxu1  ;;  %7650 = vtanh.f32 %v5905_v45  ;;  %v11393_v0 = vmul.f32 0.5, %v5500_v27 }
 0x73f   : > { %v5780_v63 = vmul.f32 %v5716_v33, %v11359_v22  ;;  %v11369_v14 = vadd.f32 %v5503_v32, %v11048_v21  ;;  %v5505_v39 = vpop.f32.mrb[225].mxu1  ;;  %v5842_v46 = vadd.f32 %v5778_v51, %v11353_v17 }
 0x740   : > { %v5781_v30 = vmul.f32 %v5717_v52, %v5500_v27  ;;  %v11372_v13 = vadd.f32 %v5505_v39, %v11051_v42  ;;  %v5507_v59 = vpop.f32.mrb[226].mxu1  ;;  %v5843_v28 = vadd.f32 %v5779_v19, %v5496_v2 }
 0x741   : > { %v5654_v41 = vmul.f32 0.044715, %v11369_v14  ;;  %v11377_v50 = vadd.f32 %v5507_v59, %v11048_v21  ;;  %v5509_v7 = vpop.f32.mrb[227].mxu1  ;;  %v5844_v37 = vadd.f32 %v5780_v63, %v11359_v22  ;;  %v5906_v49 = vmul.f32 0.7978846, %v5842_v46 }
 0x742   : > { %v5655_v6 = vmul.f32 0.044715, %v11372_v13  ;;  %v11382_v61 = vadd.f32 %v5509_v7, %v11051_v42  ;;  %v5845_v40 = vadd.f32 %v5781_v30, %v5500_v27  ;;  %v5907_v57 = vmul.f32 0.7978846, %v5843_v28 }
 0x743   : > { %v5718_v11 = vmul.f32 %v5654_v41, %v11369_v14  ;;  %v5656_v1 = vmul.f32 0.044715, %v11377_v50  ;;  %v5908_v15 = vmul.f32 0.7978846, %v5844_v37 }
 0x744   : > { %v5719_v23 = vmul.f32 %v5655_v6, %v11372_v13  ;;  %v5657_v8 = vmul.f32 0.044715, %v11382_v61  ;;  %v5909_v44 = vmul.f32 0.7978846, %v5845_v40  ;;  %7652 = vtanh.f32 %v5907_v57 }
 0x745   : > { %v7645_v18 = vpop.eup %7644  ;;  %v5720_v58 = vmul.f32 %v5656_v1, %v11377_v50  ;;  %7654 = vtanh.f32 %v5906_v49  ;;  %v5782_v2 = vmul.f32 %v5718_v11, %v11369_v14  ;;  %v5586_v6 = vmul.f32 0.5, %v11353_v17 }
 0x746   : > { %v7647_v4 = vpop.eup %7646  ;;  %v5721_v12 = vmul.f32 %v5657_v8, %v11382_v61  ;;  %v5513_v10 = vpop.f32.mrb[228].mxu1  ;;  %v6030_v47 = vadd.f32 1.0, %v7645_v18  ;;  %7656 = vtanh.f32 %v5909_v44  ;;  %v5783_v5 = vmul.f32 %v5719_v23, %v11372_v13 }
 0x747   : > { %v7649_v35 = vpop.eup %7648  ;;  %v11397_v56 = vadd.f32 %v5513_v10, %v11048_v21  ;;  %v5515_v54 = vpop.f32.mrb[229].mxu1  ;;  %v6031_v26 = vadd.f32 1.0, %v7647_v4  ;;  %7658 = vtanh.f32 %v5908_v15  ;;  %v5784_v34 = vmul.f32 %v5720_v58, %v11377_v50 }
 0x748   : > { %v7651_v20 = vpop.eup %7650  ;;  %v5785_v9 = vmul.f32 %v5721_v12, %v11382_v61  ;;  %v11402_v3 = vadd.f32 %v5515_v54, %v11051_v42  ;;  %v5517_v27 = vpop.f32.mrb[230].mxu1  ;;  %v6032_v48 = vadd.f32 1.0, %v7649_v35  ;;  %v6094_v33 = vmul.f32 %v6030_v47, %v5582_v38 }
 0x749   : > { %v11406_v60 = vadd.f32 %v5517_v27, %v11048_v21  ;;  %v5519_v45 = vpop.f32.mrb[231].mxu1  ;;  %v6033_v51 = vadd.f32 1.0, %v7651_v20  ;;  %v5658_v19 = vmul.f32 0.044715, %v11397_v56  ;;  %v6095_v30 = vmul.f32 %v6031_v26, %v5583_v62 }
 0x74a   : > { %v5659_v52 = vmul.f32 0.044715, %v11402_v3  ;;  %v11411_v32 = vadd.f32 %v5519_v45, %v11051_v42  ;;  %v6096_v63 = vmul.f32 %v6032_v48, %v5584_v43  ;;  %v5847_v28 = vadd.f32 %v5783_v5, %v11372_v13 }
 0x74b   : > { %v5660_v39 = vmul.f32 0.044715, %v11406_v60  ;;  %v6097_v59 = vmul.f32 %v6033_v51, %v5585_v36  ;;  %v5849_v38 = vadd.f32 %v5785_v9, %v11382_v61  ;;  %v5588_v40 = vmul.f32 0.5, %v11359_v22 }
 0x74c   : > { %v5723_v46 = vmul.f32 %v5659_v52, %v11402_v3  ;;  %v5661_v41 = vmul.f32 0.044715, %v11411_v32  ;;  %v6138_v7 = vpack.c.bf16 %v6096_v63, %v6094_v33  ;;  %v5911_v57 = vmul.f32 0.7978846, %v5847_v28 }
 0x74d   : > { %v6139_v37 = vpack.c.bf16 %v6097_v59, %v6095_v30  ;;  %v5722_v11 = vmul.f32 %v5658_v19, %v11397_v56  ;;  %v5724_v62 = vmul.f32 %v5660_v39, %v11406_v60  ;;  %v5913_v49 = vmul.f32 0.7978846, %v5849_v38 }
 0x74e   : > { %v7653_v43 = vpop.eup %7652  ;;  %v5725_v1 = vmul.f32 %v5661_v41, %v11411_v32  ;;  %v5787_v23 = vmul.f32 %v5723_v46, %v11402_v3  ;;  %7660 = vtanh.f32 %v5911_v57  ;;  %v5846_v44 = vadd.f32 %v5782_v2, %v11369_v14 }
 0x74f   : > { %v7655_v15 = vpop.eup %7654  ;;  %6394 = vmatprep.mubr.bf16.mxu0 %v6139_v37  ;;  %v6035_v8 = vadd.f32 1.0, %v7653_v43  ;;  %7662 = vtanh.f32 %v5913_v49  ;;  %v5848_v36 = vadd.f32 %v5784_v34, %v11377_v50  ;;  %v5786_v19 = vmul.f32 %v5722_v11, %v11397_v56 }
 0x750   : > { %v7657_v17 = vpop.eup %7656  ;;  %v5789_v22 = vmul.f32 %v5725_v1, %v11411_v32  ;;  %v5523_v18 = vpop.f32.mrb[232].mxu1  ;;  %6395 = vmatmul.mubr.bf16.gmra.mrb[216].mxu0 %v6138_v7  ;;  %v6034_v58 = vadd.f32 1.0, %v7655_v15  ;;  %v5910_v5 = vmul.f32 0.7978846, %v5846_v44  ;;  %v5788_v39 = vmul.f32 %v5724_v62, %v11406_v60 }
 0x751   : > { %v7659_v4 = vpop.eup %7658  ;;  %v11428_v12 = vadd.f32 %v5523_v18, %v11048_v21  ;;  %v5525_v10 = vpop.f32.mrb[233].mxu1  ;;  %v6037_v47 = vadd.f32 1.0, %v7657_v17  ;;  %v6099_v35 = vmul.f32 %v6035_v8, %v11390_v53  ;;  %v5912_v9 = vmul.f32 0.7978846, %v5848_v36 }
 0x752   : > { %v11432_v54 = vadd.f32 %v5525_v10, %v11051_v42  ;;  %v5527_v26 = vpop.f32.mrb[234].mxu1  ;;  %v6036_v20 = vadd.f32 1.0, %v7659_v4  ;;  %v6098_v2 = vmul.f32 %v6034_v58, %v5586_v6  ;;  %7664 = vtanh.f32 %v5910_v5 }
 0x753   : > { %v5662_v27 = vmul.f32 0.044715, %v11428_v12  ;;  %v11436_v48 = vadd.f32 %v5527_v26, %v11048_v21  ;;  %v5529_v34 = vpop.f32.mrb[235].mxu1  ;;  %v6101_v45 = vmul.f32 %v6037_v47, %v11393_v0  ;;  %7666 = vtanh.f32 %v5912_v9 }
 0x754   : > { %v5663_v51 = vmul.f32 0.044715, %v11432_v54  ;;  %v11441_v53 = vadd.f32 %v5529_v34, %v11051_v42  ;;  %v6100_v33 = vmul.f32 %v6036_v20, %v5588_v40  ;;  %v5851_v46 = vadd.f32 %v5787_v23, %v11402_v3 }
 0x755   : > { %v5664_v52 = vmul.f32 0.044715, %v11436_v48  ;;  %v6141_v63 = vpack.c.bf16 %v6101_v45, %v6099_v35  ;;  %v5726_v28 = vmul.f32 %v5662_v27, %v11428_v12  ;;  %v5853_v41 = vadd.f32 %v5789_v22, %v11411_v32 }
 0x756   : > { %v5727_v30 = vmul.f32 %v5663_v51, %v11432_v54  ;;  %v5665_v59 = vmul.f32 0.044715, %v11441_v53  ;;  %v6140_v0 = vpack.c.bf16 %v6100_v33, %v6098_v2  ;;  %v5590_v6 = vmul.f32 0.5, %v11369_v14 }
 0x757   : > { %6402 = vmatprep.mubr.bf16.mxu0 %v6141_v63  ;;  %v5728_v38 = vmul.f32 %v5664_v52, %v11436_v48  ;;  %v5591_v57 = vmul.f32 0.5, %v11372_v13  ;;  %v5915_v43 = vmul.f32 0.7978846, %v5851_v46  ;;  %v5917_v11 = vmul.f32 0.7978846, %v5853_v41 }
 0x758   : > { %v5791_v7 = vmul.f32 %v5727_v30, %v11432_v54  ;;  %v5729_v37 = vmul.f32 %v5665_v59, %v11441_v53  ;;  %6403 = vmatmul.mubr.bf16.gmra.mrb[220].mxu0 %v6140_v0  ;;  %v7661_v40 = vpop.eup %7660  ;;  %v5850_v62 = vadd.f32 %v5786_v19, %v11397_v56  ;;  %v5593_v15 = vmul.f32 0.5, %v11382_v61 }
 0x759   : > { %v7663_v1 = vpop.eup %7662  ;;  %v6039_v23 = vadd.f32 1.0, %v7661_v40  ;;  %v5852_v8 = vadd.f32 %v5788_v39, %v11406_v60  ;;  %v5790_v44 = vmul.f32 %v5726_v28, %v11428_v12  ;;  %7668 = vtanh.f32 %v5915_v43 }
 0x75a   : > { %v5793_v49 = vmul.f32 %v5729_v37, %v11441_v53  ;;  %v6041_v17 = vadd.f32 1.0, %v7663_v1  ;;  %v5914_v14 = vmul.f32 0.7978846, %v5850_v62  ;;  %v5792_v22 = vmul.f32 %v5728_v38, %v11436_v48 }
 0x75b   : > { %7670 = vtanh.f32 %v5917_v11  ;;  %v5916_v13 = vmul.f32 0.7978846, %v5852_v8  ;;  %v5855_v18 = vadd.f32 %v5791_v7, %v11432_v54  ;;  %v6103_v36 = vmul.f32 %v6039_v23, %v5591_v57 }
 0x75c   : > { %v7665_v58 = vpop.eup %7664  ;;  %v6105_v4 = vmul.f32 %v6041_v17, %v5593_v15  ;;  %7672 = vtanh.f32 %v5914_v14  ;;  %v5857_v61 = vadd.f32 %v5793_v49, %v11441_v53  ;;  %v5592_v47 = vmul.f32 0.5, %v11377_v50 }
 0x75d   : > { %v7667_v10 = vpop.eup %7666  ;;  %v6038_v35 = vadd.f32 1.0, %v7665_v58  ;;  %7674 = vtanh.f32 %v5916_v13  ;;  %v5919_v5 = vmul.f32 0.7978846, %v5855_v18  ;;  %v5854_v9 = vadd.f32 %v5790_v44, %v11428_v12 }
 0x75e   : > { %v6143_v26 = vpack.c.bf16 %v6105_v4, %v6103_v36  ;;  %v6040_v20 = vadd.f32 1.0, %v7667_v10  ;;  %v5921_v2 = vmul.f32 0.7978846, %v5857_v61  ;;  %v5856_v27 = vadd.f32 %v5792_v22, %v11436_v48 }
 0x75f   : > { %7676 = vtanh.f32 %v5919_v5  ;;  %v6102_v34 = vmul.f32 %v6038_v35, %v5590_v6  ;;  %v5918_v33 = vmul.f32 0.7978846, %v5854_v9  ;;  %v5595_v46 = vmul.f32 0.5, %v11402_v3 }
 0x760   : > { %6410 = vmatprep.mubr.bf16.mxu0 %v6143_v26  ;;  %v6104_v45 = vmul.f32 %v6040_v20, %v5592_v47  ;;  %7678 = vtanh.f32 %v5921_v2  ;;  %v5920_v52 = vmul.f32 0.7978846, %v5856_v27  ;;  %v5597_v37 = vmul.f32 0.5, %v11411_v32 }
 0x761   : > { %v5533_v51 = vpop.f32.mrb[236].mxu1  ;;  %7680 = vtanh.f32 %v5918_v33  ;;  %v5594_v6 = vmul.f32 0.5, %v11397_v56  ;;  %v5596_v3 = vmul.f32 0.5, %v11406_v60  ;;  %v5601_v58 = vmul.f32 0.5, %v11441_v53 }
 0x762   : > { %v11468_v19 = vadd.f32 %v5533_v51, %v11048_v21  ;;  %v5535_v50 = vpop.f32.mrb[237].mxu1  ;;  %v6142_v63 = vpack.c.bf16 %v6104_v45, %v6102_v34  ;;  %7682 = vtanh.f32 %v5920_v52  ;;  %v5598_v53 = vmul.f32 0.5, %v11428_v12 }
 0x763   : > { %v11471_v39 = vadd.f32 %v5535_v50, %v11051_v42  ;;  %v5537_v30 = vpop.f32.mrb[238].mxu1  ;;  %v7669_v41 = vpop.eup %7668 }
 0x764   : > { %v5666_v59 = vmul.f32 0.044715, %v11468_v19  ;;  %v11475_v0 = vadd.f32 %v5537_v30, %v11048_v21  ;;  %v5539_v28 = vpop.f32.mrb[239].mxu1  ;;  %6411 = vmatmul.mubr.bf16.gmra.mrb[224].mxu0 %v6142_v63  ;;  %v6043_v43 = vadd.f32 1.0, %v7669_v41  ;;  %v5600_v63 = vmul.f32 0.5, %v11436_v48 }
 0x765   : > { %v5667_v7 = vmul.f32 0.044715, %v11471_v39  ;;  %v11480_v38 = vadd.f32 %v5539_v28, %v11051_v42  ;;  %v7671_v40 = vpop.eup %7670  ;;  %v5599_v42 = vmul.f32 0.5, %v11432_v54  ;;  %v5603_v48 = vmul.f32 0.5, %v11471_v39 }
 0x766   : > { %v5730_v57 = vmul.f32 %v5666_v59, %v11468_v19  ;;  %v5668_v21 = vmul.f32 0.044715, %v11475_v0  ;;  %v7673_v11 = vpop.eup %7672  ;;  %v6045_v49 = vadd.f32 1.0, %v7671_v40  ;;  %v6107_v23 = vmul.f32 %v6043_v43, %v5595_v46 }
 0x767   : > { %v5731_v62 = vmul.f32 %v5667_v7, %v11471_v39  ;;  %v5669_v1 = vmul.f32 0.044715, %v11480_v38  ;;  %v7675_v15 = vpop.eup %7674  ;;  %v6042_v8 = vadd.f32 1.0, %v7673_v11  ;;  %v5605_v43 = vmul.f32 0.5, %v11480_v38 }
 0x768   : > { %v5794_v32 = vmul.f32 %v5730_v57, %v11468_v19  ;;  %v5732_v56 = vmul.f32 %v5668_v21, %v11475_v0  ;;  %v6109_v60 = vmul.f32 %v6045_v49, %v5597_v37  ;;  %v6044_v14 = vadd.f32 1.0, %v7675_v15 }
 0x769   : > { %v5795_v44 = vmul.f32 %v5731_v62, %v11471_v39  ;;  %v5733_v17 = vmul.f32 %v5669_v1, %v11480_v38  ;;  %v7677_v22 = vpop.eup %7676  ;;  %v6106_v18 = vmul.f32 %v6042_v8, %v5594_v6  ;;  %v5602_v11 = vmul.f32 0.5, %v11468_v19  ;;  %v11971_v8 = vld [vmem:[#allocation8_spill] sm:$0xff] }
 0x76a   : > { %v5796_v13 = vmul.f32 %v5732_v56, %v11475_v0  ;;  %v5858_v54 = vadd.f32 %v5794_v32, %v11468_v19  ;;  %v7679_v36 = vpop.eup %7678  ;;  %v6145_v61 = vpack.c.bf16 %v6109_v60, %v6107_v23  ;;  %v6108_v10 = vmul.f32 %v6044_v14, %v5596_v3  ;;  %v7726_v19 = vld [vmem:[%s11671_s5] sm:$0xff] }
 0x76b   : > { %v5797_v4 = vmul.f32 %v5733_v17, %v11480_v38  ;;  %v6047_v47 = vadd.f32 1.0, %v7677_v22  ;;  %v6049_v35 = vadd.f32 1.0, %v7679_v36  ;;  %v5859_v5 = vadd.f32 %v5795_v44, %v11471_v39  ;;  %v7681_v2 = vpop.eup %7680  ;;  %v11973_v36 = vld [vmem:[#allocation18_spill] sm:$0xff] }
 0x76c   : > { %v5860_v26 = vadd.f32 %v5796_v13, %v11475_v0  ;;  %v5922_v20 = vmul.f32 0.7978846, %v5858_v54  ;;  %6418 = vmatprep.mubr.bf16.mxu0 %v6145_v61  ;;  %v6144_v9 = vpack.c.bf16 %v6108_v10, %v6106_v18  ;;  %v7683_v45 = vpop.eup %7682  ;;  %v6046_v33 = vadd.f32 1.0, %v7681_v2  ;;  %v11972_v18 = vld [vmem:[#allocation16_spill] sm:$0xff]  ;;  %v11974_v2 = vld [vmem:[#allocation33_spill] sm:$0xff] }
 0x76d   : > { %v6111_v27 = vmul.f32 %v6047_v47, %v5599_v42  ;;  %v5861_v34 = vadd.f32 %v5797_v4, %v11480_v38  ;;  %v6113_v51 = vmul.f32 %v6049_v35, %v5601_v58  ;;  %v5923_v50 = vmul.f32 0.7978846, %v5859_v5 }
 0x76e   : > { %v5924_v52 = vmul.f32 0.7978846, %v5860_v26  ;;  %6419 = vmatmul.mubr.bf16.gmra.mrb[228].mxu0 %v6144_v9  ;;  %v6048_v30 = vadd.f32 1.0, %v7683_v45  ;;  %7684 = vtanh.f32 %v5922_v20  ;;  %v6110_v46 = vmul.f32 %v6046_v33, %v5598_v53  ;;  %v11975_v53 = vld [vmem:[#allocation23_spill] sm:$0xff] }
 0x76f   : > { %v5925_v59 = vmul.f32 0.7978846, %v5861_v34  ;;  %v6147_v28 = vpack.c.bf16 %v6113_v51, %v6111_v27  ;;  %7686 = vtanh.f32 %v5923_v50  ;;  %v5604_v62 = vmul.f32 0.5, %v11475_v0 }
 0x770   : > { %v6112_v41 = vmul.f32 %v6048_v30, %v5600_v63  ;;  %v6184_v44 = vsub.s32 7, %v11971_v8 }
 0x771   : > { %7688 = vtanh.f32 %v5925_v59  ;;  %6426 = vmatprep.mubr.bf16.mxu0 %v6147_v28  ;;  %v11976_v59 = vld [vmem:[#allocation11_spill] sm:$0xff] }
 0x772   : > { %7690 = vtanh.f32 %v5924_v52  ;;  %v6146_v12 = vpack.c.bf16 %v6112_v41, %v6110_v46  ;;  %v11512_v38 = vrot.slane %v7726_v19, %v6184_v44  ;;  %v11977_v41 = vld [vmem:[#allocation13_spill] sm:$0xff] }
 0x773   : > { %v11980_v44 = vld [vmem:[#allocation37_spill] sm:$0xff] }
 0x776   : > { %6427 = vmatmul.mubr.bf16.gmra.mrb[232].mxu0 %v6146_v12 }
 0x778   : > { %v7685_v7 = vpop.eup %7684 }
 0x779   : > { %v7687_v37 = vpop.eup %7686  ;;  %v6050_v57 = vadd.f32 1.0, %v7685_v7 }
 0x77a   : > { %v6051_v40 = vadd.f32 1.0, %v7687_v37 }
 0x77b   : > { %v7689_v6 = vpop.eup %7688  ;;  %v6114_v15 = vmul.f32 %v6050_v57, %v5602_v11 }
 0x77c   : > { %v7691_v21 = vpop.eup %7690  ;;  %v6053_v3 = vadd.f32 1.0, %v7689_v6  ;;  %v6115_v49 = vmul.f32 %v6051_v40, %v5603_v48 }
 0x77d   : > { %v6052_v1 = vadd.f32 1.0, %v7691_v21 }
 0x77e   : > { %v6117_v42 = vmul.f32 %v6053_v3, %v5605_v43  ;;  %v11978_v43 = vld [vmem:[#allocation15_spill] sm:$0xff] }
 0x77f   : > { %v6116_v32 = vmul.f32 %v6052_v1, %v5604_v62  ;;  %v11979_v62 = vld [vmem:[#allocation19_spill] sm:$0xff] }
 0x780   : > { %v6149_v56 = vpack.c.bf16 %v6117_v42, %v6115_v49 }
 0x781   : > { %v6148_v23 = vpack.c.bf16 %v6116_v32, %v6114_v15 }
 0x782   : > { %6434 = vmatprep.mubr.bf16.mxu0 %v6149_v56 }
 0x783   : > { %6435 = vmatmul.mubr.bf16.gmra.mrb[236].mxu0 %v6148_v23 }
 0x78b   : > { %v6915_v39 = vpop.f32.mrb[176].mxu0 }
 0x78c   : > { %v6916_v0 = vpop.f32.mrb[177].mxu0 }
 0x78d   : > { %v6917_v17 = vadd.f32 %v6916_v0, %v6915_v39  ;;  %v6918_v60 = vpop.f32.mrb[178].mxu0  ;;  %v11981_v0 = vld [vmem:[#allocation38_spill] sm:$0xff] }
 0x78e   : > { %v6919_v14 = vpop.f32.mrb[179].mxu0 }
 0x78f   : > { %v6317_v22 = vadd.f32 %v6917_v17, %v11512_v38  ;;  %v6920_v13 = vadd.f32 %v6919_v14, %v6918_v60 }
 0x791   : > { %v6443_v58 = vadd.f32 %v6317_v22, %v11972_v18  ;;  %v6320_v54 = vadd.f32 %v6920_v13, %v11512_v38 }
 0x793   : > { %6475 = vst [vmem:[%s11519_s23] sm:$0xff] %v6443_v58  ;;  %v6444_v4 = vadd.f32 %v6320_v54, %v11973_v36  ;;  %v6921_v61 = vpop.f32.mrb[180].mxu0  ;;  %v11982_v36 = vld [vmem:[#allocation25_spill] sm:$0xff] }
 0x794   : > { %v6922_v10 = vpop.f32.mrb[181].mxu0 }
 0x795   : > { %6476 = vst [vmem:[%s11519_s23 + $0x8] sm:$0xff] %v6444_v4  ;;  %v6923_v47 = vadd.f32 %v6922_v10, %v6921_v61  ;;  %v6924_v35 = vpop.f32.mrb[182].mxu0  ;;  %v11983_v10 = vld [vmem:[#allocation36_spill] sm:$0xff] }
 0x796   : > { %v6925_v5 = vpop.f32.mrb[183].mxu0 }
 0x797   : > { %v6325_v26 = vadd.f32 %v6923_v47, %v11512_v38  ;;  %v6926_v20 = vadd.f32 %v6925_v5, %v6924_v35 }
 0x799   : > { %v6445_v9 = vadd.f32 %v6325_v26, %v11974_v2  ;;  %v6328_v27 = vadd.f32 %v6926_v20, %v11512_v38 }
 0x79b   : > { %6477 = vst [vmem:[%s11519_s23 + $0x10] sm:$0xff] %v6445_v9  ;;  %v6446_v34 = vadd.f32 %v6328_v27, %v11975_v53  ;;  %v11984_v53 = vld [vmem:[#allocation39_spill] sm:$0xff] }
 0x79d   : > { %6478 = vst [vmem:[%s11519_s23 + $0x18] sm:$0xff] %v6446_v34 }
 0x79f   : > { %v6927_v45 = vpop.f32.mrb[184].mxu0 }
 0x7a0   : > { %v6928_v51 = vpop.f32.mrb[185].mxu0 }
 0x7a1   : > { %v6929_v33 = vadd.f32 %v6928_v51, %v6927_v45  ;;  %v6930_v50 = vpop.f32.mrb[186].mxu0  ;;  %v11985_v51 = vld [vmem:[#allocation40_spill] sm:$0xff] }
 0x7a2   : > { %v6931_v52 = vpop.f32.mrb[187].mxu0 }
 0x7a3   : > { %v6333_v63 = vadd.f32 %v6929_v33, %v11512_v38  ;;  %v6932_v30 = vadd.f32 %v6931_v52, %v6930_v50 }
 0x7a5   : > { %v6447_v28 = vadd.f32 %v6333_v63, %v11976_v59  ;;  %v6336_v46 = vadd.f32 %v6932_v30, %v11512_v38 }
 0x7a7   : > { %6479 = vst [vmem:[%s11519_s23 + $0x20] sm:$0xff] %v6447_v28  ;;  %v6448_v12 = vadd.f32 %v6336_v46, %v11977_v41  ;;  %v11986_v41 = vld [vmem:[#allocation35_spill] sm:$0xff] }
 0x7a9   : > { %6480 = vst [vmem:[%s11519_s23 + $0x28] sm:$0xff] %v6448_v12 }
 0x7ad   : > { %v6933_v7 = vpop.f32.mrb[188].mxu0 }
 0x7ae   : > { %v6934_v37 = vpop.f32.mrb[189].mxu0 }
 0x7af   : > { %v6935_v6 = vadd.f32 %v6934_v37, %v6933_v7  ;;  %v6936_v40 = vpop.f32.mrb[190].mxu0  ;;  %v11987_v37 = vld [vmem:[#allocation34_spill] sm:$0xff] }
 0x7b0   : > { %v6937_v57 = vpop.f32.mrb[191].mxu0 }
 0x7b1   : > { %v6341_v21 = vadd.f32 %v6935_v6, %v11512_v38  ;;  %v6938_v48 = vadd.f32 %v6937_v57, %v6936_v40 }
 0x7b3   : > { %v6449_v3 = vadd.f32 %v6341_v21, %v11978_v43  ;;  %v6344_v11 = vadd.f32 %v6938_v48, %v11512_v38 }
 0x7b5   : > { %6481 = vst [vmem:[%s11519_s23 + $0x30] sm:$0xff] %v6449_v3  ;;  %v6450_v1 = vadd.f32 %v6344_v11, %v11979_v62  ;;  %v6939_v49 = vpop.f32.mrb[192].mxu0  ;;  %v11988_v62 = vld [vmem:[#allocation30_spill] sm:$0xff] }
 0x7b6   : > { %v6940_v42 = vpop.f32.mrb[193].mxu0 }
 0x7b7   : > { %6482 = vst [vmem:[%s11519_s23 + $0x38] sm:$0xff] %v6450_v1  ;;  %v6941_v15 = vadd.f32 %v6940_v42, %v6939_v49  ;;  %v6942_v32 = vpop.f32.mrb[194].mxu0  ;;  %v11989_v42 = vld [vmem:[#allocation29_spill] sm:$0xff] }
 0x7b8   : > { %v6943_v56 = vpop.f32.mrb[195].mxu0 }
 0x7b9   : > { %v6349_v23 = vadd.f32 %v6941_v15, %v11512_v38  ;;  %v6944_v8 = vadd.f32 %v6943_v56, %v6942_v32 }
 0x7bb   : > { %v6451_v39 = vadd.f32 %v6349_v23, %v11980_v44  ;;  %v6352_v19 = vadd.f32 %v6944_v8, %v11512_v38 }
 0x7bd   : > { %6483 = vst [vmem:[%s11519_s23 + $0x40] sm:$0xff] %v6451_v39  ;;  %v6452_v17 = vadd.f32 %v6352_v19, %v11981_v0  ;;  %v6945_v60 = vpop.f32.mrb[196].mxu0  ;;  %v11990_v0 = vld [vmem:[#allocation28_spill] sm:$0xff] }
 0x7be   : > { %v6946_v14 = vpop.f32.mrb[197].mxu0 }
 0x7bf   : > { %6484 = vst [vmem:[%s11519_s23 + $0x48] sm:$0xff] %v6452_v17  ;;  %v6947_v22 = vadd.f32 %v6946_v14, %v6945_v60  ;;  %v6948_v13 = vpop.f32.mrb[198].mxu0  ;;  %v11991_v14 = vld [vmem:[#allocation20_spill] sm:$0xff] }
 0x7c0   : > { %v6949_v18 = vpop.f32.mrb[199].mxu0 }
 0x7c1   : > { %v6357_v58 = vadd.f32 %v6947_v22, %v11512_v38  ;;  %v6950_v54 = vadd.f32 %v6949_v18, %v6948_v13 }
 0x7c3   : > { %v6453_v4 = vadd.f32 %v6357_v58, %v11982_v36  ;;  %v6360_v61 = vadd.f32 %v6950_v54, %v11512_v38 }
 0x7c5   : > { %6485 = vst [vmem:[%s11519_s23 + $0x50] sm:$0xff] %v6453_v4  ;;  %v6454_v47 = vadd.f32 %v6360_v61, %v11983_v10  ;;  %v11992_v10 = vld [vmem:[#allocation21_spill] sm:$0xff] }
 0x7c6   : > { %v6951_v35 = vpop.f32.mrb[200].mxu0 }
 0x7c7   : > { %v6952_v5 = vpop.f32.mrb[201].mxu0  ;;  %6486 = vst [vmem:[%s11519_s23 + $0x58] sm:$0xff] %v6454_v47 }
 0x7c8   : > { %v6953_v26 = vadd.f32 %v6952_v5, %v6951_v35  ;;  %v6954_v20 = vpop.f32.mrb[202].mxu0  ;;  %v11993_v5 = vld [vmem:[#allocation14_spill] sm:$0xff] }
 0x7c9   : > { %v6955_v2 = vpop.f32.mrb[203].mxu0 }
 0x7ca   : > { %v6365_v9 = vadd.f32 %v6953_v26, %v11512_v38  ;;  %v6956_v27 = vadd.f32 %v6955_v2, %v6954_v20 }
 0x7cc   : > { %v6455_v34 = vadd.f32 %v6365_v9, %v11984_v53  ;;  %v6368_v45 = vadd.f32 %v6956_v27, %v11512_v38 }
 0x7ce   : > { %6487 = vst [vmem:[%s11519_s23 + $0x60] sm:$0xff] %v6455_v34  ;;  %v6456_v33 = vadd.f32 %v6368_v45, %v11985_v51  ;;  %v11994_v51 = vld [vmem:[#allocation12_spill] sm:$0xff] }
 0x7d0   : > { %6488 = vst [vmem:[%s11519_s23 + $0x68] sm:$0xff] %v6456_v33 }
 0x7ef   : > { %v6957_v50 = vpop.f32.mrb[204].mxu0 }
 0x7f0   : > { %v6958_v52 = vpop.f32.mrb[205].mxu0 }
 0x7f1   : > { %v6959_v63 = vadd.f32 %v6958_v52, %v6957_v50  ;;  %v6960_v30 = vpop.f32.mrb[206].mxu0  ;;  %v11995_v52 = vld [vmem:[#allocation31_spill] sm:$0xff] }
 0x7f2   : > { %v6961_v59 = vpop.f32.mrb[207].mxu0 }
 0x7f3   : > { %v6373_v28 = vadd.f32 %v6959_v63, %v11512_v38  ;;  %v6962_v46 = vadd.f32 %v6961_v59, %v6960_v30 }
 0x7f5   : > { %v6457_v12 = vadd.f32 %v6373_v28, %v11986_v41  ;;  %v6376_v7 = vadd.f32 %v6962_v46, %v11512_v38 }
 0x7f7   : > { %6489 = vst [vmem:[%s11519_s23 + $0x70] sm:$0xff] %v6457_v12  ;;  %v6458_v6 = vadd.f32 %v6376_v7, %v11987_v37  ;;  %v6963_v40 = vpop.f32.mrb[208].mxu0 }
 0x7f8   : > { %v6964_v57 = vpop.f32.mrb[209].mxu0 }
 0x7f9   : > { %6490 = vst [vmem:[%s11519_s23 + $0x78] sm:$0xff] %v6458_v6  ;;  %v6965_v21 = vadd.f32 %v6964_v57, %v6963_v40  ;;  %v6966_v48 = vpop.f32.mrb[210].mxu0  ;;  %v11996_v40 = vld [vmem:[#allocation32_spill] sm:$0xff] }
 0x7fa   : > { %v6967_v43 = vpop.f32.mrb[211].mxu0 }
 0x7fb   : > { %v6381_v3 = vadd.f32 %v6965_v21, %v11512_v38  ;;  %v6968_v11 = vadd.f32 %v6967_v43, %v6966_v48 }
 0x7fd   : > { %v6459_v1 = vadd.f32 %v6381_v3, %v11988_v62  ;;  %v6384_v49 = vadd.f32 %v6968_v11, %v11512_v38 }
 0x7ff   : > { %6491 = vst [vmem:[%s11519_s23 + $0x80] sm:$0xff] %v6459_v1  ;;  %v6460_v15 = vadd.f32 %v6384_v49, %v11989_v42  ;;  %v6969_v32 = vpop.f32.mrb[212].mxu0  ;;  %v11997_v42 = vld [vmem:[#allocation22_spill] sm:$0xff] }
 0x800   : > { %v6970_v56 = vpop.f32.mrb[213].mxu0 }
 0x801   : > { %6492 = vst [vmem:[%s11519_s23 + $0x88] sm:$0xff] %v6460_v15  ;;  %v6971_v23 = vadd.f32 %v6970_v56, %v6969_v32  ;;  %v6972_v8 = vpop.f32.mrb[214].mxu0 }
 0x802   : > { %v6973_v44 = vpop.f32.mrb[215].mxu0 }
 0x803   : > { %v6389_v39 = vadd.f32 %v6971_v23, %v11512_v38  ;;  %v6974_v19 = vadd.f32 %v6973_v44, %v6972_v8 }
 0x805   : > { %v6461_v17 = vadd.f32 %v6389_v39, %v11990_v0  ;;  %v6392_v60 = vadd.f32 %v6974_v19, %v11512_v38 }
 0x807   : > { %6493 = vst [vmem:[%s11519_s23 + $0x90] sm:$0xff] %v6461_v17  ;;  %v6462_v22 = vadd.f32 %v6392_v60, %v11991_v14 }
 0x809   : > { %6494 = vst [vmem:[%s11519_s23 + $0x98] sm:$0xff] %v6462_v22 }
 0x823   : > { %v6975_v13 = vpop.f32.mrb[216].mxu0 }
 0x824   : > { %v6976_v18 = vpop.f32.mrb[217].mxu0 }
 0x825   : > { %v6977_v58 = vadd.f32 %v6976_v18, %v6975_v13  ;;  %v6978_v54 = vpop.f32.mrb[218].mxu0 }
 0x826   : > { %v6979_v36 = vpop.f32.mrb[219].mxu0 }
 0x827   : > { %v6397_v4 = vadd.f32 %v6977_v58, %v11512_v38  ;;  %v6980_v61 = vadd.f32 %v6979_v36, %v6978_v54 }
 0x829   : > { %v6463_v47 = vadd.f32 %v6397_v4, %v11992_v10  ;;  %v6400_v35 = vadd.f32 %v6980_v61, %v11512_v38 }
 0x82b   : > { %6495 = vst [vmem:[%s11519_s23 + $0xa0] sm:$0xff] %v6463_v47  ;;  %v6464_v26 = vadd.f32 %v6400_v35, %v11993_v5  ;;  %v6981_v20 = vpop.f32.mrb[220].mxu0 }
 0x82c   : > { %v6982_v2 = vpop.f32.mrb[221].mxu0 }
 0x82d   : > { %6496 = vst [vmem:[%s11519_s23 + $0xa8] sm:$0xff] %v6464_v26  ;;  %v6983_v9 = vadd.f32 %v6982_v2, %v6981_v20  ;;  %v6984_v27 = vpop.f32.mrb[222].mxu0 }
 0x82e   : > { %v6985_v53 = vpop.f32.mrb[223].mxu0 }
 0x82f   : > { %v6405_v34 = vadd.f32 %v6983_v9, %v11512_v38  ;;  %v6986_v45 = vadd.f32 %v6985_v53, %v6984_v27 }
 0x831   : > { %v6465_v33 = vadd.f32 %v6405_v34, %v11994_v51  ;;  %v6408_v50 = vadd.f32 %v6986_v45, %v11512_v38 }
 0x833   : > { %6497 = vst [vmem:[%s11519_s23 + $0xb0] sm:$0xff] %v6465_v33  ;;  %v6466_v63 = vadd.f32 %v6408_v50, %v11995_v52 }
 0x835   : > { %6498 = vst [vmem:[%s11519_s23 + $0xb8] sm:$0xff] %v6466_v63 }
 0x837   : > { %v6987_v30 = vpop.f32.mrb[224].mxu0 }
 0x838   : > { %v6988_v59 = vpop.f32.mrb[225].mxu0 }
 0x839   : > { %v6989_v28 = vadd.f32 %v6988_v59, %v6987_v30  ;;  %v6990_v46 = vpop.f32.mrb[226].mxu0 }
 0x83a   : > { %v6991_v41 = vpop.f32.mrb[227].mxu0 }
 0x83b   : > { %v6413_v12 = vadd.f32 %v6989_v28, %v11512_v38  ;;  %v6992_v7 = vadd.f32 %v6991_v41, %v6990_v46 }
 0x83d   : > { %v6467_v37 = vadd.f32 %v6413_v12, %v10571_v16  ;;  %v6416_v6 = vadd.f32 %v6992_v7, %v11512_v38 }
 0x83f   : > { %6499 = vst [vmem:[%s11519_s23 + $0xc0] sm:$0xff] %v6467_v37  ;;  %v6468_v57 = vadd.f32 %v6416_v6, %v11996_v40 }
 0x841   : > { %6500 = vst [vmem:[%s11519_s23 + $0xc8] sm:$0xff] %v6468_v57  ;;  %v6993_v21 = vpop.f32.mrb[228].mxu0 }
 0x842   : > { %v6994_v48 = vpop.f32.mrb[229].mxu0 }
 0x843   : > { %v6995_v43 = vadd.f32 %v6994_v48, %v6993_v21  ;;  %v6996_v3 = vpop.f32.mrb[230].mxu0 }
 0x844   : > { %v6997_v11 = vpop.f32.mrb[231].mxu0 }
 0x845   : > { %v6421_v62 = vadd.f32 %v6995_v43, %v11512_v38  ;;  %v6998_v1 = vadd.f32 %v6997_v11, %v6996_v3 }
 0x847   : > { %v6469_v49 = vadd.f32 %v6421_v62, %v10593_v55  ;;  %v6424_v16 = vadd.f32 %v6998_v1, %v11512_v38 }
 0x849   : > { %6501 = vst [vmem:[%s11519_s23 + $0xd0] sm:$0xff] %v6469_v49  ;;  %v6470_v15 = vadd.f32 %v6424_v16, %v11997_v42  ;;  %v6999_v32 = vpop.f32.mrb[232].mxu0 }
 0x84a   : > { %v7000_v56 = vpop.f32.mrb[233].mxu0 }
 0x84b   : > { %6502 = vst [vmem:[%s11519_s23 + $0xd8] sm:$0xff] %v6470_v15  ;;  %v7001_v23 = vadd.f32 %v7000_v56, %v6999_v32  ;;  %v7002_v8 = vpop.f32.mrb[234].mxu0 }
 0x84c   : > { %v7003_v44 = vpop.f32.mrb[235].mxu0 }
 0x84d   : > { %v6429_v39 = vadd.f32 %v7001_v23, %v11512_v38  ;;  %v7004_v19 = vadd.f32 %v7003_v44, %v7002_v8 }
 0x84f   : > { %v6471_v0 = vadd.f32 %v6429_v39, %v10643_v29  ;;  %v6432_v55 = vadd.f32 %v7004_v19, %v11512_v38 }
 0x851   : > { %6503 = vst [vmem:[%s11519_s23 + $0xe0] sm:$0xff] %v6471_v0  ;;  %v6472_v17 = vadd.f32 %v6432_v55, %v10650_v31 }
 0x853   : > { %6504 = vst [vmem:[%s11519_s23 + $0xe8] sm:$0xff] %v6472_v17 }
 0x856   : > { %v7005_v60 = vpop.f32.mrb[236].mxu0 }
 0x857   : > { %v7006_v14 = vpop.f32.mrb[237].mxu0 }
 0x858   : > { %v7007_v22 = vadd.f32 %v7006_v14, %v7005_v60  ;;  %v7008_v13 = vpop.f32.mrb[238].mxu0 }
 0x859   : > { %v7009_v18 = vpop.f32.mrb[239].mxu0 }
 0x85a   : > { %v6437_v58 = vadd.f32 %v7007_v22, %v11512_v38  ;;  %v7010_v54 = vadd.f32 %v7009_v18, %v7008_v13 }
 0x85c   : > { %v6473_v29 = vadd.f32 %v6437_v58, %v10688_v25  ;;  %v6440_v36 = vadd.f32 %v7010_v54, %v11512_v38 }
 0x85e   : > { %6505 = vst [vmem:[%s11519_s23 + $0xf0] sm:$0xff] %v6473_v29  ;;  %v6474_v31 = vadd.f32 %v6440_v36, %v10704_v24 }
 0x860   : > { %6506 = vst [vmem:[%s11519_s23 + $0xf8] sm:$0xff] %v6474_v31 }
 0x861   : > { %7768 = shalt.err (!%p7765_p7)
}
 0x862   : > { %s7769_s22 = scalar_lea.hbm %s11616_s16, 4096  ;;  %s7773_s24 = scalar_lea.hbm %s11675_s9, 8192 }
 0x863   : > { %p7770_p8 = scmp.ne.s32.totalorder %s11616_s16, %s7769_s22  ;;  %p7774_p1 = scmp.lt.u32.totalorder %s11616_s16, %s11675_s9 }
 0x864   : > { %p7775_p0 = scmp.lt.u32.totalorder %s7773_s24, %s7769_s22  ;;  %p7777_p6 = scmp.lt.u32.totalorder %s7769_s22, %s11616_s16 }
 0x865   : > { %p7771_p11 = pnand %p7770_p8, %p11998_p9 }
 0x866   : > { %p7776_p5 = por %p7775_p0, %p7774_p1 }
 0x867   : > { %p7772_p13 = pneg %p7771_p11 }
 0x868   : > { %p7778_p10 = por %p7777_p6, %p7776_p5 }
 0x86a   : > { %p7779_p12 = pnand %p7778_p10, %p7772_p13 }
 0x86c   : > { %7782 = shalt.err (!%p7779_p12)
}
 0x86d   : > { %s7829_s21 = smov 128   ;;  %s7830_s17 = smov 8  }
 0x86e   : > { %7079 = dma.vmem_to_hbm [thread:$0]  (%p11998_p9), %s11618_s27, 4096, %s11616_s16, %s11625_s13, %s7829_s21, %s7829_s21, %s7830_s17  }
 0x86f PF: > { %p7091_p2 = scmp.ge.s32.totalorder %s7821_s12, 2  ;;  %s6536_s25 = sand.u32 1, %s7809_s30  }
 0x870   : > { %p11999_p3 = scmp.ne.s32.totalorder %s11739_s20, 0  ;;  %s6537_s26 = scalar_lea.sflag [#allocation4], %s6536_s25 }
 0x872   : > { %p7086_p4 = pnand %p7091_p2, %p11999_p3 }
 0x874   : > { %7804 = dma.done.wait (!%p7086_p4), %s6537_s26, 4096  }
 0x875   : > { %7806 = vsyncadd (!%p7086_p4), %s6537_s26, 4294963200  ;;  %p20_p7 = scmp.ge.s32.totalorder %s7906_s15, 4   ;;  %s12000_s30 = smov %s7813_s10 }
 0x876   : > { %s12001_s10 = smov %s7817_s11  ;;  %s12002_s11 = smov %s7917_s18 }
 0x877   : > { %s12003_s12 = smov %s7906_s15  ;;  %22 = sbr.rel (!%p20_p7) target bundleno = 4 (0x4), region = 96 }
 0x87e   :  { %6542 = vsyncpa [#allocation3], 1 }
 0x87f   :  { %6544 = vsyncpa [#allocation3 + $0x1], 1 }
 0x880   :  { %6545 = vsyncpa [#allocation4], 1 }
 0x881   :  { %6547 = vsyncpa [#allocation4 + $0x1], 1 }

</bundles_post_ra>
